<compile_context>
chip_gen: v7x
topology: tpu7x:2x2x1
jax: 0.10.0
libtpu: 0.0.40
codegen_flags: <defaults>
</compile_context>

<pallas_src>
import functools

import jax
import jax.numpy as jnp
from jax.experimental import pallas as pl
from jax.experimental.pallas import tpu as pltpu

_TAPS = 7            # largest spatial kernel (7x7); 3x3 and 5x5 embed inside it
_HALO = _TAPS // 2   # 3


def _round_up(x, m):
    return (x + m - 1) // m * m


def _gc_kernel(x_ref, sp_ref, mask_ref, pww_ref, pwb_ref, wcat_ref, bcat_ref,
               o_ref, c_ref, *, F3, pad_w, L, slope=0.01):
    """One image per grid step.

    x_ref   : (1, Cin, P)   zero-padded, flattened spatial input
    sp_ref  : (1, K,   P)   zero-padded, flattened spectral input
    mask_ref: (1, P)        1.0 on interior pixels, 0.0 on padding
    pww_ref : (3F, K)       fused band-mixer weights (z3|z5|z7 rows)
    pwb_ref : (3F, 1)       fused band-mixer bias
    wcat_ref: (49, 6F, 3F+Cin) per-tap block weights (rows: spat3|5|7|spec3|5|7,
                               cols: z3|z5|z7|x)
    bcat_ref: (6F, 1)       per-branch conv bias in final channel order
    o_ref   : (1, 6F, L)    channel-major output slab (padded-flat positions)
    c_ref   : (3F+Cin, P)   VMEM scratch: combined [z | x] feature map
    """
    # 1) Fused band mixing: z (3F, P) = pww @ sp.  Bias only on the interior so
    #    the halo of z stays exactly zero ('same' zero padding of Conv3d stage 2).
    z = jnp.dot(pww_ref[...], sp_ref[0], preferred_element_type=jnp.float32)
    z = (z + pwb_ref[...]) * mask_ref[...]

    # 2) Combined feature scratch [z3|z5|z7 | x]; both stores sublane-aligned
    #    (row offsets 0 and 3F=24).  Fully overwritten every step -> no zeroing.
    c_ref[:F3, :] = z
    c_ref[F3:, :] = x_ref[0]

    # 3) 49 taps, ONE fused (6F, 3F+Cin) x (3F+Cin, L) dot per tap.  Each tap's
    #    operand is a pure lane-offset slice of the flattened padded buffer
    #    (output position i reads input position i + kh*pad_w + kw).
    C6 = o_ref.shape[1]
    acc = jnp.zeros((C6, L), jnp.float32)
    for kh in range(_TAPS):
        for kw in range(_TAPS):
            t = kh * _TAPS + kw
            d = kh * pad_w + kw
            acc = acc + jnp.dot(wcat_ref[t], c_ref[:, d:d + L],
                                preferred_element_type=jnp.float32)

    # 4) Epilogue: bias + LeakyReLU (== F.leaky_relu after the channel concat).
    acc = acc + bcat_ref[...]
    acc = jnp.where(acc >= 0, acc, slope * acc)
    o_ref[0] = acc.astype(o_ref.dtype)


def init_params(key, input_channel, feature_channel, K):
    """Deterministic synthetic weights (PyTorch-style uniform(-1/sqrt(fan_in)))."""
    params = {}

    def uinit(k, shape, fan_in):
        bound = float(fan_in) ** -0.5
        return jax.random.uniform(k, shape, jnp.float32, -bound, bound)

    keys = jax.random.split(key, 18)
    i = 0
    for ks in (3, 5, 7):
        fan = input_channel * ks * ks
        params[f'spat{ks}_w'] = uinit(keys[i], (ks, ks, input_channel, feature_channel), fan); i += 1
        params[f'spat{ks}_b'] = uinit(keys[i], (feature_channel,), fan); i += 1
        # Conv3d(1, F, (K,1,1)) == linear map over the K spectral bands.
        params[f'spec{ks}_pw_w'] = uinit(keys[i], (K, feature_channel), K); i += 1
        params[f'spec{ks}_pw_b'] = uinit(keys[i], (feature_channel,), K); i += 1
        fan2 = feature_channel * ks * ks
        params[f'spec{ks}_w'] = uinit(keys[i], (ks, ks, feature_channel, feature_channel), fan2); i += 1
        params[f'spec{ks}_b'] = uinit(keys[i], (feature_channel,), fan2); i += 1
    return params


def _pack_params(params, Cin, F, K):
    """Embed 3x3/5x5/7x7 weights in a 7x7 tap grid and fuse spat+spec per tap.

    Per-tap weight block layout (rows = output channels in final order,
    cols = contraction over the combined [z3|z5|z7|x] feature map):
        rows [bi*F,(bi+1)*F)      <- spatial branch bi, reads x cols [3F, 3F+Cin)
        rows [3F+bi*F, 3F+(bi+1)F)<- spectral branch bi, reads z cols [bi*F,(bi+1)F)
    """
    F3, C6, CC = 3 * F, 6 * F, 3 * F + Cin
    offsets = {3: 2, 5: 1, 7: 0}   # tap offset of a kxk kernel inside the 7x7 grid
    w = jnp.zeros((_TAPS, _TAPS, C6, CC), jnp.float32)
    for bi, ks in enumerate((3, 5, 7)):
        o = offsets[ks]
        sl = slice(o, o + ks)
        ws = jnp.transpose(params[f'spat{ks}_w'], (0, 1, 3, 2))   # (ks,ks,F,Cin)
        w = w.at[sl, sl, bi * F:(bi + 1) * F, F3:].set(ws)
        wz = jnp.transpose(params[f'spec{ks}_w'], (0, 1, 3, 2))   # (ks,ks,F,F)
        w = w.at[sl, sl, F3 + bi * F:F3 + (bi + 1) * F, bi * F:(bi + 1) * F].set(wz)
    wcat = w.reshape(_TAPS * _TAPS, C6, CC)
    bcat = jnp.concatenate([params[f'spat{k}_b'] for k in (3, 5, 7)]
                           + [params[f'spec{k}_b'] for k in (3, 5, 7)]).reshape(C6, 1)
    pww = jnp.concatenate([params[f'spec{k}_pw_w'].T for k in (3, 5, 7)], axis=0)  # (3F, K)
    pwb = jnp.concatenate([params[f'spec{k}_pw_b'] for k in (3, 5, 7)]).reshape(F3, 1)
    return wcat, bcat, pww, pwb


@jax.jit
def geometrical_characteristics(spatial_nchw, spectral_n1khw, params):
    """Forward pass. spatial: (N,Cin,H,W), spectral: (N,1,K,H,W) -> (N,6F,H,W)."""
    N, Cin, H, W = spatial_nchw.shape
    K = spectral_n1khw.shape[2]
    F = params['spat3_b'].shape[0]
    F3, C6 = 3 * F, 6 * F

    pad_h, pad_w = H + 2 * _HALO, W + 2 * _HALO
    PHW = pad_h * pad_w
    # Lane-dense output length (covers all H*pad_w "rows incl. horizontal halo"
    # positions) and flattened padded input length incl. the max tap offset.
    L = _round_up(H * pad_w, 128)
    P = _round_up((_TAPS - 1) * pad_w + (_TAPS - 1) + L, 128)

    def pad_flat(a):   # (N, C, H, W) -> (N, C, P), zero 'same' halo + zero tail
        a = jnp.pad(a, ((0, 0), (0, 0), (_HALO, _HALO), (_HALO, _HALO)))
        a = a.reshape(a.shape[0], a.shape[1], PHW)
        return jnp.pad(a, ((0, 0), (0, 0), (0, P - PHW)))

    x_pad = pad_flat(spatial_nchw)                                  # (N, Cin, P)
    sp_pad = pad_flat(spectral_n1khw[:, 0])                         # (N, K,   P)
    mask = pad_flat(jnp.ones((1, 1, H, W), jnp.float32))[0]         # (1, P)

    wcat, bcat, pww, pwb = _pack_params(params, Cin, F, K)

    kernel = functools.partial(_gc_kernel, F3=F3, pad_w=pad_w, L=L)

    out = pl.pallas_call(
        kernel,
        out_shape=jax.ShapeDtypeStruct((N, C6, L), jnp.float32),
        grid_spec=pltpu.PrefetchScalarGridSpec(
            num_scalar_prefetch=0,
            grid=(N,),
            in_specs=[
                pl.BlockSpec((1, Cin, P), lambda n: (n, 0, 0)),
                pl.BlockSpec((1, K, P), lambda n: (n, 0, 0)),
                pl.BlockSpec((1, P), lambda n: (0, 0)),
                pl.BlockSpec((F3, K), lambda n: (0, 0)),
                pl.BlockSpec((F3, 1), lambda n: (0, 0)),
                pl.BlockSpec((_TAPS * _TAPS, C6, F3 + Cin), lambda n: (0, 0, 0)),
                pl.BlockSpec((C6, 1), lambda n: (0, 0)),
            ],
            out_specs=pl.BlockSpec((1, C6, L), lambda n: (n, 0, 0)),
            scratch_shapes=[pltpu.VMEM((F3 + Cin, P), jnp.float32)],
        ),
        compiler_params=pltpu.CompilerParams(
            dimension_semantics=("parallel",),
            vmem_limit_bytes=32 * 1024 * 1024),
    )(x_pad, sp_pad, mask, pww, pwb, wcat, bcat)

    # Cheap strided extraction (channel-major already, so no NCHW transpose):
    # flattened position i = h*pad_w + w  ->  (h, w).
    out = out[:, :, :H * pad_w].reshape(N, C6, H, pad_w)[:, :, :, :W]
    return out


# -------------------- pure-JAX reference for validation --------------------
def _conv_ref(x_nhwc, w, b):
    y = jax.lax.conv_general_dilated(
        x_nhwc, w, (1, 1), 'SAME',
        dimension_numbers=('NHWC', 'HWIO', 'NHWC'),
        precision=jax.lax.Precision.HIGHEST)
    return y + b


def reference_forward(spatial, spectral, params):
    lrelu = lambda v: jnp.where(v >= 0, v, 0.01 * v)
    x = jnp.transpose(spatial, (0, 2, 3, 1))
    sp = jnp.transpose(spectral[:, 0], (0, 2, 3, 1))
    outs = []
    for ks in (3, 5, 7):
        outs.append(lrelu(_conv_ref(x, params[f'spat{ks}_w'], params[f'spat{ks}_b'])))
    for ks in (3, 5, 7):
        z = jnp.einsum('nhwk,kf->nhwf', sp, params[f'spec{ks}_pw_w'],
                       precision=jax.lax.Precision.HIGHEST) + params[f'spec{ks}_pw_b']
        outs.append(lrelu(_conv_ref(z, params[f'spec{ks}_w'], params[f'spec{ks}_b'])))
    out = jnp.concatenate(outs, axis=-1)
    return jnp.transpose(out, (0, 3, 1, 2))


if __name__ == "__main__":
    key = jax.random.PRNGKey(0)
    k_spat, k_spec, k_par = jax.random.split(key, 3)

    N, Cin, F, K, H, W = 2, 4, 8, 8, 16, 16
    spatial = jax.random.normal(k_spat, (N, Cin, H, W), jnp.float32)
    spectral = jax.random.normal(k_spec, (N, 1, K, H, W), jnp.float32)
    params = init_params(k_par, Cin, F, K)

    out = geometrical_characteristics(spatial, spectral, params)
    out = jax.block_until_ready(out)
    assert out.shape == (N, 6 * F, H, W), out.shape

    # f32 end-to-end (kernel uses the multi-pass f32 MXU path, reference uses
    # Precision.HIGHEST), so a tight tolerance is appropriate.
    ref = reference_forward(spatial, spectral, params)
    err = float(jnp.max(jnp.abs(out - ref)))
    assert jnp.allclose(out, ref, rtol=1e-3, atol=1e-3), err

    print("KERNEL_OK")
</pallas_src>

<mosaic_0001>
module attributes {stable_mosaic.version = 11 : i64} {
  func.func @_gc_kernel(%arg0: i32, %arg1: memref<1x4x640xf32, #tpu.memory_space<vmem>>, %arg2: memref<1x8x640xf32, #tpu.memory_space<vmem>>, %arg3: memref<1x640xf32, #tpu.memory_space<vmem>>, %arg4: memref<24x8xf32, #tpu.memory_space<vmem>>, %arg5: memref<24x1xf32, #tpu.memory_space<vmem>>, %arg6: memref<49x48x28xf32, #tpu.memory_space<vmem>>, %arg7: memref<48x1xf32, #tpu.memory_space<vmem>>, %arg8: memref<1x48x384xf32, #tpu.memory_space<vmem>>, %arg9: memref<28x640xf32, #tpu.memory_space<vmem>>) attributes {dimension_semantics = [#tpu.dimension_semantics<parallel>], iteration_bounds = array<i64: 2>, scalar_prefetch = 0 : i64, scratch_operands = 1 : i64, tpu.core_type = #tpu.core_type<tc>, window_params = [{transform_indices = @transform_0, window_bounds = array<i64: 1, 4, 640>}, {transform_indices = @transform_1, window_bounds = array<i64: 1, 8, 640>}, {pipeline_mode = #tpu.pipeline_mode<synchronous>, transform_indices = @transform_2, window_bounds = array<i64: 1, 640>}, {pipeline_mode = #tpu.pipeline_mode<synchronous>, transform_indices = @transform_3, window_bounds = array<i64: 24, 8>}, {pipeline_mode = #tpu.pipeline_mode<synchronous>, transform_indices = @transform_4, window_bounds = array<i64: 24, 1>}, {pipeline_mode = #tpu.pipeline_mode<synchronous>, transform_indices = @transform_5, window_bounds = array<i64: 49, 48, 28>}, {pipeline_mode = #tpu.pipeline_mode<synchronous>, transform_indices = @transform_6, window_bounds = array<i64: 48, 1>}, {transform_indices = @transform_7, window_bounds = array<i64: 1, 48, 384>}]} {
    %c0 = arith.constant 0 : index
    %c0_0 = arith.constant 0 : index
    %0 = vector.load %arg4[%c0, %c0_0] : memref<24x8xf32, #tpu.memory_space<vmem>>, vector<24x8xf32>
    %c0_1 = arith.constant 0 : index
    %c0_2 = arith.constant 0 : index
    %c0_3 = arith.constant 0 : index
    %1 = vector.load %arg2[%c0_1, %c0_2, %c0_3] : memref<1x8x640xf32, #tpu.memory_space<vmem>>, vector<1x8x640xf32>
    %2 = vector.shape_cast %1 : vector<1x8x640xf32> to vector<8x640xf32>
    %cst = arith.constant dense<0.000000e+00> : vector<24x640xf32>
    %3 = tpu.matmul %0, %2, %cst {dimension_numbers = #tpu.dot_dimension_numbers<[1], [0], [0], [1], [0, 0, 1, 1], [], []>} : vector<24x8xf32>, vector<8x640xf32>, vector<24x640xf32> -> vector<24x640xf32>
    %c0_4 = arith.constant 0 : index
    %c0_5 = arith.constant 0 : index
    %4 = vector.load %arg5[%c0_4, %c0_5] : memref<24x1xf32, #tpu.memory_space<vmem>>, vector<24x1xf32>
    %5 = vector.broadcast %4 : vector<24x1xf32> to vector<24x640xf32>
    %6 = arith.addf %3, %5 : vector<24x640xf32>
    %c0_6 = arith.constant 0 : index
    %c0_7 = arith.constant 0 : index
    %7 = vector.load %arg3[%c0_6, %c0_7] : memref<1x640xf32, #tpu.memory_space<vmem>>, vector<1x640xf32>
    %8 = vector.broadcast %7 : vector<1x640xf32> to vector<24x640xf32>
    %9 = arith.mulf %6, %8 : vector<24x640xf32>
    %c0_8 = arith.constant 0 : index
    %c0_9 = arith.constant 0 : index
    %10 = vector.load %arg9[%c0_8, %c0_9] : memref<28x640xf32, #tpu.memory_space<vmem>>, vector<24x640xf32>
    tpu.vector_store %arg9[%c0_8, %c0_9], %9 {strides = array<i32>} : memref<28x640xf32, #tpu.memory_space<vmem>>, vector<24x640xf32>,
    %c0_10 = arith.constant 0 : index
    %c0_11 = arith.constant 0 : index
    %c0_12 = arith.constant 0 : index
    %11 = vector.load %arg1[%c0_10, %c0_11, %c0_12] : memref<1x4x640xf32, #tpu.memory_space<vmem>>, vector<1x4x640xf32>
    %12 = vector.shape_cast %11 : vector<1x4x640xf32> to vector<4x640xf32>
    %c24 = arith.constant 24 : index
    %c0_13 = arith.constant 0 : index
    %13 = vector.load %arg9[%c24, %c0_13] : memref<28x640xf32, #tpu.memory_space<vmem>>, vector<4x640xf32>
    tpu.vector_store %arg9[%c24, %c0_13], %12 {strides = array<i32>} : memref<28x640xf32, #tpu.memory_space<vmem>>, vector<4x640xf32>,
    %cst_14 = arith.constant 0.000000e+00 : f32
    %14 = vector.broadcast %cst_14 : f32 to vector<48x384xf32>
    %c0_15 = arith.constant 0 : index
    %c0_16 = arith.constant 0 : index
    %c0_17 = arith.constant 0 : index
    %15 = vector.load %arg6[%c0_15, %c0_16, %c0_17] : memref<49x48x28xf32, #tpu.memory_space<vmem>>, vector<1x48x28xf32>
    %16 = vector.shape_cast %15 : vector<1x48x28xf32> to vector<48x28xf32>
    %c0_18 = arith.constant 0 : index
    %c0_19 = arith.constant 0 : index
    %17 = vector.load %arg9[%c0_18, %c0_19] : memref<28x640xf32, #tpu.memory_space<vmem>>, vector<28x384xf32>
    %cst_20 = arith.constant dense<0.000000e+00> : vector<48x384xf32>
    %18 = tpu.matmul %16, %17, %cst_20 {dimension_numbers = #tpu.dot_dimension_numbers<[1], [0], [0], [1], [0, 0, 1, 1], [], []>} : vector<48x28xf32>, vector<28x384xf32>, vector<48x384xf32> -> vector<48x384xf32>
    %19 = arith.addf %14, %18 : vector<48x384xf32>
    %c1 = arith.constant 1 : index
    %c0_21 = arith.constant 0 : index
    %c0_22 = arith.constant 0 : index
    %20 = vector.load %arg6[%c1, %c0_21, %c0_22] : memref<49x48x28xf32, #tpu.memory_space<vmem>>, vector<1x48x28xf32>
    %21 = vector.shape_cast %20 : vector<1x48x28xf32> to vector<48x28xf32>
    %c0_23 = arith.constant 0 : index
    %c1_24 = arith.constant 1 : index
    %22 = vector.load %arg9[%c0_23, %c1_24] : memref<28x640xf32, #tpu.memory_space<vmem>>, vector<28x384xf32>
    %cst_25 = arith.constant dense<0.000000e+00> : vector<48x384xf32>
    %23 = tpu.matmul %21, %22, %cst_25 {dimension_numbers = #tpu.dot_dimension_numbers<[1], [0], [0], [1], [0, 0, 1, 1], [], []>} : vector<48x28xf32>, vector<28x384xf32>, vector<48x384xf32> -> vector<48x384xf32>
    %24 = arith.addf %19, %23 : vector<48x384xf32>
    %c2 = arith.constant 2 : index
    %c0_26 = arith.constant 0 : index
    %c0_27 = arith.constant 0 : index
    %25 = vector.load %arg6[%c2, %c0_26, %c0_27] : memref<49x48x28xf32, #tpu.memory_space<vmem>>, vector<1x48x28xf32>
    %26 = vector.shape_cast %25 : vector<1x48x28xf32> to vector<48x28xf32>
    %c0_28 = arith.constant 0 : index
    %c2_29 = arith.constant 2 : index
    %27 = vector.load %arg9[%c0_28, %c2_29] : memref<28x640xf32, #tpu.memory_space<vmem>>, vector<28x384xf32>
    %cst_30 = arith.constant dense<0.000000e+00> : vector<48x384xf32>
    %28 = tpu.matmul %26, %27, %cst_30 {dimension_numbers = #tpu.dot_dimension_numbers<[1], [0], [0], [1], [0, 0, 1, 1], [], []>} : vector<48x28xf32>, vector<28x384xf32>, vector<48x384xf32> -> vector<48x384xf32>
    %29 = arith.addf %24, %28 : vector<48x384xf32>
    %c3 = arith.constant 3 : index
    %c0_31 = arith.constant 0 : index
    %c0_32 = arith.constant 0 : index
    %30 = vector.load %arg6[%c3, %c0_31, %c0_32] : memref<49x48x28xf32, #tpu.memory_space<vmem>>, vector<1x48x28xf32>
    %31 = vector.shape_cast %30 : vector<1x48x28xf32> to vector<48x28xf32>
    %c0_33 = arith.constant 0 : index
    %c3_34 = arith.constant 3 : index
    %32 = vector.load %arg9[%c0_33, %c3_34] : memref<28x640xf32, #tpu.memory_space<vmem>>, vector<28x384xf32>
    %cst_35 = arith.constant dense<0.000000e+00> : vector<48x384xf32>
    %33 = tpu.matmul %31, %32, %cst_35 {dimension_numbers = #tpu.dot_dimension_numbers<[1], [0], [0], [1], [0, 0, 1, 1], [], []>} : vector<48x28xf32>, vector<28x384xf32>, vector<48x384xf32> -> vector<48x384xf32>
    %34 = arith.addf %29, %33 : vector<48x384xf32>
    %c4 = arith.constant 4 : index
    %c0_36 = arith.constant 0 : index
    %c0_37 = arith.constant 0 : index
    %35 = vector.load %arg6[%c4, %c0_36, %c0_37] : memref<49x48x28xf32, #tpu.memory_space<vmem>>, vector<1x48x28xf32>
    %36 = vector.shape_cast %35 : vector<1x48x28xf32> to vector<48x28xf32>
    %c0_38 = arith.constant 0 : index
    %c4_39 = arith.constant 4 : index
    %37 = vector.load %arg9[%c0_38, %c4_39] : memref<28x640xf32, #tpu.memory_space<vmem>>, vector<28x384xf32>
    %cst_40 = arith.constant dense<0.000000e+00> : vector<48x384xf32>
    %38 = tpu.matmul %36, %37, %cst_40 {dimension_numbers = #tpu.dot_dimension_numbers<[1], [0], [0], [1], [0, 0, 1, 1], [], []>} : vector<48x28xf32>, vector<28x384xf32>, vector<48x384xf32> -> vector<48x384xf32>
    %39 = arith.addf %34, %38 : vector<48x384xf32>
    %c5 = arith.constant 5 : index
    %c0_41 = arith.constant 0 : index
    %c0_42 = arith.constant 0 : index
    %40 = vector.load %arg6[%c5, %c0_41, %c0_42] : memref<49x48x28xf32, #tpu.memory_space<vmem>>, vector<1x48x28xf32>
    %41 = vector.shape_cast %40 : vector<1x48x28xf32> to vector<48x28xf32>
    %c0_43 = arith.constant 0 : index
    %c5_44 = arith.constant 5 : index
    %42 = vector.load %arg9[%c0_43, %c5_44] : memref<28x640xf32, #tpu.memory_space<vmem>>, vector<28x384xf32>
    %cst_45 = arith.constant dense<0.000000e+00> : vector<48x384xf32>
    %43 = tpu.matmul %41, %42, %cst_45 {dimension_numbers = #tpu.dot_dimension_numbers<[1], [0], [0], [1], [0, 0, 1, 1], [], []>} : vector<48x28xf32>, vector<28x384xf32>, vector<48x384xf32> -> vector<48x384xf32>
    %44 = arith.addf %39, %43 : vector<48x384xf32>
    %c6 = arith.constant 6 : index
    %c0_46 = arith.constant 0 : index
    %c0_47 = arith.constant 0 : index
    %45 = vector.load %arg6[%c6, %c0_46, %c0_47] : memref<49x48x28xf32, #tpu.memory_space<vmem>>, vector<1x48x28xf32>
    %46 = vector.shape_cast %45 : vector<1x48x28xf32> to vector<48x28xf32>
    %c0_48 = arith.constant 0 : index
    %c6_49 = arith.constant 6 : index
    %47 = vector.load %arg9[%c0_48, %c6_49] : memref<28x640xf32, #tpu.memory_space<vmem>>, vector<28x384xf32>
    %cst_50 = arith.constant dense<0.000000e+00> : vector<48x384xf32>
    %48 = tpu.matmul %46, %47, %cst_50 {dimension_numbers = #tpu.dot_dimension_numbers<[1], [0], [0], [1], [0, 0, 1, 1], [], []>} : vector<48x28xf32>, vector<28x384xf32>, vector<48x384xf32> -> vector<48x384xf32>
    %49 = arith.addf %44, %48 : vector<48x384xf32>
    %c7 = arith.constant 7 : index
    %c0_51 = arith.constant 0 : index
    %c0_52 = arith.constant 0 : index
    %50 = vector.load %arg6[%c7, %c0_51, %c0_52] : memref<49x48x28xf32, #tpu.memory_space<vmem>>, vector<1x48x28xf32>
    %51 = vector.shape_cast %50 : vector<1x48x28xf32> to vector<48x28xf32>
    %c0_53 = arith.constant 0 : index
    %c22 = arith.constant 22 : index
    %52 = vector.load %arg9[%c0_53, %c22] : memref<28x640xf32, #tpu.memory_space<vmem>>, vector<28x384xf32>
    %cst_54 = arith.constant dense<0.000000e+00> : vector<48x384xf32>
    %53 = tpu.matmul %51, %52, %cst_54 {dimension_numbers = #tpu.dot_dimension_numbers<[1], [0], [0], [1], [0, 0, 1, 1], [], []>} : vector<48x28xf32>, vector<28x384xf32>, vector<48x384xf32> -> vector<48x384xf32>
    %54 = arith.addf %49, %53 : vector<48x384xf32>
    %c8 = arith.constant 8 : index
    %c0_55 = arith.constant 0 : index
    %c0_56 = arith.constant 0 : index
    %55 = vector.load %arg6[%c8, %c0_55, %c0_56] : memref<49x48x28xf32, #tpu.memory_space<vmem>>, vector<1x48x28xf32>
    %56 = vector.shape_cast %55 : vector<1x48x28xf32> to vector<48x28xf32>
    %c0_57 = arith.constant 0 : index
    %c23 = arith.constant 23 : index
    %57 = vector.load %arg9[%c0_57, %c23] : memref<28x640xf32, #tpu.memory_space<vmem>>, vector<28x384xf32>
    %cst_58 = arith.constant dense<0.000000e+00> : vector<48x384xf32>
    %58 = tpu.matmul %56, %57, %cst_58 {dimension_numbers = #tpu.dot_dimension_numbers<[1], [0], [0], [1], [0, 0, 1, 1], [], []>} : vector<48x28xf32>, vector<28x384xf32>, vector<48x384xf32> -> vector<48x384xf32>
    %59 = arith.addf %54, %58 : vector<48x384xf32>
    %c9 = arith.constant 9 : index
    %c0_59 = arith.constant 0 : index
    %c0_60 = arith.constant 0 : index
    %60 = vector.load %arg6[%c9, %c0_59, %c0_60] : memref<49x48x28xf32, #tpu.memory_space<vmem>>, vector<1x48x28xf32>
    %61 = vector.shape_cast %60 : vector<1x48x28xf32> to vector<48x28xf32>
    %c0_61 = arith.constant 0 : index
    %c24_62 = arith.constant 24 : index
    %62 = vector.load %arg9[%c0_61, %c24_62] : memref<28x640xf32, #tpu.memory_space<vmem>>, vector<28x384xf32>
    %cst_63 = arith.constant dense<0.000000e+00> : vector<48x384xf32>
    %63 = tpu.matmul %61, %62, %cst_63 {dimension_numbers = #tpu.dot_dimension_numbers<[1], [0], [0], [1], [0, 0, 1, 1], [], []>} : vector<48x28xf32>, vector<28x384xf32>, vector<48x384xf32> -> vector<48x384xf32>
    %64 = arith.addf %59, %63 : vector<48x384xf32>
    %c10 = arith.constant 10 : index
    %c0_64 = arith.constant 0 : index
    %c0_65 = arith.constant 0 : index
    %65 = vector.load %arg6[%c10, %c0_64, %c0_65] : memref<49x48x28xf32, #tpu.memory_space<vmem>>, vector<1x48x28xf32>
    %66 = vector.shape_cast %65 : vector<1x48x28xf32> to vector<48x28xf32>
    %c0_66 = arith.constant 0 : index
    %c25 = arith.constant 25 : index
    %67 = vector.load %arg9[%c0_66, %c25] : memref<28x640xf32, #tpu.memory_space<vmem>>, vector<28x384xf32>
    %cst_67 = arith.constant dense<0.000000e+00> : vector<48x384xf32>
    %68 = tpu.matmul %66, %67, %cst_67 {dimension_numbers = #tpu.dot_dimension_numbers<[1], [0], [0], [1], [0, 0, 1, 1], [], []>} : vector<48x28xf32>, vector<28x384xf32>, vector<48x384xf32> -> vector<48x384xf32>
    %69 = arith.addf %64, %68 : vector<48x384xf32>
    %c11 = arith.constant 11 : index
    %c0_68 = arith.constant 0 : index
    %c0_69 = arith.constant 0 : index
    %70 = vector.load %arg6[%c11, %c0_68, %c0_69] : memref<49x48x28xf32, #tpu.memory_space<vmem>>, vector<1x48x28xf32>
    %71 = vector.shape_cast %70 : vector<1x48x28xf32> to vector<48x28xf32>
    %c0_70 = arith.constant 0 : index
    %c26 = arith.constant 26 : index
    %72 = vector.load %arg9[%c0_70, %c26] : memref<28x640xf32, #tpu.memory_space<vmem>>, vector<28x384xf32>
    %cst_71 = arith.constant dense<0.000000e+00> : vector<48x384xf32>
    %73 = tpu.matmul %71, %72, %cst_71 {dimension_numbers = #tpu.dot_dimension_numbers<[1], [0], [0], [1], [0, 0, 1, 1], [], []>} : vector<48x28xf32>, vector<28x384xf32>, vector<48x384xf32> -> vector<48x384xf32>
    %74 = arith.addf %69, %73 : vector<48x384xf32>
    %c12 = arith.constant 12 : index
    %c0_72 = arith.constant 0 : index
    %c0_73 = arith.constant 0 : index
    %75 = vector.load %arg6[%c12, %c0_72, %c0_73] : memref<49x48x28xf32, #tpu.memory_space<vmem>>, vector<1x48x28xf32>
    %76 = vector.shape_cast %75 : vector<1x48x28xf32> to vector<48x28xf32>
    %c0_74 = arith.constant 0 : index
    %c27 = arith.constant 27 : index
    %77 = vector.load %arg9[%c0_74, %c27] : memref<28x640xf32, #tpu.memory_space<vmem>>, vector<28x384xf32>
    %cst_75 = arith.constant dense<0.000000e+00> : vector<48x384xf32>
    %78 = tpu.matmul %76, %77, %cst_75 {dimension_numbers = #tpu.dot_dimension_numbers<[1], [0], [0], [1], [0, 0, 1, 1], [], []>} : vector<48x28xf32>, vector<28x384xf32>, vector<48x384xf32> -> vector<48x384xf32>
    %79 = arith.addf %74, %78 : vector<48x384xf32>
    %c13 = arith.constant 13 : index
    %c0_76 = arith.constant 0 : index
    %c0_77 = arith.constant 0 : index
    %80 = vector.load %arg6[%c13, %c0_76, %c0_77] : memref<49x48x28xf32, #tpu.memory_space<vmem>>, vector<1x48x28xf32>
    %81 = vector.shape_cast %80 : vector<1x48x28xf32> to vector<48x28xf32>
    %c0_78 = arith.constant 0 : index
    %c28 = arith.constant 28 : index
    %82 = vector.load %arg9[%c0_78, %c28] : memref<28x640xf32, #tpu.memory_space<vmem>>, vector<28x384xf32>
    %cst_79 = arith.constant dense<0.000000e+00> : vector<48x384xf32>
    %83 = tpu.matmul %81, %82, %cst_79 {dimension_numbers = #tpu.dot_dimension_numbers<[1], [0], [0], [1], [0, 0, 1, 1], [], []>} : vector<48x28xf32>, vector<28x384xf32>, vector<48x384xf32> -> vector<48x384xf32>
    %84 = arith.addf %79, %83 : vector<48x384xf32>
    %c14 = arith.constant 14 : index
    %c0_80 = arith.constant 0 : index
    %c0_81 = arith.constant 0 : index
    %85 = vector.load %arg6[%c14, %c0_80, %c0_81] : memref<49x48x28xf32, #tpu.memory_space<vmem>>, vector<1x48x28xf32>
    %86 = vector.shape_cast %85 : vector<1x48x28xf32> to vector<48x28xf32>
    %c0_82 = arith.constant 0 : index
    %c44 = arith.constant 44 : index
    %87 = vector.load %arg9[%c0_82, %c44] : memref<28x640xf32, #tpu.memory_space<vmem>>, vector<28x384xf32>
    %cst_83 = arith.constant dense<0.000000e+00> : vector<48x384xf32>
    %88 = tpu.matmul %86, %87, %cst_83 {dimension_numbers = #tpu.dot_dimension_numbers<[1], [0], [0], [1], [0, 0, 1, 1], [], []>} : vector<48x28xf32>, vector<28x384xf32>, vector<48x384xf32> -> vector<48x384xf32>
    %89 = arith.addf %84, %88 : vector<48x384xf32>
    %c15 = arith.constant 15 : index
    %c0_84 = arith.constant 0 : index
    %c0_85 = arith.constant 0 : index
    %90 = vector.load %arg6[%c15, %c0_84, %c0_85] : memref<49x48x28xf32, #tpu.memory_space<vmem>>, vector<1x48x28xf32>
    %91 = vector.shape_cast %90 : vector<1x48x28xf32> to vector<48x28xf32>
    %c0_86 = arith.constant 0 : index
    %c45 = arith.constant 45 : index
    %92 = vector.load %arg9[%c0_86, %c45] : memref<28x640xf32, #tpu.memory_space<vmem>>, vector<28x384xf32>
    %cst_87 = arith.constant dense<0.000000e+00> : vector<48x384xf32>
    %93 = tpu.matmul %91, %92, %cst_87 {dimension_numbers = #tpu.dot_dimension_numbers<[1], [0], [0], [1], [0, 0, 1, 1], [], []>} : vector<48x28xf32>, vector<28x384xf32>, vector<48x384xf32> -> vector<48x384xf32>
    %94 = arith.addf %89, %93 : vector<48x384xf32>
    %c16 = arith.constant 16 : index
    %c0_88 = arith.constant 0 : index
    %c0_89 = arith.constant 0 : index
    %95 = vector.load %arg6[%c16, %c0_88, %c0_89] : memref<49x48x28xf32, #tpu.memory_space<vmem>>, vector<1x48x28xf32>
    %96 = vector.shape_cast %95 : vector<1x48x28xf32> to vector<48x28xf32>
    %c0_90 = arith.constant 0 : index
    %c46 = arith.constant 46 : index
    %97 = vector.load %arg9[%c0_90, %c46] : memref<28x640xf32, #tpu.memory_space<vmem>>, vector<28x384xf32>
    %cst_91 = arith.constant dense<0.000000e+00> : vector<48x384xf32>
    %98 = tpu.matmul %96, %97, %cst_91 {dimension_numbers = #tpu.dot_dimension_numbers<[1], [0], [0], [1], [0, 0, 1, 1], [], []>} : vector<48x28xf32>, vector<28x384xf32>, vector<48x384xf32> -> vector<48x384xf32>
    %99 = arith.addf %94, %98 : vector<48x384xf32>
    %c17 = arith.constant 17 : index
    %c0_92 = arith.constant 0 : index
    %c0_93 = arith.constant 0 : index
    %100 = vector.load %arg6[%c17, %c0_92, %c0_93] : memref<49x48x28xf32, #tpu.memory_space<vmem>>, vector<1x48x28xf32>
    %101 = vector.shape_cast %100 : vector<1x48x28xf32> to vector<48x28xf32>
    %c0_94 = arith.constant 0 : index
    %c47 = arith.constant 47 : index
    %102 = vector.load %arg9[%c0_94, %c47] : memref<28x640xf32, #tpu.memory_space<vmem>>, vector<28x384xf32>
    %cst_95 = arith.constant dense<0.000000e+00> : vector<48x384xf32>
    %103 = tpu.matmul %101, %102, %cst_95 {dimension_numbers = #tpu.dot_dimension_numbers<[1], [0], [0], [1], [0, 0, 1, 1], [], []>} : vector<48x28xf32>, vector<28x384xf32>, vector<48x384xf32> -> vector<48x384xf32>
    %104 = arith.addf %99, %103 : vector<48x384xf32>
    %c18 = arith.constant 18 : index
    %c0_96 = arith.constant 0 : index
    %c0_97 = arith.constant 0 : index
    %105 = vector.load %arg6[%c18, %c0_96, %c0_97] : memref<49x48x28xf32, #tpu.memory_space<vmem>>, vector<1x48x28xf32>
    %106 = vector.shape_cast %105 : vector<1x48x28xf32> to vector<48x28xf32>
    %c0_98 = arith.constant 0 : index
    %c48 = arith.constant 48 : index
    %107 = vector.load %arg9[%c0_98, %c48] : memref<28x640xf32, #tpu.memory_space<vmem>>, vector<28x384xf32>
    %cst_99 = arith.constant dense<0.000000e+00> : vector<48x384xf32>
    %108 = tpu.matmul %106, %107, %cst_99 {dimension_numbers = #tpu.dot_dimension_numbers<[1], [0], [0], [1], [0, 0, 1, 1], [], []>} : vector<48x28xf32>, vector<28x384xf32>, vector<48x384xf32> -> vector<48x384xf32>
    %109 = arith.addf %104, %108 : vector<48x384xf32>
    %c19 = arith.constant 19 : index
    %c0_100 = arith.constant 0 : index
    %c0_101 = arith.constant 0 : index
    %110 = vector.load %arg6[%c19, %c0_100, %c0_101] : memref<49x48x28xf32, #tpu.memory_space<vmem>>, vector<1x48x28xf32>
    %111 = vector.shape_cast %110 : vector<1x48x28xf32> to vector<48x28xf32>
    %c0_102 = arith.constant 0 : index
    %c49 = arith.constant 49 : index
    %112 = vector.load %arg9[%c0_102, %c49] : memref<28x640xf32, #tpu.memory_space<vmem>>, vector<28x384xf32>
    %cst_103 = arith.constant dense<0.000000e+00> : vector<48x384xf32>
    %113 = tpu.matmul %111, %112, %cst_103 {dimension_numbers = #tpu.dot_dimension_numbers<[1], [0], [0], [1], [0, 0, 1, 1], [], []>} : vector<48x28xf32>, vector<28x384xf32>, vector<48x384xf32> -> vector<48x384xf32>
    %114 = arith.addf %109, %113 : vector<48x384xf32>
    %c20 = arith.constant 20 : index
    %c0_104 = arith.constant 0 : index
    %c0_105 = arith.constant 0 : index
    %115 = vector.load %arg6[%c20, %c0_104, %c0_105] : memref<49x48x28xf32, #tpu.memory_space<vmem>>, vector<1x48x28xf32>
    %116 = vector.shape_cast %115 : vector<1x48x28xf32> to vector<48x28xf32>
    %c0_106 = arith.constant 0 : index
    %c50 = arith.constant 50 : index
    %117 = vector.load %arg9[%c0_106, %c50] : memref<28x640xf32, #tpu.memory_space<vmem>>, vector<28x384xf32>
    %cst_107 = arith.constant dense<0.000000e+00> : vector<48x384xf32>
    %118 = tpu.matmul %116, %117, %cst_107 {dimension_numbers = #tpu.dot_dimension_numbers<[1], [0], [0], [1], [0, 0, 1, 1], [], []>} : vector<48x28xf32>, vector<28x384xf32>, vector<48x384xf32> -> vector<48x384xf32>
    %119 = arith.addf %114, %118 : vector<48x384xf32>
    %c21 = arith.constant 21 : index
    %c0_108 = arith.constant 0 : index
    %c0_109 = arith.constant 0 : index
    %120 = vector.load %arg6[%c21, %c0_108, %c0_109] : memref<49x48x28xf32, #tpu.memory_space<vmem>>, vector<1x48x28xf32>
    %121 = vector.shape_cast %120 : vector<1x48x28xf32> to vector<48x28xf32>
    %c0_110 = arith.constant 0 : index
    %c66 = arith.constant 66 : index
    %122 = vector.load %arg9[%c0_110, %c66] : memref<28x640xf32, #tpu.memory_space<vmem>>, vector<28x384xf32>
    %cst_111 = arith.constant dense<0.000000e+00> : vector<48x384xf32>
    %123 = tpu.matmul %121, %122, %cst_111 {dimension_numbers = #tpu.dot_dimension_numbers<[1], [0], [0], [1], [0, 0, 1, 1], [], []>} : vector<48x28xf32>, vector<28x384xf32>, vector<48x384xf32> -> vector<48x384xf32>
    %124 = arith.addf %119, %123 : vector<48x384xf32>
    %c22_112 = arith.constant 22 : index
    %c0_113 = arith.constant 0 : index
    %c0_114 = arith.constant 0 : index
    %125 = vector.load %arg6[%c22_112, %c0_113, %c0_114] : memref<49x48x28xf32, #tpu.memory_space<vmem>>, vector<1x48x28xf32>
    %126 = vector.shape_cast %125 : vector<1x48x28xf32> to vector<48x28xf32>
    %c0_115 = arith.constant 0 : index
    %c67 = arith.constant 67 : index
    %127 = vector.load %arg9[%c0_115, %c67] : memref<28x640xf32, #tpu.memory_space<vmem>>, vector<28x384xf32>
    %cst_116 = arith.constant dense<0.000000e+00> : vector<48x384xf32>
    %128 = tpu.matmul %126, %127, %cst_116 {dimension_numbers = #tpu.dot_dimension_numbers<[1], [0], [0], [1], [0, 0, 1, 1], [], []>} : vector<48x28xf32>, vector<28x384xf32>, vector<48x384xf32> -> vector<48x384xf32>
    %129 = arith.addf %124, %128 : vector<48x384xf32>
    %c23_117 = arith.constant 23 : index
    %c0_118 = arith.constant 0 : index
    %c0_119 = arith.constant 0 : index
    %130 = vector.load %arg6[%c23_117, %c0_118, %c0_119] : memref<49x48x28xf32, #tpu.memory_space<vmem>>, vector<1x48x28xf32>
    %131 = vector.shape_cast %130 : vector<1x48x28xf32> to vector<48x28xf32>
    %c0_120 = arith.constant 0 : index
    %c68 = arith.constant 68 : index
    %132 = vector.load %arg9[%c0_120, %c68] : memref<28x640xf32, #tpu.memory_space<vmem>>, vector<28x384xf32>
    %cst_121 = arith.constant dense<0.000000e+00> : vector<48x384xf32>
    %133 = tpu.matmul %131, %132, %cst_121 {dimension_numbers = #tpu.dot_dimension_numbers<[1], [0], [0], [1], [0, 0, 1, 1], [], []>} : vector<48x28xf32>, vector<28x384xf32>, vector<48x384xf32> -> vector<48x384xf32>
    %134 = arith.addf %129, %133 : vector<48x384xf32>
    %c24_122 = arith.constant 24 : index
    %c0_123 = arith.constant 0 : index
    %c0_124 = arith.constant 0 : index
    %135 = vector.load %arg6[%c24_122, %c0_123, %c0_124] : memref<49x48x28xf32, #tpu.memory_space<vmem>>, vector<1x48x28xf32>
    %136 = vector.shape_cast %135 : vector<1x48x28xf32> to vector<48x28xf32>
    %c0_125 = arith.constant 0 : index
    %c69 = arith.constant 69 : index
    %137 = vector.load %arg9[%c0_125, %c69] : memref<28x640xf32, #tpu.memory_space<vmem>>, vector<28x384xf32>
    %cst_126 = arith.constant dense<0.000000e+00> : vector<48x384xf32>
    %138 = tpu.matmul %136, %137, %cst_126 {dimension_numbers = #tpu.dot_dimension_numbers<[1], [0], [0], [1], [0, 0, 1, 1], [], []>} : vector<48x28xf32>, vector<28x384xf32>, vector<48x384xf32> -> vector<48x384xf32>
    %139 = arith.addf %134, %138 : vector<48x384xf32>
    %c25_127 = arith.constant 25 : index
    %c0_128 = arith.constant 0 : index
    %c0_129 = arith.constant 0 : index
    %140 = vector.load %arg6[%c25_127, %c0_128, %c0_129] : memref<49x48x28xf32, #tpu.memory_space<vmem>>, vector<1x48x28xf32>
    %141 = vector.shape_cast %140 : vector<1x48x28xf32> to vector<48x28xf32>
    %c0_130 = arith.constant 0 : index
    %c70 = arith.constant 70 : index
    %142 = vector.load %arg9[%c0_130, %c70] : memref<28x640xf32, #tpu.memory_space<vmem>>, vector<28x384xf32>
    %cst_131 = arith.constant dense<0.000000e+00> : vector<48x384xf32>
    %143 = tpu.matmul %141, %142, %cst_131 {dimension_numbers = #tpu.dot_dimension_numbers<[1], [0], [0], [1], [0, 0, 1, 1], [], []>} : vector<48x28xf32>, vector<28x384xf32>, vector<48x384xf32> -> vector<48x384xf32>
    %144 = arith.addf %139, %143 : vector<48x384xf32>
    %c26_132 = arith.constant 26 : index
    %c0_133 = arith.constant 0 : index
    %c0_134 = arith.constant 0 : index
    %145 = vector.load %arg6[%c26_132, %c0_133, %c0_134] : memref<49x48x28xf32, #tpu.memory_space<vmem>>, vector<1x48x28xf32>
    %146 = vector.shape_cast %145 : vector<1x48x28xf32> to vector<48x28xf32>
    %c0_135 = arith.constant 0 : index
    %c71 = arith.constant 71 : index
    %147 = vector.load %arg9[%c0_135, %c71] : memref<28x640xf32, #tpu.memory_space<vmem>>, vector<28x384xf32>
    %cst_136 = arith.constant dense<0.000000e+00> : vector<48x384xf32>
    %148 = tpu.matmul %146, %147, %cst_136 {dimension_numbers = #tpu.dot_dimension_numbers<[1], [0], [0], [1], [0, 0, 1, 1], [], []>} : vector<48x28xf32>, vector<28x384xf32>, vector<48x384xf32> -> vector<48x384xf32>
    %149 = arith.addf %144, %148 : vector<48x384xf32>
    %c27_137 = arith.constant 27 : index
    %c0_138 = arith.constant 0 : index
    %c0_139 = arith.constant 0 : index
    %150 = vector.load %arg6[%c27_137, %c0_138, %c0_139] : memref<49x48x28xf32, #tpu.memory_space<vmem>>, vector<1x48x28xf32>
    %151 = vector.shape_cast %150 : vector<1x48x28xf32> to vector<48x28xf32>
    %c0_140 = arith.constant 0 : index
    %c72 = arith.constant 72 : index
    %152 = vector.load %arg9[%c0_140, %c72] : memref<28x640xf32, #tpu.memory_space<vmem>>, vector<28x384xf32>
    %cst_141 = arith.constant dense<0.000000e+00> : vector<48x384xf32>
    %153 = tpu.matmul %151, %152, %cst_141 {dimension_numbers = #tpu.dot_dimension_numbers<[1], [0], [0], [1], [0, 0, 1, 1], [], []>} : vector<48x28xf32>, vector<28x384xf32>, vector<48x384xf32> -> vector<48x384xf32>
    %154 = arith.addf %149, %153 : vector<48x384xf32>
    %c28_142 = arith.constant 28 : index
    %c0_143 = arith.constant 0 : index
    %c0_144 = arith.constant 0 : index
    %155 = vector.load %arg6[%c28_142, %c0_143, %c0_144] : memref<49x48x28xf32, #tpu.memory_space<vmem>>, vector<1x48x28xf32>
    %156 = vector.shape_cast %155 : vector<1x48x28xf32> to vector<48x28xf32>
    %c0_145 = arith.constant 0 : index
    %c88 = arith.constant 88 : index
    %157 = vector.load %arg9[%c0_145, %c88] : memref<28x640xf32, #tpu.memory_space<vmem>>, vector<28x384xf32>
    %cst_146 = arith.constant dense<0.000000e+00> : vector<48x384xf32>
    %158 = tpu.matmul %156, %157, %cst_146 {dimension_numbers = #tpu.dot_dimension_numbers<[1], [0], [0], [1], [0, 0, 1, 1], [], []>} : vector<48x28xf32>, vector<28x384xf32>, vector<48x384xf32> -> vector<48x384xf32>
    %159 = arith.addf %154, %158 : vector<48x384xf32>
    %c29 = arith.constant 29 : index
    %c0_147 = arith.constant 0 : index
    %c0_148 = arith.constant 0 : index
    %160 = vector.load %arg6[%c29, %c0_147, %c0_148] : memref<49x48x28xf32, #tpu.memory_space<vmem>>, vector<1x48x28xf32>
    %161 = vector.shape_cast %160 : vector<1x48x28xf32> to vector<48x28xf32>
    %c0_149 = arith.constant 0 : index
    %c89 = arith.constant 89 : index
    %162 = vector.load %arg9[%c0_149, %c89] : memref<28x640xf32, #tpu.memory_space<vmem>>, vector<28x384xf32>
    %cst_150 = arith.constant dense<0.000000e+00> : vector<48x384xf32>
    %163 = tpu.matmul %161, %162, %cst_150 {dimension_numbers = #tpu.dot_dimension_numbers<[1], [0], [0], [1], [0, 0, 1, 1], [], []>} : vector<48x28xf32>, vector<28x384xf32>, vector<48x384xf32> -> vector<48x384xf32>
    %164 = arith.addf %159, %163 : vector<48x384xf32>
    %c30 = arith.constant 30 : index
    %c0_151 = arith.constant 0 : index
    %c0_152 = arith.constant 0 : index
    %165 = vector.load %arg6[%c30, %c0_151, %c0_152] : memref<49x48x28xf32, #tpu.memory_space<vmem>>, vector<1x48x28xf32>
    %166 = vector.shape_cast %165 : vector<1x48x28xf32> to vector<48x28xf32>
    %c0_153 = arith.constant 0 : index
    %c90 = arith.constant 90 : index
    %167 = vector.load %arg9[%c0_153, %c90] : memref<28x640xf32, #tpu.memory_space<vmem>>, vector<28x384xf32>
    %cst_154 = arith.constant dense<0.000000e+00> : vector<48x384xf32>
    %168 = tpu.matmul %166, %167, %cst_154 {dimension_numbers = #tpu.dot_dimension_numbers<[1], [0], [0], [1], [0, 0, 1, 1], [], []>} : vector<48x28xf32>, vector<28x384xf32>, vector<48x384xf32> -> vector<48x384xf32>
    %169 = arith.addf %164, %168 : vector<48x384xf32>
    %c31 = arith.constant 31 : index
    %c0_155 = arith.constant 0 : index
    %c0_156 = arith.constant 0 : index
    %170 = vector.load %arg6[%c31, %c0_155, %c0_156] : memref<49x48x28xf32, #tpu.memory_space<vmem>>, vector<1x48x28xf32>
    %171 = vector.shape_cast %170 : vector<1x48x28xf32> to vector<48x28xf32>
    %c0_157 = arith.constant 0 : index
    %c91 = arith.constant 91 : index
    %172 = vector.load %arg9[%c0_157, %c91] : memref<28x640xf32, #tpu.memory_space<vmem>>, vector<28x384xf32>
    %cst_158 = arith.constant dense<0.000000e+00> : vector<48x384xf32>
    %173 = tpu.matmul %171, %172, %cst_158 {dimension_numbers = #tpu.dot_dimension_numbers<[1], [0], [0], [1], [0, 0, 1, 1], [], []>} : vector<48x28xf32>, vector<28x384xf32>, vector<48x384xf32> -> vector<48x384xf32>
    %174 = arith.addf %169, %173 : vector<48x384xf32>
    %c32 = arith.constant 32 : index
    %c0_159 = arith.constant 0 : index
    %c0_160 = arith.constant 0 : index
    %175 = vector.load %arg6[%c32, %c0_159, %c0_160] : memref<49x48x28xf32, #tpu.memory_space<vmem>>, vector<1x48x28xf32>
    %176 = vector.shape_cast %175 : vector<1x48x28xf32> to vector<48x28xf32>
    %c0_161 = arith.constant 0 : index
    %c92 = arith.constant 92 : index
    %177 = vector.load %arg9[%c0_161, %c92] : memref<28x640xf32, #tpu.memory_space<vmem>>, vector<28x384xf32>
    %cst_162 = arith.constant dense<0.000000e+00> : vector<48x384xf32>
    %178 = tpu.matmul %176, %177, %cst_162 {dimension_numbers = #tpu.dot_dimension_numbers<[1], [0], [0], [1], [0, 0, 1, 1], [], []>} : vector<48x28xf32>, vector<28x384xf32>, vector<48x384xf32> -> vector<48x384xf32>
    %179 = arith.addf %174, %178 : vector<48x384xf32>
    %c33 = arith.constant 33 : index
    %c0_163 = arith.constant 0 : index
    %c0_164 = arith.constant 0 : index
    %180 = vector.load %arg6[%c33, %c0_163, %c0_164] : memref<49x48x28xf32, #tpu.memory_space<vmem>>, vector<1x48x28xf32>
    %181 = vector.shape_cast %180 : vector<1x48x28xf32> to vector<48x28xf32>
    %c0_165 = arith.constant 0 : index
    %c93 = arith.constant 93 : index
    %182 = vector.load %arg9[%c0_165, %c93] : memref<28x640xf32, #tpu.memory_space<vmem>>, vector<28x384xf32>
    %cst_166 = arith.constant dense<0.000000e+00> : vector<48x384xf32>
    %183 = tpu.matmul %181, %182, %cst_166 {dimension_numbers = #tpu.dot_dimension_numbers<[1], [0], [0], [1], [0, 0, 1, 1], [], []>} : vector<48x28xf32>, vector<28x384xf32>, vector<48x384xf32> -> vector<48x384xf32>
    %184 = arith.addf %179, %183 : vector<48x384xf32>
    %c34 = arith.constant 34 : index
    %c0_167 = arith.constant 0 : index
    %c0_168 = arith.constant 0 : index
    %185 = vector.load %arg6[%c34, %c0_167, %c0_168] : memref<49x48x28xf32, #tpu.memory_space<vmem>>, vector<1x48x28xf32>
    %186 = vector.shape_cast %185 : vector<1x48x28xf32> to vector<48x28xf32>
    %c0_169 = arith.constant 0 : index
    %c94 = arith.constant 94 : index
    %187 = vector.load %arg9[%c0_169, %c94] : memref<28x640xf32, #tpu.memory_space<vmem>>, vector<28x384xf32>
    %cst_170 = arith.constant dense<0.000000e+00> : vector<48x384xf32>
    %188 = tpu.matmul %186, %187, %cst_170 {dimension_numbers = #tpu.dot_dimension_numbers<[1], [0], [0], [1], [0, 0, 1, 1], [], []>} : vector<48x28xf32>, vector<28x384xf32>, vector<48x384xf32> -> vector<48x384xf32>
    %189 = arith.addf %184, %188 : vector<48x384xf32>
    %c35 = arith.constant 35 : index
    %c0_171 = arith.constant 0 : index
    %c0_172 = arith.constant 0 : index
    %190 = vector.load %arg6[%c35, %c0_171, %c0_172] : memref<49x48x28xf32, #tpu.memory_space<vmem>>, vector<1x48x28xf32>
    %191 = vector.shape_cast %190 : vector<1x48x28xf32> to vector<48x28xf32>
    %c0_173 = arith.constant 0 : index
    %c110 = arith.constant 110 : index
    %192 = vector.load %arg9[%c0_173, %c110] : memref<28x640xf32, #tpu.memory_space<vmem>>, vector<28x384xf32>
    %cst_174 = arith.constant dense<0.000000e+00> : vector<48x384xf32>
    %193 = tpu.matmul %191, %192, %cst_174 {dimension_numbers = #tpu.dot_dimension_numbers<[1], [0], [0], [1], [0, 0, 1, 1], [], []>} : vector<48x28xf32>, vector<28x384xf32>, vector<48x384xf32> -> vector<48x384xf32>
    %194 = arith.addf %189, %193 : vector<48x384xf32>
    %c36 = arith.constant 36 : index
    %c0_175 = arith.constant 0 : index
    %c0_176 = arith.constant 0 : index
    %195 = vector.load %arg6[%c36, %c0_175, %c0_176] : memref<49x48x28xf32, #tpu.memory_space<vmem>>, vector<1x48x28xf32>
    %196 = vector.shape_cast %195 : vector<1x48x28xf32> to vector<48x28xf32>
    %c0_177 = arith.constant 0 : index
    %c111 = arith.constant 111 : index
    %197 = vector.load %arg9[%c0_177, %c111] : memref<28x640xf32, #tpu.memory_space<vmem>>, vector<28x384xf32>
    %cst_178 = arith.constant dense<0.000000e+00> : vector<48x384xf32>
    %198 = tpu.matmul %196, %197, %cst_178 {dimension_numbers = #tpu.dot_dimension_numbers<[1], [0], [0], [1], [0, 0, 1, 1], [], []>} : vector<48x28xf32>, vector<28x384xf32>, vector<48x384xf32> -> vector<48x384xf32>
    %199 = arith.addf %194, %198 : vector<48x384xf32>
    %c37 = arith.constant 37 : index
    %c0_179 = arith.constant 0 : index
    %c0_180 = arith.constant 0 : index
    %200 = vector.load %arg6[%c37, %c0_179, %c0_180] : memref<49x48x28xf32, #tpu.memory_space<vmem>>, vector<1x48x28xf32>
    %201 = vector.shape_cast %200 : vector<1x48x28xf32> to vector<48x28xf32>
    %c0_181 = arith.constant 0 : index
    %c112 = arith.constant 112 : index
    %202 = vector.load %arg9[%c0_181, %c112] : memref<28x640xf32, #tpu.memory_space<vmem>>, vector<28x384xf32>
    %cst_182 = arith.constant dense<0.000000e+00> : vector<48x384xf32>
    %203 = tpu.matmul %201, %202, %cst_182 {dimension_numbers = #tpu.dot_dimension_numbers<[1], [0], [0], [1], [0, 0, 1, 1], [], []>} : vector<48x28xf32>, vector<28x384xf32>, vector<48x384xf32> -> vector<48x384xf32>
    %204 = arith.addf %199, %203 : vector<48x384xf32>
    %c38 = arith.constant 38 : index
    %c0_183 = arith.constant 0 : index
    %c0_184 = arith.constant 0 : index
    %205 = vector.load %arg6[%c38, %c0_183, %c0_184] : memref<49x48x28xf32, #tpu.memory_space<vmem>>, vector<1x48x28xf32>
    %206 = vector.shape_cast %205 : vector<1x48x28xf32> to vector<48x28xf32>
    %c0_185 = arith.constant 0 : index
    %c113 = arith.constant 113 : index
    %207 = vector.load %arg9[%c0_185, %c113] : memref<28x640xf32, #tpu.memory_space<vmem>>, vector<28x384xf32>
    %cst_186 = arith.constant dense<0.000000e+00> : vector<48x384xf32>
    %208 = tpu.matmul %206, %207, %cst_186 {dimension_numbers = #tpu.dot_dimension_numbers<[1], [0], [0], [1], [0, 0, 1, 1], [], []>} : vector<48x28xf32>, vector<28x384xf32>, vector<48x384xf32> -> vector<48x384xf32>
    %209 = arith.addf %204, %208 : vector<48x384xf32>
    %c39 = arith.constant 39 : index
    %c0_187 = arith.constant 0 : index
    %c0_188 = arith.constant 0 : index
    %210 = vector.load %arg6[%c39, %c0_187, %c0_188] : memref<49x48x28xf32, #tpu.memory_space<vmem>>, vector<1x48x28xf32>
    %211 = vector.shape_cast %210 : vector<1x48x28xf32> to vector<48x28xf32>
    %c0_189 = arith.constant 0 : index
    %c114 = arith.constant 114 : index
    %212 = vector.load %arg9[%c0_189, %c114] : memref<28x640xf32, #tpu.memory_space<vmem>>, vector<28x384xf32>
    %cst_190 = arith.constant dense<0.000000e+00> : vector<48x384xf32>
    %213 = tpu.matmul %211, %212, %cst_190 {dimension_numbers = #tpu.dot_dimension_numbers<[1], [0], [0], [1], [0, 0, 1, 1], [], []>} : vector<48x28xf32>, vector<28x384xf32>, vector<48x384xf32> -> vector<48x384xf32>
    %214 = arith.addf %209, %213 : vector<48x384xf32>
    %c40 = arith.constant 40 : index
    %c0_191 = arith.constant 0 : index
    %c0_192 = arith.constant 0 : index
    %215 = vector.load %arg6[%c40, %c0_191, %c0_192] : memref<49x48x28xf32, #tpu.memory_space<vmem>>, vector<1x48x28xf32>
    %216 = vector.shape_cast %215 : vector<1x48x28xf32> to vector<48x28xf32>
    %c0_193 = arith.constant 0 : index
    %c115 = arith.constant 115 : index
    %217 = vector.load %arg9[%c0_193, %c115] : memref<28x640xf32, #tpu.memory_space<vmem>>, vector<28x384xf32>
    %cst_194 = arith.constant dense<0.000000e+00> : vector<48x384xf32>
    %218 = tpu.matmul %216, %217, %cst_194 {dimension_numbers = #tpu.dot_dimension_numbers<[1], [0], [0], [1], [0, 0, 1, 1], [], []>} : vector<48x28xf32>, vector<28x384xf32>, vector<48x384xf32> -> vector<48x384xf32>
    %219 = arith.addf %214, %218 : vector<48x384xf32>
    %c41 = arith.constant 41 : index
    %c0_195 = arith.constant 0 : index
    %c0_196 = arith.constant 0 : index
    %220 = vector.load %arg6[%c41, %c0_195, %c0_196] : memref<49x48x28xf32, #tpu.memory_space<vmem>>, vector<1x48x28xf32>
    %221 = vector.shape_cast %220 : vector<1x48x28xf32> to vector<48x28xf32>
    %c0_197 = arith.constant 0 : index
    %c116 = arith.constant 116 : index
    %222 = vector.load %arg9[%c0_197, %c116] : memref<28x640xf32, #tpu.memory_space<vmem>>, vector<28x384xf32>
    %cst_198 = arith.constant dense<0.000000e+00> : vector<48x384xf32>
    %223 = tpu.matmul %221, %222, %cst_198 {dimension_numbers = #tpu.dot_dimension_numbers<[1], [0], [0], [1], [0, 0, 1, 1], [], []>} : vector<48x28xf32>, vector<28x384xf32>, vector<48x384xf32> -> vector<48x384xf32>
    %224 = arith.addf %219, %223 : vector<48x384xf32>
    %c42 = arith.constant 42 : index
    %c0_199 = arith.constant 0 : index
    %c0_200 = arith.constant 0 : index
    %225 = vector.load %arg6[%c42, %c0_199, %c0_200] : memref<49x48x28xf32, #tpu.memory_space<vmem>>, vector<1x48x28xf32>
    %226 = vector.shape_cast %225 : vector<1x48x28xf32> to vector<48x28xf32>
    %c0_201 = arith.constant 0 : index
    %c132 = arith.constant 132 : index
    %227 = vector.load %arg9[%c0_201, %c132] : memref<28x640xf32, #tpu.memory_space<vmem>>, vector<28x384xf32>
    %cst_202 = arith.constant dense<0.000000e+00> : vector<48x384xf32>
    %228 = tpu.matmul %226, %227, %cst_202 {dimension_numbers = #tpu.dot_dimension_numbers<[1], [0], [0], [1], [0, 0, 1, 1], [], []>} : vector<48x28xf32>, vector<28x384xf32>, vector<48x384xf32> -> vector<48x384xf32>
    %229 = arith.addf %224, %228 : vector<48x384xf32>
    %c43 = arith.constant 43 : index
    %c0_203 = arith.constant 0 : index
    %c0_204 = arith.constant 0 : index
    %230 = vector.load %arg6[%c43, %c0_203, %c0_204] : memref<49x48x28xf32, #tpu.memory_space<vmem>>, vector<1x48x28xf32>
    %231 = vector.shape_cast %230 : vector<1x48x28xf32> to vector<48x28xf32>
    %c0_205 = arith.constant 0 : index
    %c133 = arith.constant 133 : index
    %232 = vector.load %arg9[%c0_205, %c133] : memref<28x640xf32, #tpu.memory_space<vmem>>, vector<28x384xf32>
    %cst_206 = arith.constant dense<0.000000e+00> : vector<48x384xf32>
    %233 = tpu.matmul %231, %232, %cst_206 {dimension_numbers = #tpu.dot_dimension_numbers<[1], [0], [0], [1], [0, 0, 1, 1], [], []>} : vector<48x28xf32>, vector<28x384xf32>, vector<48x384xf32> -> vector<48x384xf32>
    %234 = arith.addf %229, %233 : vector<48x384xf32>
    %c44_207 = arith.constant 44 : index
    %c0_208 = arith.constant 0 : index
    %c0_209 = arith.constant 0 : index
    %235 = vector.load %arg6[%c44_207, %c0_208, %c0_209] : memref<49x48x28xf32, #tpu.memory_space<vmem>>, vector<1x48x28xf32>
    %236 = vector.shape_cast %235 : vector<1x48x28xf32> to vector<48x28xf32>
    %c0_210 = arith.constant 0 : index
    %c134 = arith.constant 134 : index
    %237 = vector.load %arg9[%c0_210, %c134] : memref<28x640xf32, #tpu.memory_space<vmem>>, vector<28x384xf32>
    %cst_211 = arith.constant dense<0.000000e+00> : vector<48x384xf32>
    %238 = tpu.matmul %236, %237, %cst_211 {dimension_numbers = #tpu.dot_dimension_numbers<[1], [0], [0], [1], [0, 0, 1, 1], [], []>} : vector<48x28xf32>, vector<28x384xf32>, vector<48x384xf32> -> vector<48x384xf32>
    %239 = arith.addf %234, %238 : vector<48x384xf32>
    %c45_212 = arith.constant 45 : index
    %c0_213 = arith.constant 0 : index
    %c0_214 = arith.constant 0 : index
    %240 = vector.load %arg6[%c45_212, %c0_213, %c0_214] : memref<49x48x28xf32, #tpu.memory_space<vmem>>, vector<1x48x28xf32>
    %241 = vector.shape_cast %240 : vector<1x48x28xf32> to vector<48x28xf32>
    %c0_215 = arith.constant 0 : index
    %c135 = arith.constant 135 : index
    %242 = vector.load %arg9[%c0_215, %c135] : memref<28x640xf32, #tpu.memory_space<vmem>>, vector<28x384xf32>
    %cst_216 = arith.constant dense<0.000000e+00> : vector<48x384xf32>
    %243 = tpu.matmul %241, %242, %cst_216 {dimension_numbers = #tpu.dot_dimension_numbers<[1], [0], [0], [1], [0, 0, 1, 1], [], []>} : vector<48x28xf32>, vector<28x384xf32>, vector<48x384xf32> -> vector<48x384xf32>
    %244 = arith.addf %239, %243 : vector<48x384xf32>
    %c46_217 = arith.constant 46 : index
    %c0_218 = arith.constant 0 : index
    %c0_219 = arith.constant 0 : index
    %245 = vector.load %arg6[%c46_217, %c0_218, %c0_219] : memref<49x48x28xf32, #tpu.memory_space<vmem>>, vector<1x48x28xf32>
    %246 = vector.shape_cast %245 : vector<1x48x28xf32> to vector<48x28xf32>
    %c0_220 = arith.constant 0 : index
    %c136 = arith.constant 136 : index
    %247 = vector.load %arg9[%c0_220, %c136] : memref<28x640xf32, #tpu.memory_space<vmem>>, vector<28x384xf32>
    %cst_221 = arith.constant dense<0.000000e+00> : vector<48x384xf32>
    %248 = tpu.matmul %246, %247, %cst_221 {dimension_numbers = #tpu.dot_dimension_numbers<[1], [0], [0], [1], [0, 0, 1, 1], [], []>} : vector<48x28xf32>, vector<28x384xf32>, vector<48x384xf32> -> vector<48x384xf32>
    %249 = arith.addf %244, %248 : vector<48x384xf32>
    %c47_222 = arith.constant 47 : index
    %c0_223 = arith.constant 0 : index
    %c0_224 = arith.constant 0 : index
    %250 = vector.load %arg6[%c47_222, %c0_223, %c0_224] : memref<49x48x28xf32, #tpu.memory_space<vmem>>, vector<1x48x28xf32>
    %251 = vector.shape_cast %250 : vector<1x48x28xf32> to vector<48x28xf32>
    %c0_225 = arith.constant 0 : index
    %c137 = arith.constant 137 : index
    %252 = vector.load %arg9[%c0_225, %c137] : memref<28x640xf32, #tpu.memory_space<vmem>>, vector<28x384xf32>
    %cst_226 = arith.constant dense<0.000000e+00> : vector<48x384xf32>
    %253 = tpu.matmul %251, %252, %cst_226 {dimension_numbers = #tpu.dot_dimension_numbers<[1], [0], [0], [1], [0, 0, 1, 1], [], []>} : vector<48x28xf32>, vector<28x384xf32>, vector<48x384xf32> -> vector<48x384xf32>
    %254 = arith.addf %249, %253 : vector<48x384xf32>
    %c48_227 = arith.constant 48 : index
    %c0_228 = arith.constant 0 : index
    %c0_229 = arith.constant 0 : index
    %255 = vector.load %arg6[%c48_227, %c0_228, %c0_229] : memref<49x48x28xf32, #tpu.memory_space<vmem>>, vector<1x48x28xf32>
    %256 = vector.shape_cast %255 : vector<1x48x28xf32> to vector<48x28xf32>
    %c0_230 = arith.constant 0 : index
    %c138 = arith.constant 138 : index
    %257 = vector.load %arg9[%c0_230, %c138] : memref<28x640xf32, #tpu.memory_space<vmem>>, vector<28x384xf32>
    %cst_231 = arith.constant dense<0.000000e+00> : vector<48x384xf32>
    %258 = tpu.matmul %256, %257, %cst_231 {dimension_numbers = #tpu.dot_dimension_numbers<[1], [0], [0], [1], [0, 0, 1, 1], [], []>} : vector<48x28xf32>, vector<28x384xf32>, vector<48x384xf32> -> vector<48x384xf32>
    %259 = arith.addf %254, %258 : vector<48x384xf32>
    %c0_232 = arith.constant 0 : index
    %c0_233 = arith.constant 0 : index
    %260 = vector.load %arg7[%c0_232, %c0_233] : memref<48x1xf32, #tpu.memory_space<vmem>>, vector<48x1xf32>
    %261 = vector.broadcast %260 : vector<48x1xf32> to vector<48x384xf32>
    %262 = arith.addf %259, %261 : vector<48x384xf32>
    %cst_234 = arith.constant 0.000000e+00 : f32
    %263 = vector.broadcast %cst_234 : f32 to vector<48x384xf32>
    %264 = arith.cmpf oge, %262, %263 : vector<48x384xf32>
    %cst_235 = arith.constant 0.00999999977 : f32
    %265 = vector.broadcast %cst_235 : f32 to vector<48x384xf32>
    %266 = arith.mulf %265, %262 : vector<48x384xf32>
    %267 = arith.select %264, %262, %266 : vector<48x384xi1>, vector<48x384xf32>
    %c0_236 = arith.constant 0 : index
    %c0_237 = arith.constant 0 : index
    %c0_238 = arith.constant 0 : index
    %268 = vector.load %arg8[%c0_236, %c0_237, %c0_238] : memref<1x48x384xf32, #tpu.memory_space<vmem>>, vector<1x48x384xf32>
    %269 = vector.shape_cast %268 : vector<1x48x384xf32> to vector<48x384xf32>
    %270 = vector.shape_cast %267 : vector<48x384xf32> to vector<1x48x384xf32>
    tpu.vector_store %arg8[%c0_236, %c0_237, %c0_238], %270 {strides = array<i32>} : memref<1x48x384xf32, #tpu.memory_space<vmem>>, vector<1x48x384xf32>,
    return
  }
  func.func @transform_0(%arg0: i32) -> (i32, i32, i32) {
    %c0_i32 = arith.constant 0 : i32
    %c0_i32_0 = arith.constant 0 : i32
    %c0_i32_1 = arith.constant 0 : i32
    return %arg0, %c0_i32, %c0_i32_0 : i32, i32, i32
  }
  func.func @transform_1(%arg0: i32) -> (i32, i32, i32) {
    %c0_i32 = arith.constant 0 : i32
    %c0_i32_0 = arith.constant 0 : i32
    %c0_i32_1 = arith.constant 0 : i32
    return %arg0, %c0_i32, %c0_i32_0 : i32, i32, i32
  }
  func.func @transform_2(%arg0: i32) -> (i32, i32) {
    %c0_i32 = arith.constant 0 : i32
    %c0_i32_0 = arith.constant 0 : i32
    %c0_i32_1 = arith.constant 0 : i32
    return %c0_i32, %c0_i32_0 : i32, i32
  }
  func.func @transform_3(%arg0: i32) -> (i32, i32) {
    %c0_i32 = arith.constant 0 : i32
    %c0_i32_0 = arith.constant 0 : i32
    %c0_i32_1 = arith.constant 0 : i32
    return %c0_i32, %c0_i32_0 : i32, i32
  }
  func.func @transform_4(%arg0: i32) -> (i32, i32) {
    %c0_i32 = arith.constant 0 : i32
    %c0_i32_0 = arith.constant 0 : i32
    %c0_i32_1 = arith.constant 0 : i32
    return %c0_i32, %c0_i32_0 : i32, i32
  }
  func.func @transform_5(%arg0: i32) -> (i32, i32, i32) {
    %c0_i32 = arith.constant 0 : i32
    %c0_i32_0 = arith.constant 0 : i32
    %c0_i32_1 = arith.constant 0 : i32
    %c0_i32_2 = arith.constant 0 : i32
    return %c0_i32, %c0_i32_0, %c0_i32_1 : i32, i32, i32
  }
  func.func @transform_6(%arg0: i32) -> (i32, i32) {
    %c0_i32 = arith.constant 0 : i32
    %c0_i32_0 = arith.constant 0 : i32
    %c0_i32_1 = arith.constant 0 : i32
    return %c0_i32, %c0_i32_0 : i32, i32
  }
  func.func @transform_7(%arg0: i32) -> (i32, i32, i32) {
    %c0_i32 = arith.constant 0 : i32
    %c0_i32_0 = arith.constant 0 : i32
    %c0_i32_1 = arith.constant 0 : i32
    return %arg0, %c0_i32, %c0_i32_0 : i32, i32, i32
  }
}

</mosaic_0001>

<bundles_post_ra>
// kernel: geometrical_characteristics.1
= control target key start
LH: loop header
LB: loop body
LE: loop exit
PB: predicated region body
PF: predicated region fallthrough
CT: control target
= control target key end

     0   :  { %s21933_s24 = smov 0   ;;  %s29192_s0 = inlined_call_operand.vmem [shape: f32[2,4,640], index: 0, kind: input, shape index: {}]   ;;  %s29193_s1 = inlined_call_operand.vmem [shape: f32[2,8,640], index: 1, kind: input, shape index: {}]   ;;  %s29194_s2 = inlined_call_operand.vmem [shape: f32[1,640], index: 2, kind: input, shape index: {}]   ;;  %s29195_s3 = inlined_call_operand.vmem [shape: f32[24,8], index: 3, kind: input, shape index: {}]   ;;  %s29196_s4 = inlined_call_operand.vmem [shape: f32[24,1], index: 4, kind: input, shape index: {}]   ;;  %s29197_s5 = inlined_call_operand.vmem [shape: f32[49,48,28], index: 5, kind: input, shape index: {}]   ;;  %s29198_s6 = inlined_call_operand.vmem [shape: f32[48,1], index: 6, kind: input, shape index: {}]   ;;  %s29199_s7 = inlined_call_operand.vmem [shape: f32[2,48,384], index: 7, kind: output, shape index: {}]  }
   0x1 LB: > { %s15468_s25 = sadd.s32 4294967295, %s21842_s24   ;;  %p15472_p0 = scmp.ge.s32.totalorder %s21842_s24, 1  ;;  %s21842_s24 = sphi %s21933_s24, %s17_s24  }
   0x2   : > { %p247_p1 = scmp.lt.s32.totalorder %s21842_s24, 3 }
   0x4   : > { %p248_p2 = pnand %p15472_p0, %p247_p1 }
   0x6   : > { %251 = sbr.rel (%p248_p2) target bundleno = 1646 (0x66e), region = 48 }
   0xd   : > { %p284_p3 = scmp.lt.s32.totalorder %s15468_s25, 1  ;;  %v29200_v0 = vmov 0.0   ;;  %v307_v1 = vld [vmem:[%s29196_s4] sm:$0xff]  ;;  %v309_v2 = vld [vmem:[%s29196_s4 + $0x10] sm:$0xff]  ;;  %v21845_v3 = vmov 0   ;;  %v308_v4 = vld [vmem:[%s29196_s4 + $0x8] sm:$0xff]  ;;  %v583_v24 = vlaneseq }
   0xe   : > { %399 = vmatprep.mubr.f32.mxu0 %v29200_v0  ;;  %482 = vmatprep.mubr.f32.mxu1 %v29200_v0  ;;  %v299_v5 = vld [vmem:[%s29195_s3] sm:$0xff]  ;;  %vm325_vm0 = vcmask 64512   ;;  %v300_v16 = vld [vmem:[%s29195_s3 + $0x8] sm:$0xff]  ;;  %v301_v19 = vld [vmem:[%s29195_s3 + $0x10] sm:$0xff]  ;;  %vm21846_vm1 = vmmov 0   ;;  %s21847_s23 = smov 127  }
   0xf   : > { %s30445_s25 = smov (!%p284_p3, %s15468_s25), 1  ;;  %19752 = vset.pattern.permute.xlu0 %v21845_v3  ;;  %19753 = vset.pattern.permute.xlu1 %v21845_v3  ;;  %s21848_s26 = smov 126   ;;  %v584_v25 = vshrl.u32 %v583_v24, 7  ;;  %v581_v28 = vld [vmem:[%s29194_s2] sm:$0x1f]  ;;  %vm729_vm2 = vcmask 1039360  }
  0x10   : > { %312 = vperm.xlu0 %19752, %v307_v1   ;;  %322 = vperm.xlu1 %19753, %v309_v2   ;;  %s19692_s30 = smul.u32 20, %s30445_s25  ;;  %s21849_s27 = smov 125   ;;  %vm4222_vm3 = vcmask 826368   ;;  %vm770_vm4 = vcmask 1043456   ;;  %vm21864_vm5 = vmmov 1   ;;  %vm751_vm7 = vcmask 228352  }
  0x11   : > { %s19693_s10 = smul.u32 40, %s30445_s25  ;;  %s29316_s28 = smov 124   ;;  %v585_v26 = vsub.s32 0, %v584_v25  ;;  %v593_v27 = vsub.s32 2, %v584_v25  ;;  %v589_v29 = vsub.s32 1, %v584_v25  ;;  %v597_v30 = vsub.s32 3, %v584_v25  ;;  %vm22552_vm6 = vmpackc.low %vm770_vm4, %vm21864_vm5 }
  0x12   : > { %s288_s13 = scalar_lea.vmem %s29192_s0, %s19692_s30  ;;  %s29290_s29 = smov 123   ;;  %v601_v42 = vsub.s32 4, %v584_v25  ;;  %vm1232_vm8 = vcmask 1031168   ;;  %vm4521_vm9 = vcmask 818176   ;;  %vm4820_vm10 = vcmask 687104  }
  0x13   : > { %s293_s18 = scalar_lea.vmem %s29193_s1, %s19693_s10  ;;  %v638_v6 = vld [vmem:[%s288_s13] sm:$0xff]  ;;  %v639_v7 = vld [vmem:[%s288_s13 + $0x8] sm:$0xff]  ;;  %v640_v8 = vld [vmem:[%s288_s13 + $0x10] sm:$0xf]  ;;  %s29288_s30 = smov 122   ;;  %v586_v32 = vrot.slane %v581_v28, %v585_v26  ;;  %v594_v33 = vrot.slane %v581_v28, %v593_v27  ;;  %v590_v36 = vrot.slane %v581_v28, %v589_v29  ;;  %v598_v37 = vrot.slane %v581_v28, %v597_v30 }
  0x14   : > { %317 = vperm.xlu0 %19752, %v308_v4   ;;  %v303_v9 = vld [vmem:[%s293_s18 + $0x8] sm:$0xff]  ;;  %v643_v10 = vcombine.high %v638_v6, %v638_v6  ;;  %v644_v11 = vcombine.high %v639_v7, %v639_v7  ;;  %647 = vst [vmem:[#allocation2 + $0x78] sm:$0xf] %v638_v6  ;;  %649 = vst [vmem:[#allocation2 + $0x88] sm:$0xf] %v639_v7  ;;  %v305_v12 = vld [vmem:[%s293_s18 + $0x18] sm:$0xff]  ;;  %v22070_v56 = vrot.slane %v581_v28, %v601_v42 }
  0x15   : > { %651 = vst [vmem:[#allocation2 + $0x98] sm:$0xf] %v640_v8  ;;  %v302_v13 = vld [vmem:[%s293_s18] sm:$0xff]  ;;  %335 = vmatprep.subr.mxu0 %v303_v9  ;;  %418 = vmatprep.subr.mxu1 %v305_v12  ;;  %v304_v14 = vld [vmem:[%s293_s18 + $0x10] sm:$0xff]  ;;  %s21853_s8 = smov 106   ;;  %s21854_s9 = smov 105  }
  0x16   : > { %648 = vst [vmem:[#allocation2 + $0x80] sm:$0xf] %v643_v10  ;;  %650 = vst [vmem:[#allocation2 + $0x90] sm:$0xf] %v644_v11  ;;  %336 = vmatpush1.msra.mxu0 %v302_v13  ;;  %419 = vmatpush1.msra.mxu1 %v304_v14  ;;  %v306_v15 = vld [vmem:[%s293_s18 + $0x20] sm:$0xff]  ;;  %s21855_s10 = smov 104  }
  0x17   : > { %15476 = vmatmul.mubr.msk.f32.vlgmr.msra.gmra.mrb[0].mxu0 %vm325_vm0, %v299_v5  ;;  %15479 = vmatmul.mubr.msk.f32.vlgmr.msra.gmra.mrb[0].mxu1 %vm325_vm0, %v299_v5  ;;  %s21856_s11 = smov 103   ;;  %s21857_s12 = smov 102   ;;  %vm1531_vm11 = vcmask 1022976   ;;  %vm5119_vm12 = vcmask 678912   ;;  %vm5418_vm13 = vcmask 670720   ;;  %vm29448_vm14 = vcmask 1014784  }
  0x18   : > { %405 = vmatprep.mubr.f32.mxu0 %v29200_v0  ;;  %488 = vmatprep.mubr.f32.mxu1 %v29200_v0  ;;  %s21858_s15 = smov 101   ;;  %s21859_s16 = smov 100   ;;  %vm5717_vm15 = vcmask 662528   ;;  %vm6614_vm4 = vcmask 637952   ;;  %vm2727_vm5 = vcmask 867328  }
  0x19   : > { %17004 = vmatprep.subr.mxu0 %v29200_v0  ;;  %s21860_s17 = smov 84   ;;  %s21861_s18 = smov 83  }
  0x1a   : > { %17005 = vmatpush3.msra.mxu0 %v306_v15  ;;  %s21862_s19 = smov 82   ;;  %s21863_s20 = smov 81  }
  0x1b   : > { %v21973_v17 = vld [vmem:[#allocation2 + $0x78] sm:$0xf]  ;;  %v21975_v18 = vld [vmem:[#allocation2 + $0x88] sm:$0xf]  ;;  %15477 = vmatmul.mubr.msk.f32.gmra.mrb[2].mxu0 %vm325_vm0, %v300_v16  ;;  %15480 = vmatmul.mubr.msk.f32.gmra.mrb[2].mxu1 %vm325_vm0, %v300_v16  ;;  %s21868_s22 = smov 62   ;;  %s21870_s14 = smov 60  }
  0x1c   : > { %411 = vmatprep.mubr.f32.mxu0 %v29200_v0  ;;  %494 = vmatprep.mubr.f32.mxu1 %v29200_v0  ;;  %s21872_s21 = smov 58   ;;  %s21875_s13 = smov 40  }
  0x1d   : > { %v21984_v20 = vld [vmem:[#allocation2 + $0x80] sm:$0xf]  ;;  %v21986_v21 = vld [vmem:[#allocation2 + $0x90] sm:$0xf] }
  0x1e   : > { %v21990_v22 = vpack.i.bf16 %v21986_v21, %v21975_v18  ;;  %v21994_v23 = vpack.i.bf16 %v21984_v20, %v21973_v17 }
  0x1f   : > { %15478 = vmatmul.mubr.msk.f32.gmra.mrb[4].mxu0 %vm325_vm0, %v301_v19  ;;  %15481 = vmatmul.mubr.msk.f32.gmra.mrb[4].mxu1 %vm325_vm0, %v301_v19 }
  0x20   : > { %17006 = vmatprep.mubr.msk.f32.mxu0 %vm21846_vm1, %v29200_v0  ;;  %19760 = vrot.lane.b32.xlu0 %v21990_v22, %s21847_s23 }
  0x21   : > { %19755 = vrot.lane.b32.xlu1 %v21994_v23, %s21847_s23  ;;  %4332 = vmatprep.mubr.f32.mxu1 %v29200_v0 }
  0x23   : > { %17007 = vmatmul.mubr.msk.f32.vlgmr.msra.gmra.mrb[6].mxu0 %vm325_vm0, %v299_v5 }
  0x24   : > { %17009 = vmatprep.mubr.msk.f32.mxu0 %vm21846_vm1, %v29200_v0  ;;  %19770 = vrot.lane.b32.xlu0 %v21990_v22, %s21848_s26 }
  0x25   : > { %19765 = vrot.lane.b32.xlu1 %v21994_v23, %s21848_s26 }
  0x27   : > { %17010 = vmatmul.mubr.msk.f32.gmra.mrb[8].mxu0 %vm325_vm0, %v300_v16 }
  0x28   : > { %17012 = vmatprep.mubr.msk.f32.mxu0 %vm21846_vm1, %v29200_v0  ;;  %19780 = vrot.lane.b32.xlu0 %v21990_v22, %s21849_s27  ;;  %vm6016_vm1 = vcmask 654336  }
  0x29   : > { %19775 = vrot.lane.b32.xlu1 %v21994_v23, %s21849_s27 }
  0x2b   : > { %17013 = vmatmul.mubr.msk.f32.gmra.mrb[10].mxu0 %vm325_vm0, %v301_v19  ;;  %vm29411_vm0 = vcmask 1006592  }
  0x2c   : > { %19790 = vrot.lane.b32.xlu0 %v21990_v22, %s29316_s28  ;;  %841 = vmatprep.mubr.f32.mxu0 %v29200_v0 }
  0x2d   : > { %19785 = vrot.lane.b32.xlu1 %v21994_v23, %s29316_s28 }
  0x30   : > { %19800 = vrot.lane.b32.xlu0 %v21990_v22, %s29290_s29 }
  0x31   : > { %19795 = vrot.lane.b32.xlu1 %v21994_v23, %s29290_s29 }
  0x34   : > { %19810 = vrot.lane.b32.xlu0 %v21990_v22, %s29288_s30 }
  0x35   : > { %19805 = vrot.lane.b32.xlu1 %v21994_v23, %s29288_s30 }
  0x38   : > { %19820 = vrot.lane.b32.xlu0 %v21990_v22, %s21853_s8 }
  0x39   : > { %19815 = vrot.lane.b32.xlu1 %v21994_v23, %s21853_s8 }
  0x3c   : > { %19830 = vrot.lane.b32.xlu0 %v21990_v22, %s21854_s9 }
  0x3d   : > { %19825 = vrot.lane.b32.xlu1 %v21994_v23, %s21854_s9 }
  0x40   : > { %19840 = vrot.lane.b32.xlu0 %v21990_v22, %s21855_s10 }
  0x41   : > { %19835 = vrot.lane.b32.xlu1 %v21994_v23, %s21855_s10 }
  0x44   : > { %19850 = vrot.lane.b32.xlu0 %v21990_v22, %s21856_s11 }
  0x45   : > { %19845 = vrot.lane.b32.xlu1 %v21994_v23, %s21856_s11 }
  0x48   : > { %19860 = vrot.lane.b32.xlu0 %v21990_v22, %s21857_s12 }
  0x49   : > { %19855 = vrot.lane.b32.xlu1 %v21994_v23, %s21857_s12 }
  0x8f   : > { %v22053_v31 = vpop.permute.xlu0 %312  ;;  %v323_v61 = vpop.permute.xlu1 %322 }
  0x93   : > { %v22063_v47 = vpop.permute.xlu0 %317 }
  0xea   : > { %v401_v34 = vpop.f32.mrb[0].mxu0  ;;  %v484_v35 = vpop.f32.mrb[0].mxu1 }
  0xeb   : > { %v402_v38 = vadd.f32 %v401_v34, %v22053_v31  ;;  %v485_v39 = vadd.f32 %v484_v35, %v22053_v31  ;;  %v403_v40 = vpop.f32.mrb[1].mxu0  ;;  %v486_v41 = vpop.f32.mrb[1].mxu1 }
  0xec   : > { %v404_v43 = vadd.f32 %v403_v40, %v22053_v31  ;;  %v487_v44 = vadd.f32 %v486_v41, %v22053_v31 }
  0xed   : > { %v22059_v45 = vmul.f32 %v586_v32, %v402_v38  ;;  %v22061_v46 = vmul.f32 %v594_v33, %v485_v39 }
  0xee   : > { %v22065_v48 = vmul.f32 %v590_v36, %v404_v43  ;;  %v611_v49 = vmul.f32 %v598_v37, %v487_v44  ;;  %v407_v50 = vpop.f32.mrb[2].mxu0  ;;  %v490_v51 = vpop.f32.mrb[2].mxu1 }
  0xef   : > { %625 = vst [vmem:[#allocation2 + $0x10] sm:$0xff] %v22061_v46  ;;  %v408_v52 = vadd.f32 %v407_v50, %v22063_v47  ;;  %v491_v53 = vadd.f32 %v490_v51, %v22063_v47  ;;  %v409_v54 = vpop.f32.mrb[3].mxu0  ;;  %v492_v55 = vpop.f32.mrb[3].mxu1 }
  0xf0   : > { %624 = vst [vmem:[#allocation2 + $0x8] sm:$0xff] %v22065_v48  ;;  %626 = vst [vmem:[#allocation2 + $0x18] sm:$0xff] %v611_v49  ;;  %v410_v57 = vadd.f32 %v409_v54, %v22063_v47  ;;  %v493_v58 = vadd.f32 %v492_v55, %v22063_v47  ;;  %v22076_v59 = vpack.i.bf16 %v611_v49, %v22061_v46 }
  0xf1   : > { %v22080_v60 = vpack.i.bf16 %v22065_v48, %v22059_v45  ;;  %v22082_v62 = vmul.f32 %v586_v32, %v408_v52  ;;  %v22084_v63 = vmul.f32 %v594_v33, %v491_v53  ;;  %v22088_v1 = vpack.i.bf16 %v22061_v46, %v22065_v48 }
  0xf2   : > { %v22090_v2 = vmul.f32 %v590_v36, %v410_v57  ;;  %v616_v3 = vmul.f32 %v598_v37, %v493_v58  ;;  %v413_v4 = vpop.f32.mrb[4].mxu0  ;;  %19870 = vrot.lane.b32.xlu0 %v22076_v59, %s21847_s23  ;;  %v496_v5 = vpop.f32.mrb[4].mxu1 }
  0xf3   : > { %19865 = vrot.lane.b32.xlu1 %v22080_v60, %s21847_s23  ;;  %630 = vst [vmem:[#allocation2 + $0x38] sm:$0xff] %v22084_v63  ;;  %v415_v6 = vpop.f32.mrb[5].mxu0  ;;  %v414_v7 = vadd.f32 %v413_v4, %v323_v61  ;;  %v497_v8 = vadd.f32 %v496_v5, %v323_v61  ;;  %v498_v9 = vpop.f32.mrb[5].mxu1  ;;  %v22101_v11 = vpack.i.bf16 %v22082_v62, %v22059_v45 }
  0xf4   : > { %629 = vst [vmem:[#allocation2 + $0x30] sm:$0xff] %v22090_v2  ;;  %631 = vst [vmem:[#allocation2 + $0x40] sm:$0xff] %v616_v3  ;;  %v22105_v12 = vpack.i.bf16 %v616_v3, %v22084_v63  ;;  %v22109_v13 = vpack.i.bf16 %v22090_v2, %v22082_v62  ;;  %v416_v14 = vadd.f32 %v415_v6, %v323_v61 }
  0xf5   : > { %v499_v15 = vadd.f32 %v498_v9, %v323_v61  ;;  %v22111_v16 = vmul.f32 %v586_v32, %v414_v7  ;;  %v22113_v19 = vmul.f32 %v594_v33, %v497_v8  ;;  %v22117_v25 = vpack.i.bf16 %v616_v3, %v611_v49  ;;  %v13172_v3 = vld [vmem:[#allocation2 + $0x80] sm:$0xf]  ;;  %v22192_v9 = vld [vmem:[#allocation2 + $0x98] sm:$0xf] }
  0xf6   : > { %v567_v26 = vpop.f32.mrb[6].mxu0  ;;  %19880 = vrot.lane.b32.xlu0 %v22076_v59, %s21848_s26  ;;  %v22123_v27 = vmul.f32 %v590_v36, %v416_v14  ;;  %v22129_v29 = vpack.i.bf16 %v22084_v63, %v22090_v2  ;;  %v22155_v38 = vpack.c.bf16 %v22084_v63, %v22061_v46  ;;  %29571 = vst [vmem:[#allocation10_spill] sm:$0xff] %v22192_v9 }
  0xf7   : > { %29564 = vst [vmem:[#allocation3_spill] sm:$0xff] %v22117_v25  ;;  %19875 = vrot.lane.b32.xlu1 %v22080_v60, %s21848_s26  ;;  %v22125_v28 = vmul.f32 %v598_v37, %v499_v15  ;;  %v568_v30 = vadd.f32 %v567_v26, %v22053_v31  ;;  %v17008_v32 = vpop.f32.mrb[7].mxu0  ;;  %633 = vst [vmem:[#allocation2 + $0x50] sm:$0xff] %v22111_v16  ;;  %v13162_v53 = vld [vmem:[#allocation2 + $0x18] sm:$0xff] }
  0xf8   : > { %635 = vst [vmem:[#allocation2 + $0x60] sm:$0xff] %v22113_v19  ;;  %634 = vst [vmem:[#allocation2 + $0x58] sm:$0xff] %v22123_v27  ;;  %v22146_v31 = vpack.i.bf16 %v22123_v27, %v22111_v16  ;;  %v22150_v36 = vpack.i.bf16 %v22113_v19, %v22123_v27  ;;  %v22226_v32 = vpop.permute.xlu0 %19760 }
  0xf9   : > { %636 = vst [vmem:[#allocation2 + $0x68] sm:$0xff] %v22125_v28  ;;  %v22142_v35 = vpack.i.bf16 %v22125_v28, %v22113_v19  ;;  %v612_v37 = vmul.f32 %v22070_v56, %v568_v30 }
  0xfa   : > { %v572_v39 = vpop.f32.mrb[8].mxu0  ;;  %19890 = vrot.lane.b32.xlu0 %v22076_v59, %s21849_s27  ;;  %v13165_v51 = vld [vmem:[#allocation2 + $0x38] sm:$0xff] }
  0xfb   : > { %19885 = vrot.lane.b32.xlu1 %v22080_v60, %s21849_s27  ;;  %627 = vst [vmem:[#allocation2 + $0x20] sm:$0xff] %v612_v37  ;;  %v573_v40 = vadd.f32 %v572_v39, %v22063_v47  ;;  %v17011_v41 = vpop.f32.mrb[9].mxu0  ;;  %v13161_v47 = vld [vmem:[#allocation2 + $0x10] sm:$0xff]  ;;  %v13166_v52 = vld [vmem:[#allocation2 + $0x40] sm:$0xff]  ;;  %v22228_v37 = vpop.permute.xlu1 %19755 }
  0xfc   : > { %v13164_v54 = vld [vmem:[#allocation2 + $0x30] sm:$0xff]  ;;  %v22178_v4 = vpack.i.bf16 %v13162_v53, %v13161_v47  ;;  %v22234_v39 = vpop.permute.xlu0 %19770 }
  0xfd   : > { %v617_v42 = vmul.f32 %v22070_v56, %v573_v40 }
  0xfe   : > { %19900 = vrot.lane.b32.xlu0 %v22076_v59, %s29316_s28  ;;  %v577_v43 = vpop.f32.mrb[10].mxu0  ;;  %29566 = vst [vmem:[#allocation5_spill] sm:$0xff] %v22178_v4 }
  0xff   : > { %19895 = vrot.lane.b32.xlu1 %v22080_v60, %s29316_s28  ;;  %632 = vst [vmem:[#allocation2 + $0x48] sm:$0xff] %v617_v42  ;;  %v578_v44 = vadd.f32 %v577_v43, %v323_v61  ;;  %v17014_v49 = vpop.f32.mrb[11].mxu0  ;;  %v13169_v55 = vld [vmem:[#allocation2 + $0x60] sm:$0xff]  ;;  %v13168_v58 = vld [vmem:[#allocation2 + $0x58] sm:$0xff]  ;;  %v22176_v61 = vpack.i.bf16 %v13166_v52, %v13165_v51  ;;  %v22236_v40 = vpop.permute.xlu1 %19765 }
 0x100   : > { %v13170_v57 = vld [vmem:[#allocation2 + $0x68] sm:$0xff]  ;;  %v22184_v7 = vpack.i.bf16 %v13172_v3, %v13168_v58  ;;  %v22246_v41 = vpop.permute.xlu0 %19780 }
 0x101   : > { %v622_v50 = vmul.f32 %v22070_v56, %v578_v44  ;;  %v13160_v56 = vld [vmem:[#allocation2 + $0x8] sm:$0xff]  ;;  %29565 = vst [vmem:[#allocation4_spill] sm:$0xff] %v22176_v61  ;;  %v22182_v6 = vpack.i.bf16 %v13170_v57, %v13169_v55 }
 0x102   : > { %19910 = vrot.lane.b32.xlu0 %v22076_v59, %s29290_s29  ;;  %v22180_v5 = vpack.i.bf16 %v13164_v54, %v13160_v56  ;;  %29569 = vst [vmem:[#allocation8_spill] sm:$0xff] %v22184_v7  ;;  %v22196_v15 = vld [vmem:[#allocation2 + $0x20] sm:$0xff] }
 0x103   : > { %19905 = vrot.lane.b32.xlu1 %v22080_v60, %s29290_s29  ;;  %637 = vst [vmem:[#allocation2 + $0x70] sm:$0xff] %v622_v50  ;;  %29568 = vst [vmem:[#allocation7_spill] sm:$0xff] %v22182_v6  ;;  %v22248_v42 = vpop.permute.xlu1 %19775 }
 0x104   : > { %29567 = vst [vmem:[#allocation6_spill] sm:$0xff] %v22180_v5  ;;  %29573 = vst [vmem:[#allocation12_spill] sm:$0xff] %v22196_v15  ;;  %v22254_v43 = vpop.permute.xlu0 %19790 }
 0x106   : > { %19920 = vrot.lane.b32.xlu0 %v22076_v59, %s29288_s30  ;;  %v22194_v14 = vld [vmem:[#allocation2 + $0x48] sm:$0xff] }
 0x107   : > { %19915 = vrot.lane.b32.xlu1 %v22080_v60, %s29288_s30  ;;  %29572 = vst [vmem:[#allocation11_spill] sm:$0xff] %v22194_v14  ;;  %v22256_v44 = vpop.permute.xlu1 %19785 }
 0x108   : > { %v22266_v49 = vpop.permute.xlu0 %19800 }
 0x109   : > { %29574 = vst [vmem:[#allocation13_spill] sm:$0xff] %v22266_v49 }
 0x10a   : > { %19930 = vrot.lane.b32.xlu0 %v22076_v59, %s21853_s8  ;;  %v22190_v8 = vld [vmem:[#allocation2 + $0x70] sm:$0xff] }
 0x10b   : > { %19925 = vrot.lane.b32.xlu1 %v22080_v60, %s21853_s8  ;;  %29570 = vst [vmem:[#allocation9_spill] sm:$0xff] %v22190_v8  ;;  %v22268_v50 = vpop.permute.xlu1 %19795 }
 0x10c   : > { %29575 = vst [vmem:[#allocation14_spill] sm:$0xff] %v22268_v50  ;;  %v22274_v47 = vpop.permute.xlu0 %19810 }
 0x10d   : > { %29576 = vst [vmem:[#allocation15_spill] sm:$0xff] %v22274_v47 }
 0x10e   : > { %19940 = vrot.lane.b32.xlu0 %v22076_v59, %s21854_s9 }
 0x10f   : > { %19935 = vrot.lane.b32.xlu1 %v22080_v60, %s21854_s9  ;;  %v22276_v51 = vpop.permute.xlu1 %19805 }
 0x110   : > { %29577 = vst [vmem:[#allocation16_spill] sm:$0xff] %v22276_v51  ;;  %v22286_v52 = vpop.permute.xlu0 %19820 }
 0x111   : > { %29578 = vst [vmem:[#allocation17_spill] sm:$0xff] %v22286_v52 }
 0x112   : > { %19950 = vrot.lane.b32.xlu0 %v22076_v59, %s21855_s10 }
 0x113   : > { %19945 = vrot.lane.b32.xlu1 %v22080_v60, %s21855_s10  ;;  %v22288_v53 = vpop.permute.xlu1 %19815 }
 0x114   : > { %29579 = vst [vmem:[#allocation18_spill] sm:$0xff] %v22288_v53  ;;  %v22294_v54 = vpop.permute.xlu0 %19830 }
 0x115   : > { %29580 = vst [vmem:[#allocation19_spill] sm:$0xff] %v22294_v54 }
 0x116   : > { %19960 = vrot.lane.b32.xlu0 %v22076_v59, %s21856_s11 }
 0x117   : > { %19955 = vrot.lane.b32.xlu1 %v22080_v60, %s21856_s11  ;;  %v22296_v55 = vpop.permute.xlu1 %19825 }
 0x118   : > { %29581 = vst [vmem:[#allocation20_spill] sm:$0xff] %v22296_v55  ;;  %v22306_v57 = vpop.permute.xlu0 %19840 }
 0x119   : > { %29582 = vst [vmem:[#allocation21_spill] sm:$0xff] %v22306_v57 }
 0x11a   : > { %19970 = vrot.lane.b32.xlu0 %v22076_v59, %s21857_s12 }
 0x11b   : > { %19965 = vrot.lane.b32.xlu1 %v22080_v60, %s21857_s12  ;;  %v22308_v58 = vpop.permute.xlu1 %19835 }
 0x11c   : > { %29583 = vst [vmem:[#allocation22_spill] sm:$0xff] %v22308_v58  ;;  %v22314_v3 = vpop.permute.xlu0 %19850 }
 0x11d   : > { %29584 = vst [vmem:[#allocation23_spill] sm:$0xff] %v22314_v3 }
 0x11e   : > { %19980 = vrot.lane.b32.xlu0 %v22076_v59, %s21858_s15 }
 0x11f   : > { %19975 = vrot.lane.b32.xlu1 %v22080_v60, %s21858_s15  ;;  %v22316_v56 = vpop.permute.xlu1 %19845 }
 0x120   : > { %29585 = vst [vmem:[#allocation24_spill] sm:$0xff] %v22316_v56  ;;  %v22326_v30 = vpop.permute.xlu0 %19860 }
 0x121   : > { %29586 = vst [vmem:[#allocation25_spill] sm:$0xff] %v22326_v30 }
 0x122   : > { %19990 = vrot.lane.b32.xlu0 %v22105_v12, %s21847_s23 }
 0x123   : > { %19985 = vrot.lane.b32.xlu1 %v22109_v13, %s21847_s23  ;;  %v22328_v26 = vpop.permute.xlu1 %19855 }
 0x124   : > { %29587 = vst [vmem:[#allocation26_spill] sm:$0xff] %v22328_v26 }
 0x126   : > { %20000 = vrot.lane.b32.xlu0 %v22105_v12, %s21848_s26 }
 0x127   : > { %19995 = vrot.lane.b32.xlu1 %v22109_v13, %s21848_s26 }
 0x12a   : > { %20010 = vrot.lane.b32.xlu0 %v22105_v12, %s21849_s27 }
 0x12b   : > { %20005 = vrot.lane.b32.xlu1 %v22109_v13, %s21849_s27 }
 0x12e   : > { %20020 = vrot.lane.b32.xlu0 %v22105_v12, %s29316_s28 }
 0x12f   : > { %20015 = vrot.lane.b32.xlu1 %v22109_v13, %s29316_s28 }
 0x132   : > { %20030 = vrot.lane.b32.xlu0 %v22105_v12, %s29290_s29 }
 0x133   : > { %20025 = vrot.lane.b32.xlu1 %v22109_v13, %s29290_s29 }
 0x136   : > { %20040 = vrot.lane.b32.xlu0 %v22105_v12, %s29288_s30 }
 0x137   : > { %20035 = vrot.lane.b32.xlu1 %v22109_v13, %s29288_s30 }
 0x13a   : > { %20050 = vrot.lane.b32.xlu0 %v22105_v12, %s21853_s8 }
 0x13b   : > { %20045 = vrot.lane.b32.xlu1 %v22109_v13, %s21853_s8 }
 0x13e   : > { %20060 = vrot.lane.b32.xlu0 %v22105_v12, %s21854_s9 }
 0x13f   : > { %20055 = vrot.lane.b32.xlu1 %v22109_v13, %s21854_s9 }
 0x142   : > { %20070 = vrot.lane.b32.xlu0 %v22105_v12, %s21855_s10 }
 0x143   : > { %20065 = vrot.lane.b32.xlu1 %v22109_v13, %s21855_s10 }
 0x146   : > { %20080 = vrot.lane.b32.xlu0 %v22105_v12, %s21856_s11 }
 0x147   : > { %20075 = vrot.lane.b32.xlu1 %v22109_v13, %s21856_s11 }
 0x14a   : > { %20090 = vrot.lane.b32.xlu0 %v22105_v12, %s21857_s12 }
 0x14b   : > { %20085 = vrot.lane.b32.xlu1 %v22109_v13, %s21857_s12 }
 0x14e   : > { %20100 = vrot.lane.b32.xlu0 %v22105_v12, %s21858_s15 }
 0x14f   : > { %20095 = vrot.lane.b32.xlu1 %v22109_v13, %s21858_s15 }
 0x152   : > { %20110 = vrot.lane.b32.xlu0 %v22142_v35, %s21847_s23 }
 0x153   : > { %20105 = vrot.lane.b32.xlu1 %v22146_v31, %s21847_s23  ;;  %s21865_s23 = smov 80  }
 0x156   : > { %20120 = vrot.lane.b32.xlu0 %v22142_v35, %s21848_s26 }
 0x157   : > { %20115 = vrot.lane.b32.xlu1 %v22146_v31, %s21848_s26 }
 0x15a   : > { %20130 = vrot.lane.b32.xlu0 %v22142_v35, %s21849_s27 }
 0x15b   : > { %20125 = vrot.lane.b32.xlu1 %v22146_v31, %s21849_s27  ;;  %s21879_s27 = smov 36  }
 0x15e   : > { %20140 = vrot.lane.b32.xlu0 %v22142_v35, %s29316_s28 }
 0x15f   : > { %20135 = vrot.lane.b32.xlu1 %v22146_v31, %s29316_s28  ;;  %s21888_s28 = smov 12  }
 0x162   : > { %20150 = vrot.lane.b32.xlu0 %v22142_v35, %s29290_s29 }
 0x163   : > { %20145 = vrot.lane.b32.xlu1 %v22146_v31, %s29290_s29  ;;  %s21878_s29 = smov 37  }
 0x164   : > { %v22334_v34 = vpop.permute.xlu0 %19870 }
 0x165   : > { %v22336_v33 = vpop.permute.xlu1 %19865  ;;  %v19873_v49 = vunpack.i.h.bf16 %v22334_v34 }
 0x166   : > { %20160 = vrot.lane.b32.xlu0 %v22142_v35, %s29288_s30 }
 0x167   : > { %20155 = vrot.lane.b32.xlu1 %v22146_v31, %s29288_s30  ;;  %s29924_s30 = smov 124  }
 0x168   : > { %v22342_v0 = vpop.permute.xlu0 %19880 }
 0x169   : > { %v22344_v10 = vpop.permute.xlu1 %19875 }
 0x16a   : > { %20170 = vrot.lane.b32.xlu0 %v22142_v35, %s21853_s8 }
 0x16b   : > { %20165 = vrot.lane.b32.xlu1 %v22146_v31, %s21853_s8  ;;  %s21873_s8 = smov 57  }
 0x16c   : > { %v22350_v24 = vpop.permute.xlu0 %19890 }
 0x16d   : > { %v22352_v15 = vpop.permute.xlu1 %19885 }
 0x16e   : > { %20180 = vrot.lane.b32.xlu0 %v22142_v35, %s21854_s9 }
 0x16f   : > { %20175 = vrot.lane.b32.xlu1 %v22146_v31, %s21854_s9  ;;  %s21880_s9 = smov 35  }
 0x170   : > { %v22358_v14 = vpop.permute.xlu0 %19900 }
 0x171   : > { %v22360_v8 = vpop.permute.xlu1 %19895 }
 0x172   : > { %20190 = vrot.lane.b32.xlu0 %v22142_v35, %s21855_s10 }
 0x173   : > { %20185 = vrot.lane.b32.xlu1 %v22146_v31, %s21855_s10  ;;  %s21874_s10 = smov 56  }
 0x174   : > { %v22366_v9 = vpop.permute.xlu0 %19910 }
 0x175   : > { %29588 = vst [vmem:[#allocation27_spill] sm:$0xff] %v22366_v9  ;;  %v22368_v7 = vpop.permute.xlu1 %19905  ;;  %v19767_v9 = vunpack.i.l.bf16 %v22236_v40 }
 0x176   : > { %29589 = vst [vmem:[#allocation28_spill] sm:$0xff] %v22368_v7  ;;  %20200 = vrot.lane.b32.xlu0 %v22142_v35, %s21856_s11 }
 0x177   : > { %20195 = vrot.lane.b32.xlu1 %v22146_v31, %s21856_s11  ;;  %s21871_s11 = smov 59  }
 0x178   : > { %v22374_v6 = vpop.permute.xlu0 %19920 }
 0x179   : > { %29590 = vst [vmem:[#allocation29_spill] sm:$0xff] %v22374_v6  ;;  %v22376_v5 = vpop.permute.xlu1 %19915 }
 0x17a   : > { %29591 = vst [vmem:[#allocation30_spill] sm:$0xff] %v22376_v5  ;;  %20210 = vrot.lane.b32.xlu0 %v22142_v35, %s21857_s12 }
 0x17b   : > { %20205 = vrot.lane.b32.xlu1 %v22146_v31, %s21857_s12  ;;  %s21866_s12 = smov 79  }
 0x17c   : > { %v22382_v4 = vpop.permute.xlu0 %19930 }
 0x17d   : > { %29592 = vst [vmem:[#allocation31_spill] sm:$0xff] %v22382_v4  ;;  %v22384_v61 = vpop.permute.xlu1 %19925 }
 0x17e   : > { %29593 = vst [vmem:[#allocation32_spill] sm:$0xff] %v22384_v61  ;;  %20225 = vrot.lane.b32.xlu0 %v22142_v35, %s21858_s15 }
 0x17f   : > { %20215 = vrot.lane.b32.xlu1 %v22146_v31, %s21858_s15 }
 0x180   : > { %v22390_v26 = vpop.permute.xlu0 %19940 }
 0x181   : > { %29594 = vst [vmem:[#allocation33_spill] sm:$0xff] %v22390_v26  ;;  %v22392_v30 = vpop.permute.xlu1 %19935 }
 0x182   : > { %29595 = vst [vmem:[#allocation34_spill] sm:$0xff] %v22392_v30  ;;  %20230 = vrot.lane.b32.xlu0 %v21990_v22, %s21858_s15 }
 0x183   : > { %20220 = vrot.lane.b32.xlu1 %v21994_v23, %s21858_s15  ;;  %s21869_s15 = smov 61  }
 0x184   : > { %v22398_v56 = vpop.permute.xlu0 %19950 }
 0x185   : > { %29596 = vst [vmem:[#allocation35_spill] sm:$0xff] %v22398_v56  ;;  %v22400_v3 = vpop.permute.xlu1 %19945 }
 0x186   : > { %29597 = vst [vmem:[#allocation36_spill] sm:$0xff] %v22400_v3  ;;  %20240 = vrot.lane.b32.xlu0 %v22076_v59, %s21859_s16 }
 0x187   : > { %20235 = vrot.lane.b32.xlu1 %v22080_v60, %s21859_s16 }
 0x188   : > { %v22404_v58 = vpop.permute.xlu0 %19960 }
 0x189   : > { %29598 = vst [vmem:[#allocation37_spill] sm:$0xff] %v22404_v58  ;;  %v22406_v57 = vpop.permute.xlu1 %19955  ;;  %v19868_v58 = vunpack.i.h.bf16 %v22336_v33 }
 0x18a   : > { %29599 = vst [vmem:[#allocation38_spill] sm:$0xff] %v22406_v57  ;;  %20250 = vrot.lane.b32.xlu0 %v22105_v12, %s21859_s16  ;;  %v29233_v57 = vunpack.i.l.bf16 %v22334_v34 }
 0x18b   : > { %20245 = vrot.lane.b32.xlu1 %v22109_v13, %s21859_s16 }
 0x18c   : > { %v22410_v55 = vpop.permute.xlu0 %19970 }
 0x18d   : > { %29600 = vst [vmem:[#allocation39_spill] sm:$0xff] %v22410_v55  ;;  %v22412_v54 = vpop.permute.xlu1 %19965  ;;  %v19867_v55 = vunpack.i.l.bf16 %v22336_v33  ;;  %v731_v33 = vsel %vm729_vm2, %v19868_v58, %v29233_v57  ;;  %v29610_v57 = vpack.i.bf16 %v22090_v2, %v22061_v46 }
 0x18e   : > { %29601 = vst [vmem:[#allocation40_spill] sm:$0xff] %v22412_v54  ;;  %20265 = vrot.lane.b32.xlu0 %v22142_v35, %s21859_s16 }
 0x18f   : > { %20255 = vrot.lane.b32.xlu1 %v22146_v31, %s21859_s16 }
 0x190   : > { %v22416_v3 = vpop.permute.xlu0 %19980 }
 0x191   : > { %v22418_v56 = vpop.permute.xlu1 %19975  ;;  %v19982_v46 = vunpack.i.l.bf16 %v22416_v3 }
 0x192   : > { %20270 = vrot.lane.b32.xlu0 %v21990_v22, %s21859_s16  ;;  %v730_v22 = vsel %vm729_vm2, %v19867_v55, %v19868_v58 }
 0x193   : > { %20260 = vrot.lane.b32.xlu1 %v21994_v23, %s21859_s16  ;;  %s21876_s16 = smov 39  }
 0x194   : > { %v22425_v30 = vpop.permute.xlu0 %19990 }
 0x195   : > { %v19986_v54 = vpop.permute.xlu1 %19985  ;;  %v29234_v26 = vunpack.i.l.bf16 %v22425_v30 }
 0x196   : > { %v19988_v53 = vunpack.i.h.bf16 %v19986_v54  ;;  %v19987_v52 = vunpack.i.l.bf16 %v19986_v54  ;;  %20280 = vrot.lane.b32.xlu0 %v22076_v59, %s21860_s17 }
 0x197   : > { %20275 = vrot.lane.b32.xlu1 %v22080_v60, %s21860_s17 }
 0x198   : > { %v733_v23 = vsel %vm729_vm2, %v19987_v52, %v19988_v53  ;;  %v734_v61 = vsel %vm729_vm2, %v19988_v53, %v29234_v26  ;;  %v22438_v4 = vpop.permute.xlu0 %20000  ;;  %v20309_v53 = vpack.i.bf16 %v21986_v21, %v21973_v17 }
 0x199   : > { %v22440_v54 = vpop.permute.xlu1 %19995  ;;  %v17848_v51 = vpack.c.bf16 %v734_v61, %v731_v33  ;;  %v17850_v47 = vpack.c.bf16 %v733_v23, %v730_v22  ;;  %v22454_v61 = vpack.i.bf16 %v21975_v18, %v21984_v20  ;;  %v20349_v33 = vpack.i.bf16 %v21986_v21, %v22125_v28 }
 0x19a   : > { %20290 = vrot.lane.b32.xlu0 %v22105_v12, %s21860_s17  ;;  %v29613_v28 = vpack.i.bf16 %v22082_v62, %v22084_v63  ;;  %v19762_v63 = vunpack.i.l.bf16 %v22226_v32 }
 0x19b   : > { %20285 = vrot.lane.b32.xlu1 %v22109_v13, %s21860_s17  ;;  %17849 = vmatprep.subr.bf16.mxu0 %v17848_v51 }
 0x19c   : > { %17851 = vmatpush1.bf16.msra.mxu0 %v17850_v47  ;;  %v22444_v52 = vpop.permute.xlu0 %20010 }
 0x19d   : > { %v22446_v55 = vpop.permute.xlu1 %20005 }
 0x19e   : > { %20305 = vrot.lane.b32.xlu0 %v22142_v35, %s21860_s17 }
 0x19f   : > { %20295 = vrot.lane.b32.xlu1 %v22146_v31, %s21860_s17 }
 0x1a0   : > { %v22456_v58 = vpop.permute.xlu0 %20020 }
 0x1a1   : > { %v22458_v22 = vpop.permute.xlu1 %20015 }
 0x1a2   : > { %20310 = vrot.lane.b32.xlu0 %v20309_v53, %s21860_s17 }
 0x1a3   : > { %20300 = vrot.lane.b32.xlu1 %v22454_v61, %s21860_s17  ;;  %s21867_s17 = smov 78  }
 0x1a4   : > { %v22461_v47 = vpop.permute.xlu0 %20030 }
 0x1a5   : > { %v22463_v51 = vpop.permute.xlu1 %20025 }
 0x1a6   : > { %20320 = vrot.lane.b32.xlu0 %v22076_v59, %s21861_s18 }
 0x1a7   : > { %20315 = vrot.lane.b32.xlu1 %v22080_v60, %s21861_s18 }
 0x1a8   : > { %v22467_v35 = vpop.permute.xlu0 %20040 }
 0x1a9   : > { %29602 = vst [vmem:[#allocation41_spill] sm:$0xff] %v22467_v35  ;;  %v22469_v18 = vpop.permute.xlu1 %20035 }
 0x1aa   : > { %29603 = vst [vmem:[#allocation42_spill] sm:$0xff] %v22469_v18  ;;  %20330 = vrot.lane.b32.xlu0 %v22105_v12, %s21861_s18  ;;  %v22487_v12 = vpack.i.bf16 %v21973_v17, %v22111_v16 }
 0x1ab   : > { %20325 = vrot.lane.b32.xlu1 %v22109_v13, %s21861_s18 }
 0x1ac   : > { %v22473_v20 = vpop.permute.xlu0 %20050 }
 0x1ad   : > { %29604 = vst [vmem:[#allocation43_spill] sm:$0xff] %v22473_v20  ;;  %v22475_v31 = vpop.permute.xlu1 %20045 }
 0x1ae   : > { %29605 = vst [vmem:[#allocation44_spill] sm:$0xff] %v22475_v31  ;;  %20335 = vrot.lane.b32.xlu0 %v22454_v61, %s21861_s18 }
 0x1af   : > { %20340 = vrot.lane.b32.xlu1 %v22150_v36, %s21861_s18 }
 0x1b0   : > { %v22479_v23 = vpop.permute.xlu0 %20060 }
 0x1b1   : > { %29606 = vst [vmem:[#allocation45_spill] sm:$0xff] %v22479_v23  ;;  %v22481_v59 = vpop.permute.xlu1 %20055 }
 0x1b2   : > { %29607 = vst [vmem:[#allocation46_spill] sm:$0xff] %v22481_v59  ;;  %20350 = vrot.lane.b32.xlu0 %v20349_v33, %s21861_s18 }
 0x1b3   : > { %20345 = vrot.lane.b32.xlu1 %v22487_v12, %s21861_s18  ;;  %s21877_s18 = smov 38  }
 0x1b4   : > { %v22490_v13 = vpop.permute.xlu0 %20070 }
 0x1b5   : > { %29608 = vst [vmem:[#allocation47_spill] sm:$0xff] %v22490_v13  ;;  %v22492_v53 = vpop.permute.xlu1 %20065 }
 0x1b6   : > { %29609 = vst [vmem:[#allocation48_spill] sm:$0xff] %v22492_v53  ;;  %20360 = vrot.lane.b32.xlu0 %v29610_v57, %s21862_s19  ;;  %v19977_v57 = vunpack.i.l.bf16 %v22418_v56 }
 0x1b7   : > { %20355 = vrot.lane.b32.xlu1 %v22080_v60, %s21862_s19  ;;  %v19978_v60 = vunpack.i.h.bf16 %v22418_v56  ;;  %v19757_v56 = vunpack.i.l.bf16 %v22228_v37 }
 0x1b8   : > { %v22500_v21 = vpop.permute.xlu0 %20080 }
 0x1b9   : > { %29611 = vst [vmem:[#allocation49_spill] sm:$0xff] %v22500_v21  ;;  %v22502_v17 = vpop.permute.xlu1 %20075  ;;  %v4223_v23 = vsel %vm4222_vm3, %v19977_v57, %v19978_v60  ;;  %v19993_v57 = vunpack.i.h.bf16 %v22425_v30 }
 0x1ba   : > { %29612 = vst [vmem:[#allocation50_spill] sm:$0xff] %v22502_v17  ;;  %20370 = vrot.lane.b32.xlu0 %v22150_v36, %s21862_s19  ;;  %v19983_v17 = vunpack.i.h.bf16 %v22416_v3  ;;  %v4224_v3 = vsel %vm4222_vm3, %v19978_v60, %v19982_v46 }
 0x1bb   : > { %20365 = vrot.lane.b32.xlu1 %v29613_v28, %s21862_s19  ;;  %v19758_v28 = vunpack.i.h.bf16 %v22228_v37 }
 0x1bc   : > { %v22510_v33 = vpop.permute.xlu0 %20090 }
 0x1bd   : > { %29614 = vst [vmem:[#allocation51_spill] sm:$0xff] %v22510_v33  ;;  %v22512_v26 = vpop.permute.xlu1 %20085 }
 0x1be   : > { %29615 = vst [vmem:[#allocation52_spill] sm:$0xff] %v22512_v26  ;;  %20380 = vrot.lane.b32.xlu0 %v22487_v12, %s21862_s19 }
 0x1bf   : > { %20375 = vrot.lane.b32.xlu1 %v22454_v61, %s21862_s19 }
 0x1c0   : > { %v20101_v26 = vpop.permute.xlu0 %20100 }
 0x1c1   : > { %v20096_v33 = vpop.permute.xlu1 %20095  ;;  %v20103_v21 = vunpack.i.h.bf16 %v20101_v26  ;;  %v20102_v53 = vunpack.i.l.bf16 %v20101_v26 }
 0x1c2   : > { %v20098_v13 = vunpack.i.h.bf16 %v20096_v33  ;;  %v20097_v59 = vunpack.i.l.bf16 %v20096_v33  ;;  %20390 = vrot.lane.b32.xlu0 %v22088_v1, %s21863_s20  ;;  %v4225_v33 = vsel %vm4222_vm3, %v19982_v46, %v19983_v17 }
 0x1c3   : > { %20385 = vrot.lane.b32.xlu1 %v22117_v25, %s21862_s19  ;;  %v4228_v37 = vsel %vm4222_vm3, %v20102_v53, %v20103_v21 }
 0x1c4   : > { %v4226_v31 = vsel %vm4222_vm3, %v20097_v59, %v20098_v13  ;;  %v4227_v26 = vsel %vm4222_vm3, %v20098_v13, %v20102_v53  ;;  %v20111_v20 = vpop.permute.xlu0 %20110  ;;  %v22536_v35 = vpack.c.bf16 %v4228_v37, %v4225_v33  ;;  %v740_v59 = vsel %vm729_vm2, %v19758_v28, %v19762_v63  ;;  %v15485_v33 = vld [vmem:[%s29197_s5 + $0x30] sm:$0xff] }
 0x1c5   : > { %v20106_v5 = vpop.permute.xlu1 %20105  ;;  %v18088_v6 = vpack.c.bf16 %v4227_v26, %v4224_v3  ;;  %v18090_v18 = vpack.c.bf16 %v4226_v31, %v4223_v23  ;;  %v20112_v25 = vunpack.i.l.bf16 %v20111_v20  ;;  %v739_v13 = vsel %vm729_vm2, %v19757_v56, %v19758_v28 }
 0x1c6   : > { %29616 = vst [vmem:[#allocation53_spill] sm:$0xff] %v22536_v35  ;;  %v20108_v50 = vunpack.i.h.bf16 %v20106_v5  ;;  %v20107_v60 = vunpack.i.l.bf16 %v20106_v5  ;;  %20400 = vrot.lane.b32.xlu0 %v22101_v11, %s21863_s20  ;;  %v20113_v23 = vunpack.i.h.bf16 %v20111_v20  ;;  %v29619_v28 = vunpack.i.l.bf16 %v22425_v30 }
 0x1c7   : > { %20395 = vrot.lane.b32.xlu1 %v22129_v29, %s21863_s20  ;;  %18089 = vmatprep.subr.bf16.mxu1 %v18088_v6  ;;  %v19763_v6 = vunpack.i.h.bf16 %v22226_v32 }
 0x1c8   : > { %v737_v53 = vsel %vm729_vm2, %v20108_v50, %v20112_v25  ;;  %v736_v31 = vsel %vm729_vm2, %v20107_v60, %v20108_v50  ;;  %18091 = vmatpush1.bf16.msra.mxu1 %v18090_v18  ;;  %v22547_v5 = vpop.permute.xlu0 %20120  ;;  %v735_v56 = vsel %vm729_vm2, %v29619_v28, %v19993_v57  ;;  %v29620_v50 = vunpack.i.l.bf16 %v22334_v34  ;;  %v21677_v28 = vld [vmem:[#allocation2 + $0x80] sm:$0xf] }
 0x1c9   : > { %v17855_v21 = vpack.c.bf16 %v739_v13, %v736_v31  ;;  %v22549_v17 = vpop.permute.xlu1 %20115  ;;  %v17852_v46 = vpack.c.bf16 %v740_v59, %v737_v53  ;;  %v738_v30 = vsel %vm729_vm2, %v20112_v25, %v20113_v23  ;;  %v741_v34 = vsel %vm729_vm2, %v19762_v63, %v19763_v6  ;;  %v15486_v63 = vld [vmem:[%s29197_s5 + $0x38] sm:$0xff]  ;;  %v15487_v13 = vld [vmem:[%s29197_s5 + $0x40] sm:$0xff] }
 0x1ca   : > { %20410 = vrot.lane.b32.xlu0 %v22454_v61, %s21863_s20  ;;  %v732_v18 = vsel %vm729_vm2, %v29620_v50, %v19873_v49  ;;  %v17862_v25 = vpack.c.bf16 %v741_v34, %v738_v30  ;;  %v29621_v57 = vmov 0.0   ;;  %v29624_v53 = vpack.c.bf16 %v22090_v2, %v22065_v48 }
 0x1cb   : > { %20405 = vrot.lane.b32.xlu1 %v22150_v36, %s21863_s20  ;;  %17854 = vmatprep.subr.msk.bf16.mxu0 %vm22552_vm6, %v17852_v46  ;;  %v17858_v20 = vpack.c.bf16 %v735_v56, %v732_v18  ;;  %v21676_v46 = vld [vmem:[#allocation2 + $0x88] sm:$0xf]  ;;  %v15490_v18 = vld [vmem:[%s29197_s5 + $0x58] sm:$0xff]  ;;  %v17872_v34 = vpack.c.bf16 %v21677_v28, %v22123_v27  ;;  %vm6315_vm2 = vcmask 646144  }
 0x1cc   : > { %17857 = vmatpush1.bf16.msk.msra.mxu0 %vm22552_vm6, %v17855_v21  ;;  %v22572_v32 = vpop.permute.xlu0 %20130  ;;  %v15488_v21 = vld [vmem:[%s29197_s5 + $0x48] sm:$0xff]  ;;  %v22643_v56 = vpack.i.bf16 %v21676_v46, %v21677_v28  ;;  %v22684_v27 = vld [vmem:[#allocation2 + $0x78] sm:$0xf] }
 0x1cd   : > { %v22574_v26 = vpop.permute.xlu1 %20125  ;;  %17859 = vmatprep.subr.bf16.mxu0 %v17858_v20 }
 0x1ce   : > { %20420 = vrot.lane.b32.xlu0 %v22088_v1, %s21865_s23 }
 0x1cf   : > { %20415 = vrot.lane.b32.xlu1 %v22487_v12, %s21863_s20  ;;  %15493 = vmatmul.mubr.msk.f32.vlgmr.msra.gmra.mrb[12].mxu0 %vm751_vm7, %v15485_v33 }
 0x1d0   : > { %17861 = vmatpush3.bf16.msra.mxu0 %v17858_v20  ;;  %v22585_v49 = vpop.permute.xlu0 %20140  ;;  %847 = vmatprep.mubr.f32.mxu0 %v29621_v57 }
 0x1d1   : > { %v22587_v37 = vpop.permute.xlu1 %20135  ;;  %17864 = vmatprep.subr.msk.bf16.mxu0 %vm22552_vm6, %v17862_v25 }
 0x1d2   : > { %20430 = vrot.lane.b32.xlu0 %v22101_v11, %s21865_s23 }
 0x1d3   : > { %20425 = vrot.lane.b32.xlu1 %v22129_v29, %s21865_s23  ;;  %15494 = vmatmul.mubr.msk.f32.gmra.mrb[14].mxu0 %vm751_vm7, %v15486_v63 }
 0x1d4   : > { %17867 = vmatpush3.bf16.msk.msra.mxu0 %vm22552_vm6, %v17862_v25  ;;  %v22602_v60 = vpop.permute.xlu0 %20150  ;;  %853 = vmatprep.mubr.f32.mxu0 %v29621_v57  ;;  %v29633_v25 = vpack.c.bf16 %v22082_v62, %v22059_v45  ;;  %v17875_v45 = vpack.c.bf16 %v22684_v27, %v22111_v16 }
 0x1d5   : > { %29622 = vst [vmem:[#allocation54_spill] sm:$0xff] %v22602_v60  ;;  %v22604_v59 = vpop.permute.xlu1 %20145  ;;  %17869 = vmatprep.subr.bf16.mxu0 %v29624_v53  ;;  %v29647_v60 = vunpack.i.l.bf16 %v22234_v39 }
 0x1d6   : > { %29623 = vst [vmem:[#allocation55_spill] sm:$0xff] %v22604_v59  ;;  %20440 = vrot.lane.b32.xlu0 %v22454_v61, %s21865_s23  ;;  %v15489_v61 = vld [vmem:[%s29197_s5 + $0x50] sm:$0xff] }
 0x1d7   : > { %20435 = vrot.lane.b32.xlu1 %v22150_v36, %s21865_s23  ;;  %15495 = vmatmul.mubr.msk.f32.gmra.mrb[16].mxu0 %vm751_vm7, %v15487_v13 }
 0x1d8   : > { %v22618_v31 = vpop.permute.xlu0 %20160  ;;  %859 = vmatprep.mubr.f32.mxu0 %v29621_v57 }
 0x1d9   : > { %29625 = vst [vmem:[#allocation56_spill] sm:$0xff] %v22618_v31  ;;  %v22620_v23 = vpop.permute.xlu1 %20155 }
 0x1da   : > { %29626 = vst [vmem:[#allocation57_spill] sm:$0xff] %v22620_v23  ;;  %20450 = vrot.lane.b32.xlu0 %v22088_v1, %s21866_s12  ;;  %v29644_v23 = vunpack.i.l.bf16 %v22547_v5 }
 0x1db   : > { %20445 = vrot.lane.b32.xlu1 %v22487_v12, %s21865_s23  ;;  %15496 = vmatmul.mubr.msk.f32.gmra.mrb[18].mxu0 %vm751_vm7, %v15488_v21 }
 0x1dc   : > { %v22631_v48 = vpop.permute.xlu0 %20170  ;;  %865 = vmatprep.mubr.f32.mxu0 %v29621_v57 }
 0x1dd   : > { %29627 = vst [vmem:[#allocation58_spill] sm:$0xff] %v22631_v48  ;;  %v22633_v2 = vpop.permute.xlu1 %20165 }
 0x1de   : > { %29628 = vst [vmem:[#allocation59_spill] sm:$0xff] %v22633_v2  ;;  %20460 = vrot.lane.b32.xlu0 %v22101_v11, %s21866_s12  ;;  %v20118_v2 = vunpack.i.h.bf16 %v22549_v17 }
 0x1df   : > { %20455 = vrot.lane.b32.xlu1 %v22129_v29, %s21866_s12  ;;  %15497 = vmatmul.mubr.msk.f32.gmra.mrb[20].mxu0 %vm751_vm7, %v15489_v61 }
 0x1e0   : > { %v22646_v6 = vpop.permute.xlu0 %20180  ;;  %871 = vmatprep.mubr.f32.mxu0 %v29621_v57  ;;  %v1240_v31 = vsel %vm1232_vm8, %v20118_v2, %v29644_v23  ;;  %v20117_v23 = vunpack.i.l.bf16 %v22549_v17 }
 0x1e1   : > { %29629 = vst [vmem:[#allocation60_spill] sm:$0xff] %v22646_v6  ;;  %v22648_v50 = vpop.permute.xlu1 %20175 }
 0x1e2   : > { %29630 = vst [vmem:[#allocation61_spill] sm:$0xff] %v22648_v50  ;;  %20470 = vrot.lane.b32.xlu0 %v22643_v56, %s21866_s12 }
 0x1e3   : > { %20465 = vrot.lane.b32.xlu1 %v22150_v36, %s21866_s12  ;;  %15498 = vmatmul.mubr.msk.f32.gmra.mrb[22].mxu0 %vm751_vm7, %v15490_v18 }
 0x1e4   : > { %v22659_v20 = vpop.permute.xlu0 %20190  ;;  %17023 = vmatprep.mubr.msk.f32.mxu0 %vm751_vm7, %v15485_v33 }
 0x1e5   : > { %29631 = vst [vmem:[#allocation62_spill] sm:$0xff] %v22659_v20  ;;  %v22661_v30 = vpop.permute.xlu1 %20185 }
 0x1e6   : > { %29632 = vst [vmem:[#allocation63_spill] sm:$0xff] %v22661_v30  ;;  %20480 = vrot.lane.b32.xlu0 %v22088_v1, %s21867_s17 }
 0x1e7   : > { %20475 = vrot.lane.b32.xlu1 %v22487_v12, %s21866_s12  ;;  %17024 = vmatmul.mubr.msk.f32.vlgmr.msra.gmra.mrb[24].mxu0 %vm751_vm7, %v15486_v63  ;;  %v29257_v63 = vunpack.i.h.bf16 %v22440_v54 }
 0x1e8   : > { %17871 = vmatpush1.bf16.msra.mxu0 %v29633_v25  ;;  %v22673_v53 = vpop.permute.xlu0 %20200  ;;  %17026 = vmatprep.mubr.msk.f32.mxu0 %vm751_vm7, %v15487_v13  ;;  %v29638_v13 = vunpack.i.l.bf16 %v22438_v4 }
 0x1e9   : > { %29634 = vst [vmem:[#allocation64_spill] sm:$0xff] %v22673_v53  ;;  %v22675_v35 = vpop.permute.xlu1 %20195  ;;  %17874 = vmatprep.subr.msk.bf16.mxu0 %vm22552_vm6, %v17872_v34  ;;  %v22710_v34 = vld [vmem:[%s29197_s5] sm:$0xff] }
 0x1ea   : > { %29635 = vst [vmem:[#allocation65_spill] sm:$0xff] %v22675_v35  ;;  %20490 = vrot.lane.b32.xlu0 %v22101_v11, %s21867_s17  ;;  %v29639_v35 = vunpack.i.l.bf16 %v22342_v0 }
 0x1eb   : > { %20485 = vrot.lane.b32.xlu1 %v22129_v29, %s21867_s17  ;;  %17027 = vmatmul.mubr.msk.f32.gmra.mrb[26].mxu0 %vm751_vm7, %v15488_v21  ;;  %v17882_v21 = vpack.c.bf16 %v21676_v46, %v22113_v19  ;;  %v29640_v19 = vunpack.i.h.bf16 %v22344_v10 }
 0x1ec   : > { %17877 = vmatpush1.bf16.msk.msra.mxu0 %vm22552_vm6, %v17875_v45  ;;  %v22691_v62 = vpop.permute.xlu0 %20210  ;;  %17029 = vmatprep.mubr.msk.f32.mxu0 %vm751_vm7, %v15489_v61 }
 0x1ed   : > { %29636 = vst [vmem:[#allocation66_spill] sm:$0xff] %v22691_v62  ;;  %v22693_v33 = vpop.permute.xlu1 %20205  ;;  %17879 = vmatprep.subr.bf16.mxu0 %v22155_v38  ;;  %v1234_v46 = vsel %vm1232_vm8, %v29640_v19, %v29639_v35 }
 0x1ee   : > { %29637 = vst [vmem:[#allocation67_spill] sm:$0xff] %v22693_v33  ;;  %20500 = vrot.lane.b32.xlu0 %v22643_v56, %s21867_s17 }
 0x1ef   : > { %20495 = vrot.lane.b32.xlu1 %v22150_v36, %s21867_s17  ;;  %17030 = vmatmul.mubr.msk.f32.gmra.mrb[28].mxu0 %vm751_vm7, %v15490_v18 }
 0x1f0   : > { %v20226_v28 = vpop.permute.xlu0 %20225  ;;  %1061 = vmatprep.mubr.f32.mxu0 %v29621_v57 }
 0x1f1   : > { %v20216_v61 = vpop.permute.xlu1 %20215  ;;  %v20228_v25 = vunpack.i.h.bf16 %v20226_v28  ;;  %v20227_v45 = vunpack.i.l.bf16 %v20226_v28  ;;  %v1237_v28 = vsel %vm1232_vm8, %v29257_v63, %v29638_v13 }
 0x1f2   : > { %v20218_v16 = vunpack.i.h.bf16 %v20216_v61  ;;  %20510 = vrot.lane.b32.xlu0 %v22088_v1, %s21868_s22  ;;  %v20217_v18 = vunpack.i.l.bf16 %v20216_v61  ;;  %v22729_v61 = vld [vmem:[%s29197_s5 + $0x8] sm:$0xff]  ;;  %v17888_v50 = vpack.c.bf16 %v1237_v28, %v1234_v46 }
 0x1f3   : > { %20505 = vrot.lane.b32.xlu1 %v22487_v12, %s21867_s17  ;;  %15508 = vmatmul.mubr.msk.f32.vlgmr.msra.gmra.mrb[12].mxu0 %vm751_vm7, %v22710_v34  ;;  %v4231_v30 = vsel %vm4222_vm3, %v20227_v45, %v20228_v25 }
 0x1f4   : > { %17881 = vmatpush3.bf16.msra.mxu0 %v22155_v38  ;;  %v20231_v33 = vpop.permute.xlu0 %20230  ;;  %1067 = vmatprep.mubr.f32.mxu0 %v29621_v57  ;;  %v4230_v20 = vsel %vm4222_vm3, %v20218_v16, %v20227_v45  ;;  %v4229_v35 = vsel %vm4222_vm3, %v20217_v18, %v20218_v16  ;;  %v22756_v16 = vld [vmem:[%s29197_s5 + $0x10] sm:$0xff] }
 0x1f5   : > { %v20221_v62 = vpop.permute.xlu1 %20220  ;;  %17884 = vmatprep.subr.msk.bf16.mxu0 %vm22552_vm6, %v17882_v21  ;;  %v20233_v13 = vunpack.i.h.bf16 %v20231_v33  ;;  %v20232_v38 = vunpack.i.l.bf16 %v20231_v33 }
 0x1f6   : > { %v20223_v63 = vunpack.i.h.bf16 %v20221_v62  ;;  %v20222_v53 = vunpack.i.l.bf16 %v20221_v62  ;;  %20520 = vrot.lane.b32.xlu0 %v22101_v11, %s21868_s22 }
 0x1f7   : > { %20515 = vrot.lane.b32.xlu1 %v22129_v29, %s21868_s22  ;;  %v4234_v19 = vsel %vm4222_vm3, %v20232_v38, %v20233_v13  ;;  %15509 = vmatmul.mubr.msk.f32.gmra.mrb[14].mxu0 %vm751_vm7, %v22729_v61  ;;  %v15731_v13 = vld [vmem:[%s29197_s5 + $0x240] sm:$0xff] }
 0x1f8   : > { %v4233_v6 = vsel %vm4222_vm3, %v20223_v63, %v20232_v38  ;;  %v4232_v33 = vsel %vm4222_vm3, %v20222_v53, %v20223_v63  ;;  %17887 = vmatpush3.bf16.msk.msra.mxu0 %vm22552_vm6, %v17882_v21  ;;  %v20241_v25 = vpop.permute.xlu0 %20240  ;;  %1073 = vmatprep.mubr.f32.mxu0 %v29621_v57  ;;  %v22758_v28 = vpack.c.bf16 %v4234_v19, %v4231_v30  ;;  %v22775_v21 = vld [vmem:[%s29197_s5 + $0x18] sm:$0xff]  ;;  %vm29397_vm3 = vcmask 998400  }
 0x1f9   : > { %v18095_v62 = vpack.c.bf16 %v4232_v33, %v4229_v35  ;;  %v20236_v45 = vpop.permute.xlu1 %20235  ;;  %v18092_v18 = vpack.c.bf16 %v4233_v6, %v4230_v20  ;;  %17889 = vmatprep.subr.bf16.mxu0 %v17888_v50  ;;  %v20243_v53 = vunpack.i.h.bf16 %v20241_v25  ;;  %v20242_v63 = vunpack.i.l.bf16 %v20241_v25 }
 0x1fa   : > { %29641 = vst [vmem:[#allocation68_spill] sm:$0xff] %v22758_v28  ;;  %v20238_v46 = vunpack.i.h.bf16 %v20236_v45  ;;  %20530 = vrot.lane.b32.xlu0 %v22643_v56, %s21868_s22  ;;  %v20237_v20 = vunpack.i.l.bf16 %v20236_v45 }
 0x1fb   : > { %20525 = vrot.lane.b32.xlu1 %v22150_v36, %s21868_s22  ;;  %15510 = vmatmul.mubr.msk.f32.gmra.mrb[16].mxu0 %vm751_vm7, %v22756_v16  ;;  %v4524_v6 = vsel %vm4521_vm9, %v20242_v63, %v20243_v53 }
 0x1fc   : > { %18094 = vmatprep.subr.msk.bf16.mxu1 %vm22552_vm6, %v18092_v18  ;;  %v20251_v50 = vpop.permute.xlu0 %20250  ;;  %1079 = vmatprep.mubr.f32.mxu0 %v29621_v57  ;;  %v4522_v53 = vsel %vm4521_vm9, %v20237_v20, %v20238_v46 }
 0x1fd   : > { %18097 = vmatpush1.bf16.msk.msra.mxu1 %vm22552_vm6, %v18095_v62  ;;  %v20246_v30 = vpop.permute.xlu1 %20245  ;;  %v20253_v38 = vunpack.i.h.bf16 %v20251_v50  ;;  %v20252_v35 = vunpack.i.l.bf16 %v20251_v50  ;;  %v4523_v62 = vsel %vm4521_vm9, %v20238_v46, %v20242_v63  ;;  %v22797_v63 = vld [vmem:[%s29197_s5 + $0x20] sm:$0xff] }
 0x1fe   : > { %v20248_v19 = vunpack.i.h.bf16 %v20246_v30  ;;  %v20247_v33 = vunpack.i.l.bf16 %v20246_v30  ;;  %20540 = vrot.lane.b32.xlu0 %v22088_v1, %s21869_s15 }
 0x1ff   : > { %20535 = vrot.lane.b32.xlu1 %v22487_v12, %s21868_s22  ;;  %15511 = vmatmul.mubr.msk.f32.gmra.mrb[18].mxu0 %vm751_vm7, %v22775_v21  ;;  %v4527_v18 = vsel %vm4521_vm9, %v20252_v35, %v20253_v38 }
 0x200   : > { %v4525_v25 = vsel %vm4521_vm9, %v20247_v33, %v20248_v19  ;;  %15739 = vmatmul.mubr.msk.f32.vlgmr.msra.gmra.mrb[6].mxu1 %vm751_vm7, %v15731_v13  ;;  %v4526_v45 = vsel %vm4521_vm9, %v20248_v19, %v20252_v35  ;;  %v20266_v50 = vpop.permute.xlu0 %20265  ;;  %1085 = vmatprep.mubr.f32.mxu0 %v29621_v57  ;;  %v15732_v13 = vld [vmem:[%s29197_s5 + $0x248] sm:$0xff]  ;;  %v22802_v33 = vpack.c.bf16 %v4527_v18, %v4524_v6  ;;  %v19997_v35 = vunpack.i.l.bf16 %v22440_v54 }
 0x201   : > { %v20256_v30 = vpop.permute.xlu1 %20255  ;;  %4338 = vmatprep.mubr.f32.mxu1 %v29621_v57  ;;  %v18108_v19 = vpack.c.bf16 %v4526_v45, %v4523_v62  ;;  %v20268_v38 = vunpack.i.h.bf16 %v20266_v50  ;;  %v20267_v46 = vunpack.i.l.bf16 %v20266_v50  ;;  %v18110_v20 = vpack.c.bf16 %v4525_v25, %v4522_v53 }
 0x202   : > { %29642 = vst [vmem:[#allocation69_spill] sm:$0xff] %v22802_v33  ;;  %v20258_v48 = vunpack.i.h.bf16 %v20256_v30  ;;  %20550 = vrot.lane.b32.xlu0 %v22101_v11, %s21869_s15  ;;  %v19877_v18 = vunpack.i.l.bf16 %v22344_v10  ;;  %v20257_v53 = vunpack.i.l.bf16 %v20256_v30  ;;  %v29643_v30 = vunpack.i.h.bf16 %v22440_v54 }
 0x203   : > { %20545 = vrot.lane.b32.xlu1 %v22129_v29, %s21869_s15  ;;  %v4530_v6 = vsel %vm4521_vm9, %v20267_v46, %v20268_v38  ;;  %15512 = vmatmul.mubr.msk.f32.gmra.mrb[20].mxu0 %vm751_vm7, %v22797_v63  ;;  %v22823_v38 = vld [vmem:[%s29197_s5 + $0x28] sm:$0xff] }
 0x204   : > { %15740 = vmatmul.mubr.msk.f32.gmra.mrb[8].mxu1 %vm751_vm7, %v15732_v13  ;;  %18109 = vmatprep.subr.bf16.mxu1 %v18108_v19  ;;  %v20271_v50 = vpop.permute.xlu0 %20270  ;;  %v15733_v13 = vld [vmem:[%s29197_s5 + $0x250] sm:$0xff]  ;;  %v1236_v19 = vsel %vm1232_vm8, %v19997_v35, %v29643_v30  ;;  %v4529_v59 = vsel %vm4521_vm9, %v20258_v48, %v20267_v46  ;;  %v4528_v46 = vsel %vm4521_vm9, %v20257_v53, %v20258_v48 }
 0x205   : > { %v20261_v28 = vpop.permute.xlu1 %20260  ;;  %1091 = vmatprep.mubr.f32.mxu0 %v29621_v57  ;;  %18111 = vmatpush1.bf16.msra.mxu1 %v18110_v20  ;;  %v20273_v25 = vunpack.i.h.bf16 %v20271_v50  ;;  %v20272_v45 = vunpack.i.l.bf16 %v20271_v50 }
 0x206   : > { %v20263_v62 = vunpack.i.h.bf16 %v20261_v28  ;;  %v20262_v33 = vunpack.i.l.bf16 %v20261_v28  ;;  %4344 = vmatprep.mubr.f32.mxu1 %v29621_v57  ;;  %20560 = vrot.lane.b32.xlu0 %v22643_v56, %s21869_s15  ;;  %v20003_v28 = vunpack.i.h.bf16 %v22438_v4 }
 0x207   : > { %20555 = vrot.lane.b32.xlu1 %v22150_v36, %s21869_s15  ;;  %v4533_v20 = vsel %vm4521_vm9, %v20272_v45, %v20273_v25  ;;  %15513 = vmatmul.mubr.msk.f32.gmra.mrb[22].mxu0 %vm751_vm7, %v22823_v38 }
 0x208   : > { %v4532_v54 = vsel %vm4521_vm9, %v20263_v62, %v20272_v45  ;;  %v4531_v35 = vsel %vm4521_vm9, %v20262_v33, %v20263_v62  ;;  %15741 = vmatmul.mubr.msk.f32.gmra.mrb[10].mxu1 %vm751_vm7, %v15733_v13  ;;  %v20281_v50 = vpop.permute.xlu0 %20280  ;;  %17040 = vmatprep.mubr.msk.f32.mxu0 %vm751_vm7, %v22710_v34  ;;  %v15734_v33 = vld [vmem:[%s29197_s5 + $0x258] sm:$0xff]  ;;  %v22857_v25 = vpack.c.bf16 %v4533_v20, %v4530_v6  ;;  %v29646_v45 = vunpack.i.h.bf16 %v22344_v10 }
 0x209   : > { %v22849_v30 = vpop.permute.xlu1 %20275  ;;  %4350 = vmatprep.mubr.f32.mxu1 %v29621_v57  ;;  %v18112_v62 = vpack.c.bf16 %v4532_v54, %v4529_v59  ;;  %v18115_v48 = vpack.c.bf16 %v4531_v35, %v4528_v46  ;;  %v20283_v53 = vunpack.i.h.bf16 %v20281_v50  ;;  %v20282_v13 = vunpack.i.l.bf16 %v20281_v50 }
 0x20a   : > { %29645 = vst [vmem:[#allocation70_spill] sm:$0xff] %v22857_v25  ;;  %v1233_v17 = vsel %vm1232_vm8, %v19877_v18, %v29646_v45  ;;  %v29648_v34 = vunpack.i.h.bf16 %v22236_v40  ;;  %20570 = vrot.lane.b32.xlu0 %v22088_v1, %s21870_s14  ;;  %v29649_v6 = vunpack.i.l.bf16 %v22438_v4  ;;  %v1239_v20 = vsel %vm1232_vm8, %v20117_v23, %v20118_v2  ;;  %v15735_v2 = vld [vmem:[%s29197_s5 + $0x260] sm:$0xff] }
 0x20b   : > { %20565 = vrot.lane.b32.xlu1 %v22487_v12, %s21869_s15  ;;  %v17890_v10 = vpack.c.bf16 %v1236_v19, %v1233_v17  ;;  %17041 = vmatmul.mubr.msk.f32.vlgmr.msra.gmra.mrb[24].mxu0 %vm751_vm7, %v22729_v61  ;;  %v4823_v18 = vsel %vm4820_vm10, %v20282_v13, %v20283_v53  ;;  %v20278_v54 = vunpack.i.h.bf16 %v22849_v30  ;;  %v29650_v61 = vunpack.i.h.bf16 %v22342_v0 }
 0x20c   : > { %v1243_v7 = vsel %vm1232_vm8, %v29648_v34, %v29647_v60  ;;  %15742 = vmatmul.mubr.msk.f32.gmra.mrb[12].mxu1 %vm751_vm7, %v15734_v33  ;;  %v1238_v60 = vsel %vm1232_vm8, %v29649_v6, %v20003_v28  ;;  %18114 = vmatprep.subr.msk.bf16.mxu1 %vm22552_vm6, %v18112_v62  ;;  %v20291_v19 = vpop.permute.xlu0 %20290  ;;  %v29651_v28 = vunpack.i.l.bf16 %v22342_v0  ;;  %v29652_v46 = vmov %v29648_v34 }
 0x20d   : > { %v17892_v59 = vpack.c.bf16 %v1243_v7, %v1240_v31  ;;  %17891 = vmatpush1.bf16.msra.mxu0 %v17890_v10  ;;  %v20286_v35 = vpop.permute.xlu1 %20285  ;;  %18117 = vmatpush1.bf16.msk.msra.mxu1 %vm22552_vm6, %v18115_v48  ;;  %v20293_v4 = vunpack.i.h.bf16 %v20291_v19  ;;  %v20292_v7 = vunpack.i.l.bf16 %v20291_v19  ;;  %v1242_v50 = vsel %vm1232_vm8, %v19767_v9, %v29652_v46 }
 0x20e   : > { %v20288_v31 = vunpack.i.h.bf16 %v20286_v35  ;;  %v1235_v23 = vsel %vm1232_vm8, %v29651_v28, %v29650_v61  ;;  %17043 = vmatprep.mubr.msk.f32.mxu0 %vm751_vm7, %v22756_v16  ;;  %4356 = vmatprep.mubr.f32.mxu1 %v29621_v57  ;;  %v19773_v62 = vunpack.i.h.bf16 %v22234_v39  ;;  %v17895_v45 = vpack.c.bf16 %v1242_v50, %v1239_v20 }
 0x20f   : > { %17894 = vmatprep.subr.msk.bf16.mxu0 %vm22552_vm6, %v17892_v59  ;;  %v22901_v33 = vpack.c.bf16 %v1238_v60, %v1235_v23  ;;  %20580 = vrot.lane.b32.xlu0 %v22101_v11, %s21870_s14  ;;  %v4826_v9 = vsel %vm4820_vm10, %v20292_v7, %v20293_v4  ;;  %v20123_v40 = vunpack.i.h.bf16 %v22547_v5  ;;  %v20287_v16 = vunpack.i.l.bf16 %v20286_v35 }
 0x210   : > { %20575 = vrot.lane.b32.xlu1 %v22129_v29, %s21870_s14  ;;  %v4825_v0 = vsel %vm4820_vm10, %v20288_v31, %v20292_v7  ;;  %17044 = vmatmul.mubr.msk.f32.gmra.mrb[26].mxu0 %vm751_vm7, %v22775_v21  ;;  %v20306_v17 = vpop.permute.xlu0 %20305  ;;  %v4822_v53 = vsel %vm4820_vm10, %v20278_v54, %v20282_v13  ;;  %v22917_v34 = vpack.c.bf16 %v4826_v9, %v4823_v18  ;;  %v15736_v21 = vld [vmem:[%s29197_s5 + $0x268] sm:$0xff]  ;;  %v20277_v60 = vunpack.i.l.bf16 %v22849_v30 }
 0x211   : > { %15743 = vmatmul.mubr.msk.f32.gmra.mrb[14].mxu1 %vm751_vm7, %v15735_v2  ;;  %v20296_v48 = vpop.permute.xlu1 %20295  ;;  %17897 = vmatpush1.bf16.msk.msra.mxu0 %vm22552_vm6, %v17895_v45  ;;  %v20308_v10 = vunpack.i.h.bf16 %v20306_v17  ;;  %v20307_v59 = vunpack.i.l.bf16 %v20306_v17  ;;  %v18128_v6 = vpack.c.bf16 %v4825_v0, %v4822_v53  ;;  %v29654_v13 = vunpack.i.l.bf16 %v22234_v39 }
 0x212   : > { %29653 = vst [vmem:[#allocation71_spill] sm:$0xff] %v22917_v34  ;;  %17046 = vmatprep.mubr.msk.f32.mxu0 %vm751_vm7, %v22797_v63  ;;  %17899 = vmatprep.subr.bf16.mxu0 %v22901_v33  ;;  %v29274_v20 = vunpack.i.l.bf16 %v22444_v52  ;;  %v20008_v63 = vunpack.i.h.bf16 %v22446_v55  ;;  %v29655_v35 = vunpack.i.l.bf16 %v22547_v5  ;;  %v4824_v39 = vsel %vm4820_vm10, %v20287_v16, %v20288_v31  ;;  %v22950_v5 = vld [vmem:[%s29197_s5 + $0x60] sm:$0xff] }
 0x213   : > { %4362 = vmatprep.mubr.f32.mxu1 %v29621_v57  ;;  %v1244_v18 = vsel %vm1232_vm8, %v29654_v13, %v19773_v62  ;;  %v4829_v19 = vsel %vm4820_vm10, %v20307_v59, %v20308_v10  ;;  %20590 = vrot.lane.b32.xlu0 %v22643_v56, %s21870_s14  ;;  %v20298_v7 = vunpack.i.h.bf16 %v20296_v48  ;;  %v29273_v31 = vunpack.i.l.bf16 %v22350_v24 }
 0x214   : > { %20585 = vrot.lane.b32.xlu1 %v22150_v36, %s21870_s14  ;;  %v1241_v4 = vsel %vm1232_vm8, %v29655_v35, %v20123_v40  ;;  %17047 = vmatmul.mubr.msk.f32.gmra.mrb[28].mxu0 %vm751_vm7, %v22823_v38  ;;  %v20311_v2 = vpop.permute.xlu0 %20310  ;;  %v15752_v38 = vld [vmem:[%s29197_s5 + $0x270] sm:$0xff]  ;;  %v4821_v62 = vsel %vm4820_vm10, %v20277_v60, %v20278_v54  ;;  %v20297_v45 = vunpack.i.l.bf16 %v20296_v48  ;;  %v19888_v0 = vunpack.i.h.bf16 %v22352_v15 }
 0x215   : > { %15744 = vmatmul.mubr.msk.f32.gmra.mrb[16].mxu1 %vm751_vm7, %v15736_v21  ;;  %v20301_v61 = vpop.permute.xlu1 %20300  ;;  %18129 = vmatprep.subr.bf16.mxu1 %v18128_v6  ;;  %v20313_v28 = vunpack.i.h.bf16 %v20311_v2  ;;  %v20312_v23 = vunpack.i.l.bf16 %v20311_v2  ;;  %v18130_v16 = vpack.c.bf16 %v4824_v39, %v4821_v62  ;;  %v17902_v54 = vpack.c.bf16 %v1244_v18, %v1241_v4  ;;  %v22980_v6 = vld [vmem:[%s29197_s5 + $0x68] sm:$0xff] }
 0x216   : > { %v20303_v46 = vunpack.i.h.bf16 %v20301_v61  ;;  %v20302_v50 = vunpack.i.l.bf16 %v20301_v61  ;;  %1342 = vmatprep.mubr.f32.mxu0 %v29621_v57  ;;  %4631 = vmatprep.mubr.f32.mxu1 %v29621_v57  ;;  %v4828_v10 = vsel %vm4820_vm10, %v20298_v7, %v20307_v59  ;;  %v1536_v60 = vsel %vm1531_vm11, %v20008_v63, %v29274_v20 }
 0x217   : > { %20600 = vrot.lane.b32.xlu0 %v22088_v1, %s21871_s11  ;;  %v4827_v13 = vsel %vm4820_vm10, %v20297_v45, %v20298_v7  ;;  %v1533_v35 = vsel %vm1531_vm11, %v19888_v0, %v29273_v31  ;;  %v19893_v20 = vunpack.i.h.bf16 %v22350_v24  ;;  %vm6913_vm8 = vcmask 506880  }
 0x218   : > { %v4832_v9 = vsel %vm4820_vm10, %v20303_v46, %v20313_v28  ;;  %v4831_v40 = vsel %vm4820_vm10, %v20302_v50, %v20303_v46  ;;  %20595 = vrot.lane.b32.xlu1 %v22487_v12, %s21870_s14  ;;  %v4830_v30 = vsel %vm4820_vm10, %v20312_v23, %v20302_v50  ;;  %15529 = vmatmul.mubr.msk.f32.vlgmr.msra.gmra.mrb[12].mxu0 %vm751_vm7, %v22950_v5  ;;  %v20321_v17 = vpop.permute.xlu0 %20320  ;;  %v23019_v46 = vld [vmem:[%s29197_s5 + $0x70] sm:$0xff]  ;;  %v15754_v50 = vld [vmem:[%s29197_s5 + $0x280] sm:$0xff]  ;;  %vm7212_vm9 = vcmask 498688  }
 0x219   : > { %15760 = vmatmul.mubr.msk.f32.vlgmr.msra.gmra.mrb[6].mxu1 %vm751_vm7, %v15752_v38  ;;  %v22971_v48 = vpop.permute.xlu1 %20315  ;;  %v22973_v53 = vpack.c.bf16 %v4832_v9, %v4829_v19  ;;  %17901 = vmatpush3.bf16.msra.mxu0 %v22901_v33  ;;  %v20323_v12 = vunpack.i.h.bf16 %v20321_v17  ;;  %v20322_v21 = vunpack.i.l.bf16 %v20321_v17  ;;  %v15753_v33 = vld [vmem:[%s29197_s5 + $0x278] sm:$0xff]  ;;  %v18132_v59 = vpack.c.bf16 %v4831_v40, %v4828_v10  ;;  %v23055_v17 = vld [vmem:[#allocation2 + $0x50] sm:$0xff] }
 0x21a   : > { %18131 = vmatpush1.bf16.msra.mxu1 %v18130_v16  ;;  %17904 = vmatprep.subr.msk.bf16.mxu0 %vm22552_vm6, %v17902_v54  ;;  %v18135_v18 = vpack.c.bf16 %v4830_v30, %v4827_v13  ;;  %v29276_v19 = vunpack.i.h.bf16 %v22971_v48  ;;  %v17908_v39 = vpack.c.bf16 %v1536_v60, %v1533_v35  ;;  %v23059_v10 = vpack.i.bf16 %v22684_v27, %v23055_v17  ;;  %v23080_v35 = vld [vmem:[%s29197_s5 + $0x80] sm:$0xff] }
 0x21b   : > { %29656 = vst [vmem:[#allocation72_spill] sm:$0xff] %v22973_v53  ;;  %1348 = vmatprep.mubr.f32.mxu0 %v29621_v57  ;;  %4637 = vmatprep.mubr.f32.mxu1 %v29621_v57  ;;  %v5122_v4 = vsel %vm5119_vm12, %v20322_v21, %v20323_v12  ;;  %v15755_v12 = vld [vmem:[%s29197_s5 + $0x288] sm:$0xff]  ;;  %vm3026_vm10 = vcmask 859136  }
 0x21c   : > { %20610 = vrot.lane.b32.xlu0 %v22101_v11, %s21871_s11  ;;  %20605 = vrot.lane.b32.xlu1 %v22129_v29, %s21871_s11  ;;  %v20331_v7 = vpop.permute.xlu0 %20330  ;;  %v5121_v38 = vsel %vm5119_vm12, %v29276_v19, %v20322_v21 }
 0x21d   : > { %15530 = vmatmul.mubr.msk.f32.gmra.mrb[14].mxu0 %vm751_vm7, %v22980_v6  ;;  %v23008_v2 = vpop.permute.xlu1 %20325  ;;  %15761 = vmatmul.mubr.msk.f32.gmra.mrb[8].mxu1 %vm751_vm7, %v15753_v33  ;;  %v20333_v61 = vunpack.i.h.bf16 %v20331_v7  ;;  %v20332_v28 = vunpack.i.l.bf16 %v20331_v7  ;;  %v15756_v7 = vld [vmem:[%s29197_s5 + $0x290] sm:$0xff] }
 0x21e   : > { %17907 = vmatpush3.bf16.msk.msra.mxu0 %vm22552_vm6, %v17902_v54  ;;  %v20328_v23 = vunpack.i.h.bf16 %v23008_v2  ;;  %18134 = vmatprep.subr.msk.bf16.mxu1 %vm22552_vm6, %v18132_v59  ;;  %v23052_v54 = vld [vmem:[%s29197_s5 + $0x78] sm:$0xff] }
 0x21f   : > { %17909 = vmatprep.subr.bf16.mxu0 %v17908_v39  ;;  %18137 = vmatpush1.bf16.msk.msra.mxu1 %vm22552_vm6, %v18135_v18  ;;  %v5125_v45 = vsel %vm5119_vm12, %v20332_v28, %v20333_v61  ;;  %v20007_v18 = vunpack.i.l.bf16 %v22446_v55  ;;  %v19887_v61 = vunpack.i.l.bf16 %v22352_v15 }
 0x220   : > { %1354 = vmatprep.mubr.f32.mxu0 %v29621_v57  ;;  %v5124_v62 = vsel %vm5119_vm12, %v20328_v23, %v20332_v28  ;;  %4643 = vmatprep.mubr.f32.mxu1 %v29621_v57  ;;  %v23037_v9 = vpop.permute.xlu0 %20335  ;;  %v23041_v30 = vpack.c.bf16 %v5125_v45, %v5122_v4  ;;  %v19778_v45 = vunpack.i.h.bf16 %v22248_v42 }
 0x221   : > { %20620 = vrot.lane.b32.xlu0 %v22643_v56, %s21871_s11  ;;  %v23039_v40 = vpop.permute.xlu1 %20340  ;;  %v18148_v16 = vpack.c.bf16 %v5124_v62, %v5121_v38  ;;  %20615 = vrot.lane.b32.xlu1 %v22150_v36, %s21871_s11  ;;  %v20338_v13 = vunpack.i.h.bf16 %v23037_v9  ;;  %v29275_v62 = vunpack.i.l.bf16 %v22246_v41 }
 0x222   : > { %29657 = vst [vmem:[#allocation73_spill] sm:$0xff] %v23041_v30  ;;  %15531 = vmatmul.mubr.msk.f32.gmra.mrb[16].mxu0 %vm751_vm7, %v23019_v46  ;;  %15762 = vmatmul.mubr.msk.f32.gmra.mrb[10].mxu1 %vm751_vm7, %v15754_v50  ;;  %v20343_v33 = vunpack.i.h.bf16 %v23039_v40  ;;  %v20342_v55 = vunpack.i.l.bf16 %v23039_v40 }
 0x223   : > { %1360 = vmatprep.mubr.f32.mxu0 %v29621_v57  ;;  %4649 = vmatprep.mubr.f32.mxu1 %v29621_v57  ;;  %v1542_v31 = vsel %vm1531_vm11, %v19778_v45, %v29275_v62 }
 0x224   : > { %18149 = vmatprep.subr.bf16.mxu1 %v18148_v16  ;;  %v20351_v21 = vpop.permute.xlu0 %20350  ;;  %v1535_v16 = vsel %vm1531_vm11, %v20007_v18, %v20008_v63  ;;  %v15757_v63 = vld [vmem:[%s29197_s5 + $0x298] sm:$0xff]  ;;  %v19777_v18 = vunpack.i.l.bf16 %v22248_v42  ;;  %v20013_v42 = vunpack.i.h.bf16 %v22444_v52 }
 0x225   : > { %20630 = vrot.lane.b32.xlu0 %v22088_v1, %s21872_s21  ;;  %v23066_v60 = vpop.permute.xlu1 %20345  ;;  %20625 = vrot.lane.b32.xlu1 %v23059_v10, %s21871_s11  ;;  %v20353_v27 = vunpack.i.h.bf16 %v20351_v21  ;;  %v20352_v59 = vunpack.i.l.bf16 %v20351_v21  ;;  %v20128_v21 = vunpack.i.h.bf16 %v22574_v26 }
 0x226   : > { %15532 = vmatmul.mubr.msk.f32.gmra.mrb[18].mxu0 %vm751_vm7, %v23052_v54  ;;  %15763 = vmatmul.mubr.msk.f32.gmra.mrb[12].mxu1 %vm751_vm7, %v15755_v12  ;;  %v29278_v12 = vunpack.i.l.bf16 %v22572_v32 }
 0x227   : > { %1366 = vmatprep.mubr.f32.mxu0 %v29621_v57  ;;  %v5128_v4 = vsel %vm5119_vm12, %v20343_v33, %v20352_v59  ;;  %v5131_v39 = vsel %vm5119_vm12, %v20338_v13, %v20353_v27  ;;  %4655 = vmatprep.mubr.f32.mxu1 %v29621_v57  ;;  %v20327_v27 = vunpack.i.l.bf16 %v23008_v2  ;;  %v23114_v59 = vld [vmem:[%s29197_s5 + $0x88] sm:$0xff]  ;;  %v29660_v2 = vunpack.i.h.bf16 %v22971_v48 }
 0x228   : > { %v23091_v28 = vpop.permute.xlu0 %20360  ;;  %v23095_v38 = vpack.c.bf16 %v5131_v39, %v5128_v4  ;;  %v20337_v4 = vunpack.i.l.bf16 %v23037_v9  ;;  %v1532_v39 = vsel %vm1531_vm11, %v19887_v61, %v19888_v0  ;;  %v1539_v0 = vsel %vm1531_vm11, %v20128_v21, %v29278_v12 }
 0x229   : > { %20640 = vrot.lane.b32.xlu0 %v22101_v11, %s21872_s21  ;;  %v23093_v50 = vpop.permute.xlu1 %20355  ;;  %20635 = vrot.lane.b32.xlu1 %v22129_v29, %s21872_s21  ;;  %v17910_v15 = vpack.c.bf16 %v1535_v16, %v1532_v39  ;;  %v20127_v61 = vunpack.i.l.bf16 %v22574_v26  ;;  %v5123_v62 = vsel %vm5119_vm12, %v20327_v27, %v20328_v23  ;;  %v5127_v16 = vsel %vm5119_vm12, %v20342_v55, %v20343_v33  ;;  %v15773_v26 = vld [vmem:[%s29197_s5 + $0x2a0] sm:$0xff] }
 0x22a   : > { %29658 = vst [vmem:[#allocation74_spill] sm:$0xff] %v23095_v38  ;;  %15533 = vmatmul.mubr.msk.f32.gmra.mrb[20].mxu0 %vm751_vm7, %v23080_v35  ;;  %15764 = vmatmul.mubr.msk.f32.gmra.mrb[14].mxu1 %vm751_vm7, %v15756_v7  ;;  %v20317_v7 = vunpack.i.l.bf16 %v22971_v48  ;;  %v5130_v38 = vsel %vm5119_vm12, %v20337_v4, %v20338_v13  ;;  %v20348_v39 = vunpack.i.h.bf16 %v23066_v60  ;;  %v20347_v12 = vunpack.i.l.bf16 %v23066_v60 }
 0x22b   : > { %1372 = vmatprep.mubr.f32.mxu0 %v29621_v57  ;;  %4661 = vmatprep.mubr.f32.mxu1 %v29621_v57  ;;  %v20362_v13 = vunpack.i.l.bf16 %v23091_v28 }
 0x22c   : > { %v23129_v9 = vpop.permute.xlu0 %20370  ;;  %v5120_v23 = vsel %vm5119_vm12, %v20317_v7, %v29660_v2  ;;  %v1538_v7 = vsel %vm1531_vm11, %v20127_v61, %v20128_v21  ;;  %v18152_v2 = vpack.c.bf16 %v5130_v38, %v5127_v16  ;;  %v5129_v30 = vsel %vm5119_vm12, %v20348_v39, %v20337_v4  ;;  %v15774_v38 = vld [vmem:[%s29197_s5 + $0x2a8] sm:$0xff] }
 0x22d   : > { %20650 = vrot.lane.b32.xlu0 %v22643_v56, %s21872_s21  ;;  %29659 = vst [vmem:[#allocation75_spill] sm:$0xff] %v23129_v9  ;;  %v23131_v40 = vpop.permute.xlu1 %20365  ;;  %20645 = vrot.lane.b32.xlu1 %v22150_v36, %s21872_s21  ;;  %v18150_v48 = vpack.c.bf16 %v5123_v62, %v5120_v23  ;;  %v5126_v53 = vsel %vm5119_vm12, %v20347_v12, %v20342_v55  ;;  %v29663_v12 = vunpack.i.l.bf16 %v22350_v24  ;;  %v20133_v16 = vunpack.i.h.bf16 %v22572_v32 }
 0x22e   : > { %15534 = vmatmul.mubr.msk.f32.gmra.mrb[22].mxu0 %vm751_vm7, %v23114_v59  ;;  %15765 = vmatmul.mubr.msk.f32.gmra.mrb[16].mxu1 %vm751_vm7, %v15757_v63  ;;  %v20367_v19 = vunpack.i.l.bf16 %v23131_v40  ;;  %v17912_v63 = vpack.c.bf16 %v1542_v31, %v1539_v0  ;;  %v29662_v31 = vunpack.i.l.bf16 %v22444_v52  ;;  %v1541_v62 = vsel %vm1531_vm11, %v19777_v18, %v19778_v45 }
 0x22f   : > { %17057 = vmatprep.mubr.msk.f32.mxu0 %vm751_vm7, %v22950_v5  ;;  %4930 = vmatprep.mubr.f32.mxu1 %v29621_v57  ;;  %v20363_v5 = vunpack.i.h.bf16 %v23091_v28  ;;  %v1534_v21 = vsel %vm1531_vm11, %v29663_v12, %v19893_v20  ;;  %v29664_v52 = vunpack.i.h.bf16 %v23093_v50  ;;  %v17915_v18 = vpack.c.bf16 %v1541_v62, %v1538_v7 }
 0x230   : > { %v23169_v60 = vpop.permute.xlu0 %20380  ;;  %v18155_v0 = vpack.c.bf16 %v5129_v30, %v5126_v53  ;;  %v19783_v39 = vunpack.i.h.bf16 %v22246_v41  ;;  %v29668_v23 = vunpack.i.l.bf16 %v22572_v32  ;;  %v15776_v32 = vld [vmem:[%s29197_s5 + $0x2b8] sm:$0xff]  ;;  %vm3325_vm12 = vcmask 850944  }
 0x231   : > { %20660 = vrot.lane.b32.xlu0 %v22088_v1, %s21873_s8  ;;  %v23171_v27 = vpop.permute.xlu1 %20375  ;;  %20655 = vrot.lane.b32.xlu1 %v23059_v10, %s21872_s21  ;;  %v5423_v33 = vsel %vm5418_vm13, %v20363_v5, %v20367_v19  ;;  %v5420_v4 = vsel %vm5418_vm13, %v29664_v52, %v20362_v13 }
 0x232   : > { %29661 = vst [vmem:[#allocation76_spill] sm:$0xff] %v23171_v27  ;;  %17058 = vmatmul.mubr.msk.f32.vlgmr.msra.gmra.mrb[24].mxu0 %vm751_vm7, %v22980_v6  ;;  %15781 = vmatmul.mubr.msk.f32.vlgmr.msra.gmra.mrb[6].mxu1 %vm751_vm7, %v15773_v26  ;;  %v1537_v6 = vsel %vm1531_vm11, %v29662_v31, %v20013_v42  ;;  %v20022_v26 = vunpack.i.l.bf16 %v22456_v58  ;;  %v19898_v31 = vunpack.i.h.bf16 %v22360_v8 }
 0x233   : > { %17911 = vmatpush1.bf16.msra.mxu0 %v17910_v15  ;;  %18151 = vmatpush1.bf16.msra.mxu1 %v18150_v48  ;;  %v17918_v24 = vpack.c.bf16 %v1537_v6, %v1534_v21  ;;  %v15777_v21 = vld [vmem:[%s29197_s5 + $0x2c0] sm:$0xff] }
 0x234   : > { %17914 = vmatprep.subr.msk.bf16.mxu0 %vm22552_vm6, %v17912_v63  ;;  %18154 = vmatprep.subr.msk.bf16.mxu1 %vm22552_vm6, %v18152_v2  ;;  %v23203_v55 = vpop.permute.xlu0 %20390  ;;  %v29671_v63 = vunpack.i.l.bf16 %v22246_v41  ;;  %v19902_v2 = vunpack.i.l.bf16 %v22358_v14  ;;  %v23274_v41 = vld [vmem:[%s29197_s5 + $0x98] sm:$0xff] }
 0x235   : > { %17060 = vmatprep.mubr.msk.f32.mxu0 %vm751_vm7, %v23019_v46  ;;  %29665 = vst [vmem:[#allocation77_spill] sm:$0xff] %v23203_v55  ;;  %v20386_v45 = vpop.permute.xlu1 %20385  ;;  %4936 = vmatprep.mubr.f32.mxu1 %v29621_v57  ;;  %v18168_v46 = vpack.c.bf16 %v5423_v33, %v5420_v4  ;;  %v23249_v33 = vld [vmem:[%s29197_s5 + $0x90] sm:$0xff] }
 0x236   : > { %20670 = vrot.lane.b32.xlu0 %v22101_v11, %s21873_s8  ;;  %v20388_v42 = vunpack.i.h.bf16 %v20386_v45  ;;  %v20387_v15 = vunpack.i.l.bf16 %v20386_v45  ;;  %20665 = vrot.lane.b32.xlu1 %v22129_v29, %s21873_s8  ;;  %v1543_v7 = vsel %vm1531_vm11, %v29671_v63, %v19783_v39  ;;  %v1832_v52 = vsel %vm29448_vm14, %v19898_v31, %v19902_v2 }
 0x237   : > { %17061 = vmatmul.mubr.msk.f32.gmra.mrb[26].mxu0 %vm751_vm7, %v23052_v54  ;;  %15782 = vmatmul.mubr.msk.f32.gmra.mrb[8].mxu1 %vm751_vm7, %v15774_v38  ;;  %v20368_v45 = vunpack.i.h.bf16 %v23131_v40  ;;  %v15778_v40 = vld [vmem:[%s29197_s5 + $0x2c8] sm:$0xff]  ;;  %v20382_v39 = vunpack.i.l.bf16 %v23169_v60  ;;  %v29676_v63 = vunpack.i.h.bf16 %v23093_v50 }
 0x238   : > { %17917 = vmatpush1.bf16.msk.msra.mxu0 %vm22552_vm6, %v17915_v18  ;;  %v5421_v20 = vsel %vm5418_vm13, %v20362_v13, %v20387_v15  ;;  %v5424_v61 = vsel %vm5418_vm13, %v20367_v19, %v20388_v42  ;;  %18157 = vmatpush1.bf16.msk.msra.mxu1 %vm22552_vm6, %v18155_v0  ;;  %v23220_v53 = vpop.permute.xlu0 %20400  ;;  %v15775_v19 = vld [vmem:[%s29197_s5 + $0x2b0] sm:$0xff]  ;;  %v1540_v13 = vsel %vm1531_vm11, %v29668_v23, %v20133_v16  ;;  %v23310_v18 = vld [vmem:[%s29197_s5 + $0xa0] sm:$0xff]  ;;  %v29283_v15 = vunpack.i.h.bf16 %v23171_v27 }
 0x239   : > { %17919 = vmatprep.subr.bf16.mxu0 %v17918_v24  ;;  %v23222_v30 = vpop.permute.xlu1 %20395  ;;  %v23224_v54 = vpack.c.bf16 %v5424_v61, %v5421_v20  ;;  %18169 = vmatprep.subr.bf16.mxu1 %v18168_v46  ;;  %v17922_v6 = vpack.c.bf16 %v1543_v7, %v1540_v13  ;;  %v20377_v0 = vunpack.i.l.bf16 %v23171_v27  ;;  %v29284_v20 = vunpack.i.h.bf16 %v23129_v9 }
 0x23a   : > { %29666 = vst [vmem:[#allocation78_spill] sm:$0xff] %v23222_v30  ;;  %17063 = vmatprep.mubr.msk.f32.mxu0 %vm751_vm7, %v23080_v35  ;;  %4942 = vmatprep.mubr.f32.mxu1 %v29621_v57  ;;  %v20018_v35 = vunpack.i.h.bf16 %v22458_v22  ;;  %v20372_v61 = vunpack.i.l.bf16 %v23129_v9  ;;  %v5422_v16 = vsel %vm5418_vm13, %v20368_v45, %v20363_v5  ;;  %v29281_v5 = vunpack.i.h.bf16 %v23222_v30 }
 0x23b   : > { %29667 = vst [vmem:[#allocation79_spill] sm:$0xff] %v23224_v54  ;;  %20680 = vrot.lane.b32.xlu0 %v22643_v56, %s21873_s8  ;;  %20675 = vrot.lane.b32.xlu1 %v22150_v36, %s21873_s8  ;;  %v5429_v28 = vsel %vm5418_vm13, %v20377_v0, %v29283_v15  ;;  %v15797_v15 = vld [vmem:[%s29197_s5 + $0x2e8] sm:$0xff]  ;;  %vm7511_vm11 = vcmask 490496  }
 0x23c   : > { %17064 = vmatmul.mubr.msk.f32.gmra.mrb[28].mxu0 %vm751_vm7, %v23114_v59  ;;  %15783 = vmatmul.mubr.msk.f32.gmra.mrb[10].mxu1 %vm751_vm7, %v15775_v19  ;;  %v23251_v48 = vpop.permute.xlu0 %20410  ;;  %v1835_v62 = vsel %vm29448_vm14, %v20018_v35, %v20022_v26  ;;  %v20383_v19 = vunpack.i.h.bf16 %v23169_v60  ;;  %v29285_v60 = vunpack.i.l.bf16 %v23222_v30 }
 0x23d   : > { %1641 = vmatprep.mubr.f32.mxu0 %v29621_v57  ;;  %29669 = vst [vmem:[#allocation80_spill] sm:$0xff] %v23251_v48  ;;  %v23253_v59 = vpop.permute.xlu1 %20405  ;;  %4948 = vmatprep.mubr.f32.mxu1 %v29621_v57  ;;  %v17928_v4 = vpack.c.bf16 %v1835_v62, %v1832_v52  ;;  %v29282_v62 = vunpack.i.h.bf16 %v23203_v55  ;;  %v5425_v52 = vsel %vm5418_vm13, %v20382_v39, %v20372_v61 }
 0x23e   : > { %29670 = vst [vmem:[#allocation81_spill] sm:$0xff] %v23253_v59 }
 0x23f   : > { %20690 = vrot.lane.b32.xlu0 %v22088_v1, %s21874_s10  ;;  %20685 = vrot.lane.b32.xlu1 %v23059_v10, %s21873_s8 }
 0x240   : > { %15550 = vmatmul.mubr.msk.f32.vlgmr.msra.gmra.mrb[12].mxu0 %vm751_vm7, %v23249_v33  ;;  %15784 = vmatmul.mubr.msk.f32.gmra.mrb[12].mxu1 %vm751_vm7, %v15776_v32  ;;  %v23281_v38 = vpop.permute.xlu0 %20420  ;;  %v15794_v32 = vld [vmem:[%s29197_s5 + $0x2d0] sm:$0xff] }
 0x241   : > { %17921 = vmatpush3.bf16.msra.mxu0 %v17918_v24  ;;  %29672 = vst [vmem:[#allocation82_spill] sm:$0xff] %v23281_v38  ;;  %v23283_v12 = vpop.permute.xlu1 %20415  ;;  %1647 = vmatprep.mubr.f32.mxu0 %v29621_v57  ;;  %v20357_v24 = vunpack.i.l.bf16 %v23093_v50 }
 0x242   : > { %17924 = vmatprep.subr.msk.bf16.mxu0 %vm22552_vm6, %v17922_v6  ;;  %4954 = vmatprep.mubr.f32.mxu1 %v29621_v57 }
 0x243   : > { %20700 = vrot.lane.b32.xlu0 %v22101_v11, %s21874_s10  ;;  %20695 = vrot.lane.b32.xlu1 %v22129_v29, %s21874_s10  ;;  %v5419_v7 = vsel %vm5418_vm13, %v20357_v24, %v29676_v63 }
 0x244   : > { %15551 = vmatmul.mubr.msk.f32.gmra.mrb[14].mxu0 %vm751_vm7, %v23274_v41  ;;  %15785 = vmatmul.mubr.msk.f32.gmra.mrb[14].mxu1 %vm751_vm7, %v15777_v21  ;;  %v23312_v46 = vpop.permute.xlu0 %20430  ;;  %v20392_v21 = vunpack.i.l.bf16 %v23203_v55  ;;  %v18170_v50 = vpack.c.bf16 %v5422_v16, %v5419_v7  ;;  %v21680_v16 = vld [vmem:[#allocation2 + $0x88] sm:$0xf] }
 0x245   : > { %17927 = vmatpush3.bf16.msk.msra.mxu0 %vm22552_vm6, %v17922_v6  ;;  %v23314_v42 = vpop.permute.xlu1 %20425  ;;  %1653 = vmatprep.mubr.f32.mxu0 %v29621_v57  ;;  %v5426_v6 = vsel %vm5418_vm13, %v20372_v61, %v29284_v20  ;;  %v5722_v61 = vsel %vm5717_vm15, %v29285_v60, %v29281_v5 }
 0x246   : > { %29673 = vst [vmem:[#allocation83_spill] sm:$0xff] %v23314_v42  ;;  %17929 = vmatprep.subr.bf16.mxu0 %v17928_v4  ;;  %4960 = vmatprep.mubr.f32.mxu1 %v29621_v57  ;;  %v5428_v4 = vsel %vm5418_vm13, %v20383_v19, %v20377_v0  ;;  %v18172_v45 = vpack.c.bf16 %v5429_v28, %v5426_v6  ;;  %v15795_v0 = vld [vmem:[%s29197_s5 + $0x2d8] sm:$0xff]  ;;  %v21681_v19 = vld [vmem:[#allocation2 + $0x80] sm:$0xf]  ;;  %v20017_v28 = vunpack.i.l.bf16 %v22458_v22  ;;  %v20142_v6 = vunpack.i.l.bf16 %v22585_v49 }
 0x247   : > { %20710 = vrot.lane.b32.xlu0 %v22643_v56, %s21874_s10  ;;  %20705 = vrot.lane.b32.xlu1 %v22150_v36, %s21874_s10  ;;  %v23342_v56 = vld [vmem:[%s29197_s5 + $0xa8] sm:$0xff]  ;;  %v23397_v39 = vpack.i.bf16 %v21680_v16, %v21681_v19  ;;  %v5719_v7 = vsel %vm5717_vm15, %v20392_v21, %v29282_v62  ;;  %v19897_v19 = vunpack.i.l.bf16 %v22360_v8  ;;  %v20023_v62 = vunpack.i.h.bf16 %v22456_v58 }
 0x248   : > { %15552 = vmatmul.mubr.msk.f32.gmra.mrb[16].mxu0 %vm751_vm7, %v23310_v18  ;;  %15786 = vmatmul.mubr.msk.f32.gmra.mrb[16].mxu1 %vm751_vm7, %v15778_v40  ;;  %v23344_v23 = vpop.permute.xlu0 %20440  ;;  %v23378_v40 = vld [vmem:[%s29197_s5 + $0xb0] sm:$0xff]  ;;  %v1834_v5 = vsel %vm29448_vm14, %v20017_v28, %v20018_v35  ;;  %v19787_v35 = vunpack.i.l.bf16 %v22256_v44 }
 0x249   : > { %1659 = vmatprep.mubr.f32.mxu0 %v29621_v57  ;;  %29674 = vst [vmem:[#allocation84_spill] sm:$0xff] %v23344_v23  ;;  %v23346_v13 = vpop.permute.xlu1 %20435  ;;  %5229 = vmatprep.mubr.f32.mxu1 %v29621_v57  ;;  %v1831_v28 = vsel %vm29448_vm14, %v19897_v19, %v19898_v31  ;;  %v1836_v31 = vsel %vm29448_vm14, %v20022_v26, %v20023_v62  ;;  %v19793_v26 = vunpack.i.h.bf16 %v22254_v43  ;;  %v20403_v62 = vunpack.i.h.bf16 %v23220_v53 }
 0x24a   : > { %29675 = vst [vmem:[#allocation85_spill] sm:$0xff] %v23346_v13  ;;  %v17930_v20 = vpack.c.bf16 %v1834_v5, %v1831_v28  ;;  %v20442_v55 = vunpack.i.l.bf16 %v23344_v23  ;;  %v20437_v27 = vunpack.i.l.bf16 %v23346_v13 }
 0x24b   : > { %20720 = vrot.lane.b32.xlu0 %v22088_v1, %s21875_s13  ;;  %20715 = vrot.lane.b32.xlu1 %v23059_v10, %s21874_s10 }
 0x24c   : > { %15553 = vmatmul.mubr.msk.f32.gmra.mrb[18].mxu0 %vm751_vm7, %v23342_v56  ;;  %15802 = vmatmul.mubr.msk.f32.vlgmr.msra.gmra.mrb[6].mxu1 %vm751_vm7, %v15794_v32  ;;  %v23380_v24 = vpop.permute.xlu0 %20450  ;;  %v18175_v32 = vpack.c.bf16 %v5428_v4, %v5425_v52  ;;  %v23416_v52 = vld [vmem:[%s29197_s5 + $0xb8] sm:$0xff] }
 0x24d   : > { %1665 = vmatprep.mubr.f32.mxu0 %v29621_v57  ;;  %29677 = vst [vmem:[#allocation86_spill] sm:$0xff] %v23380_v24  ;;  %v23382_v63 = vpop.permute.xlu1 %20445  ;;  %18171 = vmatpush1.bf16.msra.mxu1 %v18170_v50  ;;  %v20138_v50 = vunpack.i.h.bf16 %v22587_v37 }
 0x24e   : > { %5235 = vmatprep.mubr.f32.mxu1 %v29621_v57  ;;  %18174 = vmatprep.subr.msk.bf16.mxu1 %vm22552_vm6, %v18172_v45  ;;  %v18188_v45 = vpack.c.bf16 %v5722_v61, %v5719_v7  ;;  %v19792_v61 = vunpack.i.l.bf16 %v22254_v43  ;;  %v19788_v7 = vunpack.i.h.bf16 %v22256_v44 }
 0x24f   : > { %20730 = vrot.lane.b32.xlu0 %v22101_v11, %s21875_s13  ;;  %20725 = vrot.lane.b32.xlu1 %v22129_v29, %s21875_s13 }
 0x250   : > { %15554 = vmatmul.mubr.msk.f32.gmra.mrb[20].mxu0 %vm751_vm7, %v23378_v40  ;;  %15803 = vmatmul.mubr.msk.f32.gmra.mrb[8].mxu1 %vm751_vm7, %v15795_v0  ;;  %v23418_v4 = vpop.permute.xlu0 %20460  ;;  %v15796_v0 = vld [vmem:[%s29197_s5 + $0x2e0] sm:$0xff]  ;;  %v1840_v5 = vsel %vm29448_vm14, %v19787_v35, %v19788_v7  ;;  %v29294_v35 = vunpack.i.l.bf16 %v22461_v47 }
 0x251   : > { %1671 = vmatprep.mubr.f32.mxu0 %v29621_v57  ;;  %v23420_v16 = vpop.permute.xlu1 %20455  ;;  %18177 = vmatpush1.bf16.msk.msra.mxu1 %vm22552_vm6, %v18175_v32  ;;  %v20137_v32 = vunpack.i.l.bf16 %v22587_v37 }
 0x252   : > { %29678 = vst [vmem:[#allocation87_spill] sm:$0xff] %v23420_v16  ;;  %5241 = vmatprep.mubr.f32.mxu1 %v29621_v57  ;;  %18189 = vmatprep.subr.bf16.mxu1 %v18188_v45  ;;  %v1838_v45 = vsel %vm29448_vm14, %v20138_v50, %v20142_v6 }
 0x253   : > { %20740 = vrot.lane.b32.xlu0 %v23397_v39, %s21875_s13  ;;  %20735 = vrot.lane.b32.xlu1 %v22150_v36, %s21875_s13  ;;  %v1837_v44 = vsel %vm29448_vm14, %v20137_v32, %v20138_v50  ;;  %v20402_v50 = vunpack.i.l.bf16 %v23220_v53  ;;  %v20407_v32 = vunpack.i.l.bf16 %v23253_v59  ;;  %v15799_v53 = vld [vmem:[%s29197_s5 + $0x2f8] sm:$0xff] }
 0x254   : > { %15555 = vmatmul.mubr.msk.f32.gmra.mrb[22].mxu0 %vm751_vm7, %v23416_v52  ;;  %15804 = vmatmul.mubr.msk.f32.gmra.mrb[10].mxu1 %vm751_vm7, %v15796_v0  ;;  %v23448_v22 = vpop.permute.xlu0 %20470  ;;  %v1841_v0 = vsel %vm29448_vm14, %v19788_v7, %v19792_v61  ;;  %v29287_v7 = vunpack.i.h.bf16 %v23253_v59  ;;  %v20433_v59 = vunpack.i.h.bf16 %v23312_v46 }
 0x255   : > { %17074 = vmatprep.mubr.msk.f32.mxu0 %vm751_vm7, %v23249_v33  ;;  %29679 = vst [vmem:[#allocation88_spill] sm:$0xff] %v23448_v22  ;;  %v23450_v37 = vpop.permute.xlu1 %20465  ;;  %5247 = vmatprep.mubr.f32.mxu1 %v29621_v57  ;;  %v19903_v33 = vunpack.i.h.bf16 %v22358_v14  ;;  %v17932_v8 = vpack.c.bf16 %v1841_v0, %v1838_v45  ;;  %v1842_v45 = vsel %vm29448_vm14, %v19792_v61, %v19793_v26  ;;  %v29683_v61 = vunpack.i.l.bf16 %v23222_v30 }
 0x256   : > { %29680 = vst [vmem:[#allocation89_spill] sm:$0xff] %v23450_v37  ;;  %v5718_v0 = vsel %vm5717_vm15, %v20402_v50, %v20392_v21 }
 0x257   : > { %20750 = vrot.lane.b32.xlu0 %v22088_v1, %s21876_s16  ;;  %20745 = vrot.lane.b32.xlu1 %v23059_v10, %s21875_s13  ;;  %v1833_v58 = vsel %vm29448_vm14, %v19902_v2, %v19903_v33  ;;  %v29286_v2 = vunpack.i.h.bf16 %v23251_v48  ;;  %v5721_v33 = vsel %vm5717_vm15, %v20403_v62, %v29683_v61  ;;  %v29295_v61 = vunpack.i.l.bf16 %v23281_v38 }
 0x258   : > { %17075 = vmatmul.mubr.msk.f32.vlgmr.msra.gmra.mrb[24].mxu0 %vm751_vm7, %v23274_v41  ;;  %15805 = vmatmul.mubr.msk.f32.gmra.mrb[12].mxu1 %vm751_vm7, %v15797_v15  ;;  %v23473_v19 = vpop.permute.xlu0 %20480  ;;  %v15798_v41 = vld [vmem:[%s29197_s5 + $0x2f0] sm:$0xff]  ;;  %v17935_v15 = vpack.c.bf16 %v1840_v5, %v1837_v44  ;;  %v5725_v44 = vsel %vm5717_vm15, %v20407_v32, %v29287_v7  ;;  %v15815_v5 = vld [vmem:[%s29197_s5 + $0x300] sm:$0xff] }
 0x259   : > { %17931 = vmatpush1.bf16.msra.mxu0 %v17930_v20  ;;  %29681 = vst [vmem:[#allocation90_spill] sm:$0xff] %v23473_v19  ;;  %v23475_v60 = vpop.permute.xlu1 %20475  ;;  %17077 = vmatprep.mubr.msk.f32.mxu0 %vm751_vm7, %v23310_v18  ;;  %v17938_v18 = vpack.c.bf16 %v1836_v31, %v1833_v58  ;;  %v20143_v20 = vunpack.i.h.bf16 %v22585_v49  ;;  %v20417_v31 = vunpack.i.l.bf16 %v23283_v12  ;;  %v29687_v58 = vld [vmem:[#allocation28_spill] sm:$0xff] }
 0x25a   : > { %17934 = vmatprep.subr.msk.bf16.mxu0 %vm22552_vm6, %v17932_v8  ;;  %5253 = vmatprep.mubr.f32.mxu1 %v29621_v57  ;;  %v20418_v8 = vunpack.i.h.bf16 %v23283_v12  ;;  %v29297_v26 = vunpack.i.h.bf16 %v29687_v58  ;;  %v18190_v12 = vpack.c.bf16 %v5721_v33, %v5718_v0  ;;  %v29689_v0 = vunpack.i.h.bf16 %v23314_v42 }
 0x25b   : > { %20760 = vrot.lane.b32.xlu0 %v22101_v11, %s21876_s16  ;;  %20755 = vrot.lane.b32.xlu1 %v22129_v29, %s21876_s16  ;;  %v1839_v28 = vsel %vm29448_vm14, %v20142_v6, %v20143_v20  ;;  %v29690_v33 = vunpack.i.l.bf16 %v23314_v42  ;;  %v29706_v25 = vunpack.i.h.bf16 %v29687_v58  ;;  %vm29449_vm14 = vcmask 326656  }
 0x25c   : > { %17078 = vmatmul.mubr.msk.f32.gmra.mrb[26].mxu0 %vm751_vm7, %v23342_v56  ;;  %15806 = vmatmul.mubr.msk.f32.gmra.mrb[14].mxu1 %vm751_vm7, %v15798_v41  ;;  %v23502_v14 = vpop.permute.xlu0 %20490  ;;  %v20412_v56 = vunpack.i.l.bf16 %v23251_v48  ;;  %v29686_v41 = vld [vmem:[#allocation27_spill] sm:$0xff]  ;;  %v17942_v50 = vpack.c.bf16 %v1842_v45, %v1839_v28  ;;  %v5724_v28 = vsel %vm5717_vm15, %v20417_v31, %v20407_v32 }
 0x25d   : > { %17937 = vmatpush1.bf16.msk.msra.mxu0 %vm22552_vm6, %v17935_v15  ;;  %v23504_v43 = vpop.permute.xlu1 %20485  ;;  %17080 = vmatprep.mubr.msk.f32.mxu0 %vm751_vm7, %v23378_v40  ;;  %v29296_v40 = vunpack.i.h.bf16 %v22463_v51  ;;  %v29293_v15 = vunpack.i.l.bf16 %v29686_v41 }
 0x25e   : > { %29682 = vst [vmem:[#allocation91_spill] sm:$0xff] %v23504_v43  ;;  %17939 = vmatprep.subr.bf16.mxu0 %v17938_v18  ;;  %5259 = vmatprep.mubr.f32.mxu1 %v29621_v57  ;;  %v5728_v21 = vsel %vm5717_vm15, %v20412_v56, %v29286_v2  ;;  %v5727_v45 = vsel %vm5717_vm15, %v20418_v8, %v20412_v56  ;;  %v15816_v56 = vld [vmem:[%s29197_s5 + $0x308] sm:$0xff] }
 0x25f   : > { %20770 = vrot.lane.b32.xlu0 %v23397_v39, %s21876_s16  ;;  %20765 = vrot.lane.b32.xlu1 %v22150_v36, %s21876_s16  ;;  %v18192_v2 = vpack.c.bf16 %v5728_v21, %v5725_v44  ;;  %v2134_v7 = vsel %vm29411_vm0, %v29296_v40, %v29294_v35  ;;  %v2131_v32 = vsel %vm29411_vm0, %v29297_v26, %v29293_v15  ;;  %v19907_v15 = vunpack.i.l.bf16 %v29687_v58  ;;  %v29701_v26 = vld [vmem:[#allocation55_spill] sm:$0xff] }
 0x260   : > { %17081 = vmatmul.mubr.msk.f32.gmra.mrb[28].mxu0 %vm751_vm7, %v23416_v52  ;;  %15807 = vmatmul.mubr.msk.f32.gmra.mrb[16].mxu1 %vm751_vm7, %v15799_v53  ;;  %v23539_v52 = vld [vmem:[%s29197_s5 + $0xc0] sm:$0xff]  ;;  %v23541_v49 = vpop.permute.xlu0 %20500  ;;  %v29292_v53 = vunpack.i.h.bf16 %v23281_v38  ;;  %v6021_v21 = vsel %vm6016_vm1, %v29690_v33, %v29689_v0  ;;  %v18195_v44 = vpack.c.bf16 %v5727_v45, %v5724_v28  ;;  %v15817_v45 = vld [vmem:[%s29197_s5 + $0x310] sm:$0xff]  ;;  %v20027_v35 = vunpack.i.l.bf16 %v22463_v51 }
 0x261   : > { %1940 = vmatprep.mubr.f32.mxu0 %v29621_v57  ;;  %29684 = vst [vmem:[#allocation92_spill] sm:$0xff] %v23541_v49  ;;  %v23543_v6 = vpop.permute.xlu1 %20495  ;;  %5528 = vmatprep.mubr.f32.mxu1 %v29621_v57  ;;  %v20148_v48 = vunpack.i.h.bf16 %v29701_v26  ;;  %v29711_v58 = vunpack.i.h.bf16 %v23344_v23 }
 0x262   : > { %29685 = vst [vmem:[#allocation93_spill] sm:$0xff] %v23543_v6  ;;  %v6018_v8 = vsel %vm6016_vm1, %v29295_v61, %v29292_v53  ;;  %v29700_v61 = vld [vmem:[#allocation54_spill] sm:$0xff]  ;;  %v23700_v53 = vld [vmem:[%s29197_s5 + $0xe8] sm:$0xff] }
 0x263   : > { %20780 = vrot.lane.b32.xlu0 %v22088_v1, %s21877_s18  ;;  %20775 = vrot.lane.b32.xlu1 %v23059_v10, %s21876_s16 }
 0x264   : > { %15571 = vmatmul.mubr.msk.f32.vlgmr.msra.gmra.mrb[12].mxu0 %vm751_vm7, %v23539_v52  ;;  %15823 = vmatmul.mubr.msk.f32.vlgmr.msra.gmra.mrb[6].mxu1 %vm751_vm7, %v15815_v5  ;;  %v23575_v62 = vpop.permute.xlu0 %20510 }
 0x265   : > { %17941 = vmatpush3.bf16.msra.mxu0 %v17938_v18  ;;  %29688 = vst [vmem:[#allocation27_spill] sm:$0xff] %v23575_v62  ;;  %v23577_v20 = vpop.permute.xlu1 %20505  ;;  %18191 = vmatpush1.bf16.msra.mxu1 %v18190_v12  ;;  %v23586_v18 = vld [vmem:[%s29197_s5 + $0xc8] sm:$0xff]  ;;  %v23628_v12 = vld [vmem:[%s29197_s5 + $0xd0] sm:$0xff] }
 0x266   : > { %17944 = vmatprep.subr.msk.bf16.mxu0 %vm22552_vm6, %v17942_v50  ;;  %18194 = vmatprep.subr.msk.bf16.mxu1 %vm22552_vm6, %v18192_v2  ;;  %v17948_v2 = vpack.c.bf16 %v2134_v7, %v2131_v32  ;;  %v18208_v7 = vpack.c.bf16 %v6021_v21, %v6018_v8  ;;  %v15818_v32 = vld [vmem:[%s29197_s5 + $0x318] sm:$0xff]  ;;  %v23671_v21 = vld [vmem:[%s29197_s5 + $0xe0] sm:$0xff] }
 0x267   : > { %1946 = vmatprep.mubr.f32.mxu0 %v29621_v57  ;;  %5534 = vmatprep.mubr.f32.mxu1 %v29621_v57 }
 0x268   : > { %20790 = vrot.lane.b32.xlu0 %v22101_v11, %s21877_s18  ;;  %20785 = vrot.lane.b32.xlu1 %v22129_v29, %s21877_s18  ;;  %v23616_v31 = vpop.permute.xlu0 %20520 }
 0x269   : > { %15572 = vmatmul.mubr.msk.f32.gmra.mrb[14].mxu0 %vm751_vm7, %v23586_v18  ;;  %v23618_v5 = vpop.permute.xlu1 %20515  ;;  %15824 = vmatmul.mubr.msk.f32.gmra.mrb[8].mxu1 %vm751_vm7, %v15816_v56  ;;  %v23650_v56 = vld [vmem:[%s29197_s5 + $0xd8] sm:$0xff] }
 0x26a   : > { %29691 = vst [vmem:[#allocation28_spill] sm:$0xff] %v23618_v5  ;;  %17947 = vmatpush3.bf16.msk.msra.mxu0 %vm22552_vm6, %v17942_v50  ;;  %18197 = vmatpush1.bf16.msk.msra.mxu1 %vm22552_vm6, %v18195_v44 }
 0x26b   : > { %17949 = vmatprep.subr.bf16.mxu0 %v17948_v2  ;;  %18209 = vmatprep.subr.bf16.mxu1 %v18208_v7  ;;  %v15819_v2 = vld [vmem:[%s29197_s5 + $0x320] sm:$0xff]  ;;  %v29698_v7 = vld [vmem:[#allocation13_spill] sm:$0xff] }
 0x26c   : > { %1952 = vmatprep.mubr.f32.mxu0 %v29621_v57  ;;  %5540 = vmatprep.mubr.f32.mxu1 %v29621_v57  ;;  %v23637_v50 = vpop.permute.xlu0 %20530  ;;  %v29704_v54 = vunpack.i.l.bf16 %v29698_v7 }
 0x26d   : > { %20800 = vrot.lane.b32.xlu0 %v23397_v39, %s21877_s18  ;;  %29692 = vst [vmem:[#allocation94_spill] sm:$0xff] %v23637_v50  ;;  %v23639_v28 = vpop.permute.xlu1 %20525  ;;  %20795 = vrot.lane.b32.xlu1 %v22150_v36, %s21877_s18 }
 0x26e   : > { %29693 = vst [vmem:[#allocation95_spill] sm:$0xff] %v23639_v28  ;;  %15573 = vmatmul.mubr.msk.f32.gmra.mrb[16].mxu0 %vm751_vm7, %v23628_v12  ;;  %15825 = vmatmul.mubr.msk.f32.gmra.mrb[10].mxu1 %vm751_vm7, %v15817_v45  ;;  %v20432_v45 = vunpack.i.l.bf16 %v23312_v46  ;;  %v15820_v46 = vld [vmem:[%s29197_s5 + $0x328] sm:$0xff] }
 0x26f   : > { %1958 = vmatprep.mubr.f32.mxu0 %v29621_v57  ;;  %5546 = vmatprep.mubr.f32.mxu1 %v29621_v57 }
 0x270   : > { %v23658_v0 = vpop.permute.xlu0 %20540 }
 0x271   : > { %20810 = vrot.lane.b32.xlu0 %v22088_v1, %s21878_s29  ;;  %29694 = vst [vmem:[#allocation96_spill] sm:$0xff] %v23658_v0  ;;  %v23660_v33 = vpop.permute.xlu1 %20535  ;;  %20805 = vrot.lane.b32.xlu1 %v23059_v10, %s21877_s18  ;;  %v20033_v0 = vunpack.i.h.bf16 %v22461_v47 }
 0x272   : > { %29695 = vst [vmem:[#allocation97_spill] sm:$0xff] %v23660_v33  ;;  %15574 = vmatmul.mubr.msk.f32.gmra.mrb[18].mxu0 %vm751_vm7, %v23650_v56  ;;  %15826 = vmatmul.mubr.msk.f32.gmra.mrb[12].mxu1 %vm751_vm7, %v15818_v32  ;;  %v29699_v32 = vld [vmem:[#allocation14_spill] sm:$0xff] }
 0x273   : > { %1964 = vmatprep.mubr.f32.mxu0 %v29621_v57  ;;  %5552 = vmatprep.mubr.f32.mxu1 %v29621_v57  ;;  %v29705_v40 = vunpack.i.h.bf16 %v29699_v32 }
 0x274   : > { %v23679_v44 = vpop.permute.xlu0 %20550 }
 0x275   : > { %20820 = vrot.lane.b32.xlu0 %v22101_v11, %s21878_s29  ;;  %29696 = vst [vmem:[#allocation98_spill] sm:$0xff] %v23679_v44  ;;  %v23681_v8 = vpop.permute.xlu1 %20545  ;;  %20815 = vrot.lane.b32.xlu1 %v22129_v29, %s21878_s29  ;;  %v2140_v34 = vsel %vm29411_vm0, %v29705_v40, %v29704_v54  ;;  %v2130_v44 = vsel %vm29411_vm0, %v19907_v15, %v29706_v25  ;;  %v20147_v40 = vunpack.i.l.bf16 %v29701_v26  ;;  %v29709_v25 = vunpack.i.l.bf16 %v23281_v38 }
 0x276   : > { %29697 = vst [vmem:[#allocation99_spill] sm:$0xff] %v23681_v8  ;;  %15575 = vmatmul.mubr.msk.f32.gmra.mrb[20].mxu0 %vm751_vm7, %v23671_v21  ;;  %15827 = vmatmul.mubr.msk.f32.gmra.mrb[14].mxu1 %vm751_vm7, %v15819_v2  ;;  %v19797_v2 = vunpack.i.l.bf16 %v29699_v32  ;;  %v29707_v8 = vunpack.i.h.bf16 %v22463_v51  ;;  %v29710_v51 = vunpack.i.l.bf16 %v23314_v42  ;;  %v20448_v38 = vunpack.i.h.bf16 %v23382_v63 }
 0x277   : > { %1970 = vmatprep.mubr.f32.mxu0 %v29621_v57  ;;  %5558 = vmatprep.mubr.f32.mxu1 %v29621_v57  ;;  %v6017_v15 = vsel %vm6016_vm1, %v20432_v45, %v29709_v25  ;;  %v20447_v45 = vunpack.i.l.bf16 %v23382_v63 }
 0x278   : > { %v23713_v9 = vpop.permute.xlu0 %20560  ;;  %v2133_v33 = vsel %vm29411_vm0, %v20027_v35, %v29707_v8  ;;  %v6020_v35 = vsel %vm6016_vm1, %v20433_v59, %v29710_v51  ;;  %v6027_v8 = vsel %vm6016_vm1, %v20442_v55, %v29711_v58  ;;  %v15836_v59 = vld [vmem:[%s29197_s5 + $0x330] sm:$0xff] }
 0x279   : > { %20830 = vrot.lane.b32.xlu0 %v23397_v39, %s21878_s29  ;;  %29702 = vst [vmem:[#allocation13_spill] sm:$0xff] %v23713_v9  ;;  %v23715_v30 = vpop.permute.xlu1 %20555  ;;  %20825 = vrot.lane.b32.xlu1 %v22150_v36, %s21878_s29  ;;  %v17950_v51 = vpack.c.bf16 %v2133_v33, %v2130_v44  ;;  %v29318_v33 = vunpack.i.h.bf16 %v23380_v24  ;;  %v20452_v44 = vunpack.i.l.bf16 %v23380_v24 }
 0x27a   : > { %29703 = vst [vmem:[#allocation14_spill] sm:$0xff] %v23715_v30  ;;  %15576 = vmatmul.mubr.msk.f32.gmra.mrb[22].mxu0 %vm751_vm7, %v23700_v53  ;;  %v29708_v30 = vunpack.i.l.bf16 %v29700_v61  ;;  %15828 = vmatmul.mubr.msk.f32.gmra.mrb[16].mxu1 %vm751_vm7, %v15820_v46  ;;  %v29714_v46 = vunpack.i.l.bf16 %v22461_v47  ;;  %v29715_v47 = vunpack.i.h.bf16 %v29699_v32 }
 0x27b   : > { %17091 = vmatprep.mubr.msk.f32.mxu0 %vm751_vm7, %v23539_v52  ;;  %5827 = vmatprep.mubr.f32.mxu1 %v29621_v57  ;;  %v19913_v52 = vunpack.i.h.bf16 %v29686_v41 }
 0x27c   : > { %v2137_v54 = vsel %vm29411_vm0, %v20148_v48, %v29708_v30  ;;  %v29712_v30 = vunpack.i.h.bf16 %v23346_v13  ;;  %v23763_v58 = vpop.permute.xlu0 %20570  ;;  %v2135_v25 = vsel %vm29411_vm0, %v29714_v46, %v20033_v0  ;;  %v2136_v13 = vsel %vm29411_vm0, %v20147_v40, %v20148_v48 }
 0x27d   : > { %20840 = vrot.lane.b32.xlu0 %v22088_v1, %s21879_s27  ;;  %29713 = vst [vmem:[#allocation54_spill] sm:$0xff] %v23763_v58  ;;  %v23765_v63 = vpop.permute.xlu1 %20565  ;;  %20835 = vrot.lane.b32.xlu1 %v23059_v10, %s21878_s29  ;;  %v17952_v23 = vpack.c.bf16 %v2140_v34, %v2137_v54  ;;  %v6026_v10 = vsel %vm6016_vm1, %v20448_v38, %v20442_v55  ;;  %v15837_v55 = vld [vmem:[%s29197_s5 + $0x338] sm:$0xff]  ;;  %v29717_v38 = vunpack.i.h.bf16 %v23420_v16  ;;  %v20153_v40 = vunpack.i.h.bf16 %v29700_v61 }
 0x27e   : > { %v6024_v26 = vsel %vm6016_vm1, %v20437_v27, %v29712_v30  ;;  %17092 = vmatmul.mubr.msk.f32.vlgmr.msra.gmra.mrb[24].mxu0 %vm751_vm7, %v23586_v18  ;;  %v18210_v30 = vpack.c.bf16 %v6020_v35, %v6017_v15  ;;  %15844 = vmatmul.mubr.msk.f32.vlgmr.msra.gmra.mrb[6].mxu1 %vm751_vm7, %v15836_v59  ;;  %v6023_v18 = vsel %vm6016_vm1, %v20447_v45, %v20437_v27  ;;  %v29716_v27 = vunpack.i.l.bf16 %v29686_v41  ;;  %v29723_v45 = vld [vmem:[#allocation42_spill] sm:$0xff] }
 0x27f   : > { %17951 = vmatpush1.bf16.msra.mxu0 %v17950_v51  ;;  %v18212_v42 = vpack.c.bf16 %v6027_v8, %v6024_v26  ;;  %v2139_v34 = vsel %vm29411_vm0, %v19797_v2, %v29715_v47  ;;  %17094 = vmatprep.mubr.msk.f32.mxu0 %vm751_vm7, %v23628_v12  ;;  %v18215_v41 = vpack.c.bf16 %v6026_v10, %v6023_v18  ;;  %v19803_v8 = vunpack.i.h.bf16 %v29698_v7  ;;  %v21683_v51 = vld [vmem:[#allocation2 + $0x68] sm:$0xff]  ;;  %v23854_v10 = vld [vmem:[#allocation2 + $0x78] sm:$0xf] }
 0x280   : > { %18211 = vmatpush1.bf16.msra.mxu1 %v18210_v30  ;;  %17954 = vmatprep.subr.msk.bf16.mxu0 %vm22552_vm6, %v17952_v23  ;;  %v2132_v48 = vsel %vm29411_vm0, %v29716_v27, %v19913_v52  ;;  %v29718_v23 = vunpack.i.l.bf16 %v23420_v16  ;;  %v17955_v32 = vpack.c.bf16 %v2139_v34, %v2136_v13  ;;  %v6317_v13 = vsel %vm6315_vm2, %v20452_v44, %v29318_v33  ;;  %v15839_v18 = vld [vmem:[%s29197_s5 + $0x348] sm:$0xff] }
 0x281   : > { %18214 = vmatprep.subr.msk.bf16.mxu1 %vm22552_vm6, %v18212_v42  ;;  %5833 = vmatprep.mubr.f32.mxu1 %v29621_v57  ;;  %v17958_v42 = vpack.c.bf16 %v2135_v25, %v2132_v48  ;;  %v23803_v12 = vpop.permute.xlu0 %20580  ;;  %v29324_v59 = vunpack.i.h.bf16 %v29723_v45  ;;  %v29724_v52 = vunpack.i.l.bf16 %v29700_v61  ;;  %v21682_v25 = vld [vmem:[#allocation2 + $0x90] sm:$0xf]  ;;  %v23858_v61 = vpack.i.bf16 %v23854_v10, %v23055_v17 }
 0x282   : > { %v6320_v0 = vsel %vm6315_vm2, %v29718_v23, %v29717_v38  ;;  %20850 = vrot.lane.b32.xlu0 %v22101_v11, %s21879_s27  ;;  %v23805_v2 = vpop.permute.xlu1 %20575  ;;  %20845 = vrot.lane.b32.xlu1 %v22129_v29, %s21879_s27  ;;  %v23846_v30 = vpack.i.bf16 %v21682_v25, %v21683_v51  ;;  %v29727_v48 = vld [vmem:[#allocation29_spill] sm:$0xff]  ;;  %v29728_v23 = vld [vmem:[#allocation30_spill] sm:$0xff]  ;;  %v20472_v25 = vunpack.i.l.bf16 %v23448_v22  ;;  %v29322_v51 = vunpack.i.h.bf16 %v23450_v37 }
 0x283   : > { %29719 = vst [vmem:[#allocation55_spill] sm:$0xff] %v23805_v2  ;;  %17095 = vmatmul.mubr.msk.f32.gmra.mrb[26].mxu0 %vm751_vm7, %v23650_v56  ;;  %15845 = vmatmul.mubr.msk.f32.gmra.mrb[8].mxu1 %vm751_vm7, %v15837_v55  ;;  %v18228_v54 = vpack.c.bf16 %v6320_v0, %v6317_v13  ;;  %v15838_v56 = vld [vmem:[%s29197_s5 + $0x340] sm:$0xff]  ;;  %v2138_v46 = vsel %vm29411_vm0, %v29724_v52, %v20153_v40  ;;  %v29726_v55 = vunpack.i.l.bf16 %v29698_v7  ;;  %v29319_v38 = vunpack.i.l.bf16 %v29727_v48  ;;  %v23882_v7 = vld [vmem:[%s29197_s5 + $0xf8] sm:$0xff] }
 0x284   : > { %17957 = vmatpush1.bf16.msk.msra.mxu0 %vm22552_vm6, %v17955_v32  ;;  %18217 = vmatpush1.bf16.msk.msra.mxu1 %vm22552_vm6, %v18215_v41  ;;  %v29323_v0 = vunpack.i.h.bf16 %v29728_v23  ;;  %v23919_v52 = vld [vmem:[%s29197_s5 + $0x100] sm:$0xff]  ;;  %v20477_v33 = vunpack.i.l.bf16 %v23475_v60 }
 0x285   : > { %17959 = vmatprep.subr.bf16.mxu0 %v17958_v42  ;;  %18229 = vmatprep.subr.bf16.mxu1 %v18228_v54  ;;  %v23827_v15 = vpop.permute.xlu0 %20590  ;;  %v2141_v27 = vsel %vm29411_vm0, %v29726_v55, %v19803_v8  ;;  %v20462_v8 = vunpack.i.l.bf16 %v23418_v4  ;;  %v29730_v55 = vld [vmem:[#allocation3_spill] sm:$0xff]  ;;  %vm3923_vm0 = vcmask 834560  }
 0x286   : > { %17097 = vmatprep.mubr.msk.f32.mxu0 %vm751_vm7, %v23671_v21  ;;  %29720 = vst [vmem:[#allocation100_spill] sm:$0xff] %v23827_v15  ;;  %v23829_v35 = vpop.permute.xlu1 %20585  ;;  %5839 = vmatprep.mubr.f32.mxu1 %v29621_v57  ;;  %v29722_v21 = vld [vmem:[#allocation41_spill] sm:$0xff]  ;;  %v17962_v17 = vpack.c.bf16 %v2141_v27, %v2138_v46  ;;  %v2430_v13 = vsel %vm29397_vm3, %v29323_v0, %v29319_v38  ;;  %v29320_v46 = vunpack.i.h.bf16 %v23448_v22  ;;  %v23953_v38 = vld [vmem:[%s29197_s5 + $0x108] sm:$0xff] }
 0x287   : > { %29721 = vst [vmem:[#allocation101_spill] sm:$0xff] %v23829_v35  ;;  %20860 = vrot.lane.b32.xlu0 %v23397_v39, %s21879_s27  ;;  %20855 = vrot.lane.b32.xlu1 %v22150_v36, %s21879_s27  ;;  %v29321_v26 = vunpack.i.l.bf16 %v29722_v21 }
 0x288   : > { %17098 = vmatmul.mubr.msk.f32.gmra.mrb[28].mxu0 %vm751_vm7, %v23700_v53  ;;  %15846 = vmatmul.mubr.msk.f32.gmra.mrb[10].mxu1 %vm751_vm7, %v15838_v56  ;;  %v23851_v53 = vld [vmem:[%s29197_s5 + $0xf0] sm:$0xff]  ;;  %v20463_v56 = vunpack.i.h.bf16 %v23418_v4  ;;  %v15841_v4 = vld [vmem:[%s29197_s5 + $0x358] sm:$0xff] }
 0x289   : > { %2239 = vmatprep.mubr.f32.mxu0 %v29621_v57  ;;  %5845 = vmatprep.mubr.f32.mxu1 %v29621_v57  ;;  %v23863_v47 = vpop.permute.xlu0 %20600  ;;  %v2433_v32 = vsel %vm29397_vm3, %v29324_v59, %v29321_v26  ;;  %v23986_v26 = vld [vmem:[%s29197_s5 + $0x110] sm:$0xff] }
 0x28a   : > { %29725 = vst [vmem:[#allocation41_spill] sm:$0xff] %v23863_v47  ;;  %v23865_v34 = vpop.permute.xlu1 %20595  ;;  %v17968_v40 = vpack.c.bf16 %v2433_v32, %v2430_v13  ;;  %v6316_v32 = vsel %vm6315_vm2, %v20462_v8, %v20452_v44  ;;  %v6326_v44 = vsel %vm6315_vm2, %v20472_v25, %v29320_v46  ;;  %v29327_v46 = vunpack.i.h.bf16 %v23473_v19 }
 0x28b   : > { %20870 = vrot.lane.b32.xlu0 %v23846_v30, %s21862_s19  ;;  %20865 = vrot.lane.b32.xlu1 %v23858_v61, %s21879_s27  ;;  %s21892_s19 = smov 118  }
 0x28c   : > { %15592 = vmatmul.mubr.msk.f32.vlgmr.msra.gmra.mrb[12].mxu0 %vm751_vm7, %v23851_v53  ;;  %15847 = vmatmul.mubr.msk.f32.gmra.mrb[12].mxu1 %vm751_vm7, %v15839_v18  ;;  %v20467_v18 = vunpack.i.l.bf16 %v23450_v37  ;;  %v19917_v37 = vunpack.i.l.bf16 %v29728_v23 }
 0x28d   : > { %17961 = vmatpush3.bf16.msra.mxu0 %v17958_v42  ;;  %2245 = vmatprep.mubr.f32.mxu0 %v29621_v57  ;;  %v15840_v42 = vld [vmem:[%s29197_s5 + $0x350] sm:$0xff] }
 0x28e   : > { %17964 = vmatprep.subr.msk.bf16.mxu0 %vm22552_vm6, %v17962_v17  ;;  %v23895_v41 = vpop.permute.xlu0 %20610  ;;  %5851 = vmatprep.mubr.f32.mxu1 %v29621_v57  ;;  %v23905_v54 = vpop.permute.xlu1 %20605 }
 0x28f   : > { %20880 = vrot.lane.b32.xlu0 %v22129_v29, %s21880_s9  ;;  %29729 = vst [vmem:[#allocation42_spill] sm:$0xff] %v23905_v54  ;;  %20875 = vrot.lane.b32.xlu1 %v22088_v1, %s21880_s9 }
 0x290   : > { %15593 = vmatmul.mubr.msk.f32.gmra.mrb[14].mxu0 %vm751_vm7, %v23882_v7  ;;  %15848 = vmatmul.mubr.msk.f32.gmra.mrb[14].mxu1 %vm751_vm7, %v15840_v42  ;;  %v29733_v42 = vunpack.i.l.bf16 %v23420_v16  ;;  %v29745_v16 = vunpack.i.h.bf16 %v29723_v45 }
 0x291   : > { %17967 = vmatpush3.bf16.msk.msra.mxu0 %vm22552_vm6, %v17962_v17  ;;  %2251 = vmatprep.mubr.f32.mxu0 %v29621_v57 }
 0x292   : > { %17969 = vmatprep.subr.bf16.mxu0 %v17968_v40  ;;  %5857 = vmatprep.mubr.f32.mxu1 %v29621_v57  ;;  %v6319_v13 = vsel %vm6315_vm2, %v20463_v56, %v29733_v42  ;;  %v20478_v40 = vunpack.i.h.bf16 %v23475_v60  ;;  %v6323_v56 = vsel %vm6315_vm2, %v20467_v18, %v29322_v51  ;;  %v6322_v60 = vsel %vm6315_vm2, %v20477_v33, %v20467_v18 }
 0x293   : > { %20890 = vrot.lane.b32.xlu0 %v29730_v55, %s21863_s20  ;;  %v23932_v27 = vpop.permute.xlu0 %20620  ;;  %20885 = vrot.lane.b32.xlu1 %v22101_v11, %s21880_s9  ;;  %v23938_v17 = vpop.permute.xlu1 %20615  ;;  %v18230_v51 = vpack.c.bf16 %v6319_v13, %v6316_v32  ;;  %v18232_v8 = vpack.c.bf16 %v6326_v44, %v6323_v56  ;;  %v29735_v33 = vunpack.i.h.bf16 %v23504_v43  ;;  %v29736_v18 = vunpack.i.l.bf16 %v23504_v43 }
 0x294   : > { %29731 = vst [vmem:[#allocation29_spill] sm:$0xff] %v23932_v27  ;;  %15594 = vmatmul.mubr.msk.f32.gmra.mrb[16].mxu0 %vm751_vm7, %v23919_v52  ;;  %29732 = vst [vmem:[#allocation30_spill] sm:$0xff] %v23938_v17  ;;  %15849 = vmatmul.mubr.msk.f32.gmra.mrb[16].mxu1 %vm751_vm7, %v15841_v4  ;;  %v15857_v4 = vld [vmem:[%s29197_s5 + $0x360] sm:$0xff]  ;;  %v6325_v59 = vsel %vm6315_vm2, %v20478_v40, %v20472_v25  ;;  %v15858_v25 = vld [vmem:[%s29197_s5 + $0x368] sm:$0xff]  ;;  %v29738_v44 = vunpack.i.l.bf16 %v23473_v19 }
 0x295   : > { %2257 = vmatprep.mubr.f32.mxu0 %v29621_v57  ;;  %6126 = vmatprep.mubr.f32.mxu1 %v29621_v57  ;;  %v6619_v32 = vsel %vm6614_vm4, %v29736_v18, %v29735_v33  ;;  %v18235_v40 = vpack.c.bf16 %v6325_v59, %v6322_v60  ;;  %v29741_v18 = vld [vmem:[#allocation57_spill] sm:$0xff]  ;;  %v24022_v60 = vld [vmem:[%s29197_s5 + $0x118] sm:$0xff] }
 0x296   : > { %v6616_v56 = vsel %vm6614_vm4, %v29738_v44, %v29327_v46  ;;  %v20158_v22 = vunpack.i.h.bf16 %v29741_v18  ;;  %v15859_v44 = vld [vmem:[%s29197_s5 + $0x370] sm:$0xff]  ;;  %v20157_v24 = vunpack.i.l.bf16 %v29741_v18  ;;  %v15860_v18 = vld [vmem:[%s29197_s5 + $0x378] sm:$0xff] }
 0x297   : > { %20900 = vrot.lane.b32.xlu0 %v23397_v39, %s21880_s9  ;;  %v23969_v42 = vpop.permute.xlu0 %20630  ;;  %20895 = vrot.lane.b32.xlu1 %v22150_v36, %s21880_s9  ;;  %v23977_v0 = vpop.permute.xlu1 %20625  ;;  %v18248_v59 = vpack.c.bf16 %v6619_v32, %v6616_v56  ;;  %v29743_v56 = vld [vmem:[#allocation16_spill] sm:$0xff] }
 0x298   : > { %29734 = vst [vmem:[#allocation3_spill] sm:$0xff] %v23969_v42  ;;  %15595 = vmatmul.mubr.msk.f32.gmra.mrb[18].mxu0 %vm751_vm7, %v23953_v38  ;;  %15865 = vmatmul.mubr.msk.f32.vlgmr.msra.gmra.mrb[6].mxu1 %vm751_vm7, %v15857_v4  ;;  %v29740_v4 = vld [vmem:[#allocation56_spill] sm:$0xff]  ;;  %v19808_v46 = vunpack.i.h.bf16 %v29743_v56 }
 0x299   : > { %2263 = vmatprep.mubr.f32.mxu0 %v29621_v57  ;;  %18231 = vmatpush1.bf16.msra.mxu1 %v18230_v51  ;;  %v20037_v51 = vunpack.i.l.bf16 %v29723_v45  ;;  %v29748_v45 = vunpack.i.h.bf16 %v29728_v23 }
 0x29a   : > { %6132 = vmatprep.mubr.f32.mxu1 %v29621_v57  ;;  %18234 = vmatprep.subr.msk.bf16.mxu1 %vm22552_vm6, %v18232_v8 }
 0x29b   : > { %20910 = vrot.lane.b32.xlu0 %v23846_v30, %s21863_s20  ;;  %v24001_v13 = vpop.permute.xlu0 %20640  ;;  %20905 = vrot.lane.b32.xlu1 %v23858_v61, %s21880_s9  ;;  %v24013_v8 = vpop.permute.xlu1 %20635  ;;  %s21881_s20 = smov 34  }
 0x29c   : > { %29737 = vst [vmem:[#allocation102_spill] sm:$0xff] %v24001_v13  ;;  %15596 = vmatmul.mubr.msk.f32.gmra.mrb[20].mxu0 %vm751_vm7, %v23986_v26  ;;  %29739 = vst [vmem:[#allocation103_spill] sm:$0xff] %v24013_v8  ;;  %15866 = vmatmul.mubr.msk.f32.gmra.mrb[8].mxu1 %vm751_vm7, %v15858_v25  ;;  %v29742_v25 = vld [vmem:[#allocation15_spill] sm:$0xff]  ;;  %v29747_v13 = vunpack.i.l.bf16 %v29740_v4 }
 0x29d   : > { %2269 = vmatprep.mubr.f32.mxu0 %v29621_v57  ;;  %18237 = vmatpush1.bf16.msk.msra.mxu1 %vm22552_vm6, %v18235_v40  ;;  %v2432_v40 = vsel %vm29397_vm3, %v20037_v51, %v29745_v16  ;;  %v19807_v16 = vunpack.i.l.bf16 %v29743_v56  ;;  %v2429_v51 = vsel %vm29397_vm3, %v19917_v37, %v29748_v45  ;;  %v2435_v37 = vsel %vm29397_vm3, %v20157_v24, %v20158_v22  ;;  %v15861_v24 = vld [vmem:[%s29197_s5 + $0x380] sm:$0xff] }
 0x29e   : > { %6138 = vmatprep.mubr.f32.mxu1 %v29621_v57  ;;  %18249 = vmatprep.subr.bf16.mxu1 %v18248_v59  ;;  %v20043_v59 = vunpack.i.h.bf16 %v29722_v21 }
 0x29f   : > { %20920 = vrot.lane.b32.xlu0 %v23846_v30, %s21865_s23  ;;  %v24035_v33 = vpop.permute.xlu0 %20650  ;;  %20915 = vrot.lane.b32.xlu1 %v29730_v55, %s21865_s23  ;;  %v24045_v32 = vpop.permute.xlu1 %20645  ;;  %s21882_s23 = smov 18  }
 0x2a0   : > { %29744 = vst [vmem:[#allocation56_spill] sm:$0xff] %v24035_v33  ;;  %15597 = vmatmul.mubr.msk.f32.gmra.mrb[22].mxu0 %vm751_vm7, %v24022_v60  ;;  %29746 = vst [vmem:[#allocation57_spill] sm:$0xff] %v24045_v32  ;;  %v2436_v33 = vsel %vm29397_vm3, %v20158_v22, %v29747_v13  ;;  %15867 = vmatmul.mubr.msk.f32.gmra.mrb[10].mxu1 %vm751_vm7, %v15859_v44  ;;  %v29749_v32 = vunpack.i.l.bf16 %v29742_v25  ;;  %v19923_v44 = vunpack.i.h.bf16 %v29727_v48 }
 0x2a1   : > { %17108 = vmatprep.mubr.msk.f32.mxu0 %vm751_vm7, %v23851_v53  ;;  %6144 = vmatprep.mubr.f32.mxu1 %v29621_v57  ;;  %v17970_v53 = vpack.c.bf16 %v2432_v40, %v2429_v51  ;;  %v2438_v51 = vsel %vm29397_vm3, %v19807_v16, %v19808_v46  ;;  %v20492_v16 = vunpack.i.l.bf16 %v23502_v14 }
 0x2a2   : > { %v2439_v13 = vsel %vm29397_vm3, %v19808_v46, %v29749_v32  ;;  %v29752_v32 = vunpack.i.l.bf16 %v29722_v21  ;;  %v17975_v22 = vpack.c.bf16 %v2438_v51, %v2435_v37  ;;  %v29753_v21 = vunpack.i.l.bf16 %v29727_v48  ;;  %v29756_v37 = vld [vmem:[#allocation43_spill] sm:$0xff] }
 0x2a3   : > { %20930 = vrot.lane.b32.xlu0 %v22129_v29, %s21881_s20  ;;  %v24068_v23 = vpop.permute.xlu0 %20660  ;;  %20925 = vrot.lane.b32.xlu1 %v22088_v1, %s21881_s20  ;;  %v17972_v56 = vpack.c.bf16 %v2439_v13, %v2436_v33  ;;  %v24075_v45 = vpop.permute.xlu1 %20655  ;;  %v20163_v33 = vunpack.i.h.bf16 %v29740_v4  ;;  %v29334_v13 = vunpack.i.h.bf16 %v23543_v6 }
 0x2a4   : > { %29750 = vst [vmem:[#allocation15_spill] sm:$0xff] %v24068_v23  ;;  %17109 = vmatmul.mubr.msk.f32.vlgmr.msra.gmra.mrb[24].mxu0 %vm751_vm7, %v23882_v7  ;;  %29751 = vst [vmem:[#allocation16_spill] sm:$0xff] %v24075_v45  ;;  %15868 = vmatmul.mubr.msk.f32.gmra.mrb[12].mxu1 %vm751_vm7, %v15860_v18  ;;  %v2434_v40 = vsel %vm29397_vm3, %v29752_v32, %v20043_v59  ;;  %v2431_v7 = vsel %vm29397_vm3, %v29753_v21, %v19923_v44  ;;  %v20493_v59 = vunpack.i.h.bf16 %v23502_v14  ;;  %v15862_v14 = vld [vmem:[%s29197_s5 + $0x388] sm:$0xff] }
 0x2a5   : > { %17971 = vmatpush1.bf16.msra.mxu0 %v17970_v53  ;;  %17111 = vmatprep.mubr.msk.f32.mxu0 %vm751_vm7, %v23919_v52  ;;  %v17978_v52 = vpack.c.bf16 %v2434_v40, %v2431_v7  ;;  %v29333_v18 = vunpack.i.h.bf16 %v23541_v49  ;;  %v20497_v44 = vunpack.i.l.bf16 %v23543_v6  ;;  %v19813_v53 = vunpack.i.h.bf16 %v29742_v25 }
 0x2a6   : > { %17974 = vmatprep.subr.msk.bf16.mxu0 %vm22552_vm6, %v17972_v56  ;;  %6150 = vmatprep.mubr.f32.mxu1 %v29621_v57  ;;  %v29758_v40 = vunpack.i.l.bf16 %v29740_v4  ;;  %v29765_v56 = vld [vmem:[#allocation32_spill] sm:$0xff] }
 0x2a7   : > { %20940 = vrot.lane.b32.xlu0 %v29730_v55, %s21866_s12  ;;  %20935 = vrot.lane.b32.xlu1 %v22101_v11, %s21881_s20 }
 0x2a8   : > { %17112 = vmatmul.mubr.msk.f32.gmra.mrb[26].mxu0 %vm751_vm7, %v23953_v38  ;;  %v24099_v46 = vpop.permute.xlu0 %20670  ;;  %15869 = vmatmul.mubr.msk.f32.gmra.mrb[14].mxu1 %vm751_vm7, %v15861_v24  ;;  %v24107_v48 = vpop.permute.xlu1 %20665  ;;  %v20502_v38 = vunpack.i.l.bf16 %v23541_v49  ;;  %v2437_v51 = vsel %vm29397_vm3, %v29758_v40, %v20163_v33  ;;  %v29759_v24 = vunpack.i.l.bf16 %v23473_v19  ;;  %v6622_v33 = vsel %vm6614_vm4, %v20497_v44, %v29334_v13 }
 0x2a9   : > { %29754 = vst [vmem:[#allocation104_spill] sm:$0xff] %v24099_v46  ;;  %17977 = vmatpush1.bf16.msk.msra.mxu0 %vm22552_vm6, %v17975_v22  ;;  %29755 = vst [vmem:[#allocation105_spill] sm:$0xff] %v24107_v48  ;;  %17114 = vmatprep.mubr.msk.f32.mxu0 %vm751_vm7, %v23986_v26  ;;  %v29757_v26 = vld [vmem:[#allocation44_spill] sm:$0xff] }
 0x2aa   : > { %17979 = vmatprep.subr.bf16.mxu0 %v17978_v52  ;;  %6156 = vmatprep.mubr.f32.mxu1 %v29621_v57  ;;  %v6615_v22 = vsel %vm6614_vm4, %v20492_v16, %v29759_v24  ;;  %v6625_v7 = vsel %vm6614_vm4, %v20502_v38, %v29333_v18  ;;  %v20507_v16 = vunpack.i.l.bf16 %v23577_v20  ;;  %v29763_v24 = vunpack.i.l.bf16 %v29742_v25 }
 0x2ab   : > { %20950 = vrot.lane.b32.xlu0 %v23397_v39, %s21881_s20  ;;  %20945 = vrot.lane.b32.xlu1 %v22150_v36, %s21881_s20  ;;  %v29760_v39 = vunpack.i.l.bf16 %v23504_v43  ;;  %v29337_v18 = vunpack.i.h.bf16 %v23618_v5  ;;  %v18252_v13 = vpack.c.bf16 %v6625_v7, %v6622_v33  ;;  %v24298_v43 = vld [vmem:[%s29197_s5 + $0x148] sm:$0xff]  ;;  %v29783_v46 = vunpack.i.h.bf16 %v29757_v26 }
 0x2ac   : > { %17115 = vmatmul.mubr.msk.f32.gmra.mrb[28].mxu0 %vm751_vm7, %v24022_v60  ;;  %15870 = vmatmul.mubr.msk.f32.gmra.mrb[16].mxu1 %vm751_vm7, %v15862_v14  ;;  %v24142_v60 = vld [vmem:[%s29197_s5 + $0x120] sm:$0xff]  ;;  %v15878_v14 = vld [vmem:[%s29197_s5 + $0x390] sm:$0xff]  ;;  %v6621_v49 = vsel %vm6614_vm4, %v20507_v16, %v20497_v44  ;;  %v29768_v44 = vunpack.i.l.bf16 %v23618_v5 }
 0x2ad   : > { %v6618_v21 = vsel %vm6614_vm4, %v20493_v59, %v29760_v39  ;;  %2538 = vmatprep.mubr.f32.mxu0 %v29621_v57  ;;  %v24144_v4 = vpop.permute.xlu0 %20680  ;;  %v20508_v59 = vunpack.i.h.bf16 %v23577_v20  ;;  %6425 = vmatprep.mubr.f32.mxu1 %v29621_v57  ;;  %v24158_v40 = vpop.permute.xlu1 %20675  ;;  %v2440_v39 = vsel %vm29397_vm3, %v29763_v24, %v19813_v53  ;;  %v29764_v20 = vld [vmem:[#allocation31_spill] sm:$0xff]  ;;  %v29338_v53 = vunpack.i.h.bf16 %v23575_v62 }
 0x2ae   : > { %29761 = vst [vmem:[#allocation43_spill] sm:$0xff] %v24144_v4  ;;  %29762 = vst [vmem:[#allocation44_spill] sm:$0xff] %v24158_v40  ;;  %v18250_v25 = vpack.c.bf16 %v6618_v21, %v6615_v22  ;;  %v17982_v6 = vpack.c.bf16 %v2440_v39, %v2437_v51  ;;  %v29339_v24 = vunpack.i.l.bf16 %v23575_v62  ;;  %v24183_v51 = vld [vmem:[%s29197_s5 + $0x128] sm:$0xff]  ;;  %v29766_v22 = vunpack.i.l.bf16 %v29756_v37 }
 0x2af   : > { %20960 = vrot.lane.b32.xlu0 %v23846_v30, %s21866_s12  ;;  %20955 = vrot.lane.b32.xlu1 %v23858_v61, %s21881_s20  ;;  %v6624_v32 = vsel %vm6614_vm4, %v20508_v59, %v20502_v38  ;;  %v15879_v38 = vld [vmem:[%s29197_s5 + $0x398] sm:$0xff]  ;;  %v6918_v7 = vsel %vm6913_vm8, %v29768_v44, %v29337_v18  ;;  %v29771_v59 = vunpack.i.h.bf16 %v29765_v56  ;;  %v15881_v44 = vld [vmem:[%s29197_s5 + $0x3a8] sm:$0xff]  ;;  %v20053_v4 = vunpack.i.h.bf16 %v29756_v37  ;;  %s21884_s12 = smov 16  }
 0x2b0   : > { %15613 = vmatmul.mubr.msk.f32.vlgmr.msra.gmra.mrb[12].mxu0 %vm751_vm7, %v24142_v60  ;;  %15886 = vmatmul.mubr.msk.f32.vlgmr.msra.gmra.mrb[6].mxu1 %vm751_vm7, %v15878_v14  ;;  %v18255_v39 = vpack.c.bf16 %v6624_v32, %v6621_v49  ;;  %v24230_v49 = vld [vmem:[%s29197_s5 + $0x130] sm:$0xff]  ;;  %v15880_v32 = vld [vmem:[%s29197_s5 + $0x3a0] sm:$0xff]  ;;  %vm3624_vm3 = vcmask 842752  }
 0x2b1   : > { %17981 = vmatpush3.bf16.msra.mxu0 %v17978_v52  ;;  %18251 = vmatpush1.bf16.msra.mxu1 %v18250_v25  ;;  %v29767_v52 = vunpack.i.h.bf16 %v29757_v26  ;;  %v24201_v33 = vpop.permute.xlu0 %20690  ;;  %v24211_v14 = vpop.permute.xlu1 %20685 }
 0x2b2   : > { %17984 = vmatprep.subr.msk.bf16.mxu0 %vm22552_vm6, %v17982_v6  ;;  %18254 = vmatprep.subr.msk.bf16.mxu1 %vm22552_vm6, %v18252_v13  ;;  %29769 = vst [vmem:[#allocation31_spill] sm:$0xff] %v24201_v33  ;;  %v29770_v13 = vunpack.i.l.bf16 %v29764_v20  ;;  %29772 = vst [vmem:[#allocation32_spill] sm:$0xff] %v24211_v14  ;;  %v29780_v33 = vld [vmem:[#allocation18_spill] sm:$0xff] }
 0x2b3   : > { %v2732_v21 = vsel %vm2727_vm5, %v29767_v52, %v29766_v22  ;;  %2544 = vmatprep.mubr.f32.mxu0 %v29621_v57  ;;  %6431 = vmatprep.mubr.f32.mxu1 %v29621_v57  ;;  %v6915_v22 = vsel %vm6913_vm8, %v29339_v24, %v29338_v53  ;;  %v20523_v53 = vunpack.i.h.bf16 %v23616_v31  ;;  %v20522_v24 = vunpack.i.l.bf16 %v23616_v31  ;;  %v15883_v31 = vld [vmem:[%s29197_s5 + $0x3b8] sm:$0xff] }
 0x2b4   : > { %20970 = vrot.lane.b32.xlu0 %v23846_v30, %s21867_s17  ;;  %v2729_v16 = vsel %vm2727_vm5, %v29771_v59, %v29770_v13  ;;  %20965 = vrot.lane.b32.xlu1 %v29730_v55, %s21867_s17  ;;  %v18268_v52 = vpack.c.bf16 %v6918_v7, %v6915_v22  ;;  %v21685_v7 = vld [vmem:[#allocation2 + $0x88] sm:$0xf]  ;;  %v21686_v13 = vld [vmem:[#allocation2 + $0x80] sm:$0xf]  ;;  %v15882_v22 = vld [vmem:[%s29197_s5 + $0x3b0] sm:$0xff]  ;;  %v19817_v19 = vunpack.i.l.bf16 %v29780_v33  ;;  %s21883_s17 = smov 17  }
 0x2b5   : > { %15614 = vmatmul.mubr.msk.f32.gmra.mrb[14].mxu0 %vm751_vm7, %v24183_v51  ;;  %v17988_v25 = vpack.c.bf16 %v2732_v21, %v2729_v16  ;;  %15887 = vmatmul.mubr.msk.f32.gmra.mrb[8].mxu1 %vm751_vm7, %v15879_v38  ;;  %v24245_v21 = vpop.permute.xlu1 %20695  ;;  %v24252_v38 = vld [vmem:[%s29197_s5 + $0x138] sm:$0xff]  ;;  %v24260_v59 = vpack.i.bf16 %v21685_v7, %v21686_v13  ;;  %v29778_v13 = vld [vmem:[#allocation59_spill] sm:$0xff]  ;;  %v29782_v7 = vunpack.i.h.bf16 %v29765_v56 }
 0x2b6   : > { %17987 = vmatpush3.bf16.msk.msra.mxu0 %vm22552_vm6, %v17982_v6  ;;  %18257 = vmatpush1.bf16.msk.msra.mxu1 %vm22552_vm6, %v18255_v39  ;;  %v24239_v6 = vpop.permute.xlu0 %20700  ;;  %29774 = vst [vmem:[#allocation107_spill] sm:$0xff] %v24245_v21  ;;  %v24273_v39 = vld [vmem:[%s29197_s5 + $0x140] sm:$0xff]  ;;  %v20168_v18 = vunpack.i.h.bf16 %v29778_v13  ;;  %v19818_v21 = vunpack.i.h.bf16 %v29780_v33 }
 0x2b7   : > { %17989 = vmatprep.subr.bf16.mxu0 %v17988_v25  ;;  %18269 = vmatprep.subr.bf16.mxu1 %v18268_v52  ;;  %29773 = vst [vmem:[#allocation106_spill] sm:$0xff] %v24239_v6  ;;  %v19927_v52 = vunpack.i.l.bf16 %v29765_v56 }
 0x2b8   : > { %2550 = vmatprep.mubr.f32.mxu0 %v29621_v57  ;;  %6437 = vmatprep.mubr.f32.mxu1 %v29621_v57 }
 0x2b9   : > { %20980 = vrot.lane.b32.xlu0 %v22129_v29, %s21882_s23  ;;  %20975 = vrot.lane.b32.xlu1 %v22088_v1, %s21882_s23  ;;  %v24275_v25 = vpop.permute.xlu1 %20705  ;;  %v2728_v40 = vsel %vm2727_vm5, %v19927_v52, %v29782_v7  ;;  %v20167_v52 = vunpack.i.l.bf16 %v29778_v13  ;;  %v29786_v7 = vunpack.i.l.bf16 %v23575_v62  ;;  %v29790_v62 = vld [vmem:[#allocation97_spill] sm:$0xff] }
 0x2ba   : > { %15615 = vmatmul.mubr.msk.f32.gmra.mrb[16].mxu0 %vm751_vm7, %v24230_v49  ;;  %15888 = vmatmul.mubr.msk.f32.gmra.mrb[10].mxu1 %vm751_vm7, %v15880_v32  ;;  %v24267_v16 = vpop.permute.xlu0 %20710  ;;  %29776 = vst [vmem:[#allocation109_spill] sm:$0xff] %v24275_v25  ;;  %v20047_v32 = vunpack.i.l.bf16 %v29757_v26  ;;  %v20532_v25 = vunpack.i.l.bf16 %v23637_v50  ;;  %v20538_v48 = vunpack.i.h.bf16 %v29790_v62 }
 0x2bb   : > { %2556 = vmatprep.mubr.f32.mxu0 %v29621_v57  ;;  %6443 = vmatprep.mubr.f32.mxu1 %v29621_v57  ;;  %29775 = vst [vmem:[#allocation108_spill] sm:$0xff] %v24267_v16  ;;  %v20527_v16 = vunpack.i.l.bf16 %v23639_v28  ;;  %v6914_v26 = vsel %vm6913_vm8, %v20522_v24, %v29786_v7  ;;  %v20537_v24 = vunpack.i.l.bf16 %v29790_v62  ;;  %v29792_v7 = vld [vmem:[#allocation99_spill] sm:$0xff]  ;;  %v19933_v62 = vunpack.i.h.bf16 %v29764_v20 }
 0x2bc   : > { %v2731_v23 = vsel %vm2727_vm5, %v20047_v32, %v29783_v46  ;;  %v29787_v46 = vunpack.i.l.bf16 %v23618_v5  ;;  %v29793_v5 = vld [vmem:[#allocation96_spill] sm:$0xff] }
 0x2bd   : > { %20990 = vrot.lane.b32.xlu0 %v29730_v55, %s21868_s22  ;;  %20985 = vrot.lane.b32.xlu1 %v22101_v11, %s21882_s23  ;;  %v24322_v6 = vpop.permute.xlu1 %20715  ;;  %v6920_v42 = vsel %vm6913_vm8, %v20537_v24, %v20527_v16 }
 0x2be   : > { %15616 = vmatmul.mubr.msk.f32.gmra.mrb[18].mxu0 %vm751_vm7, %v24252_v38  ;;  %15889 = vmatmul.mubr.msk.f32.gmra.mrb[12].mxu1 %vm751_vm7, %v15881_v44  ;;  %v29777_v44 = vld [vmem:[#allocation58_spill] sm:$0xff]  ;;  %v24310_v14 = vpop.permute.xlu0 %20720  ;;  %29784 = vst [vmem:[#allocation59_spill] sm:$0xff] %v24322_v6  ;;  %v6917_v32 = vsel %vm6913_vm8, %v20523_v53, %v29787_v46  ;;  %v15899_v53 = vld [vmem:[%s29197_s5 + $0x3c0] sm:$0xff]  ;;  %v20542_v46 = vunpack.i.l.bf16 %v29793_v5 }
 0x2bf   : > { %2562 = vmatprep.mubr.f32.mxu0 %v29621_v57  ;;  %6449 = vmatprep.mubr.f32.mxu1 %v29621_v57  ;;  %29781 = vst [vmem:[#allocation58_spill] sm:$0xff] %v24310_v14  ;;  %v29785_v33 = vunpack.i.l.bf16 %v29777_v44  ;;  %v29788_v14 = vunpack.i.h.bf16 %v23637_v50  ;;  %v18270_v50 = vpack.c.bf16 %v6917_v32, %v6914_v26  ;;  %v15901_v26 = vld [vmem:[%s29197_s5 + $0x3d0] sm:$0xff] }
 0x2c1   : > { %21000 = vrot.lane.b32.xlu0 %v24260_v59, %s21882_s23  ;;  %20995 = vrot.lane.b32.xlu1 %v22150_v36, %s21882_s23  ;;  %v2735_v56 = vsel %vm2727_vm5, %v20168_v18, %v29785_v33  ;;  %v6924_v6 = vsel %vm6913_vm8, %v20532_v25, %v29788_v14  ;;  %v29789_v33 = vunpack.i.h.bf16 %v23639_v28  ;;  %v29363_v14 = vunpack.i.h.bf16 %v29793_v5 }
 0x2c2   : > { %15617 = vmatmul.mubr.msk.f32.gmra.mrb[20].mxu0 %vm751_vm7, %v24273_v39  ;;  %15890 = vmatmul.mubr.msk.f32.gmra.mrb[14].mxu1 %vm751_vm7, %v15882_v22  ;;  %v29779_v22 = vld [vmem:[#allocation17_spill] sm:$0xff]  ;;  %v24368_v45 = vpop.permute.xlu0 %20730 }
 0x2c3   : > { %2568 = vmatprep.mubr.f32.mxu0 %v29621_v57  ;;  %6455 = vmatprep.mubr.f32.mxu1 %v29621_v57  ;;  %v6921_v13 = vsel %vm6913_vm8, %v20527_v16, %v29789_v33  ;;  %v17990_v33 = vpack.c.bf16 %v2731_v23, %v2728_v40  ;;  %v6923_v40 = vsel %vm6913_vm8, %v20538_v48, %v20532_v25  ;;  %v15900_v48 = vld [vmem:[%s29197_s5 + $0x3c8] sm:$0xff]  ;;  %v19823_v32 = vunpack.i.h.bf16 %v29779_v22 }
 0x2c4   : > { %v18272_v23 = vpack.c.bf16 %v6924_v6, %v6921_v13  ;;  %v7214_v16 = vsel %vm7212_vm9, %v20542_v46, %v29363_v14  ;;  %v29798_v13 = vld [vmem:[#allocation45_spill] sm:$0xff] }
 0x2c5   : > { %21010 = vrot.lane.b32.xlu0 %v23846_v30, %s21868_s22  ;;  %21005 = vrot.lane.b32.xlu1 %v23858_v61, %s21882_s23  ;;  %v29365_v24 = vunpack.i.l.bf16 %v29798_v13 }
 0x2c6   : > { %15618 = vmatmul.mubr.msk.f32.gmra.mrb[22].mxu0 %vm751_vm7, %v24298_v43  ;;  %15891 = vmatmul.mubr.msk.f32.gmra.mrb[16].mxu1 %vm751_vm7, %v15883_v31  ;;  %v24412_v25 = vpop.permute.xlu0 %20740 }
 0x2c7   : > { %17125 = vmatprep.mubr.msk.f32.mxu0 %vm751_vm7, %v24142_v60  ;;  %6724 = vmatprep.mubr.f32.mxu1 %v29621_v57  ;;  %v29791_v60 = vunpack.i.l.bf16 %v29779_v22 }
 0x2c9   : > { %v2738_v31 = vsel %vm2727_vm5, %v19818_v21, %v29791_v60  ;;  %21020 = vrot.lane.b32.xlu0 %v23846_v30, %s21869_s15  ;;  %21015 = vrot.lane.b32.xlu1 %v29730_v55, %s21869_s15  ;;  %v2734_v60 = vsel %vm2727_vm5, %v20167_v52, %v20168_v18  ;;  %v29794_v18 = vunpack.i.l.bf16 %v29756_v37  ;;  %v2737_v52 = vsel %vm2727_vm5, %v19817_v19, %v19818_v21 }
 0x2ca   : > { %17126 = vmatmul.mubr.msk.f32.vlgmr.msra.gmra.mrb[24].mxu0 %vm751_vm7, %v24183_v51  ;;  %v17992_v28 = vpack.c.bf16 %v2738_v31, %v2735_v56  ;;  %15907 = vmatmul.mubr.msk.f32.vlgmr.msra.gmra.mrb[6].mxu1 %vm751_vm7, %v15899_v53  ;;  %v24373_v51 = vpop.permute.xlu1 %20725  ;;  %v17995_v6 = vpack.c.bf16 %v2737_v52, %v2734_v60  ;;  %v29797_v19 = vunpack.i.l.bf16 %v29764_v20  ;;  %v29800_v31 = vunpack.i.l.bf16 %v29777_v44  ;;  %v24452_v52 = vpop.permute.xlu0 %20750 }
 0x2cb   : > { %17991 = vmatpush1.bf16.msra.mxu0 %v17990_v33  ;;  %18271 = vmatpush1.bf16.msra.mxu1 %v18270_v50  ;;  %v2733_v56 = vsel %vm2727_vm5, %v29794_v18, %v20053_v4  ;;  %v29795_v50 = vunpack.i.h.bf16 %v29792_v7  ;;  %v29801_v60 = vunpack.i.l.bf16 %v29779_v22  ;;  %v29803_v18 = vld [vmem:[#allocation34_spill] sm:$0xff] }
 0x2cc   : > { %17994 = vmatprep.subr.msk.bf16.mxu0 %vm22552_vm6, %v17992_v28  ;;  %18274 = vmatprep.subr.msk.bf16.mxu1 %vm22552_vm6, %v18272_v23  ;;  %v29796_v28 = vunpack.i.l.bf16 %v29792_v7  ;;  %v2730_v4 = vsel %vm2727_vm5, %v29797_v19, %v19933_v62  ;;  %v24441_v62 = vld [vmem:[%s29197_s5 + $0x150] sm:$0xff] }
 0x2cd   : > { %17128 = vmatprep.mubr.msk.f32.mxu0 %vm751_vm7, %v24230_v49  ;;  %6730 = vmatprep.mubr.f32.mxu1 %v29621_v57  ;;  %v18275_v49 = vpack.c.bf16 %v6923_v40, %v6920_v42  ;;  %v17998_v21 = vpack.c.bf16 %v2733_v56, %v2730_v4  ;;  %v20173_v42 = vunpack.i.h.bf16 %v29777_v44  ;;  %v2739_v44 = vsel %vm2727_vm5, %v29801_v60, %v19823_v32  ;;  %v29802_v23 = vld [vmem:[#allocation33_spill] sm:$0xff]  ;;  %v29804_v4 = vld [vmem:[#allocation98_spill] sm:$0xff] }
 0x2ce   : > { %v7217_v37 = vsel %vm7212_vm9, %v29796_v28, %v29795_v50  ;;  %21030 = vrot.lane.b32.xlu0 %v22129_v29, %s21883_s17  ;;  %21025 = vrot.lane.b32.xlu1 %v22088_v1, %s21883_s17  ;;  %v29364_v40 = vunpack.i.l.bf16 %v29802_v23  ;;  %v29366_v56 = vunpack.i.h.bf16 %v29803_v18  ;;  %v24466_v50 = vld [vmem:[%s29197_s5 + $0x158] sm:$0xff] }
 0x2cf   : > { %17129 = vmatmul.mubr.msk.f32.gmra.mrb[26].mxu0 %vm751_vm7, %v24252_v38  ;;  %15908 = vmatmul.mubr.msk.f32.gmra.mrb[8].mxu1 %vm751_vm7, %v15900_v48  ;;  %v18288_v20 = vpack.c.bf16 %v7217_v37, %v7214_v16  ;;  %v24416_v38 = vpop.permute.xlu1 %20735  ;;  %v2736_v33 = vsel %vm2727_vm5, %v29800_v31, %v20173_v42  ;;  %v15903_v37 = vld [vmem:[%s29197_s5 + $0x3e0] sm:$0xff]  ;;  %v24493_v16 = vpop.permute.xlu0 %20760  ;;  %v20562_v42 = vunpack.i.l.bf16 %v23713_v9  ;;  %vm7810_vm5 = vcmask 482304  }
 0x2d0   : > { %17997 = vmatpush1.bf16.msk.msra.mxu0 %vm22552_vm6, %v17995_v6  ;;  %18277 = vmatpush1.bf16.msk.msra.mxu1 %vm22552_vm6, %v18275_v49  ;;  %v18002_v22 = vpack.c.bf16 %v2739_v44, %v2736_v33  ;;  %v3028_v6 = vsel %vm3026_vm10, %v29366_v56, %v29364_v40  ;;  %v20553_v49 = vunpack.i.h.bf16 %v29804_v4  ;;  %v29806_v44 = vunpack.i.l.bf16 %v29792_v7  ;;  %v24566_v56 = vld [vmem:[%s29197_s5 + $0x170] sm:$0xff] }
 0x2d1   : > { %17999 = vmatprep.subr.bf16.mxu0 %v17998_v21  ;;  %18289 = vmatprep.subr.bf16.mxu1 %v18288_v20  ;;  %v24501_v20 = vld [vmem:[%s29197_s5 + $0x160] sm:$0xff]  ;;  %v20617_v7 = vunpack.i.l.bf16 %v23938_v17 }
 0x2d2   : > { %17131 = vmatprep.mubr.msk.f32.mxu0 %vm751_vm7, %v24273_v39  ;;  %6736 = vmatprep.mubr.f32.mxu1 %v29621_v57  ;;  %v29799_v39 = vld [vmem:[#allocation46_spill] sm:$0xff] }
 0x2d3   : > { %21040 = vrot.lane.b32.xlu0 %v29730_v55, %s21870_s14  ;;  %21035 = vrot.lane.b32.xlu1 %v22101_v11, %s21883_s17  ;;  %v20058_v53 = vunpack.i.h.bf16 %v29799_v39  ;;  %v24456_v48 = vpop.permute.xlu1 %20745 }
 0x2d4   : > { %17132 = vmatmul.mubr.msk.f32.gmra.mrb[28].mxu0 %vm751_vm7, %v24298_v43  ;;  %15909 = vmatmul.mubr.msk.f32.gmra.mrb[10].mxu1 %vm751_vm7, %v15901_v26  ;;  %v15902_v43 = vld [vmem:[%s29197_s5 + $0x3d8] sm:$0xff] }
 0x2d5   : > { %2837 = vmatprep.mubr.f32.mxu0 %v29621_v57  ;;  %6742 = vmatprep.mubr.f32.mxu1 %v29621_v57  ;;  %v3031_v28 = vsel %vm3026_vm10, %v20058_v53, %v29365_v24  ;;  %v29805_v26 = vld [vmem:[#allocation14_spill] sm:$0xff] }
 0x2d6   : > { %v18008_v19 = vpack.c.bf16 %v3031_v28, %v3028_v6  ;;  %v29362_v32 = vunpack.i.h.bf16 %v29805_v26  ;;  %v20557_v31 = vunpack.i.l.bf16 %v29805_v26  ;;  %v20568_v28 = vunpack.i.h.bf16 %v23765_v63  ;;  %v24533_v6 = vld [vmem:[%s29197_s5 + $0x168] sm:$0xff] }
 0x2d7   : > { %21050 = vrot.lane.b32.xlu0 %v24260_v59, %s21883_s17  ;;  %21045 = vrot.lane.b32.xlu1 %v22150_v36, %s21883_s17  ;;  %v24507_v33 = vpop.permute.xlu1 %20755 }
 0x2d8   : > { %15634 = vmatmul.mubr.msk.f32.vlgmr.msra.gmra.mrb[12].mxu0 %vm751_vm7, %v24441_v62  ;;  %15910 = vmatmul.mubr.msk.f32.gmra.mrb[12].mxu1 %vm751_vm7, %v15902_v43  ;;  %v15904_v43 = vld [vmem:[%s29197_s5 + $0x3e8] sm:$0xff]  ;;  %v7222_v14 = vsel %vm7212_vm9, %v20568_v28, %v20562_v42 }
 0x2d9   : > { %18001 = vmatpush3.bf16.msra.mxu0 %v17998_v21  ;;  %2843 = vmatprep.mubr.f32.mxu0 %v29621_v57  ;;  %v20552_v21 = vunpack.i.l.bf16 %v29804_v4  ;;  %v29367_v4 = vunpack.i.h.bf16 %v23805_v2  ;;  %v29809_v28 = vld [vmem:[#allocation60_spill] sm:$0xff] }
 0x2da   : > { %18004 = vmatprep.subr.msk.bf16.mxu0 %vm22552_vm6, %v18002_v22  ;;  %6748 = vmatprep.mubr.f32.mxu1 %v29621_v57 }
 0x2db   : > { %21060 = vrot.lane.b32.xlu0 %v23846_v30, %s21870_s14  ;;  %21055 = vrot.lane.b32.xlu1 %v23858_v61, %s21883_s17  ;;  %v29361_v61 = vunpack.i.h.bf16 %v23713_v9  ;;  %v7213_v60 = vsel %vm7212_vm9, %v20552_v21, %v20542_v46  ;;  %v24547_v21 = vpop.permute.xlu0 %20770  ;;  %s21887_s14 = smov 13  }
 0x2dc   : > { %15635 = vmatmul.mubr.msk.f32.gmra.mrb[14].mxu0 %vm751_vm7, %v24466_v50  ;;  %15911 = vmatmul.mubr.msk.f32.gmra.mrb[14].mxu1 %vm751_vm7, %v15903_v37  ;;  %v20567_v37 = vunpack.i.l.bf16 %v23765_v63  ;;  %v29369_v63 = vunpack.i.l.bf16 %v23805_v2  ;;  %29807 = vst [vmem:[#allocation17_spill] sm:$0xff] %v24547_v21 }
 0x2dd   : > { %18007 = vmatpush3.bf16.msk.msra.mxu0 %vm22552_vm6, %v18002_v22  ;;  %2849 = vmatprep.mubr.f32.mxu0 %v29621_v57  ;;  %v7216_v22 = vsel %vm7212_vm9, %v20553_v49, %v29806_v44  ;;  %v7223_v46 = vsel %vm7212_vm9, %v20562_v42, %v29361_v61  ;;  %v15920_v49 = vld [vmem:[%s29197_s5 + $0x3f0] sm:$0xff]  ;;  %v29370_v44 = vunpack.i.l.bf16 %v23763_v58  ;;  %v24553_v61 = vpop.permute.xlu1 %20765  ;;  %v15921_v42 = vld [vmem:[%s29197_s5 + $0x3f8] sm:$0xff] }
 0x2de   : > { %18009 = vmatprep.subr.bf16.mxu0 %v18008_v19  ;;  %6754 = vmatprep.mubr.f32.mxu1 %v29621_v57  ;;  %v7220_v19 = vsel %vm7212_vm9, %v20557_v31, %v29362_v32  ;;  %29808 = vst [vmem:[#allocation18_spill] sm:$0xff] %v24553_v61  ;;  %v18290_v32 = vpack.c.bf16 %v7216_v22, %v7213_v60 }
 0x2df   : > { %21070 = vrot.lane.b32.xlu0 %v23846_v30, %s21871_s11  ;;  %21065 = vrot.lane.b32.xlu1 %v29730_v55, %s21871_s11  ;;  %v7219_v40 = vsel %vm7212_vm9, %v20567_v37, %v20557_v31  ;;  %v18292_v24 = vpack.c.bf16 %v7223_v46, %v7220_v19  ;;  %v7516_v31 = vsel %vm7511_vm11, %v29369_v63, %v29367_v4  ;;  %v29810_v37 = vld [vmem:[#allocation61_spill] sm:$0xff]  ;;  %v24593_v19 = vpop.permute.xlu0 %20780  ;;  %s21885_s11 = smov 15  }
 0x2e0   : > { %15636 = vmatmul.mubr.msk.f32.gmra.mrb[16].mxu0 %vm751_vm7, %v24501_v20  ;;  %15912 = vmatmul.mubr.msk.f32.gmra.mrb[16].mxu1 %vm751_vm7, %v15904_v43  ;;  %v29368_v43 = vunpack.i.h.bf16 %v23763_v58  ;;  %v18295_v60 = vpack.c.bf16 %v7222_v14, %v7219_v40  ;;  %v20178_v46 = vunpack.i.h.bf16 %v29810_v37  ;;  %29811 = vst [vmem:[#allocation97_spill] sm:$0xff] %v24593_v19  ;;  %v24600_v40 = vld [vmem:[%s29197_s5 + $0x178] sm:$0xff] }
 0x2e1   : > { %2855 = vmatprep.mubr.f32.mxu0 %v29621_v57  ;;  %7023 = vmatprep.mubr.f32.mxu1 %v29621_v57  ;;  %v24603_v4 = vpop.permute.xlu1 %20775 }
 0x2e2   : > { %v7513_v22 = vsel %vm7511_vm11, %v29370_v44, %v29368_v43  ;;  %v29813_v43 = vld [vmem:[#allocation20_spill] sm:$0xff] }
 0x2e3   : > { %21080 = vrot.lane.b32.xlu0 %v22129_v29, %s21884_s12  ;;  %21075 = vrot.lane.b32.xlu1 %v22088_v1, %s21884_s12  ;;  %v18308_v14 = vpack.c.bf16 %v7516_v31, %v7513_v22  ;;  %v29812_v31 = vld [vmem:[#allocation19_spill] sm:$0xff]  ;;  %v19828_v63 = vunpack.i.h.bf16 %v29813_v43  ;;  %v20063_v22 = vunpack.i.h.bf16 %v29798_v13  ;;  %v24645_v26 = vpop.permute.xlu0 %20790 }
 0x2e4   : > { %15637 = vmatmul.mubr.msk.f32.gmra.mrb[18].mxu0 %vm751_vm7, %v24533_v6  ;;  %15928 = vmatmul.mubr.msk.f32.vlgmr.msra.gmra.mrb[6].mxu1 %vm751_vm7, %v15920_v49  ;;  %v19937_v49 = vunpack.i.l.bf16 %v29803_v18 }
 0x2e5   : > { %2861 = vmatprep.mubr.f32.mxu0 %v29621_v57  ;;  %18291 = vmatpush1.bf16.msra.mxu1 %v18290_v32  ;;  %v20057_v32 = vunpack.i.l.bf16 %v29799_v39  ;;  %v19827_v39 = vunpack.i.l.bf16 %v29813_v43  ;;  %v19943_v43 = vunpack.i.h.bf16 %v29802_v23 }
 0x2e6   : > { %7029 = vmatprep.mubr.f32.mxu1 %v29621_v57  ;;  %18294 = vmatprep.subr.msk.bf16.mxu1 %vm22552_vm6, %v18292_v24  ;;  %v29372_v24 = vunpack.i.l.bf16 %v29809_v28 }
 0x2e7   : > { %21090 = vrot.lane.b32.xlu0 %v29730_v55, %s21872_s21  ;;  %21085 = vrot.lane.b32.xlu1 %v22101_v11, %s21884_s12  ;;  %v3030_v44 = vsel %vm3026_vm10, %v20057_v32, %v20058_v53  ;;  %v29814_v53 = vunpack.i.h.bf16 %v29803_v18 }
 0x2e8   : > { %15638 = vmatmul.mubr.msk.f32.gmra.mrb[20].mxu0 %vm751_vm7, %v24566_v56  ;;  %15929 = vmatmul.mubr.msk.f32.gmra.mrb[8].mxu1 %vm751_vm7, %v15921_v42  ;;  %v15922_v42 = vld [vmem:[%s29197_s5 + $0x400] sm:$0xff] }
 0x2e9   : > { %2867 = vmatprep.mubr.f32.mxu0 %v29621_v57  ;;  %18297 = vmatpush1.bf16.msk.msra.mxu1 %vm22552_vm6, %v18295_v60  ;;  %v20177_v60 = vunpack.i.l.bf16 %v29810_v37  ;;  %v3027_v32 = vsel %vm3026_vm10, %v19937_v49, %v29814_v53  ;;  %v21687_v37 = vld [vmem:[#allocation2 + $0x50] sm:$0xff] }
 0x2ea   : > { %7035 = vmatprep.mubr.f32.mxu1 %v29621_v57  ;;  %18309 = vmatprep.subr.bf16.mxu1 %v18308_v14  ;;  %v3034_v14 = vsel %vm3026_vm10, %v20178_v46, %v29372_v24  ;;  %v24636_v9 = vpack.i.bf16 %v23854_v10, %v21687_v37  ;;  %v15923_v24 = vld [vmem:[%s29197_s5 + $0x408] sm:$0xff]  ;;  %v18010_v18 = vpack.c.bf16 %v3030_v44, %v3027_v32  ;;  %v24650_v10 = vpop.permute.xlu1 %20785  ;;  %v29817_v37 = vunpack.i.l.bf16 %v29798_v13 }
 0x2eb   : > { %21100 = vrot.lane.b32.xlu0 %v24260_v59, %s21884_s12  ;;  %21095 = vrot.lane.b32.xlu1 %v22150_v36, %s21884_s12  ;;  %v3033_v49 = vsel %vm3026_vm10, %v20177_v60, %v20178_v46  ;;  %29816 = vst [vmem:[#allocation45_spill] sm:$0xff] %v24650_v10  ;;  %v3036_v44 = vsel %vm3026_vm10, %v19827_v39, %v19828_v63  ;;  %v29818_v13 = vunpack.i.l.bf16 %v29802_v23  ;;  %v20582_v60 = vunpack.i.l.bf16 %v23803_v12 }
 0x2ec   : > { %15639 = vmatmul.mubr.msk.f32.gmra.mrb[22].mxu0 %vm751_vm7, %v24600_v40  ;;  %15930 = vmatmul.mubr.msk.f32.gmra.mrb[10].mxu1 %vm751_vm7, %v15922_v42  ;;  %v29815_v42 = vunpack.i.l.bf16 %v29812_v31  ;;  %v18015_v46 = vpack.c.bf16 %v3036_v44, %v3033_v49  ;;  %v29374_v23 = vunpack.i.h.bf16 %v23827_v15  ;;  %v20592_v39 = vunpack.i.l.bf16 %v23827_v15 }
 0x2ed   : > { %17142 = vmatprep.mubr.msk.f32.mxu0 %vm751_vm7, %v24441_v62  ;;  %7041 = vmatprep.mubr.f32.mxu1 %v29621_v57  ;;  %v20587_v32 = vunpack.i.l.bf16 %v23829_v35  ;;  %v29824_v44 = vunpack.i.l.bf16 %v23763_v58  ;;  %v20622_v58 = vunpack.i.l.bf16 %v23932_v27 }
 0x2ee   : > { %v3037_v62 = vsel %vm3026_vm10, %v19828_v63, %v29815_v42  ;;  %v3032_v42 = vsel %vm3026_vm10, %v29817_v37, %v20063_v22  ;;  %v3029_v63 = vsel %vm3026_vm10, %v29818_v13, %v19943_v43  ;;  %v20583_v22 = vunpack.i.h.bf16 %v23803_v12  ;;  %v15925_v12 = vld [vmem:[%s29197_s5 + $0x418] sm:$0xff] }
 0x2ef   : > { %21110 = vrot.lane.b32.xlu0 %v23846_v30, %s21872_s21  ;;  %21105 = vrot.lane.b32.xlu1 %v24636_v9, %s21884_s12  ;;  %v18012_v53 = vpack.c.bf16 %v3037_v62, %v3034_v14  ;;  %v24681_v14 = vpop.permute.xlu0 %20800  ;;  %v24690_v62 = vpop.permute.xlu1 %20795  ;;  %v19833_v43 = vunpack.i.h.bf16 %v29812_v31  ;;  %v29823_v37 = vunpack.i.l.bf16 %v29809_v28  ;;  %s21891_s21 = smov 119  }
 0x2f0   : > { %17143 = vmatmul.mubr.msk.f32.vlgmr.msra.gmra.mrb[24].mxu0 %vm751_vm7, %v24466_v50  ;;  %15931 = vmatmul.mubr.msk.f32.gmra.mrb[12].mxu1 %vm751_vm7, %v15923_v24  ;;  %v15924_v50 = vld [vmem:[%s29197_s5 + $0x410] sm:$0xff]  ;;  %v20183_v24 = vunpack.i.h.bf16 %v29809_v28  ;;  %29819 = vst [vmem:[#allocation46_spill] sm:$0xff] %v24681_v14  ;;  %29820 = vst [vmem:[#allocation33_spill] sm:$0xff] %v24690_v62  ;;  %v7522_v28 = vsel %vm7511_vm11, %v20592_v39, %v29374_v23 }
 0x2f1   : > { %18011 = vmatpush1.bf16.msra.mxu0 %v18010_v18  ;;  %17145 = vmatprep.mubr.msk.f32.mxu0 %vm751_vm7, %v24501_v20  ;;  %v18018_v20 = vpack.c.bf16 %v3032_v42, %v3029_v63  ;;  %v29821_v18 = vld [vmem:[#allocation47_spill] sm:$0xff] }
 0x2f2   : > { %18014 = vmatprep.subr.msk.bf16.mxu0 %vm22552_vm6, %v18012_v53  ;;  %7047 = vmatprep.mubr.f32.mxu1 %v29621_v57  ;;  %v3035_v42 = vsel %vm3026_vm10, %v29823_v37, %v20183_v24  ;;  %v20598_v24 = vunpack.i.h.bf16 %v23865_v34 }
 0x2f3   : > { %21120 = vrot.lane.b32.xlu0 %v23846_v30, %s21873_s8  ;;  %21115 = vrot.lane.b32.xlu1 %v29730_v55, %s21873_s8  ;;  %v24741_v53 = vpop.permute.xlu0 %20810  ;;  %v24746_v15 = vpop.permute.xlu1 %20805 }
 0x2f4   : > { %17146 = vmatmul.mubr.msk.f32.gmra.mrb[26].mxu0 %vm751_vm7, %v24533_v6  ;;  %15932 = vmatmul.mubr.msk.f32.gmra.mrb[14].mxu1 %vm751_vm7, %v15924_v50  ;;  %v29375_v6 = vunpack.i.h.bf16 %v23829_v35  ;;  %v7512_v50 = vsel %vm7511_vm11, %v20582_v60, %v29824_v44  ;;  %v15941_v60 = vld [vmem:[%s29197_s5 + $0x420] sm:$0xff]  ;;  %29828 = vst [vmem:[#allocation34_spill] sm:$0xff] %v24741_v53  ;;  %v7521_v49 = vsel %vm7511_vm11, %v20598_v24, %v20592_v39  ;;  %v15942_v39 = vld [vmem:[%s29197_s5 + $0x428] sm:$0xff] }
 0x2f5   : > { %18017 = vmatpush1.bf16.msk.msra.mxu0 %vm22552_vm6, %v18015_v46  ;;  %17148 = vmatprep.mubr.msk.f32.mxu0 %vm751_vm7, %v24566_v56  ;;  %v29822_v56 = vld [vmem:[#allocation48_spill] sm:$0xff]  ;;  %v29825_v46 = vunpack.i.l.bf16 %v23805_v2  ;;  %v29827_v44 = vld [vmem:[#allocation35_spill] sm:$0xff] }
 0x2f6   : > { %18019 = vmatprep.subr.bf16.mxu0 %v18018_v20  ;;  %7053 = vmatprep.mubr.f32.mxu1 %v29621_v57  ;;  %v7519_v63 = vsel %vm7511_vm11, %v20587_v32, %v29375_v6  ;;  %v29834_v24 = vunpack.i.l.bf16 %v29827_v44  ;;  %v24875_v35 = vld [vmem:[%s29197_s5 + $0x1a8] sm:$0xff] }
 0x2f7   : > { %21130 = vrot.lane.b32.xlu0 %v22129_v29, %s21885_s11  ;;  %21125 = vrot.lane.b32.xlu1 %v22088_v1, %s21885_s11  ;;  %v7515_v13 = vsel %vm7511_vm11, %v20583_v22, %v29825_v46  ;;  %v20597_v22 = vunpack.i.l.bf16 %v23865_v34  ;;  %v29829_v34 = vld [vmem:[#allocation36_spill] sm:$0xff]  ;;  %v29378_v46 = vunpack.i.l.bf16 %v23863_v47  ;;  %v18312_v6 = vpack.c.bf16 %v7522_v28, %v7519_v63 }
 0x2f8   : > { %17149 = vmatmul.mubr.msk.f32.gmra.mrb[28].mxu0 %vm751_vm7, %v24600_v40  ;;  %15933 = vmatmul.mubr.msk.f32.gmra.mrb[16].mxu1 %vm751_vm7, %v15925_v12  ;;  %v24721_v40 = vld [vmem:[%s29197_s5 + $0x180] sm:$0xff]  ;;  %v29826_v12 = vunpack.i.l.bf16 %v29812_v31  ;;  %v18310_v31 = vpack.c.bf16 %v7515_v13, %v7512_v50  ;;  %v29830_v50 = vunpack.i.l.bf16 %v29821_v18  ;;  %v29833_v28 = vunpack.i.l.bf16 %v23905_v54 }
 0x2f9   : > { %3136 = vmatprep.mubr.f32.mxu0 %v29621_v57  ;;  %7322 = vmatprep.mubr.f32.mxu1 %v29621_v57  ;;  %v7518_v23 = vsel %vm7511_vm11, %v20597_v22, %v20587_v32  ;;  %v29832_v32 = vunpack.i.h.bf16 %v23905_v54 }
 0x2fa   : > { %v3038_v37 = vsel %vm3026_vm10, %v29826_v12, %v19833_v43  ;;  %v29377_v12 = vunpack.i.h.bf16 %v23863_v47  ;;  %vm8109_vm10 = vcmask 474112  }
 0x2fb   : > { %21140 = vrot.lane.b32.xlu0 %v29730_v55, %s21874_s10  ;;  %21135 = vrot.lane.b32.xlu1 %v22101_v11, %s21885_s11  ;;  %v18022_v43 = vpack.c.bf16 %v3038_v37, %v3035_v42  ;;  %v24762_v42 = vld [vmem:[%s29197_s5 + $0x188] sm:$0xff]  ;;  %v7815_v63 = vsel %vm7810_vm5, %v29833_v28, %v29832_v32  ;;  %v24788_v37 = vpop.permute.xlu0 %20820  ;;  %v15944_v28 = vld [vmem:[%s29197_s5 + $0x438] sm:$0xff] }
 0x2fc   : > { %15655 = vmatmul.mubr.msk.f32.vlgmr.msra.gmra.mrb[12].mxu0 %vm751_vm7, %v24721_v40  ;;  %15949 = vmatmul.mubr.msk.f32.vlgmr.msra.gmra.mrb[6].mxu1 %vm751_vm7, %v15941_v60  ;;  %v18315_v60 = vpack.c.bf16 %v7521_v49, %v7518_v23  ;;  %29836 = vst [vmem:[#allocation98_spill] sm:$0xff] %v24788_v37  ;;  %v24809_v49 = vld [vmem:[%s29197_s5 + $0x190] sm:$0xff]  ;;  %v29847_v37 = vunpack.i.h.bf16 %v29822_v56 }
 0x2fd   : > { %18021 = vmatpush3.bf16.msra.mxu0 %v18018_v20  ;;  %18311 = vmatpush1.bf16.msra.mxu1 %v18310_v31  ;;  %v29831_v20 = vunpack.i.h.bf16 %v29822_v56 }
 0x2fe   : > { %18024 = vmatprep.subr.msk.bf16.mxu0 %vm22552_vm6, %v18022_v43  ;;  %18314 = vmatprep.subr.msk.bf16.mxu1 %vm22552_vm6, %v18312_v6  ;;  %v29835_v6 = vunpack.i.h.bf16 %v29829_v34 }
 0x2ff   : > { %v3330_v13 = vsel %vm3325_vm12, %v29831_v20, %v29830_v50  ;;  %3142 = vmatprep.mubr.f32.mxu0 %v29621_v57  ;;  %7328 = vmatprep.mubr.f32.mxu1 %v29621_v57  ;;  %v7812_v50 = vsel %vm7810_vm5, %v29378_v46, %v29377_v12  ;;  %v24799_v20 = vpop.permute.xlu1 %20815  ;;  %v20613_v12 = vunpack.i.h.bf16 %v23895_v41  ;;  %v20612_v46 = vunpack.i.l.bf16 %v23895_v41  ;;  %v15946_v41 = vld [vmem:[%s29197_s5 + $0x448] sm:$0xff] }
 0x300   : > { %21150 = vrot.lane.b32.xlu0 %v24260_v59, %s21885_s11  ;;  %v3327_v22 = vsel %vm3325_vm12, %v29835_v6, %v29834_v24  ;;  %21145 = vrot.lane.b32.xlu1 %v22150_v36, %s21885_s11  ;;  %29837 = vst [vmem:[#allocation60_spill] sm:$0xff] %v24799_v20  ;;  %v18328_v23 = vpack.c.bf16 %v7815_v63, %v7812_v50  ;;  %v24848_v63 = vld [vmem:[%s29197_s5 + $0x1a0] sm:$0xff]  ;;  %v29842_v50 = vld [vmem:[#allocation62_spill] sm:$0xff]  ;;  %v29852_v20 = vunpack.i.h.bf16 %v23932_v27  ;;  %v19953_v27 = vunpack.i.h.bf16 %v29827_v44 }
 0x301   : > { %15656 = vmatmul.mubr.msk.f32.gmra.mrb[14].mxu0 %vm751_vm7, %v24762_v42  ;;  %v18028_v31 = vpack.c.bf16 %v3330_v13, %v3327_v22  ;;  %15950 = vmatmul.mubr.msk.f32.gmra.mrb[8].mxu1 %vm751_vm7, %v15942_v39  ;;  %v15943_v13 = vld [vmem:[%s29197_s5 + $0x430] sm:$0xff]  ;;  %v24829_v39 = vld [vmem:[%s29197_s5 + $0x198] sm:$0xff]  ;;  %v15945_v24 = vld [vmem:[%s29197_s5 + $0x440] sm:$0xff]  ;;  %v19947_v22 = vunpack.i.l.bf16 %v29829_v34  ;;  %v29848_v5 = vunpack.i.l.bf16 %v29842_v50 }
 0x302   : > { %18027 = vmatpush3.bf16.msk.msra.mxu0 %vm22552_vm6, %v18022_v43  ;;  %18317 = vmatpush1.bf16.msk.msra.mxu1 %vm22552_vm6, %v18315_v60  ;;  %v24822_v43 = vpop.permute.xlu0 %20830  ;;  %v20067_v60 = vunpack.i.l.bf16 %v29822_v56  ;;  %v29850_v56 = vunpack.i.l.bf16 %v23905_v54 }
 0x303   : > { %18029 = vmatprep.subr.bf16.mxu0 %v18028_v31  ;;  %18329 = vmatprep.subr.bf16.mxu1 %v18328_v23  ;;  %29838 = vst [vmem:[#allocation61_spill] sm:$0xff] %v24822_v43  ;;  %v24831_v32 = vpop.permute.xlu1 %20825  ;;  %v20073_v43 = vunpack.i.h.bf16 %v29821_v18 }
 0x304   : > { %3148 = vmatprep.mubr.f32.mxu0 %v29621_v57  ;;  %7334 = vmatprep.mubr.f32.mxu1 %v29621_v57  ;;  %29839 = vst [vmem:[#allocation19_spill] sm:$0xff] %v24831_v32  ;;  %v29846_v32 = vunpack.i.h.bf16 %v29829_v34  ;;  %v3329_v53 = vsel %vm3325_vm12, %v20067_v60, %v29847_v37  ;;  %v7814_v37 = vsel %vm7810_vm5, %v20613_v12, %v29850_v56 }
 0x305   : > { %21160 = vrot.lane.b32.xlu0 %v23846_v30, %s21874_s10  ;;  %21155 = vrot.lane.b32.xlu1 %v24636_v9, %s21885_s11  ;;  %s29962_s10 = smov 122  }
 0x306   : > { %15657 = vmatmul.mubr.msk.f32.gmra.mrb[16].mxu0 %vm751_vm7, %v24809_v49  ;;  %15951 = vmatmul.mubr.msk.f32.gmra.mrb[10].mxu1 %vm751_vm7, %v15943_v13  ;;  %v24854_v6 = vpop.permute.xlu0 %20840  ;;  %v29843_v13 = vld [vmem:[#allocation63_spill] sm:$0xff]  ;;  %v3326_v23 = vsel %vm3325_vm12, %v19947_v22, %v29846_v32  ;;  %v29849_v32 = vunpack.i.l.bf16 %v23863_v47 }
 0x307   : > { %3154 = vmatprep.mubr.f32.mxu0 %v29621_v57  ;;  %7340 = vmatprep.mubr.f32.mxu1 %v29621_v57  ;;  %29840 = vst [vmem:[#allocation20_spill] sm:$0xff] %v24854_v6  ;;  %v24860_v31 = vpop.permute.xlu1 %20835  ;;  %v29845_v6 = vld [vmem:[#allocation22_spill] sm:$0xff]  ;;  %v20187_v34 = vunpack.i.l.bf16 %v29843_v13 }
 0x308   : > { %29841 = vst [vmem:[#allocation47_spill] sm:$0xff] %v24860_v31  ;;  %v19838_v31 = vunpack.i.h.bf16 %v29845_v6  ;;  %v19837_v2 = vunpack.i.l.bf16 %v29845_v6  ;;  %v7811_v22 = vsel %vm7810_vm5, %v20612_v46, %v29849_v32  ;;  %v20628_v46 = vunpack.i.h.bf16 %v23977_v0 }
 0x309   : > { %21170 = vrot.lane.b32.xlu0 %v23846_v30, %s21875_s13  ;;  %21165 = vrot.lane.b32.xlu1 %v29730_v55, %s21875_s13  ;;  %s21886_s13 = smov 14   ;;  %v20627_v32 = vunpack.i.l.bf16 %v23977_v0  ;;  %v18030_v0 = vpack.c.bf16 %v3329_v53, %v3326_v23 }
 0x30a   : > { %15658 = vmatmul.mubr.msk.f32.gmra.mrb[18].mxu0 %vm751_vm7, %v24829_v39  ;;  %15952 = vmatmul.mubr.msk.f32.gmra.mrb[12].mxu1 %vm751_vm7, %v15944_v28  ;;  %v20188_v28 = vunpack.i.h.bf16 %v29843_v13  ;;  %v24911_v60 = vpop.permute.xlu0 %20850  ;;  %v29853_v13 = vunpack.i.h.bf16 %v23938_v17  ;;  %v18330_v17 = vpack.c.bf16 %v7814_v37, %v7811_v22  ;;  %v7820_v23 = vsel %vm7810_vm5, %v20628_v46, %v20622_v58 }
 0x30b   : > { %3160 = vmatprep.mubr.f32.mxu0 %v29621_v57  ;;  %7346 = vmatprep.mubr.f32.mxu1 %v29621_v57  ;;  %29851 = vst [vmem:[#allocation48_spill] sm:$0xff] %v24911_v60  ;;  %v24924_v12 = vpop.permute.xlu1 %20845  ;;  %v29856_v60 = vld [vmem:[#allocation3_spill] sm:$0xff] }
 0x30c   : > { %v3333_v6 = vsel %vm3325_vm12, %v20188_v28, %v29848_v5  ;;  %v7821_v5 = vsel %vm7810_vm5, %v20622_v58, %v29852_v20  ;;  %v7818_v47 = vsel %vm7810_vm5, %v20617_v7, %v29853_v13  ;;  %29854 = vst [vmem:[#allocation35_spill] sm:$0xff] %v24924_v12  ;;  %v29398_v56 = vunpack.i.h.bf16 %v29856_v60  ;;  %v15963_v58 = vld [vmem:[%s29197_s5 + $0x458] sm:$0xff] }
 0x30d   : > { %21180 = vrot.lane.b32.xlu0 %v22129_v29, %s21886_s13  ;;  %21175 = vrot.lane.b32.xlu1 %v22088_v1, %s21886_s13  ;;  %v20632_v13 = vunpack.i.l.bf16 %v29856_v60  ;;  %v18332_v53 = vpack.c.bf16 %v7821_v5, %v7818_v47  ;;  %v7817_v12 = vsel %vm7810_vm5, %v20627_v32, %v20617_v7  ;;  %v29859_v47 = vunpack.i.h.bf16 %v24013_v8 }
 0x30e   : > { %15659 = vmatmul.mubr.msk.f32.gmra.mrb[20].mxu0 %vm751_vm7, %v24848_v63  ;;  %15953 = vmatmul.mubr.msk.f32.gmra.mrb[14].mxu1 %vm751_vm7, %v15945_v24  ;;  %v29844_v24 = vld [vmem:[#allocation21_spill] sm:$0xff] }
 0x30f   : > { %3166 = vmatprep.mubr.f32.mxu0 %v29621_v57  ;;  %7352 = vmatprep.mubr.f32.mxu1 %v29621_v57  ;;  %v8111_v22 = vsel %vm8109_vm10, %v20632_v13, %v29398_v56  ;;  %v19843_v37 = vunpack.i.h.bf16 %v29844_v24  ;;  %v25110_v56 = vld [vmem:[%s29197_s5 + $0x1c8] sm:$0xff] }
 0x311   : > { %21190 = vrot.lane.b32.xlu0 %v29730_v55, %s21876_s16  ;;  %21185 = vrot.lane.b32.xlu1 %v22101_v11, %s21886_s13 }
 0x312   : > { %15660 = vmatmul.mubr.msk.f32.gmra.mrb[22].mxu0 %vm751_vm7, %v24875_v35  ;;  %15954 = vmatmul.mubr.msk.f32.gmra.mrb[16].mxu1 %vm751_vm7, %v15946_v41  ;;  %v29855_v41 = vunpack.i.l.bf16 %v29844_v24 }
 0x313   : > { %17159 = vmatprep.mubr.msk.f32.mxu0 %vm751_vm7, %v24721_v40  ;;  %7621 = vmatprep.mubr.f32.mxu1 %v29621_v57  ;;  %v15962_v40 = vld [vmem:[%s29197_s5 + $0x450] sm:$0xff] }
 0x314   : > { %v3336_v20 = vsel %vm3325_vm12, %v19838_v31, %v29855_v41  ;;  %v3332_v41 = vsel %vm3325_vm12, %v20187_v34, %v20188_v28  ;;  %v24954_v34 = vpop.permute.xlu0 %20860 }
 0x315   : > { %21200 = vrot.lane.b32.xlu0 %v24260_v59, %s21886_s13  ;;  %21195 = vrot.lane.b32.xlu1 %v22150_v36, %s21886_s13  ;;  %v18032_v54 = vpack.c.bf16 %v3336_v20, %v3333_v6  ;;  %v3335_v6 = vsel %vm3325_vm12, %v19837_v2, %v19838_v31  ;;  %29858 = vst [vmem:[#allocation36_spill] sm:$0xff] %v24954_v34  ;;  %v24968_v2 = vpop.permute.xlu1 %20855  ;;  %v29867_v20 = vunpack.i.l.bf16 %v29842_v50 }
 0x316   : > { %17160 = vmatmul.mubr.msk.f32.vlgmr.msra.gmra.mrb[24].mxu0 %vm751_vm7, %v24762_v42  ;;  %15970 = vmatmul.mubr.msk.f32.vlgmr.msra.gmra.mrb[6].mxu1 %vm751_vm7, %v15962_v40  ;;  %v29857_v42 = vunpack.i.l.bf16 %v29821_v18  ;;  %v18035_v7 = vpack.c.bf16 %v3335_v6, %v3332_v41  ;;  %29861 = vst [vmem:[#allocation62_spill] sm:$0xff] %v24968_v2  ;;  %v29862_v18 = vunpack.i.l.bf16 %v29827_v44  ;;  %v20193_v44 = vunpack.i.h.bf16 %v29842_v50  ;;  %v25018_v41 = vld [vmem:[%s29197_s5 + $0x1b0] sm:$0xff] }
 0x317   : > { %18031 = vmatpush1.bf16.msra.mxu0 %v18030_v0  ;;  %18331 = vmatpush1.bf16.msra.mxu1 %v18330_v17  ;;  %v29938_v2 = vld [vmem:[#allocation109_spill] sm:$0xff] }
 0x318   : > { %18034 = vmatprep.subr.msk.bf16.mxu0 %vm22552_vm6, %v18032_v54  ;;  %v3331_v28 = vsel %vm3325_vm12, %v29857_v42, %v20073_v43  ;;  %18334 = vmatprep.subr.msk.bf16.mxu1 %vm22552_vm6, %v18332_v53  ;;  %v29860_v54 = vunpack.i.l.bf16 %v24013_v8  ;;  %v18335_v43 = vpack.c.bf16 %v7820_v23, %v7817_v12  ;;  %v24997_v5 = vpop.permute.xlu0 %20870  ;;  %v29866_v12 = vld [vmem:[#allocation50_spill] sm:$0xff]  ;;  %v3334_v0 = vsel %vm3325_vm12, %v29867_v20, %v20193_v44  ;;  %v29869_v23 = vld [vmem:[#allocation37_spill] sm:$0xff]  ;;  %v29874_v44 = vld [vmem:[#allocation56_spill] sm:$0xff] }
 0x319   : > { %17162 = vmatprep.mubr.msk.f32.mxu0 %vm751_vm7, %v24809_v49  ;;  %7627 = vmatprep.mubr.f32.mxu1 %v29621_v57  ;;  %v3328_v49 = vsel %vm3325_vm12, %v29862_v18, %v19953_v27  ;;  %29863 = vst [vmem:[#allocation63_spill] sm:$0xff] %v24997_v5  ;;  %v25002_v46 = vpop.permute.xlu1 %20865  ;;  %v29404_v40 = vunpack.i.h.bf16 %v29866_v12  ;;  %v29868_v53 = vunpack.i.l.bf16 %v29844_v24  ;;  %v29399_v42 = vunpack.i.l.bf16 %v29869_v23  ;;  %v25041_v24 = vld [vmem:[%s29197_s5 + $0x1b8] sm:$0xff]  ;;  %v29875_v20 = vld [vmem:[#allocation57_spill] sm:$0xff] }
 0x31a   : > { %v8114_v17 = vsel %vm8109_vm10, %v29860_v54, %v29859_v47  ;;  %21210 = vrot.lane.b32.xlu0 %v23846_v30, %s21876_s16  ;;  %21205 = vrot.lane.b32.xlu1 %v24636_v9, %s21886_s13  ;;  %v18038_v31 = vpack.c.bf16 %v3331_v28, %v3328_v49  ;;  %29864 = vst [vmem:[#allocation21_spill] sm:$0xff] %v25002_v46  ;;  %v29870_v28 = vld [vmem:[#allocation38_spill] sm:$0xff]  ;;  %v20707_v34 = vunpack.i.l.bf16 %v29938_v2 }
 0x31b   : > { %17163 = vmatmul.mubr.msk.f32.gmra.mrb[26].mxu0 %vm751_vm7, %v24829_v39  ;;  %15971 = vmatmul.mubr.msk.f32.gmra.mrb[8].mxu1 %vm751_vm7, %v15963_v58  ;;  %v18348_v27 = vpack.c.bf16 %v8114_v17, %v8111_v22  ;;  %v15964_v39 = vld [vmem:[%s29197_s5 + $0x460] sm:$0xff]  ;;  %v3337_v50 = vsel %vm3325_vm12, %v29868_v53, %v19843_v37  ;;  %v29403_v6 = vunpack.i.h.bf16 %v29870_v28  ;;  %v20652_v37 = vunpack.i.l.bf16 %v29874_v44  ;;  %v15967_v53 = vld [vmem:[%s29197_s5 + $0x478] sm:$0xff] }
 0x31c   : > { %18037 = vmatpush1.bf16.msk.msra.mxu0 %vm22552_vm6, %v18035_v7  ;;  %18337 = vmatpush1.bf16.msk.msra.mxu1 %vm22552_vm6, %v18335_v43  ;;  %v18042_v58 = vpack.c.bf16 %v3337_v50, %v3334_v0  ;;  %v25035_v47 = vpop.permute.xlu0 %20880  ;;  %v15966_v7 = vld [vmem:[%s29197_s5 + $0x470] sm:$0xff]  ;;  %v29873_v43 = vld [vmem:[#allocation102_spill] sm:$0xff]  ;;  %v29402_v0 = vunpack.i.h.bf16 %v29875_v20  ;;  %vm8408_vm12 = vcmask 465920  }
 0x31d   : > { %18039 = vmatprep.subr.bf16.mxu0 %v18038_v31  ;;  %18349 = vmatprep.subr.bf16.mxu1 %v18348_v27  ;;  %29871 = vst [vmem:[#allocation22_spill] sm:$0xff] %v25035_v47  ;;  %v25048_v17 = vpop.permute.xlu1 %20875  ;;  %v3626_v18 = vsel %vm3624_vm3, %v29403_v6, %v29399_v42  ;;  %v20642_v22 = vunpack.i.l.bf16 %v29873_v43  ;;  %v25076_v27 = vld [vmem:[%s29197_s5 + $0x1c0] sm:$0xff]  ;;  %v29937_v47 = vld [vmem:[#allocation108_spill] sm:$0xff] }
 0x31e   : > { %17165 = vmatprep.mubr.msk.f32.mxu0 %vm751_vm7, %v24848_v63  ;;  %7633 = vmatprep.mubr.f32.mxu1 %v29621_v57  ;;  %v29865_v63 = vld [vmem:[#allocation49_spill] sm:$0xff]  ;;  %v29881_v42 = vld [vmem:[#allocation15_spill] sm:$0xff] }
 0x31f   : > { %21220 = vrot.lane.b32.xlu0 %v23846_v30, %s21877_s18  ;;  %21215 = vrot.lane.b32.xlu1 %v29730_v55, %s21877_s18  ;;  %v29400_v32 = vunpack.i.l.bf16 %v29865_v63  ;;  %29872 = vst [vmem:[#allocation49_spill] sm:$0xff] %v25048_v17  ;;  %v25462_v17 = vld [vmem:[%s29197_s5 + $0x208] sm:$0xff]  ;;  %s19694_s18 = smul.u32 144, %s30445_s25 }
 0x320   : > { %17166 = vmatmul.mubr.msk.f32.gmra.mrb[28].mxu0 %vm751_vm7, %v24875_v35  ;;  %15972 = vmatmul.mubr.msk.f32.gmra.mrb[10].mxu1 %vm751_vm7, %v15964_v39  ;;  %v15965_v35 = vld [vmem:[%s29197_s5 + $0x468] sm:$0xff]  ;;  %v29401_v39 = vunpack.i.h.bf16 %v29874_v44  ;;  %v25086_v50 = vpop.permute.xlu0 %20890 }
 0x321   : > { %3435 = vmatprep.mubr.f32.mxu0 %v29621_v57  ;;  %7639 = vmatprep.mubr.f32.mxu1 %v29621_v57  ;;  %v3629_v54 = vsel %vm3624_vm3, %v29404_v40, %v29400_v32  ;;  %29876 = vst [vmem:[#allocation50_spill] sm:$0xff] %v25086_v50 }
 0x322   : > { %v18048_v49 = vpack.c.bf16 %v3629_v54, %v3626_v18  ;;  %v8110_v54 = vsel %vm8109_vm10, %v20642_v22, %v20632_v13  ;;  %v8120_v13 = vsel %vm8109_vm10, %v20652_v37, %v29401_v39  ;;  %v29880_v22 = vld [vmem:[#allocation105_spill] sm:$0xff] }
 0x323   : > { %21230 = vrot.lane.b32.xlu0 %v22129_v29, %s21887_s14  ;;  %21225 = vrot.lane.b32.xlu1 %v22088_v1, %s21887_s14  ;;  %v25141_v39 = vld [vmem:[%s29197_s5 + $0x1d0] sm:$0xff] }
 0x324   : > { %15676 = vmatmul.mubr.msk.f32.vlgmr.msra.gmra.mrb[12].mxu0 %vm751_vm7, %v25018_v41  ;;  %15973 = vmatmul.mubr.msk.f32.gmra.mrb[12].mxu1 %vm751_vm7, %v15965_v35  ;;  %v20647_v35 = vunpack.i.l.bf16 %v29875_v20  ;;  %v29893_v20 = vunpack.i.h.bf16 %v29866_v12 }
 0x325   : > { %18041 = vmatpush3.bf16.msra.mxu0 %v18038_v31  ;;  %3441 = vmatprep.mubr.f32.mxu0 %v29621_v57  ;;  %v20643_v31 = vunpack.i.h.bf16 %v29873_v43 }
 0x326   : > { %18044 = vmatprep.subr.msk.bf16.mxu0 %vm22552_vm6, %v18042_v58  ;;  %7645 = vmatprep.mubr.f32.mxu1 %v29621_v57 }
 0x327   : > { %21240 = vrot.lane.b32.xlu0 %v29730_v55, %s21878_s29  ;;  %21235 = vrot.lane.b32.xlu1 %v22101_v11, %s21887_s14 }
 0x328   : > { %15677 = vmatmul.mubr.msk.f32.gmra.mrb[14].mxu0 %vm751_vm7, %v25041_v24  ;;  %15974 = vmatmul.mubr.msk.f32.gmra.mrb[14].mxu1 %vm751_vm7, %v15966_v7  ;;  %v29878_v7 = vunpack.i.l.bf16 %v24013_v8 }
 0x329   : > { %18047 = vmatpush3.bf16.msk.msra.mxu0 %vm22552_vm6, %v18042_v58  ;;  %3447 = vmatprep.mubr.f32.mxu0 %v29621_v57  ;;  %v25091_v58 = vpop.permute.xlu1 %20885 }
 0x32a   : > { %18049 = vmatprep.subr.bf16.mxu0 %v18048_v49  ;;  %7651 = vmatprep.mubr.f32.mxu1 %v29621_v57  ;;  %29877 = vst [vmem:[#allocation37_spill] sm:$0xff] %v25091_v58  ;;  %v8113_v18 = vsel %vm8109_vm10, %v20643_v31, %v29878_v7  ;;  %v29879_v49 = vld [vmem:[#allocation16_spill] sm:$0xff]  ;;  %v8117_v31 = vsel %vm8109_vm10, %v20647_v35, %v29402_v0 }
 0x32b   : > { %21250 = vrot.lane.b32.xlu0 %v24260_v59, %s21887_s14  ;;  %21245 = vrot.lane.b32.xlu1 %v22150_v36, %s21887_s14  ;;  %v20658_v43 = vunpack.i.h.bf16 %v29879_v49  ;;  %v20657_v59 = vunpack.i.l.bf16 %v29879_v49  ;;  %v18350_v0 = vpack.c.bf16 %v8113_v18, %v8110_v54  ;;  %v25134_v49 = vpop.permute.xlu0 %20900  ;;  %v18352_v7 = vpack.c.bf16 %v8120_v13, %v8117_v31 }
 0x32c   : > { %15678 = vmatmul.mubr.msk.f32.gmra.mrb[16].mxu0 %vm751_vm7, %v25076_v27  ;;  %15975 = vmatmul.mubr.msk.f32.gmra.mrb[16].mxu1 %vm751_vm7, %v15967_v53  ;;  %v15983_v53 = vld [vmem:[%s29197_s5 + $0x480] sm:$0xff]  ;;  %29882 = vst [vmem:[#allocation38_spill] sm:$0xff] %v25134_v49  ;;  %v29885_v54 = vunpack.i.l.bf16 %v29880_v22  ;;  %v29887_v13 = vunpack.i.l.bf16 %v29881_v42 }
 0x32d   : > { %3453 = vmatprep.mubr.f32.mxu0 %v29621_v57  ;;  %7920 = vmatprep.mubr.f32.mxu1 %v29621_v57  ;;  %v8119_v6 = vsel %vm8109_vm10, %v20658_v43, %v20652_v37  ;;  %v8116_v40 = vsel %vm8109_vm10, %v20657_v59, %v20647_v35  ;;  %v25143_v32 = vpop.permute.xlu1 %20895  ;;  %v15984_v37 = vld [vmem:[%s29197_s5 + $0x488] sm:$0xff]  ;;  %v29884_v35 = vunpack.i.h.bf16 %v29880_v22  ;;  %v29886_v59 = vunpack.i.h.bf16 %v29881_v42 }
 0x32e   : > { %29883 = vst [vmem:[#allocation102_spill] sm:$0xff] %v25143_v32  ;;  %v18355_v43 = vpack.c.bf16 %v8119_v6, %v8116_v40  ;;  %v25175_v40 = vld [vmem:[%s29197_s5 + $0x1d8] sm:$0xff]  ;;  %v19957_v6 = vunpack.i.l.bf16 %v29870_v28 }
 0x32f   : > { %21260 = vrot.lane.b32.xlu0 %v23846_v30, %s21878_s29  ;;  %21255 = vrot.lane.b32.xlu1 %v24636_v9, %s21887_s14  ;;  %v8413_v18 = vsel %vm8408_vm12, %v29885_v54, %v29884_v35  ;;  %v8410_v31 = vsel %vm8408_vm12, %v29887_v13, %v29886_v59  ;;  %v29889_v35 = vld [vmem:[#allocation65_spill] sm:$0xff]  ;;  %v29891_v13 = vld [vmem:[#allocation24_spill] sm:$0xff]  ;;  %s29950_s29 = smov 123  }
 0x330   : > { %15679 = vmatmul.mubr.msk.f32.gmra.mrb[18].mxu0 %vm751_vm7, %v25110_v56  ;;  %15991 = vmatmul.mubr.msk.f32.vlgmr.msra.gmra.mrb[6].mxu1 %vm751_vm7, %v15983_v53  ;;  %v29888_v53 = vld [vmem:[#allocation64_spill] sm:$0xff]  ;;  %v20198_v54 = vunpack.i.h.bf16 %v29889_v35  ;;  %v18368_v44 = vpack.c.bf16 %v8413_v18, %v8410_v31  ;;  %v15985_v59 = vld [vmem:[%s29197_s5 + $0x490] sm:$0xff]  ;;  %v19848_v31 = vunpack.i.h.bf16 %v29891_v13  ;;  %v20197_v8 = vunpack.i.l.bf16 %v29889_v35 }
 0x331   : > { %3459 = vmatprep.mubr.f32.mxu0 %v29621_v57  ;;  %18351 = vmatpush1.bf16.msra.mxu1 %v18350_v0  ;;  %v20077_v0 = vunpack.i.l.bf16 %v29866_v12  ;;  %v25194_v60 = vpop.permute.xlu1 %20905  ;;  %v29895_v18 = vunpack.i.l.bf16 %v29888_v53  ;;  %v19847_v12 = vunpack.i.l.bf16 %v29891_v13  ;;  %v21688_v13 = vld [vmem:[#allocation2 + $0x88] sm:$0xf] }
 0x332   : > { %7926 = vmatprep.mubr.f32.mxu1 %v29621_v57  ;;  %18354 = vmatprep.subr.msk.bf16.mxu1 %vm22552_vm6, %v18352_v7  ;;  %v25186_v7 = vpop.permute.xlu0 %20910  ;;  %29894 = vst [vmem:[#allocation64_spill] sm:$0xff] %v25194_v60 }
 0x333   : > { %21270 = vrot.lane.b32.xlu0 %v23846_v30, %s21879_s27  ;;  %21265 = vrot.lane.b32.xlu1 %v29730_v55, %s21879_s27  ;;  %29892 = vst [vmem:[#allocation16_spill] sm:$0xff] %v25186_v7 }
 0x334   : > { %15680 = vmatmul.mubr.msk.f32.gmra.mrb[20].mxu0 %vm751_vm7, %v25141_v39  ;;  %15992 = vmatmul.mubr.msk.f32.gmra.mrb[8].mxu1 %vm751_vm7, %v15984_v37  ;;  %v29890_v37 = vld [vmem:[#allocation23_spill] sm:$0xff] }
 0x335   : > { %3465 = vmatprep.mubr.f32.mxu0 %v29621_v57  ;;  %18357 = vmatpush1.bf16.msk.msra.mxu1 %vm22552_vm6, %v18355_v43  ;;  %v3628_v43 = vsel %vm3624_vm3, %v20077_v0, %v29893_v20  ;;  %v29896_v20 = vunpack.i.h.bf16 %v29870_v28  ;;  %v15986_v0 = vld [vmem:[%s29197_s5 + $0x498] sm:$0xff]  ;;  %v29897_v35 = vunpack.i.l.bf16 %v29890_v37  ;;  %v21689_v28 = vld [vmem:[#allocation2 + $0x80] sm:$0xf] }
 0x336   : > { %7932 = vmatprep.mubr.f32.mxu1 %v29621_v57  ;;  %18369 = vmatprep.subr.bf16.mxu1 %v18368_v44  ;;  %v20083_v44 = vunpack.i.h.bf16 %v29865_v63  ;;  %v21299_v60 = vpack.i.bf16 %v21688_v13, %v21689_v28  ;;  %v25226_v32 = vpop.permute.xlu0 %20920  ;;  %v25233_v13 = vpop.permute.xlu1 %20915  ;;  %v29906_v28 = vld [vmem:[#allocation51_spill] sm:$0xff] }
 0x337   : > { %21280 = vrot.lane.b32.xlu0 %v22129_v29, %s21888_s28  ;;  %21275 = vrot.lane.b32.xlu1 %v22088_v1, %s21888_s28  ;;  %v3632_v29 = vsel %vm3624_vm3, %v20198_v54, %v29895_v18  ;;  %v3625_v1 = vsel %vm3624_vm3, %v19957_v6, %v29896_v20  ;;  %v3635_v18 = vsel %vm3624_vm3, %v19848_v31, %v29897_v35  ;;  %v29899_v35 = vunpack.i.l.bf16 %v29865_v63 }
 0x338   : > { %15681 = vmatmul.mubr.msk.f32.gmra.mrb[22].mxu0 %vm751_vm7, %v25175_v40  ;;  %15993 = vmatmul.mubr.msk.f32.gmra.mrb[10].mxu1 %vm751_vm7, %v15985_v59  ;;  %v19963_v59 = vunpack.i.h.bf16 %v29869_v23  ;;  %v3631_v6 = vsel %vm3624_vm3, %v20197_v8, %v20198_v54  ;;  %v18052_v20 = vpack.c.bf16 %v3635_v18, %v3632_v29  ;;  %29898 = vst [vmem:[#allocation65_spill] sm:$0xff] %v25226_v32  ;;  %29900 = vst [vmem:[#allocation23_spill] sm:$0xff] %v25233_v13  ;;  %v15988_v18 = vld [vmem:[%s29197_s5 + $0x4a8] sm:$0xff] }
 0x339   : > { %17176 = vmatprep.mubr.msk.f32.mxu0 %vm751_vm7, %v25018_v41  ;;  %7938 = vmatprep.mubr.f32.mxu1 %v29621_v57  ;;  %v18050_v41 = vpack.c.bf16 %v3628_v43, %v3625_v1  ;;  %v3630_v43 = vsel %vm3624_vm3, %v29899_v35, %v20083_v44  ;;  %v3634_v1 = vsel %vm3624_vm3, %v19847_v12, %v19848_v31  ;;  %v29901_v63 = vunpack.i.l.bf16 %v29869_v23  ;;  %v29902_v31 = vld [vmem:[#allocation104_spill] sm:$0xff] }
 0x33a   : > { %v18055_v8 = vpack.c.bf16 %v3634_v1, %v3631_v6  ;;  %v20203_v54 = vunpack.i.h.bf16 %v29888_v53  ;;  %v20673_v44 = vunpack.i.h.bf16 %v29902_v31  ;;  %v20672_v29 = vunpack.i.l.bf16 %v29902_v31  ;;  %v29916_v35 = vld [vmem:[#allocation40_spill] sm:$0xff]  ;;  %v21691_v6 = vld [vmem:[#allocation2 + $0x40] sm:$0xff] }
 0x33b   : > { %21290 = vrot.lane.b32.xlu0 %v29730_v55, %s21880_s9  ;;  %21285 = vrot.lane.b32.xlu1 %v22101_v11, %s21888_s28  ;;  %v15987_v11 = vld [vmem:[%s29197_s5 + $0x4a0] sm:$0xff] }
 0x33c   : > { %17177 = vmatmul.mubr.msk.f32.vlgmr.msra.gmra.mrb[24].mxu0 %vm751_vm7, %v25041_v24  ;;  %15994 = vmatmul.mubr.msk.f32.gmra.mrb[12].mxu1 %vm751_vm7, %v15986_v0  ;;  %v3627_v24 = vsel %vm3624_vm3, %v29901_v63, %v19963_v59  ;;  %v19853_v59 = vunpack.i.h.bf16 %v29890_v37  ;;  %v29911_v63 = vunpack.i.l.bf16 %v29880_v22 }
 0x33d   : > { %18051 = vmatpush1.bf16.msra.mxu0 %v18050_v41  ;;  %17179 = vmatprep.mubr.msk.f32.mxu0 %vm751_vm7, %v25076_v27  ;;  %v18058_v27 = vpack.c.bf16 %v3630_v43, %v3627_v24  ;;  %v25267_v41 = vpop.permute.xlu0 %20930  ;;  %v29909_v43 = vunpack.i.l.bf16 %v29888_v53 }
 0x33e   : > { %18054 = vmatprep.subr.msk.bf16.mxu0 %vm22552_vm6, %v18052_v20  ;;  %7944 = vmatprep.mubr.f32.mxu1 %v29621_v57  ;;  %29905 = vst [vmem:[#allocation24_spill] sm:$0xff] %v25267_v41  ;;  %v25273_v20 = vpop.permute.xlu1 %20925  ;;  %v8412_v24 = vsel %vm8408_vm12, %v20673_v44, %v29911_v63 }
 0x33f   : > { %21300 = vrot.lane.b32.xlu0 %v21299_v60, %s21888_s28  ;;  %21295 = vrot.lane.b32.xlu1 %v22150_v36, %s21888_s28  ;;  %v29903_v60 = vld [vmem:[#allocation43_spill] sm:$0xff]  ;;  %v29904_v36 = vld [vmem:[#allocation44_spill] sm:$0xff]  ;;  %29907 = vst [vmem:[#allocation104_spill] sm:$0xff] %v25273_v20  ;;  %v3633_v1 = vsel %vm3624_vm3, %v29909_v43, %v20203_v54 }
 0x340   : > { %17180 = vmatmul.mubr.msk.f32.gmra.mrb[26].mxu0 %vm751_vm7, %v25110_v56  ;;  %15995 = vmatmul.mubr.msk.f32.gmra.mrb[14].mxu1 %vm751_vm7, %v15987_v11  ;;  %v29412_v23 = vunpack.i.h.bf16 %v29903_v60  ;;  %v20682_v12 = vunpack.i.l.bf16 %v29903_v60  ;;  %v29413_v0 = vunpack.i.h.bf16 %v29904_v36  ;;  %v20677_v56 = vunpack.i.l.bf16 %v29904_v36  ;;  %v29912_v54 = vld [vmem:[#allocation32_spill] sm:$0xff] }
 0x341   : > { %18057 = vmatpush1.bf16.msk.msra.mxu0 %vm22552_vm6, %v18055_v8  ;;  %17182 = vmatprep.mubr.msk.f32.mxu0 %vm751_vm7, %v25141_v39  ;;  %v29908_v39 = vld [vmem:[#allocation52_spill] sm:$0xff]  ;;  %v29910_v11 = vunpack.i.l.bf16 %v29881_v42  ;;  %v20688_v31 = vunpack.i.h.bf16 %v29912_v54  ;;  %v20687_v44 = vunpack.i.l.bf16 %v29912_v54  ;;  %v21690_v54 = vld [vmem:[#allocation2 + $0x38] sm:$0xff] }
 0x342   : > { %18059 = vmatprep.subr.bf16.mxu0 %v18058_v27  ;;  %7950 = vmatprep.mubr.f32.mxu1 %v29621_v57  ;;  %v8419_v53 = vsel %vm8408_vm12, %v20682_v12, %v29412_v23  ;;  %v25323_v23 = vpop.permute.xlu0 %20940  ;;  %v25326_v36 = vpack.i.bf16 %v21691_v6, %v21690_v54  ;;  %v29921_v6 = vunpack.i.h.bf16 %v29908_v39  ;;  %v29926_v54 = vunpack.i.h.bf16 %v29916_v35 }
 0x343   : > { %21310 = vrot.lane.b32.xlu0 %v23846_v30, %s21880_s9  ;;  %21305 = vrot.lane.b32.xlu1 %v24636_v9, %s21888_s28  ;;  %v8409_v8 = vsel %vm8408_vm12, %v20672_v29, %v29910_v11  ;;  %v25294_v9 = vld [vmem:[%s29197_s5 + $0x1e0] sm:$0xff]  ;;  %v16004_v29 = vld [vmem:[%s29197_s5 + $0x4b0] sm:$0xff]  ;;  %29918 = vst [vmem:[#allocation51_spill] sm:$0xff] %v25323_v23  ;;  %v8418_v22 = vsel %vm8408_vm12, %v20688_v31, %v20682_v12  ;;  %v29942_v13 = vunpack.i.h.bf16 %v29908_v39 }
 0x344   : > { %17183 = vmatmul.mubr.msk.f32.gmra.mrb[28].mxu0 %vm751_vm7, %v25175_v40  ;;  %15996 = vmatmul.mubr.msk.f32.gmra.mrb[16].mxu1 %vm751_vm7, %v15988_v18  ;;  %v8416_v40 = vsel %vm8408_vm12, %v20677_v56, %v29413_v0  ;;  %v29913_v18 = vunpack.i.l.bf16 %v29890_v37  ;;  %v29914_v11 = vld [vmem:[#allocation107_spill] sm:$0xff]  ;;  %v18370_v37 = vpack.c.bf16 %v8412_v24, %v8409_v8  ;;  %v8415_v42 = vsel %vm8408_vm12, %v20687_v44, %v20677_v56  ;;  %v21692_v56 = vld [vmem:[#allocation2 + $0x10] sm:$0xff]  ;;  %v21693_v24 = vld [vmem:[#allocation2 + $0x18] sm:$0xff] }
 0x345   : > { %3734 = vmatprep.mubr.f32.mxu0 %v29621_v57  ;;  %8219 = vmatprep.mubr.f32.mxu1 %v29621_v57  ;;  %v29915_v0 = vld [vmem:[#allocation39_spill] sm:$0xff]  ;;  %v29920_v8 = vunpack.i.l.bf16 %v29906_v28  ;;  %v29922_v31 = vunpack.i.h.bf16 %v29914_v11  ;;  %v29923_v44 = vunpack.i.l.bf16 %v29914_v11 }
 0x346   : > { %v3636_v43 = vsel %vm3624_vm3, %v29913_v18, %v19853_v59  ;;  %v29917_v18 = vld [vmem:[#allocation31_spill] sm:$0xff]  ;;  %vm8707_vm3 = vcmask 457728  }
 0x347   : > { %21320 = vrot.lane.b32.xlu0 %v23846_v30, %s21881_s20  ;;  %21315 = vrot.lane.b32.xlu1 %v29730_v55, %s21881_s20  ;;  %v18062_v59 = vpack.c.bf16 %v3636_v43, %v3633_v1  ;;  %v29418_v60 = vunpack.i.h.bf16 %v29917_v18  ;;  %v29419_v63 = vunpack.i.l.bf16 %v29917_v18  ;;  %v18372_v30 = vpack.c.bf16 %v8419_v53, %v8416_v40  ;;  %v25330_v1 = vpop.permute.xlu1 %20935  ;;  %v16005_v40 = vld [vmem:[%s29197_s5 + $0x4b8] sm:$0xff] }
 0x348   : > { %15697 = vmatmul.mubr.msk.f32.vlgmr.msra.gmra.mrb[12].mxu0 %vm751_vm7, %v25294_v9  ;;  %16012 = vmatmul.mubr.msk.f32.vlgmr.msra.gmra.mrb[6].mxu1 %vm751_vm7, %v16004_v29  ;;  %29919 = vst [vmem:[#allocation52_spill] sm:$0xff] %v25330_v1  ;;  %v3928_v12 = vsel %vm3923_vm0, %v29921_v6, %v29920_v8  ;;  %v25347_v53 = vpack.i.bf16 %v21693_v24, %v21692_v56  ;;  %v29925_v43 = vunpack.i.l.bf16 %v29915_v0  ;;  %v25377_v24 = vpop.permute.xlu0 %20950  ;;  %v29934_v1 = vld [vmem:[#allocation67_spill] sm:$0xff] }
 0x349   : > { %18061 = vmatpush3.bf16.msra.mxu0 %v18058_v27  ;;  %18371 = vmatpush1.bf16.msra.mxu1 %v18370_v37  ;;  %v25337_v27 = vld [vmem:[%s29197_s5 + $0x1e8] sm:$0xff]  ;;  %v8712_v29 = vsel %vm8707_vm3, %v29923_v44, %v29922_v31  ;;  %v8709_v6 = vsel %vm8707_vm3, %v29419_v63, %v29418_v60  ;;  %29927 = vst [vmem:[#allocation32_spill] sm:$0xff] %v25377_v24  ;;  %v29931_v63 = vld [vmem:[#allocation25_spill] sm:$0xff]  ;;  %v20087_v24 = vunpack.i.l.bf16 %v29908_v39  ;;  %v20208_v20 = vunpack.i.h.bf16 %v29934_v1 }
 0x34a   : > { %18064 = vmatprep.subr.msk.bf16.mxu0 %vm22552_vm6, %v18062_v59  ;;  %18374 = vmatprep.subr.msk.bf16.mxu1 %vm22552_vm6, %v18372_v30  ;;  %v3925_v37 = vsel %vm3923_vm0, %v29926_v54, %v29925_v43  ;;  %v18375_v30 = vpack.c.bf16 %v8418_v22, %v8415_v42  ;;  %v18388_v56 = vpack.c.bf16 %v8712_v29, %v8709_v6  ;;  %v13173_v42 = vld [vmem:[#allocation2 + $0x88] sm:$0xf]  ;;  %v13174_v22 = vld [vmem:[#allocation2 + $0x90] sm:$0xf]  ;;  %v16006_v29 = vld [vmem:[%s29197_s5 + $0x4c0] sm:$0xff]  ;;  %v29945_v39 = vunpack.i.l.bf16 %v29914_v11 }
 0x34b   : > { %3740 = vmatprep.mubr.f32.mxu0 %v29621_v57  ;;  %8225 = vmatprep.mubr.f32.mxu1 %v29621_v57  ;;  %v18068_v8 = vpack.c.bf16 %v3928_v12, %v3925_v37  ;;  %v25384_v12 = vld [vmem:[%s29197_s5 + $0x1f0] sm:$0xff]  ;;  %v25386_v31 = vpop.permute.xlu1 %20945  ;;  %v25397_v43 = vpack.i.bf16 %v13174_v22, %v13173_v42  ;;  %v25408_v54 = vld [vmem:[%s29197_s5 + $0x1f8] sm:$0xff]  ;;  %v21696_v37 = vld [vmem:[#allocation2 + $0x60] sm:$0xff]  ;;  %v3927_v7 = vsel %vm3923_vm0, %v20087_v24, %v29942_v13  ;;  %v29946_v24 = vunpack.i.h.bf16 %v29937_v47 }
 0x34c   : > { %21330 = vrot.lane.b32.xlu0 %v25326_v36, %s29924_s30  ;;  %21325 = vrot.lane.b32.xlu1 %v25347_v53, %s29924_s30  ;;  %29928 = vst [vmem:[#allocation39_spill] sm:$0xff] %v25386_v31  ;;  %v16007_v6 = vld [vmem:[%s29197_s5 + $0x4c8] sm:$0xff]  ;;  %v21698_v22 = vld [vmem:[#allocation2 + $0x90] sm:$0xf]  ;;  %v29932_v31 = vld [vmem:[#allocation26_spill] sm:$0xff] }
 0x34d   : > { %15698 = vmatmul.mubr.msk.f32.gmra.mrb[14].mxu0 %vm751_vm7, %v25337_v27  ;;  %16013 = vmatmul.mubr.msk.f32.gmra.mrb[8].mxu1 %vm751_vm7, %v16005_v40  ;;  %v21695_v40 = vld [vmem:[#allocation2 + $0x8] sm:$0xff]  ;;  %v19857_v46 = vunpack.i.l.bf16 %v29932_v31  ;;  %v29953_v11 = vld [vmem:[#allocation58_spill] sm:$0xff] }
 0x34e   : > { %18067 = vmatpush3.bf16.msk.msra.mxu0 %vm22552_vm6, %v18062_v59  ;;  %18377 = vmatpush1.bf16.msk.msra.mxu1 %vm22552_vm6, %v18375_v30  ;;  %v21694_v59 = vld [vmem:[#allocation2 + $0x30] sm:$0xff]  ;;  %v21697_v30 = vld [vmem:[#allocation2 + $0x68] sm:$0xff] }
 0x34f   : > { %18069 = vmatprep.subr.bf16.mxu0 %v18068_v8  ;;  %18389 = vmatprep.subr.bf16.mxu1 %v18388_v56  ;;  %v25389_v44 = vpack.i.bf16 %v21694_v59, %v21695_v40  ;;  %v25411_v8 = vpack.i.bf16 %v21697_v30, %v21696_v37  ;;  %v25416_v56 = vpop.permute.xlu0 %20960  ;;  %v25420_v42 = vpop.permute.xlu1 %20955  ;;  %v21699_v59 = vld [vmem:[#allocation2 + $0x68] sm:$0xff]  ;;  %v21700_v37 = vld [vmem:[#allocation2 + $0x58] sm:$0xff]  ;;  %v21701_v30 = vld [vmem:[#allocation2 + $0x80] sm:$0xf] }
 0x350   : > { %3746 = vmatprep.mubr.f32.mxu0 %v29621_v57  ;;  %8231 = vmatprep.mubr.f32.mxu1 %v29621_v57  ;;  %29929 = vst [vmem:[#allocation40_spill] sm:$0xff] %v25416_v56  ;;  %29930 = vst [vmem:[#allocation110_spill] sm:$0xff] %v25420_v42  ;;  %v25428_v40 = vpack.i.bf16 %v21698_v22, %v21699_v59  ;;  %v25436_v60 = vpack.i.bf16 %v21701_v30, %v21700_v37  ;;  %v19858_v22 = vunpack.i.h.bf16 %v29932_v31  ;;  %v29933_v37 = vld [vmem:[#allocation66_spill] sm:$0xff] }
 0x351   : > { %21340 = vrot.lane.b32.xlu0 %v29730_v55, %s21882_s23  ;;  %21335 = vrot.lane.b32.xlu1 %v25389_v44, %s29924_s30  ;;  %v19967_v59 = vunpack.i.l.bf16 %v29916_v35  ;;  %v29935_v42 = vld [vmem:[#allocation106_spill] sm:$0xff]  ;;  %v20712_v30 = vunpack.i.l.bf16 %v29937_v47  ;;  %v29941_v56 = vunpack.i.h.bf16 %v29916_v35  ;;  %v20207_v35 = vunpack.i.l.bf16 %v29934_v1 }
 0x352   : > { %15699 = vmatmul.mubr.msk.f32.gmra.mrb[16].mxu0 %vm751_vm7, %v25384_v12  ;;  %16014 = vmatmul.mubr.msk.f32.gmra.mrb[10].mxu1 %vm751_vm7, %v16006_v29  ;;  %v25433_v29 = vld [vmem:[%s29197_s5 + $0x200] sm:$0xff]  ;;  %v20703_v41 = vunpack.i.h.bf16 %v29935_v42  ;;  %v20702_v49 = vunpack.i.l.bf16 %v29935_v42 }
 0x353   : > { %3752 = vmatprep.mubr.f32.mxu0 %v29621_v57  ;;  %8237 = vmatprep.mubr.f32.mxu1 %v29621_v57  ;;  %v25455_v58 = vpop.permute.xlu0 %20970  ;;  %v25468_v42 = vpop.permute.xlu1 %20965  ;;  %v3924_v32 = vsel %vm3923_vm0, %v19967_v59, %v29941_v56  ;;  %v29944_v56 = vunpack.i.l.bf16 %v29917_v18  ;;  %v8718_v50 = vsel %vm8707_vm3, %v20712_v30, %v29946_v24  ;;  %v29948_v18 = vld [vmem:[#allocation59_spill] sm:$0xff] }
 0x354   : > { %29936 = vst [vmem:[#allocation25_spill] sm:$0xff] %v25455_v58  ;;  %29939 = vst [vmem:[#allocation26_spill] sm:$0xff] %v25468_v42  ;;  %v29940_v58 = vunpack.i.l.bf16 %v29931_v63  ;;  %v20093_v42 = vunpack.i.h.bf16 %v29906_v28  ;;  %v8711_v13 = vsel %vm8707_vm3, %v20703_v41, %v29945_v39  ;;  %v20718_v5 = vunpack.i.h.bf16 %v29948_v18  ;;  %v16025_v41 = vld [vmem:[%s29197_s5 + $0x4e0] sm:$0xff] }
 0x355   : > { %21350 = vrot.lane.b32.xlu0 %v25397_v43, %s29924_s30  ;;  %21345 = vrot.lane.b32.xlu1 %v25411_v8, %s29924_s30  ;;  %v8708_v59 = vsel %vm8707_vm3, %v20702_v49, %v29944_v56  ;;  %v20717_v49 = vunpack.i.l.bf16 %v29948_v18  ;;  %v18070_v24 = vpack.c.bf16 %v3927_v7, %v3924_v32  ;;  %v20722_v32 = vunpack.i.l.bf16 %v29953_v11 }
 0x356   : > { %15700 = vmatmul.mubr.msk.f32.gmra.mrb[18].mxu0 %vm751_vm7, %v25408_v54  ;;  %16015 = vmatmul.mubr.msk.f32.gmra.mrb[12].mxu1 %vm751_vm7, %v16007_v6  ;;  %v16008_v6 = vld [vmem:[%s29197_s5 + $0x4d0] sm:$0xff]  ;;  %v3934_v23 = vsel %vm3923_vm0, %v19858_v22, %v29940_v58  ;;  %v29943_v58 = vunpack.i.l.bf16 %v29933_v37  ;;  %v18390_v18 = vpack.c.bf16 %v8711_v13, %v8708_v59  ;;  %v29957_v59 = vunpack.i.l.bf16 %v29933_v37 }
 0x357   : > { %3758 = vmatprep.mubr.f32.mxu0 %v29621_v57  ;;  %8243 = vmatprep.mubr.f32.mxu1 %v29621_v57  ;;  %v25519_v39 = vpop.permute.xlu0 %20980 }
 0x358   : > { %v3931_v31 = vsel %vm3923_vm0, %v20208_v20, %v29943_v58  ;;  %v29947_v58 = vunpack.i.h.bf16 %v29938_v2  ;;  %29949 = vst [vmem:[#allocation66_spill] sm:$0xff] %v25519_v39  ;;  %v3930_v2 = vsel %vm3923_vm0, %v20207_v35, %v20208_v20  ;;  %v29460_v39 = vunpack.i.h.bf16 %v29953_v11 }
 0x359   : > { %21360 = vrot.lane.b32.xlu0 %v25428_v40, %s21882_s23  ;;  %21355 = vrot.lane.b32.xlu1 %v25436_v60, %s29924_s30  ;;  %v18072_v47 = vpack.c.bf16 %v3934_v23, %v3931_v31  ;;  %v8714_v23 = vsel %vm8707_vm3, %v20717_v49, %v20707_v34  ;;  %v20213_v31 = vunpack.i.h.bf16 %v29933_v37  ;;  %v19863_v35 = vunpack.i.h.bf16 %v29931_v63 }
 0x35a   : > { %15701 = vmatmul.mubr.msk.f32.gmra.mrb[20].mxu0 %vm751_vm7, %v25433_v29  ;;  %16016 = vmatmul.mubr.msk.f32.gmra.mrb[14].mxu1 %vm751_vm7, %v16008_v6  ;;  %v16009_v6 = vld [vmem:[%s29197_s5 + $0x4d8] sm:$0xff]  ;;  %v8715_v1 = vsel %vm8707_vm3, %v20707_v34, %v29947_v58  ;;  %v25523_v58 = vpop.permute.xlu1 %20975  ;;  %v29955_v34 = vunpack.i.h.bf16 %v24373_v51  ;;  %v29960_v37 = vunpack.i.l.bf16 %v29931_v63  ;;  %v16029_v63 = vld [vmem:[%s29197_s5 + $0x500] sm:$0xff] }
 0x35b   : > { %3764 = vmatprep.mubr.f32.mxu0 %v29621_v57  ;;  %8249 = vmatprep.mubr.f32.mxu1 %v29621_v57  ;;  %29951 = vst [vmem:[#allocation67_spill] sm:$0xff] %v25523_v58  ;;  %v18392_v7 = vpack.c.bf16 %v8718_v50, %v8715_v1  ;;  %v3933_v58 = vsel %vm3923_vm0, %v19857_v46, %v19858_v22  ;;  %v16026_v50 = vld [vmem:[%s29197_s5 + $0x4e8] sm:$0xff]  ;;  %v29954_v46 = vunpack.i.l.bf16 %v29915_v0  ;;  %v25601_v1 = vld [vmem:[%s29197_s5 + $0x210] sm:$0xff] }
 0x35c   : > { %v18075_v20 = vpack.c.bf16 %v3933_v58, %v3930_v2  ;;  %v9008_v2 = vsel %vm29449_vm14, %v20722_v32, %v29460_v39  ;;  %v20733_v58 = vunpack.i.h.bf16 %v24368_v45 }
 0x35d   : > { %21370 = vrot.lane.b32.xlu0 %v25428_v40, %s21883_s17  ;;  %21365 = vrot.lane.b32.xlu1 %v29730_v55, %s21883_s17 }
 0x35e   : > { %15702 = vmatmul.mubr.msk.f32.gmra.mrb[22].mxu0 %vm751_vm7, %v25462_v17  ;;  %16017 = vmatmul.mubr.msk.f32.gmra.mrb[16].mxu1 %vm751_vm7, %v16009_v6  ;;  %v29952_v6 = vunpack.i.l.bf16 %v29906_v28  ;;  %v29956_v28 = vunpack.i.l.bf16 %v24373_v51 }
 0x35f   : > { %17193 = vmatprep.mubr.msk.f32.mxu0 %vm751_vm7, %v25294_v9  ;;  %8518 = vmatprep.mubr.f32.mxu1 %v29621_v57  ;;  %v19973_v9 = vunpack.i.h.bf16 %v29915_v0  ;;  %v25570_v0 = vpop.permute.xlu1 %20985 }
 0x360   : > { %v3929_v56 = vsel %vm3923_vm0, %v29952_v6, %v20093_v42  ;;  %v25622_v6 = vld [vmem:[%s29197_s5 + $0x218] sm:$0xff] }
 0x361   : > { %21380 = vrot.lane.b32.xlu0 %v25326_v36, %s29950_s29  ;;  %21375 = vrot.lane.b32.xlu1 %v25347_v53, %s29950_s29 }
 0x362   : > { %17194 = vmatmul.mubr.msk.f32.vlgmr.msra.gmra.mrb[24].mxu0 %vm751_vm7, %v25337_v27  ;;  %16033 = vmatmul.mubr.msk.f32.vlgmr.msra.gmra.mrb[6].mxu1 %vm751_vm7, %v16025_v41  ;;  %v8717_v27 = vsel %vm8707_vm3, %v20718_v5, %v20712_v30  ;;  %v3926_v5 = vsel %vm3923_vm0, %v29954_v46, %v19973_v9  ;;  %v25559_v30 = vpop.permute.xlu0 %20990  ;;  %v3935_v41 = vsel %vm3923_vm0, %v29960_v37, %v19863_v35  ;;  %v20737_v46 = vunpack.i.l.bf16 %v24416_v38  ;;  %v16046_v35 = vld [vmem:[%s29197_s5 + $0x510] sm:$0xff] }
 0x363   : > { %18071 = vmatpush1.bf16.msra.mxu0 %v18070_v24  ;;  %18391 = vmatpush1.bf16.msra.mxu1 %v18390_v18  ;;  %v18395_v22 = vpack.c.bf16 %v8717_v27, %v8714_v23  ;;  %v25603_v49 = vpop.permute.xlu1 %20995  ;;  %v20732_v18 = vunpack.i.l.bf16 %v24368_v45  ;;  %v29458_v27 = vunpack.i.h.bf16 %v24412_v25  ;;  %v20742_v23 = vunpack.i.l.bf16 %v24412_v25  ;;  %v16030_v45 = vld [vmem:[%s29197_s5 + $0x508] sm:$0xff] }
 0x364   : > { %18074 = vmatprep.subr.msk.bf16.mxu0 %vm22552_vm6, %v18072_v47  ;;  %18394 = vmatprep.subr.msk.bf16.mxu1 %vm22552_vm6, %v18392_v7  ;;  %v9011_v47 = vsel %vm29449_vm14, %v29956_v28, %v29955_v34  ;;  %29959 = vst [vmem:[#allocation59_spill] sm:$0xff] %v25603_v49  ;;  %v25649_v7 = vld [vmem:[%s29197_s5 + $0x220] sm:$0xff] }
 0x365   : > { %17196 = vmatprep.mubr.msk.f32.mxu0 %vm751_vm7, %v25384_v12  ;;  %8524 = vmatprep.mubr.f32.mxu1 %v29621_v57  ;;  %v18078_v12 = vpack.c.bf16 %v3929_v56, %v3926_v5  ;;  %v18408_v42 = vpack.c.bf16 %v9011_v47, %v9008_v2  ;;  %v29961_v5 = vld [vmem:[#allocation53_spill] sm:$0xff]  ;;  %v9007_v34 = vsel %vm29449_vm14, %v20732_v18, %v20722_v32  ;;  %v25682_v2 = vld [vmem:[%s29197_s5 + $0x228] sm:$0xff] }
 0x366   : > { %21390 = vrot.lane.b32.xlu0 %v29730_v55, %s21884_s12  ;;  %21385 = vrot.lane.b32.xlu1 %v25389_v44, %s29950_s29  ;;  %v25594_v13 = vpop.permute.xlu0 %21000  ;;  %v9010_v47 = vsel %vm29449_vm14, %v20733_v58, %v29956_v28  ;;  %v9017_v32 = vsel %vm29449_vm14, %v20742_v23, %v29458_v27  ;;  %v16047_v58 = vld [vmem:[%s29197_s5 + $0x518] sm:$0xff] }
 0x367   : > { %17197 = vmatmul.mubr.msk.f32.gmra.mrb[26].mxu0 %vm751_vm7, %v25408_v54  ;;  %16034 = vmatmul.mubr.msk.f32.gmra.mrb[8].mxu1 %vm751_vm7, %v16026_v50  ;;  %v16027_v54 = vld [vmem:[%s29197_s5 + $0x4f0] sm:$0xff]  ;;  %29958 = vst [vmem:[#allocation106_spill] sm:$0xff] %v25594_v13  ;;  %v25635_v24 = vpop.permute.xlu1 %21005  ;;  %v29459_v50 = vunpack.i.h.bf16 %v24416_v38  ;;  %v29980_v27 = vld [vmem:[#allocation34_spill] sm:$0xff] }
 0x368   : > { %18077 = vmatpush1.bf16.msk.msra.mxu0 %vm22552_vm6, %v18075_v20  ;;  %18397 = vmatpush1.bf16.msk.msra.mxu1 %vm22552_vm6, %v18395_v22  ;;  %v20748_v20 = vunpack.i.h.bf16 %v24456_v48  ;;  %v29466_v39 = vunpack.i.l.bf16 %v29980_v27 }
 0x369   : > { %18079 = vmatprep.subr.bf16.mxu0 %v18078_v12  ;;  %18409 = vmatprep.subr.bf16.mxu1 %v18408_v42  ;;  %v9014_v42 = vsel %vm29449_vm14, %v20737_v46, %v29459_v50  ;;  %v29465_v50 = vunpack.i.h.bf16 %v29980_v27 }
 0x36a   : > { %17199 = vmatprep.mubr.msk.f32.mxu0 %vm751_vm7, %v25433_v29  ;;  %8530 = vmatprep.mubr.f32.mxu1 %v29621_v57  ;;  %v3932_v29 = vsel %vm3923_vm0, %v29957_v59, %v20213_v31  ;;  %v25630_v56 = vpop.permute.xlu0 %21010  ;;  %v20757_v31 = vunpack.i.l.bf16 %v24507_v33  ;;  %v29455_v59 = vunpack.i.h.bf16 %v24452_v52  ;;  %v9016_v37 = vsel %vm29449_vm14, %v20748_v20, %v20742_v23  ;;  %v16048_v20 = vld [vmem:[%s29197_s5 + $0x520] sm:$0xff] }
 0x36b   : > { %21400 = vrot.lane.b32.xlu0 %v25397_v43, %s29950_s29  ;;  %21395 = vrot.lane.b32.xlu1 %v25411_v8, %s29950_s29  ;;  %v18082_v9 = vpack.c.bf16 %v3935_v41, %v3932_v29  ;;  %v20752_v29 = vunpack.i.l.bf16 %v24452_v52  ;;  %vm29463_vm0 = vcmask 318464  }
 0x36c   : > { %17200 = vmatmul.mubr.msk.f32.gmra.mrb[28].mxu0 %vm751_vm7, %v25462_v17  ;;  %16035 = vmatmul.mubr.msk.f32.gmra.mrb[10].mxu1 %vm751_vm7, %v16027_v54  ;;  %v16028_v17 = vld [vmem:[%s29197_s5 + $0x4f8] sm:$0xff]  ;;  %v25692_v54 = vpop.permute.xlu1 %21015 }
 0x36d   : > { %4033 = vmatprep.mubr.f32.mxu0 %v29621_v57  ;;  %8536 = vmatprep.mubr.f32.mxu1 %v29621_v57 }
 0x36e   : > { %v25675_v22 = vpop.permute.xlu0 %21020 }
 0x36f   : > { %21410 = vrot.lane.b32.xlu0 %v25428_v40, %s21884_s12  ;;  %21405 = vrot.lane.b32.xlu1 %v25436_v60, %s29950_s29 }
 0x370   : > { %15718 = vmatmul.mubr.msk.f32.vlgmr.msra.gmra.mrb[12].mxu0 %vm751_vm7, %v25601_v1  ;;  %16036 = vmatmul.mubr.msk.f32.gmra.mrb[12].mxu1 %vm751_vm7, %v16028_v17  ;;  %v18410_v17 = vpack.c.bf16 %v9010_v47, %v9007_v34  ;;  %v9307_v34 = vsel %vm29463_vm0, %v20752_v29, %v29455_v59  ;;  %v15715_v47 = vld [vmem:[%s29197_s5 + $0x238] sm:$0xff] }
 0x371   : > { %18081 = vmatpush3.bf16.msra.mxu0 %v18078_v12  ;;  %4039 = vmatprep.mubr.f32.mxu0 %v29621_v57  ;;  %v20747_v12 = vunpack.i.l.bf16 %v24456_v48  ;;  %v29454_v48 = vunpack.i.h.bf16 %v24507_v33 }
 0x372   : > { %18084 = vmatprep.subr.msk.bf16.mxu0 %vm22552_vm6, %v18082_v9  ;;  %8542 = vmatprep.mubr.f32.mxu1 %v29621_v57  ;;  %v25722_v23 = vpop.permute.xlu0 %21030 }
 0x373   : > { %21420 = vrot.lane.b32.xlu0 %v25428_v40, %s21885_s11  ;;  %21415 = vrot.lane.b32.xlu1 %v29730_v55, %s21885_s11  ;;  %v9013_v41 = vsel %vm29449_vm14, %v20747_v12, %v20737_v46  ;;  %v9310_v18 = vsel %vm29463_vm0, %v20757_v31, %v29454_v48  ;;  %vm9604_vm14 = vcmask 310272   ;;  %v21718_v48 = vld [vmem:[%s29197_s5 + $0x2a0] sm:$0xff]  ;;  %s29137_s11 = scalar_lea.vmem %s29199_s7, %s19694_s18 }
 0x374   : > { %15719 = vmatmul.mubr.msk.f32.gmra.mrb[14].mxu0 %vm751_vm7, %v25622_v6  ;;  %16037 = vmatmul.mubr.msk.f32.gmra.mrb[14].mxu1 %vm751_vm7, %v16029_v63  ;;  %v15714_v63 = vld [vmem:[%s29197_s5 + $0x230] sm:$0xff]  ;;  %v18415_v46 = vpack.c.bf16 %v9016_v37, %v9013_v41  ;;  %v18428_v28 = vpack.c.bf16 %v9310_v18, %v9307_v34  ;;  %v20772_v37 = vunpack.i.l.bf16 %v24547_v21  ;;  %v29453_v41 = vunpack.i.h.bf16 %v24553_v61  ;;  %v16067_v34 = vld [vmem:[%s29197_s5 + $0x540] sm:$0xff] }
 0x375   : > { %18087 = vmatpush3.bf16.msk.msra.mxu0 %vm22552_vm6, %v18082_v9  ;;  %4045 = vmatprep.mubr.f32.mxu0 %v29621_v57  ;;  %v18412_v9 = vpack.c.bf16 %v9017_v32, %v9014_v42  ;;  %v16049_v42 = vld [vmem:[%s29197_s5 + $0x528] sm:$0xff]  ;;  %v20777_v18 = vunpack.i.l.bf16 %v24603_v4 }
 0x376   : > { %18099 = vmatprep.subr.bf16.mxu0 %v29961_v5  ;;  %8548 = vmatprep.mubr.f32.mxu1 %v29621_v57  ;;  %v25754_v12 = vpop.permute.xlu0 %21040 }
 0x377   : > { %21430 = vrot.lane.b32.xlu0 %v25326_v36, %s29962_s10  ;;  %21425 = vrot.lane.b32.xlu1 %v25347_v53, %s29962_s10 }
 0x378   : > { %15720 = vmatmul.mubr.msk.f32.gmra.mrb[16].mxu0 %vm751_vm7, %v25649_v7  ;;  %16038 = vmatmul.mubr.msk.f32.gmra.mrb[16].mxu1 %vm751_vm7, %v16030_v45  ;;  %v25728_v45 = vpop.permute.xlu1 %21025 }
 0x379   : > { %4051 = vmatprep.mubr.f32.mxu0 %v29621_v57  ;;  %8817 = vmatprep.mubr.f32.mxu1 %v29621_v57 }
 0x37b   : > { %21440 = vrot.lane.b32.xlu0 %v29730_v55, %s21886_s13  ;;  %21435 = vrot.lane.b32.xlu1 %v25389_v44, %s29962_s10 }
 0x37c   : > { %15721 = vmatmul.mubr.msk.f32.gmra.mrb[18].mxu0 %vm751_vm7, %v25682_v2  ;;  %16054 = vmatmul.mubr.msk.f32.vlgmr.msra.gmra.mrb[6].mxu1 %vm751_vm7, %v16046_v35  ;;  %v25759_v32 = vpop.permute.xlu1 %21035  ;;  %v16050_v35 = vld [vmem:[%s29197_s5 + $0x530] sm:$0xff] }
 0x37d   : > { %4057 = vmatprep.mubr.f32.mxu0 %v29621_v57  ;;  %18411 = vmatpush1.bf16.msra.mxu1 %v18410_v17  ;;  %v25781_v17 = vpop.permute.xlu0 %21050 }
 0x37e   : > { %8823 = vmatprep.mubr.f32.mxu1 %v29621_v57  ;;  %18414 = vmatprep.subr.msk.bf16.mxu1 %vm22552_vm6, %v18412_v9  ;;  %29964 = vst [vmem:[#allocation58_spill] sm:$0xff] %v25781_v17  ;;  %v29966_v9 = vld [vmem:[#allocation69_spill] sm:$0xff] }
 0x37f   : > { %21450 = vrot.lane.b32.xlu0 %v25397_v43, %s29962_s10  ;;  %21445 = vrot.lane.b32.xlu1 %v25411_v8, %s29962_s10 }
 0x380   : > { %15722 = vmatmul.mubr.msk.f32.gmra.mrb[20].mxu0 %vm751_vm7, %v15714_v63  ;;  %16055 = vmatmul.mubr.msk.f32.gmra.mrb[8].mxu1 %vm751_vm7, %v16047_v58 }
 0x381   : > { %4063 = vmatprep.mubr.f32.mxu0 %v29621_v57  ;;  %18417 = vmatpush1.bf16.msk.msra.mxu1 %vm22552_vm6, %v18415_v46  ;;  %v25819_v58 = vpop.permute.xlu0 %21060 }
 0x382   : > { %8829 = vmatprep.mubr.f32.mxu1 %v29621_v57  ;;  %18429 = vmatprep.subr.bf16.mxu1 %v18428_v28  ;;  %v29450_v28 = vunpack.i.h.bf16 %v24650_v10 }
 0x383   : > { %21460 = vrot.lane.b32.xlu0 %v25428_v40, %s21886_s13  ;;  %21455 = vrot.lane.b32.xlu1 %v25436_v60, %s29962_s10 }
 0x384   : > { %15723 = vmatmul.mubr.msk.f32.gmra.mrb[22].mxu0 %vm751_vm7, %v15715_v47  ;;  %16056 = vmatmul.mubr.msk.f32.gmra.mrb[10].mxu1 %vm751_vm7, %v16048_v20 }
 0x385   : > { %17210 = vmatprep.mubr.msk.f32.mxu0 %vm751_vm7, %v25601_v1  ;;  %8835 = vmatprep.mubr.f32.mxu1 %v29621_v57  ;;  %v29963_v1 = vld [vmem:[#allocation68_spill] sm:$0xff] }
 0x387   : > { %21470 = vrot.lane.b32.xlu0 %v25428_v40, %s21887_s14  ;;  %21465 = vrot.lane.b32.xlu1 %v29730_v55, %s21887_s14  ;;  %s21889_s14 = smov 121  }
 0x388   : > { %17211 = vmatmul.mubr.msk.f32.vlgmr.msra.gmra.mrb[24].mxu0 %vm751_vm7, %v25622_v6  ;;  %16057 = vmatmul.mubr.msk.f32.gmra.mrb[12].mxu1 %vm751_vm7, %v16049_v42  ;;  %v25786_v6 = vpop.permute.xlu1 %21045  ;;  %v29451_v42 = vunpack.i.h.bf16 %v24593_v19 }
 0x389   : > { %18101 = vmatpush3.bf16.msra.mxu0 %v29961_v5  ;;  %17213 = vmatprep.mubr.msk.f32.mxu0 %vm751_vm7, %v25649_v7  ;;  %29965 = vst [vmem:[#allocation53_spill] sm:$0xff] %v25786_v6  ;;  %v20763_v7 = vunpack.i.h.bf16 %v24493_v16  ;;  %v20762_v5 = vunpack.i.l.bf16 %v24493_v16  ;;  %v16051_v16 = vld [vmem:[%s29197_s5 + $0x538] sm:$0xff] }
 0x38a   : > { %18104 = vmatprep.subr.msk.bf16.mxu0 %vm22552_vm6, %v29963_v1  ;;  %8841 = vmatprep.mubr.f32.mxu1 %v29621_v57 }
 0x38b   : > { %21480 = vrot.lane.b32.xlu0 %v25326_v36, %s21889_s14  ;;  %21475 = vrot.lane.b32.xlu1 %v25347_v53, %s21889_s14  ;;  %v29452_v36 = vunpack.i.h.bf16 %v24547_v21  ;;  %v20767_v53 = vunpack.i.l.bf16 %v24553_v61 }
 0x38c   : > { %17214 = vmatmul.mubr.msk.f32.gmra.mrb[26].mxu0 %vm751_vm7, %v25682_v2  ;;  %16058 = vmatmul.mubr.msk.f32.gmra.mrb[14].mxu1 %vm751_vm7, %v16050_v35  ;;  %v9306_v2 = vsel %vm29463_vm0, %v20762_v5, %v20752_v29  ;;  %v25834_v46 = vpop.permute.xlu1 %21055  ;;  %v29967_v5 = vld [vmem:[#allocation70_spill] sm:$0xff] }
 0x38d   : > { %18107 = vmatpush3.bf16.msk.msra.mxu0 %vm22552_vm6, %v29963_v1  ;;  %17216 = vmatprep.mubr.msk.f32.mxu0 %vm751_vm7, %v15714_v63  ;;  %v9309_v63 = vsel %vm29463_vm0, %v20763_v7, %v20757_v31  ;;  %v9313_v29 = vsel %vm29463_vm0, %v20767_v53, %v29453_v41  ;;  %v20778_v31 = vunpack.i.h.bf16 %v24603_v4  ;;  %v21703_v4 = vld [vmem:[%s29197_s5 + $0x248] sm:$0xff]  ;;  %v20782_v1 = vunpack.i.l.bf16 %v24593_v19 }
 0x38e   : > { %18119 = vmatprep.subr.bf16.mxu0 %v29966_v9  ;;  %8847 = vmatprep.mubr.f32.mxu1 %v29621_v57  ;;  %v18430_v20 = vpack.c.bf16 %v9309_v63, %v9306_v2 }
 0x38f   : > { %21490 = vrot.lane.b32.xlu0 %v29730_v55, %s21888_s28  ;;  %21485 = vrot.lane.b32.xlu1 %v25389_v44, %s21889_s14  ;;  %v21702_v55 = vld [vmem:[%s29197_s5 + $0x240] sm:$0xff]  ;;  %v9316_v44 = vsel %vm29463_vm0, %v20772_v37, %v29452_v36  ;;  %v9315_v7 = vsel %vm29463_vm0, %v20778_v31, %v20772_v37  ;;  %v16068_v37 = vld [vmem:[%s29197_s5 + $0x548] sm:$0xff]  ;;  %v21707_v31 = vld [vmem:[#allocation2 + $0x98] sm:$0xf] }
 0x390   : > { %17217 = vmatmul.mubr.msk.f32.gmra.mrb[28].mxu0 %vm751_vm7, %v15715_v47  ;;  %16059 = vmatmul.mubr.msk.f32.gmra.mrb[16].mxu1 %vm751_vm7, %v16051_v16  ;;  %v20787_v47 = vunpack.i.l.bf16 %v24650_v10  ;;  %v18432_v35 = vpack.c.bf16 %v9316_v44, %v9313_v29  ;;  %v25859_v16 = vpop.permute.xlu0 %21070  ;;  %v25875_v2 = vpop.permute.xlu1 %21065  ;;  %v9606_v44 = vsel %vm9604_vm14, %v20782_v1, %v29451_v42  ;;  %v21706_v29 = vld [vmem:[#allocation2 + $0x70] sm:$0xff]  ;;  %v29977_v42 = vld [vmem:[#allocation7_spill] sm:$0xff] }
 0x391   : > { %17227 = vmatprep.mubr.msk.f32.mxu0 %vm751_vm7, %v21702_v55  ;;  %9116 = vmatprep.mubr.f32.mxu1 %v29621_v57  ;;  %v21705_v55 = vld [vmem:[%s29197_s5 + $0x258] sm:$0xff] }
 0x393   : > { %21500 = vrot.lane.b32.xlu0 %v25397_v43, %s21889_s14  ;;  %21495 = vrot.lane.b32.xlu1 %v25411_v8, %s21889_s14  ;;  %v9312_v8 = vsel %vm29463_vm0, %v20777_v18, %v20767_v53  ;;  %v9609_v53 = vsel %vm9604_vm14, %v20787_v47, %v29450_v28  ;;  %v25898_v18 = vpack.i.bf16 %v21707_v31, %v21706_v29  ;;  %v29972_v31 = vld [vmem:[#allocation72_spill] sm:$0xff]  ;;  %v29974_v28 = vld [vmem:[#allocation73_spill] sm:$0xff]  ;;  %vm9903_vm0 = vcmask 302080  }
 0x394   : > { %17228 = vmatmul.mubr.msk.f32.vlgmr.msra.gmra.mrb[24].mxu0 %vm751_vm7, %v21703_v4  ;;  %16075 = vmatmul.mubr.msk.f32.vlgmr.msra.gmra.mrb[6].mxu1 %vm751_vm7, %v16067_v34  ;;  %v18435_v63 = vpack.c.bf16 %v9315_v7, %v9312_v8  ;;  %v21708_v34 = vld [vmem:[%s29197_s5 + $0x260] sm:$0xff]  ;;  %v21709_v4 = vld [vmem:[#allocation2 + $0x48] sm:$0xff]  ;;  %v16069_v7 = vld [vmem:[%s29197_s5 + $0x550] sm:$0xff]  ;;  %v25909_v8 = vpop.permute.xlu0 %21080 }
 0x395   : > { %18121 = vmatpush3.bf16.msra.mxu0 %v29966_v9  ;;  %18431 = vmatpush1.bf16.msra.mxu1 %v18430_v20  ;;  %v21704_v9 = vld [vmem:[%s29197_s5 + $0x250] sm:$0xff]  ;;  %v21710_v20 = vld [vmem:[#allocation2 + $0x20] sm:$0xff] }
 0x396   : > { %18124 = vmatprep.subr.msk.bf16.mxu0 %vm22552_vm6, %v29967_v5  ;;  %18434 = vmatprep.subr.msk.bf16.mxu1 %vm22552_vm6, %v18432_v35  ;;  %v25904_v35 = vpack.i.bf16 %v21709_v4, %v21710_v20  ;;  %v16071_v4 = vld [vmem:[%s29197_s5 + $0x560] sm:$0xff]  ;;  %v21715_v20 = vld [vmem:[%s29197_s5 + $0x288] sm:$0xff] }
 0x397   : > { %17230 = vmatprep.mubr.msk.f32.mxu0 %vm751_vm7, %v21704_v9  ;;  %9122 = vmatprep.mubr.f32.mxu1 %v29621_v57  ;;  %v21711_v9 = vld [vmem:[%s29197_s5 + $0x268] sm:$0xff] }
 0x398   : > { %21510 = vrot.lane.b32.xlu0 %v25428_v40, %s21888_s28  ;;  %21505 = vrot.lane.b32.xlu1 %v25436_v60, %s21889_s14  ;;  %v18448_v40 = vpack.c.bf16 %v9609_v53, %v9606_v44  ;;  %v29968_v60 = vld [vmem:[#allocation71_spill] sm:$0xff]  ;;  %v16070_v53 = vld [vmem:[%s29197_s5 + $0x558] sm:$0xff] }
 0x399   : > { %17231 = vmatmul.mubr.msk.f32.gmra.mrb[26].mxu0 %vm751_vm7, %v21705_v55  ;;  %16076 = vmatmul.mubr.msk.f32.gmra.mrb[8].mxu1 %vm751_vm7, %v16068_v37  ;;  %v21712_v37 = vld [vmem:[%s29197_s5 + $0x270] sm:$0xff]  ;;  %v21713_v44 = vld [vmem:[%s29197_s5 + $0x278] sm:$0xff] }
 0x39a   : > { %18127 = vmatpush3.bf16.msk.msra.mxu0 %vm22552_vm6, %v29967_v5  ;;  %18437 = vmatpush1.bf16.msk.msra.mxu1 %vm22552_vm6, %v18435_v63  ;;  %v25914_v5 = vpop.permute.xlu1 %21075  ;;  %v29969_v63 = vld [vmem:[#allocation4_spill] sm:$0xff]  ;;  %v29970_v55 = vld [vmem:[#allocation5_spill] sm:$0xff] }
 0x39b   : > { %18139 = vmatprep.subr.bf16.mxu0 %v29968_v60  ;;  %18449 = vmatprep.subr.bf16.mxu1 %v18448_v40  ;;  %v25939_v40 = vpop.permute.xlu0 %21090 }
 0x39c   : > { %17233 = vmatprep.mubr.msk.f32.mxu0 %vm751_vm7, %v21708_v34  ;;  %9128 = vmatprep.mubr.f32.mxu1 %v29621_v57  ;;  %v21714_v34 = vld [vmem:[%s29197_s5 + $0x280] sm:$0xff] }
 0x39d   : > { %21520 = vrot.lane.b32.xlu0 %v25898_v18, %s29924_s30  ;;  %21515 = vrot.lane.b32.xlu1 %v25904_v35, %s29924_s30  ;;  %s21890_s30 = smov 120  }
 0x39e   : > { %17234 = vmatmul.mubr.msk.f32.gmra.mrb[28].mxu0 %vm751_vm7, %v21711_v9  ;;  %16077 = vmatmul.mubr.msk.f32.gmra.mrb[10].mxu1 %vm751_vm7, %v16069_v7  ;;  %v25943_v29 = vpop.permute.xlu1 %21085  ;;  %v20793_v7 = vunpack.i.h.bf16 %v24645_v26  ;;  %v20792_v9 = vunpack.i.l.bf16 %v24645_v26  ;;  %v21716_v26 = vld [vmem:[%s29197_s5 + $0x290] sm:$0xff] }
 0x39f   : > { %17244 = vmatprep.mubr.msk.f32.mxu0 %vm751_vm7, %v21712_v37  ;;  %9134 = vmatprep.mubr.f32.mxu1 %v29621_v57  ;;  %29971 = vst [vmem:[#allocation68_spill] sm:$0xff] %v25943_v29  ;;  %v29456_v37 = vunpack.i.h.bf16 %v24681_v14 }
 0x3a0   : > { %v9605_v36 = vsel %vm9604_vm14, %v20792_v9, %v20782_v1  ;;  %v9608_v41 = vsel %vm9604_vm14, %v20793_v7, %v20787_v47  ;;  %v20808_v9 = vunpack.i.h.bf16 %v24746_v15  ;;  %v20807_v47 = vunpack.i.l.bf16 %v24746_v15  ;;  %v16088_v7 = vld [vmem:[%s29197_s5 + $0x570] sm:$0xff]  ;;  %v21719_v15 = vld [vmem:[%s29197_s5 + $0x2a8] sm:$0xff] }
 0x3a1   : > { %21530 = vrot.lane.b32.xlu0 %v29969_v63, %s21890_s30  ;;  %21525 = vrot.lane.b32.xlu1 %v29970_v55, %s21890_s30 }
 0x3a2   : > { %17245 = vmatmul.mubr.msk.f32.vlgmr.msra.gmra.mrb[24].mxu0 %vm751_vm7, %v21713_v44  ;;  %16078 = vmatmul.mubr.msk.f32.gmra.mrb[12].mxu1 %vm751_vm7, %v16070_v53  ;;  %v20802_v53 = vunpack.i.l.bf16 %v24681_v14  ;;  %v29457_v44 = vunpack.i.h.bf16 %v24690_v62 }
 0x3a3   : > { %18141 = vmatpush3.bf16.msra.mxu0 %v29968_v60  ;;  %17247 = vmatprep.mubr.msk.f32.mxu0 %vm751_vm7, %v21714_v34  ;;  %v29973_v60 = vld [vmem:[#allocation6_spill] sm:$0xff]  ;;  %v20797_v34 = vunpack.i.l.bf16 %v24690_v62 }
 0x3a4   : > { %18144 = vmatprep.subr.msk.bf16.mxu0 %vm22552_vm6, %v29972_v31  ;;  %9140 = vmatprep.mubr.f32.mxu1 %v29621_v57  ;;  %v9614_v14 = vsel %vm9604_vm14, %v20808_v9, %v20802_v53 }
 0x3a5   : > { %21540 = vrot.lane.b32.xlu0 %v25904_v35, %s29950_s29  ;;  %21535 = vrot.lane.b32.xlu1 %v29973_v60, %s21890_s30  ;;  %v9612_v1 = vsel %vm9604_vm14, %v20797_v34, %v29457_v44  ;;  %v18450_v44 = vpack.c.bf16 %v9608_v41, %v9605_v36  ;;  %v9611_v62 = vsel %vm9604_vm14, %v20807_v47, %v20797_v34  ;;  %v29982_v36 = vld [vmem:[#allocation74_spill] sm:$0xff]  ;;  %v21720_v41 = vld [vmem:[%s29197_s5 + $0x2b0] sm:$0xff] }
 0x3a6   : > { %17248 = vmatmul.mubr.msk.f32.gmra.mrb[26].mxu0 %vm751_vm7, %v21715_v20  ;;  %16079 = vmatmul.mubr.msk.f32.gmra.mrb[14].mxu1 %vm751_vm7, %v16071_v4  ;;  %v25982_v4 = vpop.permute.xlu0 %21100  ;;  %v25987_v20 = vpop.permute.xlu1 %21095 }
 0x3a7   : > { %18147 = vmatpush3.bf16.msk.msra.mxu0 %vm22552_vm6, %v29972_v31  ;;  %17250 = vmatprep.mubr.msk.f32.mxu0 %vm751_vm7, %v21716_v26  ;;  %v16072_v31 = vld [vmem:[%s29197_s5 + $0x568] sm:$0xff]  ;;  %29975 = vst [vmem:[#allocation69_spill] sm:$0xff] %v25982_v4  ;;  %29976 = vst [vmem:[#allocation70_spill] sm:$0xff] %v25987_v20  ;;  %v21717_v26 = vld [vmem:[%s29197_s5 + $0x298] sm:$0xff] }
 0x3a8   : > { %18159 = vmatprep.subr.bf16.mxu0 %v29974_v28  ;;  %9146 = vmatprep.mubr.f32.mxu1 %v29621_v57  ;;  %v30012_v20 = vld [vmem:[#allocation23_spill] sm:$0xff] }
 0x3a9   : > { %21550 = vrot.lane.b32.xlu0 %v25397_v43, %s21890_s30  ;;  %21545 = vrot.lane.b32.xlu1 %v29977_v42, %s21890_s30 }
 0x3aa   : > { %17251 = vmatmul.mubr.msk.f32.gmra.mrb[28].mxu0 %vm751_vm7, %v21717_v26  ;;  %16080 = vmatmul.mubr.msk.f32.gmra.mrb[16].mxu1 %vm751_vm7, %v16072_v31  ;;  %v9615_v26 = vsel %vm9604_vm14, %v20802_v53, %v29456_v37  ;;  %v29978_v31 = vld [vmem:[#allocation60_spill] sm:$0xff]  ;;  %v26036_v10 = vpop.permute.xlu1 %21105 }
 0x3ab   : > { %17261 = vmatprep.mubr.msk.f32.mxu0 %vm751_vm7, %v21718_v48  ;;  %9415 = vmatprep.mubr.f32.mxu1 %v29621_v57  ;;  %v29979_v37 = vld [vmem:[#allocation8_spill] sm:$0xff]  ;;  %v26030_v48 = vpop.permute.xlu0 %21110  ;;  %v18452_v59 = vpack.c.bf16 %v9615_v26, %v9612_v1  ;;  %29981 = vst [vmem:[#allocation71_spill] sm:$0xff] %v26036_v10  ;;  %v29983_v53 = vunpack.i.h.bf16 %v29978_v31  ;;  %v21721_v26 = vld [vmem:[%s29197_s5 + $0x2b8] sm:$0xff]  ;;  %v9905_v1 = vsel %vm9903_vm0, %v29466_v39, %v29465_v50  ;;  %v21724_v39 = vld [vmem:[%s29197_s5 + $0x2d0] sm:$0xff] }
 0x3ad   : > { %21560 = vrot.lane.b32.xlu0 %v25898_v18, %s29950_s29  ;;  %21555 = vrot.lane.b32.xlu1 %v29979_v37, %s21890_s30 }
 0x3ae   : > { %17262 = vmatmul.mubr.msk.f32.vlgmr.msra.gmra.mrb[24].mxu0 %vm751_vm7, %v21719_v15  ;;  %16096 = vmatmul.mubr.msk.f32.vlgmr.msra.gmra.mrb[6].mxu1 %vm751_vm7, %v16088_v7  ;;  %v29986_v15 = vld [vmem:[#allocation79_spill] sm:$0xff] }
 0x3af   : > { %18161 = vmatpush3.bf16.msra.mxu0 %v29974_v28  ;;  %18451 = vmatpush1.bf16.msra.mxu1 %v18450_v44  ;;  %v16089_v28 = vld [vmem:[%s29197_s5 + $0x578] sm:$0xff]  ;;  %v29984_v44 = vunpack.i.l.bf16 %v29978_v31  ;;  %v26075_v7 = vpop.permute.xlu0 %21120 }
 0x3b0   : > { %18164 = vmatprep.subr.msk.bf16.mxu0 %vm22552_vm6, %v29982_v36  ;;  %18454 = vmatprep.subr.msk.bf16.mxu1 %vm22552_vm6, %v18452_v59  ;;  %v18455_v59 = vpack.c.bf16 %v9614_v14, %v9611_v62  ;;  %v29985_v62 = vld [vmem:[#allocation63_spill] sm:$0xff] }
 0x3b1   : > { %17264 = vmatprep.mubr.msk.f32.mxu0 %vm751_vm7, %v21720_v41  ;;  %v9908_v34 = vsel %vm9903_vm0, %v29984_v44, %v29983_v53  ;;  %9421 = vmatprep.mubr.f32.mxu1 %v29621_v57  ;;  %v20873_v9 = vunpack.i.h.bf16 %v29985_v62  ;;  %v20872_v47 = vunpack.i.l.bf16 %v29985_v62  ;;  %v26080_v41 = vpop.permute.xlu1 %21115  ;;  %v21723_v53 = vld [vmem:[%s29197_s5 + $0x2c8] sm:$0xff]  ;;  %v29987_v44 = vld [vmem:[#allocation75_spill] sm:$0xff]  ;;  %v29991_v62 = vld [vmem:[#allocation50_spill] sm:$0xff] }
 0x3b2   : > { %21570 = vrot.lane.b32.xlu0 %v25898_v18, %s29962_s10  ;;  %21565 = vrot.lane.b32.xlu1 %v25904_v35, %s29962_s10  ;;  %v18468_v14 = vpack.c.bf16 %v9908_v34, %v9905_v1  ;;  %v29988_v34 = vunpack.i.h.bf16 %v29987_v44  ;;  %v20892_v50 = vunpack.i.l.bf16 %v29991_v62  ;;  %v29994_v44 = vld [vmem:[#allocation77_spill] sm:$0xff] }
 0x3b3   : > { %17265 = vmatmul.mubr.msk.f32.gmra.mrb[26].mxu0 %vm751_vm7, %v21721_v26  ;;  %16097 = vmatmul.mubr.msk.f32.gmra.mrb[8].mxu1 %vm751_vm7, %v16089_v28  ;;  %v16090_v28 = vld [vmem:[%s29197_s5 + $0x580] sm:$0xff]  ;;  %v29989_v26 = vld [vmem:[#allocation76_spill] sm:$0xff] }
 0x3b4   : > { %18167 = vmatpush3.bf16.msk.msra.mxu0 %vm22552_vm6, %v29982_v36  ;;  %18457 = vmatpush1.bf16.msk.msra.mxu1 %vm22552_vm6, %v18455_v59  ;;  %v21722_v36 = vld [vmem:[%s29197_s5 + $0x2c0] sm:$0xff]  ;;  %v5427_v59 = vsel %vm5418_vm13, %v29988_v34, %v20872_v47  ;;  %v29990_v1 = vunpack.i.h.bf16 %v29989_v26  ;;  %v16091_v47 = vld [vmem:[%s29197_s5 + $0x588] sm:$0xff]  ;;  %v29995_v34 = vunpack.i.h.bf16 %v29994_v44  ;;  %v29999_v44 = vld [vmem:[#allocation61_spill] sm:$0xff] }
 0x3b5   : > { %18179 = vmatprep.subr.bf16.mxu0 %v29986_v15  ;;  %18469 = vmatprep.subr.bf16.mxu1 %v18468_v14 }
 0x3b6   : > { %17267 = vmatprep.mubr.msk.f32.mxu0 %vm751_vm7, %v21722_v36  ;;  %9427 = vmatprep.mubr.f32.mxu1 %v29621_v57  ;;  %v5430_v14 = vsel %vm5418_vm13, %v29990_v1, %v20873_v9  ;;  %v20893_v36 = vunpack.i.h.bf16 %v29991_v62  ;;  %v26119_v9 = vpop.permute.xlu1 %21125  ;;  %v5720_v26 = vsel %vm5717_vm15, %v29995_v34, %v20892_v50  ;;  %v29996_v1 = vld [vmem:[#allocation78_spill] sm:$0xff]  ;;  %vm10202_vm13 = vcmask 293888  }
 0x3b7   : > { %21580 = vrot.lane.b32.xlu0 %v29969_v63, %s21891_s21  ;;  %21575 = vrot.lane.b32.xlu1 %v29970_v55, %s21891_s21  ;;  %29993 = vst [vmem:[#allocation5_spill] sm:$0xff] %v26119_v9  ;;  %v29997_v62 = vunpack.i.h.bf16 %v29996_v1  ;;  %v29998_v50 = vld [vmem:[#allocation98_spill] sm:$0xff]  ;;  %v20832_v1 = vunpack.i.l.bf16 %v29999_v44 }
 0x3b8   : > { %17268 = vmatmul.mubr.msk.f32.gmra.mrb[28].mxu0 %vm751_vm7, %v21723_v53  ;;  %16098 = vmatmul.mubr.msk.f32.gmra.mrb[10].mxu1 %vm751_vm7, %v16090_v28  ;;  %v26115_v53 = vpop.permute.xlu0 %21130  ;;  %v18182_v28 = vpack.c.bf16 %v5430_v14, %v5427_v59  ;;  %v20823_v59 = vunpack.i.h.bf16 %v29998_v50  ;;  %v20822_v14 = vunpack.i.l.bf16 %v29998_v50  ;;  %v30001_v50 = vld [vmem:[#allocation19_spill] sm:$0xff] }
 0x3b9   : > { %17278 = vmatprep.mubr.msk.f32.mxu0 %vm751_vm7, %v21724_v39  ;;  %9433 = vmatprep.mubr.f32.mxu1 %v29621_v57  ;;  %29992 = vst [vmem:[#allocation4_spill] sm:$0xff] %v26115_v53  ;;  %v21725_v39 = vld [vmem:[%s29197_s5 + $0x2d8] sm:$0xff]  ;;  %v5723_v19 = vsel %vm5717_vm15, %v29997_v62, %v20893_v36  ;;  %v21727_v36 = vld [vmem:[%s29197_s5 + $0x2e8] sm:$0xff]  ;;  %v30004_v53 = vunpack.i.l.bf16 %v29978_v31 }
 0x3ba   : > { %v30000_v62 = vld [vmem:[#allocation16_spill] sm:$0xff] }
 0x3bb   : > { %21590 = vrot.lane.b32.xlu0 %v25904_v35, %s21889_s14  ;;  %21585 = vrot.lane.b32.xlu1 %v29973_v60, %s21891_s21  ;;  %v9907_v34 = vsel %vm9903_vm0, %v20823_v59, %v30004_v53  ;;  %v30009_v53 = vld [vmem:[#allocation80_spill] sm:$0xff] }
 0x3bc   : > { %17279 = vmatmul.mubr.msk.f32.vlgmr.msra.gmra.mrb[24].mxu0 %vm751_vm7, %v21725_v39  ;;  %16099 = vmatmul.mubr.msk.f32.gmra.mrb[12].mxu1 %vm751_vm7, %v16091_v47  ;;  %v21726_v39 = vld [vmem:[%s29197_s5 + $0x2e0] sm:$0xff]  ;;  %v18198_v47 = vpack.c.bf16 %v5723_v19, %v5720_v26  ;;  %v26159_v9 = vpop.permute.xlu0 %21140  ;;  %v26166_v19 = vpop.permute.xlu1 %21135  ;;  %v21728_v26 = vld [vmem:[%s29197_s5 + $0x2f0] sm:$0xff]  ;;  %v30010_v59 = vunpack.i.h.bf16 %v30009_v53 }
 0x3bd   : > { %18181 = vmatpush3.bf16.msra.mxu0 %v29986_v15  ;;  %17281 = vmatprep.mubr.msk.f32.mxu0 %vm751_vm7, %v21726_v39  ;;  %v16092_v15 = vld [vmem:[%s29197_s5 + $0x590] sm:$0xff]  ;;  %v20912_v39 = vunpack.i.l.bf16 %v30000_v62  ;;  %30002 = vst [vmem:[#allocation72_spill] sm:$0xff] %v26166_v19  ;;  %v30005_v19 = vunpack.i.h.bf16 %v29999_v44 }
 0x3be   : > { %18184 = vmatprep.subr.msk.bf16.mxu0 %vm22552_vm6, %v18182_v28  ;;  %9439 = vmatprep.mubr.f32.mxu1 %v29621_v57 }
 0x3bf   : > { %21600 = vrot.lane.b32.xlu0 %v25397_v43, %s21891_s21  ;;  %21595 = vrot.lane.b32.xlu1 %v29977_v42, %s21891_s21  ;;  %v20913_v43 = vunpack.i.h.bf16 %v30000_v62  ;;  %v16093_v62 = vld [vmem:[%s29197_s5 + $0x598] sm:$0xff]  ;;  %v9914_v21 = vsel %vm9903_vm0, %v20832_v1, %v30005_v19  ;;  %v30011_v19 = vunpack.i.h.bf16 %v30001_v50 }
 0x3c0   : > { %17282 = vmatmul.mubr.msk.f32.gmra.mrb[26].mxu0 %vm751_vm7, %v21727_v36  ;;  %16100 = vmatmul.mubr.msk.f32.gmra.mrb[14].mxu1 %vm751_vm7, %v16092_v15  ;;  %v20827_v36 = vunpack.i.l.bf16 %v30001_v50  ;;  %v30016_v50 = vld [vmem:[#allocation20_spill] sm:$0xff] }
 0x3c1   : > { %18187 = vmatpush3.bf16.msk.msra.mxu0 %vm22552_vm6, %v18182_v28  ;;  %17284 = vmatprep.mubr.msk.f32.mxu0 %vm751_vm7, %v21728_v26  ;;  %v30003_v28 = vunpack.i.l.bf16 %v29980_v27  ;;  %v21729_v26 = vld [vmem:[%s29197_s5 + $0x2f8] sm:$0xff]  ;;  %v30006_v27 = vld [vmem:[#allocation47_spill] sm:$0xff]  ;;  %v5729_v10 = vsel %vm5717_vm15, %v30010_v59, %v20913_v43  ;;  %v29483_v59 = vunpack.i.h.bf16 %v30016_v50 }
 0x3c2   : > { %18199 = vmatprep.subr.bf16.mxu0 %v18198_v47  ;;  %9445 = vmatprep.mubr.f32.mxu1 %v29621_v57  ;;  %v20838_v61 = vunpack.i.h.bf16 %v30006_v27  ;;  %v9911_v44 = vsel %vm9903_vm0, %v20827_v36, %v30011_v19  ;;  %v16109_v43 = vld [vmem:[%s29197_s5 + $0x5a0] sm:$0xff] }
 0x3c3   : > { %21610 = vrot.lane.b32.xlu0 %v25898_v18, %s21889_s14  ;;  %v9904_v15 = vsel %vm9903_vm0, %v20822_v14, %v30003_v28  ;;  %21605 = vrot.lane.b32.xlu1 %v29979_v37, %s21891_s21  ;;  %v30007_v14 = vld [vmem:[#allocation81_spill] sm:$0xff] }
 0x3c4   : > { %17285 = vmatmul.mubr.msk.f32.gmra.mrb[28].mxu0 %vm751_vm7, %v21729_v26  ;;  %v30008_v28 = vunpack.i.h.bf16 %v30007_v14  ;;  %16101 = vmatmul.mubr.msk.f32.gmra.mrb[16].mxu1 %vm751_vm7, %v16093_v62  ;;  %v21730_v26 = vld [vmem:[%s29197_s5 + $0x300] sm:$0xff]  ;;  %v20837_v14 = vunpack.i.l.bf16 %v30006_v27  ;;  %v26221_v27 = vpop.permute.xlu1 %21145  ;;  %v18470_v19 = vpack.c.bf16 %v9907_v34, %v9904_v15  ;;  %v9913_v4 = vsel %vm9903_vm0, %v20838_v61, %v20832_v1  ;;  %v21732_v61 = vld [vmem:[%s29197_s5 + $0x310] sm:$0xff] }
 0x3c5   : > { %17295 = vmatprep.mubr.msk.f32.mxu0 %vm751_vm7, %v21730_v26  ;;  %9714 = vmatprep.mubr.f32.mxu1 %v29621_v57  ;;  %v30013_v62 = vld [vmem:[#allocation35_spill] sm:$0xff]  ;;  %v26217_v26 = vpop.permute.xlu0 %21150  ;;  %30015 = vst [vmem:[#allocation73_spill] sm:$0xff] %v26221_v27  ;;  %v18472_v27 = vpack.c.bf16 %v9914_v21, %v9911_v44  ;;  %v16110_v21 = vld [vmem:[%s29197_s5 + $0x5a8] sm:$0xff] }
 0x3c6   : > { %v5726_v31 = vsel %vm5717_vm15, %v30008_v28, %v20912_v39  ;;  %v20918_v39 = vunpack.i.h.bf16 %v30012_v20  ;;  %v20917_v28 = vunpack.i.l.bf16 %v30012_v20  ;;  %30014 = vst [vmem:[#allocation6_spill] sm:$0xff] %v26217_v26  ;;  %v21731_v20 = vld [vmem:[%s29197_s5 + $0x308] sm:$0xff]  ;;  %v9910_v29 = vsel %vm9903_vm0, %v20837_v14, %v20827_v36 }
 0x3c7   : > { %21620 = vrot.lane.b32.xlu0 %v25898_v18, %s21890_s30  ;;  %21615 = vrot.lane.b32.xlu1 %v25904_v35, %s21890_s30  ;;  %v18202_v53 = vpack.c.bf16 %v5729_v10, %v5726_v31  ;;  %v30019_v31 = vld [vmem:[#allocation83_spill] sm:$0xff]  ;;  %v30022_v44 = vunpack.i.l.bf16 %v30013_v62  ;;  %v18475_v36 = vpack.c.bf16 %v9913_v4, %v9910_v29  ;;  %v30024_v29 = vld [vmem:[#allocation65_spill] sm:$0xff]  ;;  %vm10501_vm15 = vcmask 285696  }
 0x3c8   : > { %17296 = vmatmul.mubr.msk.f32.vlgmr.msra.gmra.mrb[24].mxu0 %vm751_vm7, %v21731_v20  ;;  %16117 = vmatmul.mubr.msk.f32.vlgmr.msra.gmra.mrb[6].mxu1 %vm751_vm7, %v16109_v43  ;;  %v30017_v20 = vld [vmem:[#allocation82_spill] sm:$0xff]  ;;  %v30020_v15 = vunpack.i.h.bf16 %v30019_v31  ;;  %v30023_v43 = vunpack.i.l.bf16 %v30016_v50  ;;  %v20923_v4 = vunpack.i.h.bf16 %v30024_v29  ;;  %v21737_v31 = vld [vmem:[%s29197_s5 + $0x328] sm:$0xff] }
 0x3c9   : > { %18201 = vmatpush3.bf16.msra.mxu0 %v18198_v47  ;;  %18471 = vmatpush1.bf16.msra.mxu1 %v18470_v19  ;;  %v30018_v34 = vunpack.i.h.bf16 %v30017_v20  ;;  %v30021_v47 = vunpack.i.h.bf16 %v30013_v62  ;;  %v26259_v14 = vpop.permute.xlu0 %21160  ;;  %v20922_v19 = vunpack.i.l.bf16 %v30024_v29  ;;  %v21735_v20 = vld [vmem:[#allocation2 + $0x88] sm:$0xf]  ;;  %v21739_v29 = vld [vmem:[%s29197_s5 + $0x338] sm:$0xff] }
 0x3ca   : > { %18204 = vmatprep.subr.msk.bf16.mxu0 %vm22552_vm6, %v18202_v53  ;;  %v6022_v26 = vsel %vm6016_vm1, %v30020_v15, %v20918_v39  ;;  %18474 = vmatprep.subr.msk.bf16.mxu1 %vm22552_vm6, %v18472_v27  ;;  %v21733_v39 = vld [vmem:[%s29197_s5 + $0x318] sm:$0xff]  ;;  %v10204_v27 = vsel %vm10202_vm13, %v30023_v43, %v29483_v59  ;;  %v30025_v15 = vld [vmem:[#allocation85_spill] sm:$0xff] }
 0x3cb   : > { %v6019_v10 = vsel %vm6016_vm1, %v30018_v34, %v20917_v28  ;;  %17298 = vmatprep.mubr.msk.f32.mxu0 %vm751_vm7, %v21732_v61  ;;  %v10207_v1 = vsel %vm10202_vm13, %v30022_v44, %v30021_v47  ;;  %9720 = vmatprep.mubr.f32.mxu1 %v29621_v57  ;;  %v21736_v34 = vld [vmem:[#allocation2 + $0x90] sm:$0xf]  ;;  %v30026_v61 = vunpack.i.h.bf16 %v30025_v15  ;;  %v30027_v47 = vld [vmem:[#allocation84_spill] sm:$0xff]  ;;  %v21743_v59 = vld [vmem:[%s29197_s5 + $0x358] sm:$0xff] }
 0x3cc   : > { %21630 = vrot.lane.b32.xlu0 %v29969_v63, %s21892_s19  ;;  %21625 = vrot.lane.b32.xlu1 %v29970_v55, %s21892_s19  ;;  %v18218_v28 = vpack.c.bf16 %v6022_v26, %v6019_v10  ;;  %v26272_v63 = vpop.permute.xlu1 %21155  ;;  %v18488_v55 = vpack.c.bf16 %v10207_v1, %v10204_v27  ;;  %v21734_v26 = vld [vmem:[%s29197_s5 + $0x320] sm:$0xff]  ;;  %v21649_v10 = vpack.i.bf16 %v21736_v34, %v21735_v20  ;;  %v30028_v44 = vunpack.i.h.bf16 %v30027_v47  ;;  %v30035_v15 = vld [vmem:[#allocation48_spill] sm:$0xff] }
 0x3cd   : > { %17299 = vmatmul.mubr.msk.f32.gmra.mrb[26].mxu0 %vm751_vm7, %v21733_v39  ;;  %16118 = vmatmul.mubr.msk.f32.gmra.mrb[8].mxu1 %vm751_vm7, %v16110_v21  ;;  %v6025_v21 = vsel %vm6016_vm1, %v30026_v61, %v20922_v19  ;;  %v30029_v1 = vld [vmem:[#allocation51_spill] sm:$0xff]  ;;  %v26305_v43 = vpop.permute.xlu0 %21170  ;;  %v30030_v19 = vld [vmem:[#allocation86_spill] sm:$0xff]  ;;  %v20853_v61 = vunpack.i.h.bf16 %v30035_v15 }
 0x3ce   : > { %18207 = vmatpush3.bf16.msk.msra.mxu0 %vm22552_vm6, %v18202_v53  ;;  %18477 = vmatpush1.bf16.msk.msra.mxu1 %vm22552_vm6, %v18475_v36  ;;  %v16111_v53 = vld [vmem:[%s29197_s5 + $0x5b0] sm:$0xff]  ;;  %v20943_v36 = vunpack.i.h.bf16 %v30029_v1  ;;  %v20942_v39 = vunpack.i.l.bf16 %v30029_v1  ;;  %v30032_v20 = vld [vmem:[#allocation87_spill] sm:$0xff]  ;;  %v30037_v1 = vld [vmem:[#allocation36_spill] sm:$0xff] }
 0x3cf   : > { %18219 = vmatprep.subr.bf16.mxu0 %v18218_v28  ;;  %18489 = vmatprep.subr.bf16.mxu1 %v18488_v55  ;;  %v16112_v55 = vld [vmem:[%s29197_s5 + $0x5b8] sm:$0xff]  ;;  %v30033_v34 = vunpack.i.h.bf16 %v30032_v20  ;;  %v30041_v20 = vld [vmem:[#allocation9_spill] sm:$0xff] }
 0x3d0   : > { %17301 = vmatprep.mubr.msk.f32.mxu0 %vm751_vm7, %v21734_v26  ;;  %9726 = vmatprep.mubr.f32.mxu1 %v29621_v57  ;;  %v26312_v27 = vpop.permute.xlu1 %21165  ;;  %v30031_v26 = vunpack.i.h.bf16 %v30030_v19 }
 0x3d1   : > { %21640 = vrot.lane.b32.xlu0 %v25904_v35, %s21891_s21  ;;  %21635 = vrot.lane.b32.xlu1 %v29973_v60, %s21892_s19  ;;  %v6028_v35 = vsel %vm6016_vm1, %v30028_v44, %v20923_v4  ;;  %v21738_v60 = vld [vmem:[%s29197_s5 + $0x330] sm:$0xff]  ;;  %v21741_v44 = vld [vmem:[%s29197_s5 + $0x348] sm:$0xff]  ;;  %vm10800_vm1 = vcmask 277504  }
 0x3d2   : > { %17302 = vmatmul.mubr.msk.f32.gmra.mrb[28].mxu0 %vm751_vm7, %v21737_v31  ;;  %16119 = vmatmul.mubr.msk.f32.gmra.mrb[10].mxu1 %vm751_vm7, %v16111_v53  ;;  %v18222_v4 = vpack.c.bf16 %v6028_v35, %v6025_v21  ;;  %v6318_v53 = vsel %vm6315_vm2, %v30031_v26, %v20942_v39  ;;  %v26341_v31 = vpop.permute.xlu0 %21180  ;;  %v20852_v21 = vunpack.i.l.bf16 %v30035_v15  ;;  %v30038_v39 = vld [vmem:[#allocation40_spill] sm:$0xff]  ;;  %v21742_v26 = vld [vmem:[%s29197_s5 + $0x350] sm:$0xff] }
 0x3d3   : > { %17312 = vmatprep.mubr.msk.f32.mxu0 %vm751_vm7, %v21738_v60  ;;  %9732 = vmatprep.mubr.f32.mxu1 %v29621_v57  ;;  %30034 = vst [vmem:[#allocation7_spill] sm:$0xff] %v26341_v31  ;;  %v20963_v60 = vunpack.i.h.bf16 %v30038_v39 }
 0x3d4   : > { %v26348_v47 = vpop.permute.xlu1 %21175 }
 0x3d5   : > { %21650 = vrot.lane.b32.xlu0 %v21649_v10, %s21892_s19  ;;  %21645 = vrot.lane.b32.xlu1 %v29977_v42, %s21892_s19  ;;  %v6321_v10 = vsel %vm6315_vm2, %v30033_v34, %v20943_v36  ;;  %v21740_v42 = vld [vmem:[%s29197_s5 + $0x340] sm:$0xff]  ;;  %30036 = vst [vmem:[#allocation8_spill] sm:$0xff] %v26348_v47  ;;  %v29484_v36 = vunpack.i.h.bf16 %v30037_v1 }
 0x3d6   : > { %17313 = vmatmul.mubr.msk.f32.vlgmr.msra.gmra.mrb[24].mxu0 %vm751_vm7, %v21739_v29  ;;  %16120 = vmatmul.mubr.msk.f32.gmra.mrb[12].mxu1 %vm751_vm7, %v16112_v55  ;;  %v18238_v35 = vpack.c.bf16 %v6321_v10, %v6318_v53  ;;  %v20962_v55 = vunpack.i.l.bf16 %v30038_v39  ;;  %v16114_v53 = vld [vmem:[%s29197_s5 + $0x5c8] sm:$0xff]  ;;  %v30043_v10 = vunpack.i.l.bf16 %v30016_v50  ;;  %v26404_v29 = vpop.permute.xlu0 %21190  ;;  %v30057_v50 = vld [vmem:[#allocation49_spill] sm:$0xff] }
 0x3d7   : > { %18221 = vmatpush3.bf16.msra.mxu0 %v18218_v28  ;;  %17315 = vmatprep.mubr.msk.f32.mxu0 %vm751_vm7, %v21740_v42  ;;  %v16113_v28 = vld [vmem:[%s29197_s5 + $0x5c0] sm:$0xff]  ;;  %v30046_v39 = vld [vmem:[#allocation12_spill] sm:$0xff] }
 0x3d8   : > { %18224 = vmatprep.subr.msk.bf16.mxu0 %vm22552_vm6, %v18222_v4  ;;  %9738 = vmatprep.mubr.f32.mxu1 %v29621_v57  ;;  %v10203_v42 = vsel %vm10202_vm13, %v20852_v21, %v30043_v10 }
 0x3d9   : > { %21660 = vrot.lane.b32.xlu0 %v25898_v18, %s21891_s21  ;;  %21655 = vrot.lane.b32.xlu1 %v29979_v37, %s21892_s19  ;;  %v20862_v18 = vunpack.i.l.bf16 %v30037_v1  ;;  %v30039_v37 = vld [vmem:[#allocation62_spill] sm:$0xff] }
 0x3da   : > { %17316 = vmatmul.mubr.msk.f32.gmra.mrb[26].mxu0 %vm751_vm7, %v21741_v44  ;;  %16121 = vmatmul.mubr.msk.f32.gmra.mrb[14].mxu1 %vm751_vm7, %v16113_v28  ;;  %v20857_v19 = vunpack.i.l.bf16 %v30039_v37  ;;  %v30044_v28 = vunpack.i.l.bf16 %v30013_v62  ;;  %v30045_v44 = vld [vmem:[#allocation11_spill] sm:$0xff]  ;;  %v30056_v1 = vld [vmem:[#allocation22_spill] sm:$0xff] }
 0x3db   : > { %18227 = vmatpush3.bf16.msk.msra.mxu0 %vm22552_vm6, %v18222_v4  ;;  %17318 = vmatprep.mubr.msk.f32.mxu0 %vm751_vm7, %v21742_v26  ;;  %v30040_v4 = vld [vmem:[#allocation10_spill] sm:$0xff]  ;;  %v30047_v26 = vpack.i.bf16 %v30045_v44, %v30046_v39  ;;  %v10213_v21 = vsel %vm10202_vm13, %v20862_v18, %v29484_v36  ;;  %v30051_v44 = vld [vmem:[#allocation88_spill] sm:$0xff]  ;;  %v26420_v36 = vpop.permute.xlu1 %21185  ;;  %v29492_v62 = vunpack.i.h.bf16 %v30056_v1 }
 0x3dc   : > { %18239 = vmatprep.subr.bf16.mxu0 %v18238_v35  ;;  %9744 = vmatprep.mubr.f32.mxu1 %v29621_v57  ;;  %v30042_v34 = vpack.i.bf16 %v30040_v4, %v30041_v20  ;;  %v10206_v15 = vsel %vm10202_vm13, %v20853_v61, %v30044_v28  ;;  %v15276_v4 = vld [vmem:[%s29198_s6 + $0x8] sm:$0xff]  ;;  %v30048_v61 = vld [vmem:[#allocation21_spill] sm:$0xff]  ;;  %v30052_v39 = vunpack.i.h.bf16 %v30051_v44  ;;  %v30054_v44 = vld [vmem:[#allocation26_spill] sm:$0xff]  ;;  %30055 = vst [vmem:[#allocation74_spill] sm:$0xff] %v26420_v36 }
 0x3dd   : > { %21665 = vrot.lane.b32.xlu1 %v30047_v26, %s21892_s19  ;;  %v20868_v20 = vunpack.i.h.bf16 %v30048_v61  ;;  %v18490_v36 = vpack.c.bf16 %v10206_v15, %v10203_v42  ;;  %v15277_v42 = vld [vmem:[%s29198_s6 + $0x10] sm:$0xff]  ;;  %v30058_v15 = vld [vmem:[#allocation90_spill] sm:$0xff] }
 0x3de   : > { %21670 = vrot.lane.b32.xlu0 %v30042_v34, %s21892_s19  ;;  %17319 = vmatmul.mubr.msk.f32.gmra.mrb[28].mxu0 %vm751_vm7, %v21743_v59  ;;  %v30049_v34 = vld [vmem:[#allocation89_spill] sm:$0xff]  ;;  %v6327_v26 = vsel %vm6315_vm2, %v30052_v39, %v20963_v60  ;;  %v21744_v59 = vld [vmem:[%s29197_s5 + $0x360] sm:$0xff]  ;;  %v20867_v60 = vunpack.i.l.bf16 %v30048_v61  ;;  %v20968_v39 = vunpack.i.h.bf16 %v30054_v44  ;;  %v20877_v61 = vunpack.i.l.bf16 %v30057_v50 }
 0x3df   : > { %v30050_v10 = vunpack.i.h.bf16 %v30049_v34  ;;  %16122 = vmatmul.mubr.msk.f32.gmra.mrb[16].mxu1 %vm751_vm7, %v16114_v53  ;;  %17329 = vmatprep.mubr.msk.f32.mxu0 %vm751_vm7, %v21744_v59  ;;  %v15275_v34 = vld [vmem:[%s29198_s6] sm:$0xff]  ;;  %v20967_v53 = vunpack.i.l.bf16 %v30054_v44  ;;  %v16130_v59 = vld [vmem:[%s29197_s5 + $0x5d0] sm:$0xff]  ;;  %v21745_v44 = vld [vmem:[%s29197_s5 + $0x368] sm:$0xff]  ;;  %v10212_v31 = vsel %vm10202_vm13, %v20868_v20, %v20862_v18  ;;  %v30059_v18 = vunpack.i.h.bf16 %v30058_v15 }
 0x3e0   : > { %10013 = vmatprep.mubr.f32.mxu1 %v29621_v57  ;;  %v30060_v20 = vld [vmem:[#allocation91_spill] sm:$0xff] }
 0x3e1   : > { %v6324_v28 = vsel %vm6315_vm2, %v30050_v10, %v20962_v55  ;;  %v30053_v55 = vunpack.i.h.bf16 %v30039_v37  ;;  %15283 = vperm.xlu1 %19753, %v15275_v34   ;;  %v10209_v34 = vsel %vm10202_vm13, %v20867_v60, %v20857_v19  ;;  %vm11099_vm2 = vcmask 146432  }
 0x3e2   : > { %15288 = vperm.xlu0 %19752, %v15276_v4   ;;  %17330 = vmatmul.mubr.msk.f32.vlgmr.msra.gmra.mrb[24].mxu0 %vm751_vm7, %v21745_v44  ;;  %v18242_v47 = vpack.c.bf16 %v6327_v26, %v6324_v28  ;;  %v15278_v4 = vld [vmem:[%s29198_s6 + $0x18] sm:$0xff]  ;;  %v26451_v26 = vpop.permute.xlu0 %21200 }
 0x3e3   : > { %v10210_v10 = vsel %vm10202_vm13, %v20857_v19, %v30053_v55  ;;  %v29493_v55 = vunpack.i.h.bf16 %v30057_v50  ;;  %18241 = vmatpush3.bf16.msra.mxu0 %v18238_v35  ;;  %16138 = vmatmul.mubr.msk.f32.vlgmr.msra.gmra.mrb[6].mxu1 %vm751_vm7, %v16130_v59  ;;  %v6617_v35 = vsel %vm6614_vm4, %v30059_v18, %v20967_v53  ;;  %30062 = vst [vmem:[#allocation63_spill] sm:$0xff] %v26451_v26  ;;  %v16131_v19 = vld [vmem:[%s29197_s5 + $0x5d8] sm:$0xff]  ;;  %v15280_v18 = vld [vmem:[%s29198_s6 + $0x28] sm:$0xff]  ;;  %v30088_v26 = vld [vmem:[#allocation99_spill] sm:$0xff] }
 0x3e4   : > { %v18492_v37 = vpack.c.bf16 %v10213_v21, %v10210_v10  ;;  %18491 = vmatpush1.bf16.msra.mxu1 %v18490_v36  ;;  %18244 = vmatprep.subr.msk.bf16.mxu0 %vm22552_vm6, %v18242_v47  ;;  %v30061_v21 = vunpack.i.h.bf16 %v30060_v20  ;;  %v21746_v36 = vld [vmem:[%s29197_s5 + $0x370] sm:$0xff]  ;;  %v18495_v53 = vpack.c.bf16 %v10212_v31, %v10209_v34  ;;  %v21747_v59 = vld [vmem:[%s29197_s5 + $0x378] sm:$0xff] }
 0x3e5   : > { %17332 = vmatprep.mubr.msk.f32.mxu0 %vm751_vm7, %v21746_v36  ;;  %v10503_v10 = vsel %vm10501_vm15, %v20877_v61, %v29493_v55  ;;  %10019 = vmatprep.mubr.f32.mxu1 %v29621_v57  ;;  %v30067_v36 = vld [vmem:[#allocation93_spill] sm:$0xff]  ;;  %v30082_v55 = vld [vmem:[#allocation94_spill] sm:$0xff] }
 0x3e6   : > { %v6620_v28 = vsel %vm6614_vm4, %v30061_v21, %v20968_v39  ;;  %18494 = vmatprep.subr.msk.bf16.mxu1 %vm22552_vm6, %v18492_v37  ;;  %v30063_v37 = vunpack.i.l.bf16 %v30056_v1  ;;  %v26472_v39 = vpop.permute.xlu1 %21195  ;;  %15298 = vperm.xlu0 %19752, %v15278_v4   ;;  %v30065_v4 = vld [vmem:[#allocation25_spill] sm:$0xff]  ;;  %v26499_v20 = vpop.permute.xlu0 %21210 }
 0x3e7   : > { %30064 = vst [vmem:[#allocation79_spill] sm:$0xff] %v26472_v39  ;;  %15293 = vperm.xlu1 %19753, %v15277_v42   ;;  %17333 = vmatmul.mubr.msk.f32.gmra.mrb[26].mxu0 %vm751_vm7, %v21747_v59  ;;  %v18258_v44 = vpack.c.bf16 %v6620_v28, %v6617_v35  ;;  %v20973_v31 = vunpack.i.h.bf16 %v30065_v4  ;;  %v20972_v34 = vunpack.i.l.bf16 %v30065_v4  ;;  %v15279_v42 = vld [vmem:[%s29198_s6 + $0x20] sm:$0xff]  ;;  %v21749_v28 = vld [vmem:[%s29197_s5 + $0x388] sm:$0xff]  ;;  %v20993_v59 = vunpack.i.h.bf16 %v25559_v30 }
 0x3e8   : > { %v10506_v60 = vsel %vm10501_vm15, %v30063_v37, %v29492_v62  ;;  %18247 = vmatpush3.bf16.msk.msra.mxu0 %vm22552_vm6, %v18242_v47  ;;  %16139 = vmatmul.mubr.msk.f32.gmra.mrb[8].mxu1 %vm751_vm7, %v16131_v19  ;;  %v21748_v47 = vld [vmem:[%s29197_s5 + $0x380] sm:$0xff]  ;;  %v30068_v19 = vunpack.i.h.bf16 %v30067_v36  ;;  %v30069_v37 = vld [vmem:[#allocation92_spill] sm:$0xff] }
 0x3e9   : > { %v18508_v15 = vpack.c.bf16 %v10506_v60, %v10503_v10  ;;  %18497 = vmatpush1.bf16.msk.msra.mxu1 %vm22552_vm6, %v18495_v53  ;;  %18259 = vmatprep.subr.bf16.mxu0 %v18258_v44  ;;  %v16132_v35 = vld [vmem:[%s29197_s5 + $0x5e0] sm:$0xff]  ;;  %v30070_v60 = vunpack.i.h.bf16 %v30069_v37  ;;  %v16133_v4 = vld [vmem:[%s29197_s5 + $0x5e8] sm:$0xff] }
 0x3ea   : > { %17335 = vmatprep.mubr.msk.f32.mxu0 %vm751_vm7, %v21748_v47  ;;  %10025 = vmatprep.mubr.f32.mxu1 %v29621_v57  ;;  %v26502_v21 = vpop.permute.xlu1 %21205  ;;  %v6623_v10 = vsel %vm6614_vm4, %v30068_v19, %v20972_v34  ;;  %v30071_v34 = vld [vmem:[#allocation27_spill] sm:$0xff] }
 0x3eb   : > { %18509 = vmatprep.subr.bf16.mxu1 %v18508_v15  ;;  %15308 = vperm.xlu0 %19752, %v15280_v18   ;;  %30066 = vst [vmem:[#allocation75_spill] sm:$0xff] %v26502_v21  ;;  %v6626_v53 = vsel %vm6614_vm4, %v30070_v60, %v20973_v31  ;;  %v20992_v15 = vunpack.i.l.bf16 %v25559_v30  ;;  %v21750_v18 = vld [vmem:[%s29197_s5 + $0x390] sm:$0xff]  ;;  %v21751_v31 = vld [vmem:[%s29197_s5 + $0x398] sm:$0xff]  ;;  %v21752_v19 = vld [vmem:[%s29197_s5 + $0x3a0] sm:$0xff]  ;;  %vm11398_vm4 = vcmask 138240  }
 0x3ec   : > { %15303 = vperm.xlu1 %19753, %v15279_v42   ;;  %17336 = vmatmul.mubr.msk.f32.gmra.mrb[28].mxu0 %vm751_vm7, %v21749_v28  ;;  %v18262_v30 = vpack.c.bf16 %v6626_v53, %v6623_v10  ;;  %v30072_v42 = vunpack.i.h.bf16 %v30071_v34  ;;  %v30075_v10 = vld [vmem:[#allocation37_spill] sm:$0xff]  ;;  %v30076_v53 = vld [vmem:[#allocation38_spill] sm:$0xff]  ;;  %v21753_v34 = vld [vmem:[%s29197_s5 + $0x3a8] sm:$0xff] }
 0x3ed   : > { %16140 = vmatmul.mubr.msk.f32.gmra.mrb[10].mxu1 %vm751_vm7, %v16132_v35  ;;  %17346 = vmatprep.mubr.msk.f32.mxu0 %vm751_vm7, %v21750_v18  ;;  %v30073_v35 = vld [vmem:[#allocation28_spill] sm:$0xff]  ;;  %v20888_v37 = vunpack.i.h.bf16 %v30075_v10  ;;  %v20887_v60 = vunpack.i.l.bf16 %v30075_v10  ;;  %v30077_v18 = vld [vmem:[#allocation102_spill] sm:$0xff] }
 0x3ee   : > { %10031 = vmatprep.mubr.f32.mxu1 %v29621_v57  ;;  %v6916_v47 = vsel %vm6913_vm8, %v30072_v42, %v20992_v15  ;;  %v30074_v28 = vunpack.i.h.bf16 %v30073_v35  ;;  %v29494_v15 = vunpack.i.h.bf16 %v30076_v53  ;;  %v21013_v35 = vunpack.i.h.bf16 %v25630_v56 }
 0x3f0   : > { %17347 = vmatmul.mubr.msk.f32.vlgmr.msra.gmra.mrb[24].mxu0 %vm751_vm7, %v21751_v31  ;;  %v6919_v36 = vsel %vm6913_vm8, %v30074_v28, %v20993_v59  ;;  %v20902_v59 = vunpack.i.l.bf16 %v30076_v53  ;;  %v20897_v31 = vunpack.i.l.bf16 %v30077_v18  ;;  %v21012_v28 = vunpack.i.l.bf16 %v25630_v56 }
 0x3f1   : > { %18261 = vmatpush3.bf16.msra.mxu0 %v18258_v44  ;;  %16141 = vmatmul.mubr.msk.f32.gmra.mrb[12].mxu1 %vm751_vm7, %v16133_v4  ;;  %v16134_v44 = vld [vmem:[%s29197_s5 + $0x5f0] sm:$0xff]  ;;  %v29496_v4 = vunpack.i.h.bf16 %v30077_v18  ;;  %v18278_v42 = vpack.c.bf16 %v6919_v36, %v6916_v47  ;;  %v16135_v47 = vld [vmem:[%s29197_s5 + $0x5f8] sm:$0xff]  ;;  %v30078_v36 = vunpack.i.l.bf16 %v30056_v1  ;;  %v21017_v18 = vunpack.i.l.bf16 %v25692_v54 }
 0x3f2   : > { %18264 = vmatprep.subr.msk.bf16.mxu0 %vm22552_vm6, %v18262_v30  ;;  %17349 = vmatprep.mubr.msk.f32.mxu0 %vm751_vm7, %v21752_v19  ;;  %v21754_v19 = vld [vmem:[%s29197_s5 + $0x3b0] sm:$0xff] }
 0x3f3   : > { %10037 = vmatprep.mubr.f32.mxu1 %v29621_v57  ;;  %v10505_v56 = vsel %vm10501_vm15, %v20888_v37, %v30078_v36  ;;  %v10509_v10 = vsel %vm10501_vm15, %v20897_v31, %v29496_v4  ;;  %v21755_v37 = vld [vmem:[%s29197_s5 + $0x3b8] sm:$0xff]  ;;  %v21018_v4 = vunpack.i.h.bf16 %v25692_v54  ;;  %v16151_v54 = vld [vmem:[%s29197_s5 + $0x600] sm:$0xff] }
 0x3f4   : > { %17350 = vmatmul.mubr.msk.f32.gmra.mrb[26].mxu0 %vm751_vm7, %v21753_v34  ;;  %v30079_v34 = vld [vmem:[#allocation64_spill] sm:$0xff] }
 0x3f5   : > { %18267 = vmatpush3.bf16.msk.msra.mxu0 %vm22552_vm6, %v18262_v30  ;;  %16142 = vmatmul.mubr.msk.f32.gmra.mrb[14].mxu1 %vm751_vm7, %v16134_v44  ;;  %v10502_v30 = vsel %vm10501_vm15, %v20887_v60, %v20877_v61  ;;  %v10512_v44 = vsel %vm10501_vm15, %v20902_v59, %v29494_v15  ;;  %v20907_v62 = vunpack.i.l.bf16 %v30079_v34  ;;  %v30080_v61 = vld [vmem:[#allocation95_spill] sm:$0xff]  ;;  %v30083_v15 = vunpack.i.h.bf16 %v30082_v55  ;;  %v30086_v55 = vld [vmem:[#allocation96_spill] sm:$0xff] }
 0x3f6   : > { %18279 = vmatprep.subr.bf16.mxu0 %v18278_v42  ;;  %17352 = vmatprep.mubr.msk.f32.mxu0 %vm751_vm7, %v21754_v19  ;;  %v20908_v19 = vunpack.i.h.bf16 %v30079_v34  ;;  %v30081_v60 = vunpack.i.h.bf16 %v30080_v61  ;;  %v21756_v34 = vld [vmem:[%s29197_s5 + $0x3c0] sm:$0xff]  ;;  %v18512_v61 = vpack.c.bf16 %v10512_v44, %v10509_v10  ;;  %v30087_v21 = vunpack.i.h.bf16 %v30086_v55  ;;  %v16153_v55 = vld [vmem:[%s29197_s5 + $0x610] sm:$0xff] }
 0x3f7   : > { %10043 = vmatprep.mubr.f32.mxu1 %v29621_v57  ;;  %v6925_v53 = vsel %vm6913_vm8, %v30083_v15, %v21013_v35  ;;  %v10508_v15 = vsel %vm10501_vm15, %v20907_v62, %v20897_v31  ;;  %v21023_v10 = vunpack.i.h.bf16 %v25675_v22 }
 0x3f8   : > { %17353 = vmatmul.mubr.msk.f32.gmra.mrb[28].mxu0 %vm751_vm7, %v21755_v37  ;;  %v6922_v36 = vsel %vm6913_vm8, %v30081_v60, %v21012_v28  ;;  %v30084_v37 = vld [vmem:[#allocation24_spill] sm:$0xff]  ;;  %v10511_v35 = vsel %vm10501_vm15, %v20908_v19, %v20902_v59  ;;  %v7215_v39 = vsel %vm7212_vm9, %v30087_v21, %v21017_v18  ;;  %v30089_v59 = vunpack.i.h.bf16 %v30088_v26 }
 0x3f9   : > { %16143 = vmatmul.mubr.msk.f32.gmra.mrb[16].mxu1 %vm751_vm7, %v16135_v47  ;;  %17363 = vmatprep.mubr.msk.f32.mxu0 %vm751_vm7, %v21756_v34  ;;  %v30085_v60 = vld [vmem:[#allocation104_spill] sm:$0xff]  ;;  %v18510_v34 = vpack.c.bf16 %v10505_v56, %v10502_v30  ;;  %v18282_v28 = vpack.c.bf16 %v6925_v53, %v6922_v36  ;;  %v30092_v21 = vunpack.i.h.bf16 %v30084_v37  ;;  %v30093_v26 = vunpack.i.l.bf16 %v30084_v37  ;;  %v21759_v30 = vld [vmem:[%s29197_s5 + $0x3d8] sm:$0xff] }
 0x3fa   : > { %10312 = vmatprep.mubr.f32.mxu1 %v29621_v57  ;;  %v21757_v47 = vld [vmem:[%s29197_s5 + $0x3c8] sm:$0xff]  ;;  %v7218_v19 = vsel %vm7212_vm9, %v30089_v59, %v21018_v4  ;;  %v30090_v62 = vunpack.i.h.bf16 %v30085_v60  ;;  %v30091_v31 = vunpack.i.l.bf16 %v30085_v60  ;;  %v21758_v4 = vld [vmem:[%s29197_s5 + $0x3d0] sm:$0xff]  ;;  %v18515_v56 = vpack.c.bf16 %v10511_v35, %v10508_v15 }
 0x3fb   : > { %v16152_v53 = vld [vmem:[%s29197_s5 + $0x608] sm:$0xff]  ;;  %v10805_v18 = vsel %vm10800_vm1, %v30093_v26, %v30092_v21  ;;  %v18298_v44 = vpack.c.bf16 %v7218_v19, %v7215_v39  ;;  %v21022_v36 = vunpack.i.l.bf16 %v25675_v22  ;;  %v21760_v39 = vld [vmem:[%s29197_s5 + $0x3e0] sm:$0xff]  ;;  %v30096_v35 = vld [vmem:[#allocation13_spill] sm:$0xff]  ;;  %v21043_v59 = vunpack.i.h.bf16 %v25754_v12 }
 0x3fc   : > { %17364 = vmatmul.mubr.msk.f32.vlgmr.msra.gmra.mrb[24].mxu0 %vm751_vm7, %v21757_v47  ;;  %v21761_v22 = vld [vmem:[%s29197_s5 + $0x3e8] sm:$0xff]  ;;  %v30097_v47 = vunpack.i.h.bf16 %v30096_v35  ;;  %v21042_v19 = vunpack.i.l.bf16 %v25754_v12  ;;  %vm11697_vm8 = vcmask 130048  }
 0x3fd   : > { %18281 = vmatpush3.bf16.msra.mxu0 %v18278_v42  ;;  %16159 = vmatmul.mubr.msk.f32.vlgmr.msra.gmra.mrb[6].mxu1 %vm751_vm7, %v16151_v54  ;;  %v10802_v42 = vsel %vm10800_vm1, %v30091_v31, %v30090_v62  ;;  %v16154_v62 = vld [vmem:[%s29197_s5 + $0x618] sm:$0xff]  ;;  %v21765_v35 = vld [vmem:[%s29197_s5 + $0x408] sm:$0xff] }
 0x3fe   : > { %18511 = vmatpush1.bf16.msra.mxu1 %v18510_v34  ;;  %18284 = vmatprep.subr.msk.bf16.mxu0 %vm22552_vm6, %v18282_v28  ;;  %v7224_v34 = vsel %vm7212_vm9, %v30097_v47, %v21023_v10  ;;  %v21763_v31 = vld [vmem:[%s29197_s5 + $0x3f8] sm:$0xff]  ;;  %v30102_v10 = vld [vmem:[#allocation52_spill] sm:$0xff] }
 0x3ff   : > { %18514 = vmatprep.subr.msk.bf16.mxu1 %vm22552_vm6, %v18512_v61  ;;  %17366 = vmatprep.mubr.msk.f32.mxu0 %vm751_vm7, %v21758_v4  ;;  %v18528_v61 = vpack.c.bf16 %v10805_v18, %v10802_v42  ;;  %v30098_v42 = vld [vmem:[#allocation54_spill] sm:$0xff]  ;;  %v30100_v18 = vld [vmem:[#allocation55_spill] sm:$0xff] }
 0x400   : > { %10318 = vmatprep.mubr.f32.mxu1 %v29621_v57  ;;  %17367 = vmatmul.mubr.msk.f32.gmra.mrb[26].mxu0 %vm751_vm7, %v21759_v30  ;;  %v30099_v21 = vunpack.i.h.bf16 %v30098_v42  ;;  %v30101_v4 = vunpack.i.h.bf16 %v30100_v18  ;;  %v21764_v30 = vld [vmem:[%s29197_s5 + $0x400] sm:$0xff] }
 0x401   : > { %18287 = vmatpush3.bf16.msk.msra.mxu0 %vm22552_vm6, %v18282_v28  ;;  %16160 = vmatmul.mubr.msk.f32.gmra.mrb[8].mxu1 %vm751_vm7, %v16152_v53  ;;  %v30094_v28 = vld [vmem:[#allocation14_spill] sm:$0xff]  ;;  %v21762_v53 = vld [vmem:[%s29197_s5 + $0x3f0] sm:$0xff] }
 0x402   : > { %18517 = vmatpush1.bf16.msk.msra.mxu1 %vm22552_vm6, %v18515_v56  ;;  %18299 = vmatprep.subr.bf16.mxu0 %v18298_v44  ;;  %v30095_v15 = vunpack.i.h.bf16 %v30094_v28  ;;  %v7514_v26 = vsel %vm7511_vm11, %v30099_v21, %v21042_v19  ;;  %v7517_v56 = vsel %vm7511_vm11, %v30101_v4, %v21043_v59  ;;  %v30104_v28 = vld [vmem:[#allocation39_spill] sm:$0xff]  ;;  %v21062_v59 = vunpack.i.l.bf16 %v25819_v58  ;;  %v21766_v19 = vld [vmem:[%s29197_s5 + $0x410] sm:$0xff] }
 0x403   : > { %18529 = vmatprep.subr.bf16.mxu1 %v18528_v61  ;;  %17369 = vmatprep.mubr.msk.f32.mxu0 %vm751_vm7, %v21760_v39  ;;  %v20937_v61 = vunpack.i.l.bf16 %v30102_v10  ;;  %v18318_v47 = vpack.c.bf16 %v7517_v56, %v7514_v26  ;;  %v30107_v26 = vld [vmem:[#allocation110_spill] sm:$0xff] }
 0x404   : > { %10324 = vmatprep.mubr.f32.mxu1 %v29621_v57  ;;  %17370 = vmatmul.mubr.msk.f32.gmra.mrb[28].mxu0 %vm751_vm7, %v21761_v22  ;;  %v7221_v54 = vsel %vm7212_vm9, %v30095_v15, %v21022_v36  ;;  %v20938_v36 = vunpack.i.h.bf16 %v30102_v10  ;;  %v29502_v15 = vunpack.i.h.bf16 %v30104_v28  ;;  %v20958_v18 = vunpack.i.h.bf16 %v30107_v26  ;;  %v21767_v56 = vld [vmem:[%s29197_s5 + $0x418] sm:$0xff] }
 0x405   : > { %16161 = vmatmul.mubr.msk.f32.gmra.mrb[10].mxu1 %vm751_vm7, %v16153_v55  ;;  %17380 = vmatprep.mubr.msk.f32.mxu0 %vm751_vm7, %v21762_v53  ;;  %v18302_v12 = vpack.c.bf16 %v7224_v34, %v7221_v54  ;;  %v30103_v55 = vld [vmem:[#allocation32_spill] sm:$0xff]  ;;  %v20947_v54 = vunpack.i.l.bf16 %v30104_v28  ;;  %v21063_v34 = vunpack.i.h.bf16 %v25819_v58  ;;  %v20957_v4 = vunpack.i.l.bf16 %v30107_v26  ;;  %v30112_v26 = vld [vmem:[#allocation66_spill] sm:$0xff] }
 0x406   : > { %10330 = vmatprep.mubr.f32.mxu1 %v29621_v57  ;;  %v29501_v39 = vunpack.i.h.bf16 %v30103_v55  ;;  %v20952_v22 = vunpack.i.l.bf16 %v30103_v55  ;;  %v16156_v53 = vld [vmem:[%s29197_s5 + $0x628] sm:$0xff]  ;;  %vm30166_vm9 = vcmask 326656  }
 0x407   : > { %v10808_v21 = vsel %vm10800_vm1, %v20947_v54, %v29502_v15  ;;  %v10807_v15 = vsel %vm10800_vm1, %v20957_v4, %v20947_v54 }
 0x408   : > { %17381 = vmatmul.mubr.msk.f32.vlgmr.msra.gmra.mrb[24].mxu0 %vm751_vm7, %v21763_v31  ;;  %v30106_v31 = vunpack.i.l.bf16 %v30085_v60  ;;  %v10811_v42 = vsel %vm10800_vm1, %v20952_v22, %v29501_v39 }
 0x409   : > { %18301 = vmatpush3.bf16.msra.mxu0 %v18298_v44  ;;  %16162 = vmatmul.mubr.msk.f32.gmra.mrb[12].mxu1 %vm751_vm7, %v16154_v62  ;;  %v16155_v44 = vld [vmem:[%s29197_s5 + $0x620] sm:$0xff]  ;;  %v30105_v62 = vunpack.i.l.bf16 %v30084_v37  ;;  %v18532_v39 = vpack.c.bf16 %v10811_v42, %v10808_v21  ;;  %v30120_v42 = vunpack.i.h.bf16 %v30112_v26  ;;  %v30121_v21 = vunpack.i.l.bf16 %v30112_v26 }
 0x40a   : > { %18304 = vmatprep.subr.msk.bf16.mxu0 %vm22552_vm6, %v18302_v12  ;;  %17383 = vmatprep.mubr.msk.f32.mxu0 %vm751_vm7, %v21764_v30  ;;  %v30108_v30 = vld [vmem:[#allocation101_spill] sm:$0xff] }
 0x40b   : > { %10336 = vmatprep.mubr.f32.mxu1 %v29621_v57  ;;  %v10804_v58 = vsel %vm10800_vm1, %v20938_v36, %v30105_v62  ;;  %v30110_v36 = vld [vmem:[#allocation100_spill] sm:$0xff]  ;;  %v21067_v62 = vunpack.i.l.bf16 %v25875_v2  ;;  %v11104_v4 = vsel %vm11099_vm2, %v30121_v21, %v30120_v42  ;;  %v30126_v42 = vld [vmem:[#allocation3_spill] sm:$0xff] }
 0x40c   : > { %17384 = vmatmul.mubr.msk.f32.gmra.mrb[26].mxu0 %vm751_vm7, %v21765_v35  ;;  %v30127_v21 = vunpack.i.h.bf16 %v30126_v42 }
 0x40d   : > { %18307 = vmatpush3.bf16.msk.msra.mxu0 %vm22552_vm6, %v18302_v12  ;;  %16163 = vmatmul.mubr.msk.f32.gmra.mrb[14].mxu1 %vm751_vm7, %v16155_v44  ;;  %v10801_v12 = vsel %vm10800_vm1, %v20937_v61, %v30106_v31  ;;  %v30109_v44 = vunpack.i.h.bf16 %v30108_v30  ;;  %v30111_v61 = vunpack.i.h.bf16 %v30110_v36  ;;  %v21768_v31 = vld [vmem:[%s29197_s5 + $0x420] sm:$0xff]  ;;  %v21769_v36 = vld [vmem:[%s29197_s5 + $0x428] sm:$0xff] }
 0x40e   : > { %18319 = vmatprep.subr.bf16.mxu0 %v18318_v47  ;;  %17386 = vmatprep.mubr.msk.f32.mxu0 %vm751_vm7, %v21766_v19  ;;  %v21068_v19 = vunpack.i.h.bf16 %v25875_v2  ;;  %v30113_v30 = vld [vmem:[#allocation67_spill] sm:$0xff]  ;;  %v16172_v2 = vld [vmem:[%s29197_s5 + $0x630] sm:$0xff] }
 0x40f   : > { %10342 = vmatprep.mubr.f32.mxu1 %v29621_v57  ;;  %v7520_v10 = vsel %vm7511_vm11, %v30109_v44, %v21062_v59  ;;  %v7523_v35 = vsel %vm7511_vm11, %v30111_v61, %v21063_v34  ;;  %v18530_v61 = vpack.c.bf16 %v10804_v58, %v10801_v12  ;;  %v30114_v59 = vld [vmem:[#allocation41_spill] sm:$0xff]  ;;  %v30116_v44 = vld [vmem:[#allocation42_spill] sm:$0xff]  ;;  %v30118_v54 = vunpack.i.h.bf16 %v30113_v30  ;;  %vm30168_vm11 = vmmov %vm30166_vm9 }
 0x410   : > { %17387 = vmatmul.mubr.msk.f32.gmra.mrb[28].mxu0 %vm751_vm7, %v21767_v56  ;;  %v30115_v56 = vunpack.i.h.bf16 %v30114_v59  ;;  %v16173_v58 = vld [vmem:[%s29197_s5 + $0x638] sm:$0xff] }
 0x411   : > { %16164 = vmatmul.mubr.msk.f32.gmra.mrb[16].mxu1 %vm751_vm7, %v16156_v53  ;;  %17397 = vmatprep.mubr.msk.f32.mxu0 %vm751_vm7, %v21768_v31  ;;  %v10810_v53 = vsel %vm10800_vm1, %v20958_v18, %v20952_v22  ;;  %v18322_v31 = vpack.c.bf16 %v7523_v35, %v7520_v10  ;;  %v30117_v22 = vunpack.i.h.bf16 %v30116_v44  ;;  %v21770_v10 = vld [vmem:[%s29197_s5 + $0x430] sm:$0xff]  ;;  %v21773_v44 = vld [vmem:[%s29197_s5 + $0x448] sm:$0xff] }
 0x412   : > { %10611 = vmatprep.mubr.f32.mxu1 %v29621_v57  ;;  %v7813_v34 = vsel %vm7810_vm5, %v30115_v56, %v21067_v62  ;;  %v18535_v35 = vpack.c.bf16 %v10810_v53, %v10807_v15  ;;  %v21073_v56 = vunpack.i.h.bf16 %v25859_v16  ;;  %v26815_v15 = vld [vmem:[%s29197_s5 + $0x640] sm:$0xff] }
 0x413   : > { %v7816_v18 = vsel %vm7810_vm5, %v30117_v22, %v21068_v19  ;;  %v21771_v19 = vld [vmem:[%s29197_s5 + $0x438] sm:$0xff]  ;;  %v21093_v22 = vunpack.i.h.bf16 %v25939_v40 }
 0x414   : > { %17398 = vmatmul.mubr.msk.f32.vlgmr.msra.gmra.mrb[24].mxu0 %vm751_vm7, %v21769_v36  ;;  %v18338_v62 = vpack.c.bf16 %v7816_v18, %v7813_v34  ;;  %v30122_v34 = vld [vmem:[#allocation30_spill] sm:$0xff]  ;;  %v30124_v36 = vld [vmem:[#allocation29_spill] sm:$0xff]  ;;  %v21092_v18 = vunpack.i.l.bf16 %v25939_v40 }
 0x415   : > { %18321 = vmatpush3.bf16.msra.mxu0 %v18318_v47  ;;  %16180 = vmatmul.mubr.msk.f32.vlgmr.msra.gmra.mrb[6].mxu1 %vm751_vm7, %v16172_v2  ;;  %v30119_v47 = vunpack.i.l.bf16 %v30113_v30  ;;  %v30123_v2 = vunpack.i.h.bf16 %v30122_v34  ;;  %v21775_v40 = vld [vmem:[%s29197_s5 + $0x458] sm:$0xff]  ;;  %v21002_v34 = vunpack.i.l.bf16 %v25594_v13 }
 0x416   : > { %18531 = vmatpush1.bf16.msra.mxu1 %v18530_v61  ;;  %18324 = vmatprep.subr.msk.bf16.mxu0 %vm22552_vm6, %v18322_v31  ;;  %v30125_v61 = vunpack.i.h.bf16 %v30124_v36  ;;  %v21777_v36 = vld [vmem:[%s29197_s5 + $0x468] sm:$0xff] }
 0x417   : > { %v11101_v12 = vsel %vm11099_vm2, %v30119_v47, %v30118_v54  ;;  %18534 = vmatprep.subr.msk.bf16.mxu1 %vm22552_vm6, %v18532_v39  ;;  %17400 = vmatprep.mubr.msk.f32.mxu0 %vm751_vm7, %v21770_v10  ;;  %v21072_v39 = vunpack.i.l.bf16 %v25859_v16  ;;  %v21772_v16 = vld [vmem:[%s29197_s5 + $0x440] sm:$0xff]  ;;  %v26844_v54 = vld [vmem:[%s29197_s5 + $0x648] sm:$0xff] }
 0x418   : > { %10617 = vmatprep.mubr.f32.mxu1 %v29621_v57  ;;  %17401 = vmatmul.mubr.msk.f32.gmra.mrb[26].mxu0 %vm751_vm7, %v21771_v19  ;;  %v18548_v59 = vpack.c.bf16 %v11104_v4, %v11101_v12  ;;  %v26850_v12 = vpop.permute.xlu1 %21215  ;;  %v8112_v4 = vsel %vm8109_vm10, %v30127_v21, %v21092_v18  ;;  %v30128_v10 = vld [vmem:[#allocation103_spill] sm:$0xff]  ;;  %v26897_v18 = vld [vmem:[%s29197_s5 + $0x658] sm:$0xff] }
 0x419   : > { %18327 = vmatpush3.bf16.msk.msra.mxu0 %vm22552_vm6, %v18322_v31  ;;  %16181 = vmatmul.mubr.msk.f32.gmra.mrb[8].mxu1 %vm751_vm7, %v16173_v58  ;;  %v7819_v53 = vsel %vm7810_vm5, %v30123_v2, %v21072_v39  ;;  %v7822_v31 = vsel %vm7810_vm5, %v30125_v61, %v21073_v56  ;;  %v21774_v58 = vld [vmem:[%s29197_s5 + $0x450] sm:$0xff]  ;;  %v21776_v56 = vld [vmem:[%s29197_s5 + $0x460] sm:$0xff]  ;;  %v20988_v39 = vunpack.i.h.bf16 %v25570_v0  ;;  %v29504_v2 = vunpack.i.h.bf16 %v25603_v49  ;;  %30130 = vst [vmem:[#allocation76_spill] sm:$0xff] %v26897_v18  ;;  %vm30180_vm5 = vmmov %vm30166_vm9 }
 0x41a   : > { %18537 = vmatpush1.bf16.msk.msra.mxu1 %vm22552_vm6, %v18535_v35  ;;  %18339 = vmatprep.subr.bf16.mxu0 %v18338_v62  ;;  %v18342_v47 = vpack.c.bf16 %v7822_v31, %v7819_v53  ;;  %v30129_v35 = vunpack.i.h.bf16 %v30128_v10  ;;  %v20997_v53 = vunpack.i.l.bf16 %v25603_v49  ;;  %v21112_v31 = vunpack.i.l.bf16 %v26030_v48 }
 0x41b   : > { %18549 = vmatprep.subr.bf16.mxu1 %v18548_v59  ;;  %17403 = vmatprep.mubr.msk.f32.mxu0 %vm751_vm7, %v21772_v16  ;;  %v20987_v59 = vunpack.i.l.bf16 %v25570_v0  ;;  %v29503_v16 = vunpack.i.h.bf16 %v25594_v13  ;;  %v21113_v0 = vunpack.i.h.bf16 %v26030_v48  ;;  %v30131_v48 = vunpack.i.l.bf16 %v30112_v26 }
 0x41c   : > { %10623 = vmatprep.mubr.f32.mxu1 %v29621_v57  ;;  %17404 = vmatmul.mubr.msk.f32.gmra.mrb[28].mxu0 %vm751_vm7, %v21773_v44  ;;  %v8115_v19 = vsel %vm8109_vm10, %v30129_v35, %v21093_v22  ;;  %v26874_v44 = vpop.permute.xlu0 %21220  ;;  %v21778_v22 = vld [vmem:[%s29197_s5 + $0x470] sm:$0xff]  ;;  %v26905_v42 = vpop.permute.xlu1 %21225  ;;  %v21008_v10 = vunpack.i.h.bf16 %v25635_v24  ;;  %v21007_v35 = vunpack.i.l.bf16 %v25635_v24  ;;  %v21780_v24 = vld [vmem:[%s29197_s5 + $0x480] sm:$0xff] }
 0x41d   : > { %16182 = vmatmul.mubr.msk.f32.gmra.mrb[10].mxu1 %vm751_vm7, %v26815_v15  ;;  %17414 = vmatprep.mubr.msk.f32.mxu0 %vm751_vm7, %v21774_v58  ;;  %v18358_v61 = vpack.c.bf16 %v8115_v19, %v8112_v4  ;;  %v11103_v58 = vsel %vm11099_vm2, %v20988_v39, %v30131_v48  ;;  %v11110_v21 = vsel %vm11099_vm2, %v21002_v34, %v29503_v16  ;;  %v21779_v19 = vld [vmem:[%s29197_s5 + $0x478] sm:$0xff]  ;;  %v21117_v16 = vunpack.i.l.bf16 %v26080_v41 }
 0x41e   : > { %10629 = vmatprep.mubr.f32.mxu1 %v29621_v57  ;;  %v11107_v4 = vsel %vm11099_vm2, %v20997_v53, %v29504_v2 }
 0x420   : > { %17415 = vmatmul.mubr.msk.f32.vlgmr.msra.gmra.mrb[24].mxu0 %vm751_vm7, %v21775_v40  ;;  %v30132_v40 = vunpack.i.l.bf16 %v30113_v30  ;;  %v26928_v2 = vpop.permute.xlu0 %21230 }
 0x421   : > { %18341 = vmatpush3.bf16.msra.mxu0 %v18338_v62  ;;  %16183 = vmatmul.mubr.msk.f32.gmra.mrb[12].mxu1 %vm751_vm7, %v26844_v54  ;;  %v26869_v62 = vld [vmem:[%s29197_s5 + $0x650] sm:$0xff] }
 0x422   : > { %18344 = vmatprep.subr.msk.bf16.mxu0 %vm22552_vm6, %v18342_v47  ;;  %17417 = vmatprep.mubr.msk.f32.mxu0 %vm751_vm7, %v21776_v56  ;;  %v30133_v56 = vld [vmem:[#allocation57_spill] sm:$0xff] }
 0x423   : > { %10635 = vmatprep.mubr.f32.mxu1 %v29621_v57  ;;  %v30134_v39 = vunpack.i.h.bf16 %v30133_v56  ;;  %v26952_v56 = vpop.permute.xlu1 %21235 }
 0x424   : > { %17418 = vmatmul.mubr.msk.f32.gmra.mrb[26].mxu0 %vm751_vm7, %v21777_v36  ;;  %v30135_v36 = vld [vmem:[#allocation56_spill] sm:$0xff] }
 0x425   : > { %18347 = vmatpush3.bf16.msk.msra.mxu0 %vm22552_vm6, %v18342_v47  ;;  %16184 = vmatmul.mubr.msk.f32.gmra.mrb[14].mxu1 %vm751_vm7, %v26869_v62  ;;  %v11100_v47 = vsel %vm11099_vm2, %v20987_v59, %v30132_v40  ;;  %v8118_v59 = vsel %vm8109_vm10, %v30134_v39, %v21112_v31  ;;  %v21118_v40 = vunpack.i.h.bf16 %v26080_v41  ;;  %v26944_v41 = vld [vmem:[%s29197_s5 + $0x660] sm:$0xff]  ;;  %v11109_v39 = vsel %vm11099_vm2, %v21008_v10, %v21002_v34  ;;  %v30139_v10 = vld [vmem:[#allocation105_spill] sm:$0xff] }
 0x426   : > { %18359 = vmatprep.subr.bf16.mxu0 %v18358_v61  ;;  %17420 = vmatprep.mubr.msk.f32.mxu0 %vm751_vm7, %v21778_v22  ;;  %v30136_v22 = vunpack.i.h.bf16 %v30135_v36  ;;  %v21781_v36 = vld [vmem:[%s29197_s5 + $0x488] sm:$0xff]  ;;  %v11106_v31 = vsel %vm11099_vm2, %v21007_v35, %v20997_v53  ;;  %v30140_v49 = vunpack.i.h.bf16 %v30139_v10 }
 0x427   : > { %10641 = vmatprep.mubr.f32.mxu1 %v29621_v57  ;;  %v26967_v53 = vld [vmem:[%s29197_s5 + $0x668] sm:$0xff]  ;;  %v18555_v35 = vpack.c.bf16 %v11109_v39, %v11106_v31 }
 0x428   : > { %17421 = vmatmul.mubr.msk.f32.gmra.mrb[28].mxu0 %vm751_vm7, %v21779_v19  ;;  %v8121_v48 = vsel %vm8109_vm10, %v30136_v22, %v21113_v0  ;;  %v18550_v22 = vpack.c.bf16 %v11103_v58, %v11100_v47  ;;  %v18552_v19 = vpack.c.bf16 %v11110_v21, %v11107_v4  ;;  %v30137_v0 = vld [vmem:[#allocation15_spill] sm:$0xff]  ;;  %v30142_v58 = vunpack.i.l.bf16 %v25728_v45  ;;  %v26979_v21 = vpop.permute.xlu0 %21240  ;;  %v21782_v4 = vld [vmem:[%s29197_s5 + $0x490] sm:$0xff]  ;;  %v21785_v39 = vld [vmem:[%s29197_s5 + $0x4a8] sm:$0xff] }
 0x429   : > { %16185 = vmatmul.mubr.msk.f32.gmra.mrb[16].mxu1 %vm751_vm7, %v26897_v18  ;;  %17431 = vmatprep.mubr.msk.f32.mxu0 %vm751_vm7, %v21780_v24  ;;  %v18362_v24 = vpack.c.bf16 %v8121_v48, %v8118_v59  ;;  %v30138_v13 = vunpack.i.h.bf16 %v30137_v0  ;;  %v8414_v18 = vsel %vm8408_vm12, %v30140_v49, %v21118_v40  ;;  %v21783_v59 = vld [vmem:[%s29197_s5 + $0x498] sm:$0xff]  ;;  %v21123_v40 = vunpack.i.h.bf16 %v26075_v7  ;;  %v27003_v0 = vld [vmem:[%s29197_s5 + $0x670] sm:$0xff]  ;;  %vm30182_vm10 = vmmov %vm30180_vm5 }
 0x42a   : > { %10910 = vmatprep.mubr.f32.mxu1 %v29621_v57  ;;  %30145 = vst [vmem:[#allocation50_spill] sm:$0xff] %v27003_v0 }
 0x42b   : > { %v8411_v34 = vsel %vm8408_vm12, %v30138_v13, %v21117_v16  ;;  %v30143_v13 = vunpack.i.h.bf16 %v25722_v23  ;;  %v30144_v16 = vunpack.i.l.bf16 %v25722_v23 }
 0x42c   : > { %17432 = vmatmul.mubr.msk.f32.vlgmr.msra.gmra.mrb[24].mxu0 %vm751_vm7, %v21781_v36  ;;  %v18378_v48 = vpack.c.bf16 %v8414_v18, %v8411_v34  ;;  %v27005_v18 = vpop.permute.xlu1 %21245  ;;  %v30146_v36 = vld [vmem:[#allocation44_spill] sm:$0xff]  ;;  %v30148_v34 = vld [vmem:[#allocation43_spill] sm:$0xff] }
 0x42d   : > { %18361 = vmatpush3.bf16.msra.mxu0 %v18358_v61  ;;  %16201 = vmatmul.mubr.msk.f32.vlgmr.msra.gmra.mrb[6].mxu1 %vm751_vm7, %v26944_v41  ;;  %v30141_v61 = vunpack.i.h.bf16 %v25728_v45  ;;  %v11403_v49 = vsel %vm11398_vm4, %v30144_v16, %v30143_v13  ;;  %v30149_v10 = vunpack.i.h.bf16 %v30148_v34  ;;  %v27024_v13 = vpop.permute.xlu0 %21250  ;;  %v21786_v16 = vld [vmem:[%s29197_s5 + $0x4b0] sm:$0xff]  ;;  %v29510_v34 = vunpack.i.h.bf16 %v25781_v17 }
 0x42e   : > { %18551 = vmatpush1.bf16.msra.mxu1 %v18550_v22  ;;  %18364 = vmatprep.subr.msk.bf16.mxu0 %vm22552_vm6, %v18362_v24  ;;  %v30147_v22 = vunpack.i.h.bf16 %v30146_v36  ;;  %v21788_v36 = vld [vmem:[%s29197_s5 + $0x4c0] sm:$0xff] }
 0x42f   : > { %v11400_v47 = vsel %vm11398_vm4, %v30142_v58, %v30141_v61  ;;  %18554 = vmatprep.subr.msk.bf16.mxu1 %vm22552_vm6, %v18552_v19  ;;  %17434 = vmatprep.mubr.msk.f32.mxu0 %vm751_vm7, %v21782_v4  ;;  %v21122_v19 = vunpack.i.l.bf16 %v26075_v7  ;;  %v21784_v7 = vld [vmem:[%s29197_s5 + $0x4a0] sm:$0xff]  ;;  %v8420_v61 = vsel %vm8408_vm12, %v30149_v10, %v21123_v40  ;;  %v21143_v58 = vunpack.i.h.bf16 %v26159_v9 }
 0x430   : > { %10916 = vmatprep.mubr.f32.mxu1 %v29621_v57  ;;  %17435 = vmatmul.mubr.msk.f32.gmra.mrb[26].mxu0 %vm751_vm7, %v21783_v59  ;;  %v18568_v31 = vpack.c.bf16 %v11403_v49, %v11400_v47  ;;  %v21142_v47 = vunpack.i.l.bf16 %v26159_v9  ;;  %v27036_v49 = vld [vmem:[%s29197_s5 + $0x678] sm:$0xff]  ;;  %v30151_v59 = vld [vmem:[#allocation31_spill] sm:$0xff] }
 0x431   : > { %18367 = vmatpush3.bf16.msk.msra.mxu0 %vm22552_vm6, %v18362_v24  ;;  %16202 = vmatmul.mubr.msk.f32.gmra.mrb[8].mxu1 %vm751_vm7, %v26967_v53  ;;  %v8417_v24 = vsel %vm8408_vm12, %v30147_v22, %v21122_v19  ;;  %30150 = vst [vmem:[#allocation77_spill] sm:$0xff] %v27036_v49  ;;  %v21787_v9 = vld [vmem:[%s29197_s5 + $0x4b8] sm:$0xff]  ;;  %v30152_v40 = vunpack.i.h.bf16 %v30151_v59  ;;  %v21038_v22 = vunpack.i.h.bf16 %v25759_v32  ;;  %v27066_v10 = vpop.permute.xlu0 %21260  ;;  %v21162_v59 = vunpack.i.l.bf16 %v26259_v14 }
 0x432   : > { %18557 = vmatpush1.bf16.msk.msra.mxu1 %vm22552_vm6, %v18555_v35  ;;  %18379 = vmatprep.subr.bf16.mxu0 %v18378_v48  ;;  %v18382_v4 = vpack.c.bf16 %v8420_v61, %v8417_v24  ;;  %v27042_v35 = vpop.permute.xlu1 %21255  ;;  %v21037_v24 = vunpack.i.l.bf16 %v25759_v32  ;;  %v21052_v61 = vunpack.i.l.bf16 %v25781_v17  ;;  %v21163_v32 = vunpack.i.h.bf16 %v26259_v14 }
 0x433   : > { %18569 = vmatprep.subr.bf16.mxu1 %v18568_v31  ;;  %17437 = vmatprep.mubr.msk.f32.mxu0 %vm751_vm7, %v21784_v7  ;;  %v8710_v19 = vsel %vm8707_vm3, %v30152_v40, %v21142_v47  ;;  %v30153_v31 = vld [vmem:[#allocation107_spill] sm:$0xff]  ;;  %v21047_v47 = vunpack.i.l.bf16 %v25786_v6  ;;  %v21790_v40 = vld [vmem:[%s29197_s5 + $0x4d0] sm:$0xff]  ;;  %v30157_v14 = vunpack.i.l.bf16 %v25722_v23  ;;  %vm30188_vm12 = vcmask 318464  }
 0x434   : > { %10922 = vmatprep.mubr.f32.mxu1 %v29621_v57  ;;  %17438 = vmatmul.mubr.msk.f32.gmra.mrb[28].mxu0 %vm751_vm7, %v21785_v39  ;;  %v30154_v7 = vunpack.i.h.bf16 %v30153_v31 }
 0x435   : > { %16203 = vmatmul.mubr.msk.f32.gmra.mrb[10].mxu1 %vm751_vm7, %v27003_v0  ;;  %17448 = vmatprep.mubr.msk.f32.mxu0 %vm751_vm7, %v21786_v16  ;;  %v21789_v16 = vld [vmem:[%s29197_s5 + $0x4c8] sm:$0xff]  ;;  %v11402_v31 = vsel %vm11398_vm4, %v21038_v22, %v30157_v14  ;;  %v21057_v22 = vunpack.i.l.bf16 %v25834_v46  ;;  %v30159_v14 = vld [vmem:[#allocation109_spill] sm:$0xff]  ;;  %v27120_v0 = vpop.permute.xlu0 %21270 }
 0x436   : > { %10928 = vmatprep.mubr.f32.mxu1 %v29621_v57  ;;  %v8713_v39 = vsel %vm8707_vm3, %v30154_v7, %v21143_v58  ;;  %v29512_v58 = vunpack.i.h.bf16 %v25786_v6 }
 0x438   : > { %17449 = vmatmul.mubr.msk.f32.vlgmr.msra.gmra.mrb[24].mxu0 %vm751_vm7, %v21787_v9  ;;  %v18398_v9 = vpack.c.bf16 %v8713_v39, %v8710_v19  ;;  %v27089_v19 = vld [vmem:[%s29197_s5 + $0x688] sm:$0xff]  ;;  %v27097_v39 = vpop.permute.xlu1 %21265 }
 0x439   : > { %18381 = vmatpush3.bf16.msra.mxu0 %v18378_v48  ;;  %16204 = vmatmul.mubr.msk.f32.gmra.mrb[12].mxu1 %vm751_vm7, %v27036_v49  ;;  %v27061_v48 = vld [vmem:[%s29197_s5 + $0x680] sm:$0xff]  ;;  %30156 = vst [vmem:[#allocation98_spill] sm:$0xff] %v27089_v19  ;;  %v21167_v49 = vunpack.i.l.bf16 %v26312_v27 }
 0x43a   : > { %18384 = vmatprep.subr.msk.bf16.mxu0 %vm22552_vm6, %v18382_v4  ;;  %17451 = vmatprep.mubr.msk.f32.mxu0 %vm751_vm7, %v21788_v36  ;;  %30155 = vst [vmem:[#allocation78_spill] sm:$0xff] %v27061_v48  ;;  %v11409_v36 = vsel %vm11398_vm4, %v21052_v61, %v29510_v34 }
 0x43b   : > { %10934 = vmatprep.mubr.f32.mxu1 %v29621_v57 }
 0x43c   : > { %17452 = vmatmul.mubr.msk.f32.gmra.mrb[26].mxu0 %vm751_vm7, %v21789_v16  ;;  %v11406_v16 = vsel %vm11398_vm4, %v21047_v47, %v29512_v58  ;;  %v21168_v58 = vunpack.i.h.bf16 %v26312_v27  ;;  %v27136_v27 = vld [vmem:[%s29197_s5 + $0x690] sm:$0xff] }
 0x43d   : > { %18387 = vmatpush3.bf16.msk.msra.mxu0 %vm22552_vm6, %v18382_v4  ;;  %16205 = vmatmul.mubr.msk.f32.gmra.mrb[14].mxu1 %vm751_vm7, %v27061_v48  ;;  %v30158_v4 = vunpack.i.l.bf16 %v25728_v45  ;;  %v30161_v48 = vld [vmem:[#allocation108_spill] sm:$0xff] }
 0x43e   : > { %18399 = vmatprep.subr.bf16.mxu0 %v18398_v9  ;;  %17454 = vmatprep.mubr.msk.f32.mxu0 %vm751_vm7, %v21790_v40  ;;  %v21058_v40 = vunpack.i.h.bf16 %v25834_v46  ;;  %v30162_v34 = vunpack.i.h.bf16 %v30161_v48  ;;  %v21792_v46 = vld [vmem:[%s29197_s5 + $0x4e0] sm:$0xff] }
 0x43f   : > { %v11399_v7 = vsel %vm11398_vm4, %v21037_v24, %v30158_v4  ;;  %10940 = vmatprep.mubr.f32.mxu1 %v29621_v57  ;;  %v21791_v24 = vld [vmem:[%s29197_s5 + $0x4d8] sm:$0xff]  ;;  %v30160_v4 = vunpack.i.h.bf16 %v30159_v14 }
 0x440   : > { %17455 = vmatmul.mubr.msk.f32.gmra.mrb[28].mxu0 %vm751_vm7, %v21791_v24  ;;  %v8719_v6 = vsel %vm8707_vm3, %v30162_v34, %v21163_v32  ;;  %v11408_v14 = vsel %vm11398_vm4, %v21058_v40, %v21052_v61  ;;  %v11405_v34 = vsel %vm11398_vm4, %v21057_v22, %v21047_v47  ;;  %v30165_v61 = vunpack.i.h.bf16 %v29953_v11  ;;  %v21795_v22 = vld [vmem:[%s29197_s5 + $0x4f8] sm:$0xff] }
 0x441   : > { %v8716_v17 = vsel %vm8707_vm3, %v30160_v4, %v21162_v59  ;;  %16206 = vmatmul.mubr.msk.f32.gmra.mrb[16].mxu1 %vm751_vm7, %v27089_v19  ;;  %17465 = vmatprep.mubr.msk.f32.mxu0 %vm751_vm7, %v21792_v46  ;;  %v21793_v4 = vld [vmem:[%s29197_s5 + $0x4e8] sm:$0xff]  ;;  %v18570_v46 = vpack.c.bf16 %v11402_v31, %v11399_v7  ;;  %v18572_v59 = vpack.c.bf16 %v11409_v36, %v11406_v16  ;;  %v27148_v19 = vpop.permute.xlu1 %21275  ;;  %v30170_v47 = vunpack.i.l.bf16 %v25914_v5  ;;  %v21794_v7 = vld [vmem:[%s29197_s5 + $0x4f0] sm:$0xff]  ;;  %vm30190_vm3 = vmmov %vm30188_vm12 }
 0x442   : > { %11209 = vmatprep.mubr.f32.mxu1 %v29621_v57  ;;  %v18402_v48 = vpack.c.bf16 %v8719_v6, %v8716_v17  ;;  %v9009_v40 = vsel %vm30166_vm9, %v30165_v61, %v21167_v49  ;;  %v27163_v17 = vld [vmem:[%s29197_s5 + $0x698] sm:$0xff]  ;;  %v30169_v6 = vunpack.i.h.bf16 %v25914_v5  ;;  %v30171_v49 = vunpack.i.h.bf16 %v25909_v8  ;;  %vm30209_vm9 = vmmov %vm30190_vm3 }
 0x443   : > { %v27138_v24 = vpop.f32.mrb[12].mxu0  ;;  %v18575_v16 = vpack.c.bf16 %v11408_v14, %v11405_v34  ;;  %v27203_v14 = vld [vmem:[%s29197_s5 + $0x6a0] sm:$0xff] }
 0x444   : > { %30163 = vst [vmem:[#allocation16_spill] sm:$0xff] %v27138_v24  ;;  %17466 = vmatmul.mubr.msk.f32.vlgmr.msra.gmra.mrb[24].mxu0 %vm751_vm7, %v21793_v4  ;;  %v27145_v32 = vpop.f32.mrb[13].mxu0  ;;  %v30167_v24 = vunpack.i.h.bf16 %v24373_v51  ;;  %v11699_v11 = vsel %vm11697_vm8, %v30170_v47, %v30169_v6  ;;  %v30172_v51 = vunpack.i.l.bf16 %v25909_v8  ;;  %30175 = vst [vmem:[#allocation23_spill] sm:$0xff] %v27203_v14  ;;  %v30179_v6 = vunpack.i.h.bf16 %v24416_v38 }
 0x445   : > { %30164 = vst [vmem:[#allocation47_spill] sm:$0xff] %v27145_v32  ;;  %18401 = vmatpush3.bf16.msra.mxu0 %v18398_v9  ;;  %16222 = vmatmul.mubr.msk.f32.vlgmr.msra.gmra.mrb[6].mxu1 %vm751_vm7, %v27136_v27  ;;  %v27175_v9 = vpop.permute.xlu0 %21280  ;;  %v27205_v61 = vpop.permute.xlu1 %21285  ;;  %v30205_v32 = vld [vmem:[#allocation71_spill] sm:$0xff] }
 0x446   : > { %v9012_v31 = vsel %vm30168_vm11, %v30167_v24, %v21168_v58  ;;  %18571 = vmatpush1.bf16.msra.mxu1 %v18570_v46  ;;  %18404 = vmatprep.subr.msk.bf16.mxu0 %vm22552_vm6, %v18402_v48  ;;  %v11702_v58 = vsel %vm11697_vm8, %v30172_v51, %v30171_v49  ;;  %v21172_v46 = vunpack.i.l.bf16 %v26305_v43  ;;  %30176 = vst [vmem:[#allocation82_spill] sm:$0xff] %v27205_v61  ;;  %v21193_v51 = vunpack.i.h.bf16 %v26404_v29  ;;  %vm30212_vm11 = vmmov %vm30190_vm3 }
 0x447   : > { %18574 = vmatprep.subr.msk.bf16.mxu1 %vm22552_vm6, %v18572_v59  ;;  %17468 = vmatprep.mubr.msk.f32.mxu0 %vm751_vm7, %v21794_v7  ;;  %v27183_v36 = vpop.f32.mrb[14].mxu0  ;;  %v18418_v24 = vpack.c.bf16 %v9012_v31, %v9009_v40  ;;  %v21173_v59 = vunpack.i.h.bf16 %v26305_v43  ;;  %v18588_v34 = vpack.c.bf16 %v11702_v58, %v11699_v11  ;;  %v21796_v43 = vld [vmem:[%s29197_s5 + $0x500] sm:$0xff]  ;;  %v21797_v40 = vld [vmem:[%s29197_s5 + $0x508] sm:$0xff]  ;;  %v30181_v11 = vunpack.i.h.bf16 %v24412_v25 }
 0x448   : > { %30173 = vst [vmem:[#allocation81_spill] sm:$0xff] %v27183_v36  ;;  %11215 = vmatprep.mubr.f32.mxu1 %v29621_v57  ;;  %17469 = vmatmul.mubr.msk.f32.gmra.mrb[26].mxu0 %vm751_vm7, %v21795_v22  ;;  %v27190_v4 = vpop.f32.mrb[15].mxu0  ;;  %v9015_v47 = vsel %vm30180_vm5, %v30179_v6, %v21172_v46  ;;  %v21192_v58 = vunpack.i.l.bf16 %v26404_v29  ;;  %v27240_v25 = vld [vmem:[%s29197_s5 + $0x6a8] sm:$0xff]  ;;  %v21799_v29 = vld [vmem:[%s29197_s5 + $0x518] sm:$0xff]  ;;  %vm11996_vm5 = vcmask 121856  }
 0x449   : > { %30174 = vst [vmem:[#allocation80_spill] sm:$0xff] %v27190_v4  ;;  %18407 = vmatpush3.bf16.msk.msra.mxu0 %vm22552_vm6, %v18402_v48  ;;  %16223 = vmatmul.mubr.msk.f32.gmra.mrb[8].mxu1 %vm751_vm7, %v27163_v17  ;;  %v9018_v49 = vsel %vm30182_vm10, %v30181_v11, %v21173_v59  ;;  %v27228_v7 = vpop.permute.xlu0 %21290  ;;  %30183 = vst [vmem:[#allocation85_spill] sm:$0xff] %v27240_v25  ;;  %v27250_v46 = vpop.permute.xlu1 %21295 }
 0x44a   : > { %18577 = vmatpush1.bf16.msk.msra.mxu1 %vm22552_vm6, %v18575_v16  ;;  %18419 = vmatprep.subr.bf16.mxu0 %v18418_v24  ;;  %v21798_v16 = vld [vmem:[%s29197_s5 + $0x510] sm:$0xff]  ;;  %v18422_v22 = vpack.c.bf16 %v9018_v49, %v9015_v47  ;;  %30186 = vst [vmem:[#allocation86_spill] sm:$0xff] %v27250_v46  ;;  %v21800_v47 = vld [vmem:[%s29197_s5 + $0x520] sm:$0xff] }
 0x44b   : > { %18589 = vmatprep.subr.bf16.mxu1 %v18588_v34  ;;  %17471 = vmatprep.mubr.msk.f32.mxu0 %vm751_vm7, %v21796_v43  ;;  %v27211_v48 = vpop.f32.mrb[16].mxu0  ;;  %v30187_v34 = vunpack.i.h.bf16 %v24452_v52  ;;  %v30192_v52 = vld [vmem:[#allocation68_spill] sm:$0xff]  ;;  %v30193_v49 = vld [vmem:[#allocation69_spill] sm:$0xff] }
 0x44c   : > { %30177 = vst [vmem:[#allocation83_spill] sm:$0xff] %v27211_v48  ;;  %11221 = vmatprep.mubr.f32.mxu1 %v29621_v57  ;;  %17472 = vmatmul.mubr.msk.f32.gmra.mrb[28].mxu0 %vm751_vm7, %v21797_v40  ;;  %v27218_v31 = vpop.f32.mrb[17].mxu0  ;;  %v30189_v40 = vunpack.i.h.bf16 %v24507_v33  ;;  %v21088_v11 = vunpack.i.h.bf16 %v30192_v52  ;;  %v21087_v33 = vunpack.i.l.bf16 %v30192_v52  ;;  %v30215_v46 = vld [vmem:[#allocation97_spill] sm:$0xff] }
 0x44d   : > { %30178 = vst [vmem:[#allocation65_spill] sm:$0xff] %v27218_v31  ;;  %16224 = vmatmul.mubr.msk.f32.gmra.mrb[10].mxu1 %vm751_vm7, %v27203_v14  ;;  %17482 = vmatprep.mubr.msk.f32.mxu0 %vm751_vm7, %v21798_v16  ;;  %v9308_v43 = vsel %vm30188_vm12, %v30187_v34, %v21192_v58  ;;  %v27274_v58 = vpop.permute.xlu0 %21300  ;;  %v30196_v34 = vld [vmem:[#allocation70_spill] sm:$0xff]  ;;  %v21212_v31 = vunpack.i.l.bf16 %v26499_v20 }
 0x44e   : > { %11227 = vmatprep.mubr.f32.mxu1 %v29621_v57  ;;  %v9311_v6 = vsel %vm30190_vm3, %v30189_v40, %v21193_v51  ;;  %30194 = vst [vmem:[#allocation48_spill] sm:$0xff] %v27274_v58  ;;  %v21802_v40 = vld [vmem:[%s29197_s5 + $0x530] sm:$0xff]  ;;  %v30204_v4 = vunpack.i.h.bf16 %v30196_v34  ;;  %v30216_v58 = vunpack.i.h.bf16 %v30215_v46 }
 0x44f   : > { %v27242_v38 = vpop.f32.mrb[18].mxu0  ;;  %v18438_v52 = vpack.c.bf16 %v9311_v6, %v9308_v43 }
 0x450   : > { %30184 = vst [vmem:[#allocation84_spill] sm:$0xff] %v27242_v38  ;;  %17483 = vmatmul.mubr.msk.f32.vlgmr.msra.gmra.mrb[24].mxu0 %vm751_vm7, %v21799_v29  ;;  %v27248_v59 = vpop.f32.mrb[19].mxu0  ;;  %v21102_v29 = vunpack.i.l.bf16 %v30193_v49  ;;  %v21213_v38 = vunpack.i.h.bf16 %v26499_v20  ;;  %v30199_v20 = vunpack.i.l.bf16 %v25909_v8 }
 0x451   : > { %30185 = vst [vmem:[#allocation51_spill] sm:$0xff] %v27248_v59  ;;  %18421 = vmatpush3.bf16.msra.mxu0 %v18418_v24  ;;  %16225 = vmatmul.mubr.msk.f32.gmra.mrb[12].mxu1 %vm751_vm7, %v27240_v25  ;;  %v27269_v24 = vld [vmem:[%s29197_s5 + $0x6b0] sm:$0xff]  ;;  %v21801_v59 = vld [vmem:[%s29197_s5 + $0x528] sm:$0xff]  ;;  %v27336_v25 = vpop.permute.xlu0 %21310 }
 0x452   : > { %18424 = vmatprep.subr.msk.bf16.mxu0 %vm22552_vm6, %v18422_v22  ;;  %17485 = vmatprep.mubr.msk.f32.mxu0 %vm751_vm7, %v21800_v47  ;;  %30191 = vst [vmem:[#allocation87_spill] sm:$0xff] %v27269_v24  ;;  %v21097_v47 = vunpack.i.l.bf16 %v30196_v34  ;;  %v11701_v43 = vsel %vm11697_vm8, %v21088_v11, %v30199_v20  ;;  %v21108_v11 = vunpack.i.h.bf16 %v30205_v32  ;;  %v21107_v20 = vunpack.i.l.bf16 %v30205_v32 }
 0x453   : > { %11233 = vmatprep.mubr.f32.mxu1 %v29621_v57  ;;  %v27277_v16 = vpop.f32.mrb[20].mxu0  ;;  %v21217_v32 = vunpack.i.l.bf16 %v26850_v12 }
 0x454   : > { %30195 = vst [vmem:[#allocation40_spill] sm:$0xff] %v27277_v16  ;;  %17486 = vmatmul.mubr.msk.f32.gmra.mrb[26].mxu0 %vm751_vm7, %v21801_v59  ;;  %v27286_v51 = vpop.f32.mrb[21].mxu0  ;;  %v27301_v59 = vld [vmem:[%s29197_s5 + $0x6b8] sm:$0xff]  ;;  %v11705_v36 = vsel %vm11697_vm8, %v21097_v47, %v30204_v4 }
 0x455   : > { %30197 = vst [vmem:[#allocation10_spill] sm:$0xff] %v27286_v51  ;;  %18427 = vmatpush3.bf16.msk.msra.mxu0 %vm22552_vm6, %v18422_v22  ;;  %16226 = vmatmul.mubr.msk.f32.gmra.mrb[14].mxu1 %vm751_vm7, %v27269_v24  ;;  %30198 = vst [vmem:[#allocation9_spill] sm:$0xff] %v27301_v59  ;;  %v30200_v22 = vunpack.i.l.bf16 %v25914_v5  ;;  %v27309_v51 = vpop.permute.xlu1 %21305  ;;  %v21218_v24 = vunpack.i.h.bf16 %v26850_v12  ;;  %v27352_v12 = vld [vmem:[%s29197_s5 + $0x6c0] sm:$0xff] }
 0x456   : > { %18439 = vmatprep.subr.bf16.mxu0 %v18438_v52  ;;  %17488 = vmatprep.mubr.msk.f32.mxu0 %vm751_vm7, %v21802_v40  ;;  %30201 = vst [vmem:[#allocation11_spill] sm:$0xff] %v27309_v51  ;;  %v30203_v40 = vunpack.i.h.bf16 %v30193_v49  ;;  %v30210_v51 = vld [vmem:[#allocation17_spill] sm:$0xff] }
 0x457   : > { %v11698_v6 = vsel %vm11697_vm8, %v21087_v33, %v30200_v22  ;;  %11239 = vmatprep.mubr.f32.mxu1 %v29621_v57  ;;  %v27312_v16 = vpop.f32.mrb[22].mxu0  ;;  %v21803_v33 = vld [vmem:[%s29197_s5 + $0x538] sm:$0xff]  ;;  %v30211_v34 = vunpack.i.h.bf16 %v30210_v51 }
 0x458   : > { %30202 = vst [vmem:[#allocation12_spill] sm:$0xff] %v27312_v16  ;;  %v11708_v48 = vsel %vm11697_vm8, %v21102_v29, %v30203_v40  ;;  %17489 = vmatmul.mubr.msk.f32.gmra.mrb[28].mxu0 %vm751_vm7, %v21803_v33  ;;  %v27326_v22 = vpop.f32.mrb[23].mxu0  ;;  %v30207_v16 = vld [vmem:[#allocation18_spill] sm:$0xff]  ;;  %v21804_v33 = vld [vmem:[%s29197_s5 + $0x540] sm:$0xff]  ;;  %v18590_v51 = vpack.c.bf16 %v11701_v43, %v11698_v6  ;;  %v21806_v43 = vld [vmem:[%s29197_s5 + $0x550] sm:$0xff] }
 0x459   : > { %30206 = vst [vmem:[#allocation21_spill] sm:$0xff] %v27326_v22  ;;  %v30208_v49 = vunpack.i.h.bf16 %v30207_v16  ;;  %v9317_v4 = vsel %vm30212_vm11, %v30211_v34, %v21213_v38  ;;  %16227 = vmatmul.mubr.msk.f32.gmra.mrb[16].mxu1 %vm751_vm7, %v27301_v59  ;;  %17499 = vmatprep.mubr.msk.f32.mxu0 %vm751_vm7, %v21804_v33  ;;  %v30214_v38 = vld [vmem:[#allocation5_spill] sm:$0xff]  ;;  %v11707_v22 = vsel %vm11697_vm8, %v21108_v11, %v21102_v29  ;;  %v21805_v33 = vld [vmem:[%s29197_s5 + $0x548] sm:$0xff]  ;;  %v27360_v59 = vpop.permute.xlu1 %21315 }
 0x45a   : > { %11508 = vmatprep.mubr.f32.mxu1 %v29621_v57  ;;  %v18592_v16 = vpack.c.bf16 %v11708_v48, %v11705_v36  ;;  %v11704_v34 = vsel %vm11697_vm8, %v21107_v20, %v21097_v47  ;;  %v9607_v29 = vsel %vm9604_vm14, %v30216_v58, %v21217_v32  ;;  %v30217_v11 = vld [vmem:[#allocation45_spill] sm:$0xff]  ;;  %v27375_v36 = vld [vmem:[%s29197_s5 + $0x6c8] sm:$0xff]  ;;  %v30219_v48 = vunpack.i.h.bf16 %v30214_v38  ;;  %v21807_v20 = vld [vmem:[%s29197_s5 + $0x558] sm:$0xff] }
 0x45b   : > { %v9314_v40 = vsel %vm30209_vm9, %v30208_v49, %v21212_v31  ;;  %v30213_v31 = vld [vmem:[#allocation4_spill] sm:$0xff]  ;;  %v30218_v61 = vunpack.i.h.bf16 %v30217_v11  ;;  %v30220_v47 = vunpack.i.l.bf16 %v30214_v38  ;;  %v18595_v6 = vpack.c.bf16 %v11707_v22, %v11704_v34 }
 0x45c   : > { %17500 = vmatmul.mubr.msk.f32.vlgmr.msra.gmra.mrb[24].mxu0 %vm751_vm7, %v21805_v33  ;;  %v18442_v49 = vpack.c.bf16 %v9317_v4, %v9314_v40  ;;  %v30221_v58 = vunpack.i.h.bf16 %v30213_v31  ;;  %v21223_v4 = vunpack.i.h.bf16 %v26874_v44  ;;  %v21222_v32 = vunpack.i.l.bf16 %v26874_v44  ;;  %v21808_v44 = vld [vmem:[%s29197_s5 + $0x560] sm:$0xff] }
 0x45d   : > { %18441 = vmatpush3.bf16.msra.mxu0 %v18438_v52  ;;  %16243 = vmatmul.mubr.msk.f32.vlgmr.msra.gmra.mrb[6].mxu1 %vm751_vm7, %v27352_v12  ;;  %v9610_v14 = vsel %vm9604_vm14, %v30218_v61, %v21218_v24  ;;  %v11998_v46 = vsel %vm11996_vm5, %v30220_v47, %v30219_v48  ;;  %v30222_v52 = vunpack.i.l.bf16 %v30213_v31  ;;  %v27387_v24 = vpop.permute.xlu0 %21320  ;;  %v21243_v47 = vunpack.i.h.bf16 %v26979_v21 }
 0x45e   : > { %18591 = vmatpush1.bf16.msra.mxu1 %v18590_v51  ;;  %18444 = vmatprep.subr.msk.bf16.mxu0 %vm22552_vm6, %v18442_v49  ;;  %v18458_v40 = vpack.c.bf16 %v9610_v14, %v9607_v29  ;;  %v27411_v51 = vld [vmem:[%s29197_s5 + $0x6d0] sm:$0xff]  ;;  %v27413_v14 = vpop.permute.xlu1 %21325  ;;  %v30226_v29 = vld [vmem:[#allocation46_spill] sm:$0xff]  ;;  %vm30380_vm9 = vcmask 1006592  }
 0x45f   : > { %v12001_v61 = vsel %vm11996_vm5, %v30222_v52, %v30221_v58  ;;  %18594 = vmatprep.subr.msk.bf16.mxu1 %vm22552_vm6, %v18592_v16  ;;  %17502 = vmatprep.mubr.msk.f32.mxu0 %vm751_vm7, %v21806_v43  ;;  %30223 = vst [vmem:[#allocation89_spill] sm:$0xff] %v27411_v51  ;;  %v30224_v16 = vld [vmem:[#allocation33_spill] sm:$0xff]  ;;  %v30227_v11 = vunpack.i.h.bf16 %v30226_v29  ;;  %vm30383_vm11 = vmmov %vm30380_vm9 }
 0x460   : > { %11514 = vmatprep.mubr.f32.mxu1 %v29621_v57  ;;  %17503 = vmatmul.mubr.msk.f32.gmra.mrb[26].mxu0 %vm751_vm7, %v21807_v20  ;;  %v18608_v22 = vpack.c.bf16 %v12001_v61, %v11998_v46  ;;  %v30225_v34 = vunpack.i.h.bf16 %v30224_v16  ;;  %v21242_v46 = vunpack.i.l.bf16 %v26979_v21  ;;  %v21810_v52 = vld [vmem:[%s29197_s5 + $0x570] sm:$0xff]  ;;  %v27444_v61 = vld [vmem:[%s29197_s5 + $0x6d8] sm:$0xff]  ;;  %v21812_v16 = vld [vmem:[%s29197_s5 + $0x580] sm:$0xff] }
 0x461   : > { %18447 = vmatpush3.bf16.msk.msra.mxu0 %vm22552_vm6, %v18442_v49  ;;  %16244 = vmatmul.mubr.msk.f32.gmra.mrb[8].mxu1 %vm751_vm7, %v27375_v36  ;;  %v21809_v49 = vld [vmem:[%s29197_s5 + $0x568] sm:$0xff]  ;;  %v9616_v48 = vsel %vm9604_vm14, %v30227_v11, %v21223_v4  ;;  %v27432_v58 = vpop.permute.xlu0 %21330  ;;  %30228 = vst [vmem:[#allocation88_spill] sm:$0xff] %v27444_v61  ;;  %v21811_v21 = vld [vmem:[%s29197_s5 + $0x578] sm:$0xff] }
 0x462   : > { %18597 = vmatpush1.bf16.msk.msra.mxu1 %vm22552_vm6, %v18595_v6  ;;  %18459 = vmatprep.subr.bf16.mxu0 %v18458_v40  ;;  %v9613_v33 = vsel %vm9604_vm14, %v30225_v34, %v21222_v32  ;;  %v27450_v6 = vpop.permute.xlu1 %21335  ;;  %v30230_v20 = vld [vmem:[#allocation34_spill] sm:$0xff]  ;;  %v30235_v34 = vld [vmem:[#allocation72_spill] sm:$0xff]  ;;  %vm12295_vm14 = vcmask 113664  }
 0x463   : > { %18609 = vmatprep.subr.bf16.mxu1 %v18608_v22  ;;  %17505 = vmatprep.mubr.msk.f32.mxu0 %vm751_vm7, %v21808_v44  ;;  %v18462_v43 = vpack.c.bf16 %v9616_v48, %v9613_v33  ;;  %30229 = vst [vmem:[#allocation26_spill] sm:$0xff] %v27450_v6  ;;  %v30231_v4 = vunpack.i.h.bf16 %v30230_v20  ;;  %v30232_v22 = vld [vmem:[#allocation60_spill] sm:$0xff]  ;;  %v21138_v33 = vunpack.i.h.bf16 %v30235_v34  ;;  %v21137_v29 = vunpack.i.l.bf16 %v30235_v34  ;;  %v30236_v11 = vld [vmem:[#allocation6_spill] sm:$0xff]  ;;  %v21814_v34 = vld [vmem:[%s29197_s5 + $0x590] sm:$0xff] }
 0x464   : > { %11520 = vmatprep.mubr.f32.mxu1 %v29621_v57  ;;  %17506 = vmatmul.mubr.msk.f32.gmra.mrb[28].mxu0 %vm751_vm7, %v21809_v49  ;;  %v30233_v44 = vunpack.i.h.bf16 %v30232_v22  ;;  %v29531_v48 = vunpack.i.h.bf16 %v30236_v11 }
 0x465   : > { %16245 = vmatmul.mubr.msk.f32.gmra.mrb[10].mxu1 %vm751_vm7, %v27411_v51  ;;  %17516 = vmatprep.mubr.msk.f32.mxu0 %vm751_vm7, %v21810_v52  ;;  %v9906_v32 = vsel %vm9903_vm0, %v30231_v4, %v21242_v46  ;;  %v21152_v46 = vunpack.i.l.bf16 %v30236_v11  ;;  %v30237_v52 = vld [vmem:[#allocation73_spill] sm:$0xff]  ;;  %v21813_v4 = vld [vmem:[%s29197_s5 + $0x588] sm:$0xff]  ;;  %v21267_v51 = vunpack.i.l.bf16 %v27097_v39 }
 0x466   : > { %11526 = vmatprep.mubr.f32.mxu1 %v29621_v57  ;;  %v9909_v49 = vsel %vm9903_vm0, %v30233_v44, %v21243_v47  ;;  %v27474_v47 = vpop.permute.xlu0 %21340  ;;  %v21147_v20 = vunpack.i.l.bf16 %v30237_v52  ;;  %v21263_v44 = vunpack.i.h.bf16 %v27066_v10  ;;  %v30242_v6 = vunpack.i.h.bf16 %v30237_v52  ;;  %v30245_v11 = vld [vmem:[#allocation61_spill] sm:$0xff] }
 0x467   : > { %v18478_v22 = vpack.c.bf16 %v9909_v49, %v9906_v32  ;;  %v27497_v32 = vld [vmem:[%s29197_s5 + $0x6e8] sm:$0xff] }
 0x468   : > { %17517 = vmatmul.mubr.msk.f32.vlgmr.msra.gmra.mrb[24].mxu0 %vm751_vm7, %v21811_v21  ;;  %30238 = vst [vmem:[#allocation49_spill] sm:$0xff] %v27497_v32  ;;  %v27505_v21 = vpop.permute.xlu1 %21345 }
 0x469   : > { %18461 = vmatpush3.bf16.msra.mxu0 %v18458_v40  ;;  %16246 = vmatmul.mubr.msk.f32.gmra.mrb[12].mxu1 %vm751_vm7, %v27444_v61  ;;  %v27469_v40 = vld [vmem:[%s29197_s5 + $0x6e0] sm:$0xff]  ;;  %30241 = vst [vmem:[#allocation90_spill] sm:$0xff] %v27505_v21  ;;  %v21158_v61 = vunpack.i.h.bf16 %v26272_v63 }
 0x46a   : > { %18464 = vmatprep.subr.msk.bf16.mxu0 %vm22552_vm6, %v18462_v43  ;;  %17519 = vmatprep.mubr.msk.f32.mxu0 %vm751_vm7, %v21812_v16  ;;  %30234 = vst [vmem:[#allocation22_spill] sm:$0xff] %v27469_v40  ;;  %v21262_v16 = vunpack.i.l.bf16 %v27066_v10  ;;  %v30239_v10 = vunpack.i.l.bf16 %v30213_v31  ;;  %v27528_v31 = vpop.permute.xlu0 %21350 }
 0x46b   : > { %11532 = vmatprep.mubr.f32.mxu1 %v29621_v57  ;;  %30247 = vst [vmem:[#allocation91_spill] sm:$0xff] %v27528_v31 }
 0x46c   : > { %17520 = vmatmul.mubr.msk.f32.gmra.mrb[26].mxu0 %vm751_vm7, %v21813_v4  ;;  %v12000_v49 = vsel %vm11996_vm5, %v21138_v33, %v30239_v10  ;;  %v21157_v33 = vunpack.i.l.bf16 %v26272_v63  ;;  %v30243_v10 = vld [vmem:[#allocation19_spill] sm:$0xff] }
 0x46d   : > { %18467 = vmatpush3.bf16.msk.msra.mxu0 %vm22552_vm6, %v18462_v43  ;;  %16247 = vmatmul.mubr.msk.f32.gmra.mrb[14].mxu1 %vm751_vm7, %v27469_v40  ;;  %v30240_v43 = vunpack.i.l.bf16 %v30214_v38  ;;  %v12004_v40 = vsel %vm11996_vm5, %v21147_v20, %v30242_v6  ;;  %v21268_v6 = vunpack.i.h.bf16 %v27097_v39  ;;  %v21816_v63 = vld [vmem:[%s29197_s5 + $0x5a0] sm:$0xff]  ;;  %v27544_v39 = vld [vmem:[%s29197_s5 + $0x6f0] sm:$0xff] }
 0x46e   : > { %18479 = vmatprep.subr.bf16.mxu0 %v18478_v22  ;;  %17522 = vmatprep.mubr.msk.f32.mxu0 %vm751_vm7, %v21814_v34  ;;  %v12007_v34 = vsel %vm11996_vm5, %v21152_v46, %v29531_v48  ;;  %v30246_v48 = vunpack.i.h.bf16 %v30245_v11 }
 0x46f   : > { %v11997_v4 = vsel %vm11996_vm5, %v21137_v29, %v30240_v43  ;;  %11538 = vmatprep.mubr.f32.mxu1 %v29621_v57  ;;  %v21815_v29 = vld [vmem:[%s29197_s5 + $0x598] sm:$0xff]  ;;  %v30244_v43 = vunpack.i.h.bf16 %v30243_v10  ;;  %v12003_v10 = vsel %vm11996_vm5, %v21157_v33, %v21147_v20 }
 0x470   : > { %17523 = vmatmul.mubr.msk.f32.gmra.mrb[28].mxu0 %vm751_vm7, %v21815_v29  ;;  %v9915_v52 = vsel %vm9903_vm0, %v30246_v48, %v21263_v44  ;;  %v30249_v48 = vld [vmem:[#allocation8_spill] sm:$0xff]  ;;  %v18610_v11 = vpack.c.bf16 %v12000_v49, %v11997_v4  ;;  %v18612_v29 = vpack.c.bf16 %v12007_v34, %v12004_v40  ;;  %v27552_v44 = vpop.permute.xlu1 %21355  ;;  %v27567_v40 = vld [vmem:[%s29197_s5 + $0x6f8] sm:$0xff]  ;;  %v27579_v4 = vpop.permute.xlu0 %21360  ;;  %v21818_v34 = vld [vmem:[%s29197_s5 + $0x5b0] sm:$0xff] }
 0x471   : > { %v9912_v21 = vsel %vm9903_vm0, %v30244_v43, %v21262_v16  ;;  %16248 = vmatmul.mubr.msk.f32.gmra.mrb[16].mxu1 %vm751_vm7, %v27497_v32  ;;  %17533 = vmatprep.mubr.msk.f32.mxu0 %vm751_vm7, %v21816_v63  ;;  %v30248_v16 = vld [vmem:[#allocation7_spill] sm:$0xff]  ;;  %v12006_v43 = vsel %vm11996_vm5, %v21158_v61, %v21152_v46  ;;  %v21817_v63 = vld [vmem:[%s29197_s5 + $0x5a8] sm:$0xff]  ;;  %30250 = vst [vmem:[#allocation25_spill] sm:$0xff] %v27552_v44  ;;  %v30255_v20 = vunpack.i.h.bf16 %v30249_v48  ;;  %vm12594_vm0 = vcmask 105472  }
 0x472   : > { %11807 = vmatprep.mubr.f32.mxu1 %v29621_v57  ;;  %v18482_v31 = vpack.c.bf16 %v9915_v52, %v9912_v21  ;;  %v30251_v32 = vld [vmem:[#allocation20_spill] sm:$0xff]  ;;  %v30253_v46 = vld [vmem:[#allocation35_spill] sm:$0xff]  ;;  %v18615_v33 = vpack.c.bf16 %v12006_v43, %v12003_v10 }
 0x473   : > { %v30252_v38 = vunpack.i.h.bf16 %v30251_v32  ;;  %v30254_v52 = vunpack.i.h.bf16 %v30253_v46  ;;  %v27603_v43 = vld [vmem:[%s29197_s5 + $0x700] sm:$0xff]  ;;  %v30260_v46 = vld [vmem:[#allocation62_spill] sm:$0xff] }
 0x474   : > { %17534 = vmatmul.mubr.msk.f32.vlgmr.msra.gmra.mrb[24].mxu0 %vm751_vm7, %v21817_v63  ;;  %v21273_v63 = vunpack.i.h.bf16 %v27120_v0  ;;  %30259 = vst [vmem:[#allocation93_spill] sm:$0xff] %v27603_v43  ;;  %v30277_v44 = vld [vmem:[#allocation75_spill] sm:$0xff] }
 0x475   : > { %18481 = vmatpush3.bf16.msra.mxu0 %v18478_v22  ;;  %16264 = vmatmul.mubr.msk.f32.vlgmr.msra.gmra.mrb[6].mxu1 %vm751_vm7, %v27544_v39  ;;  %v10205_v61 = vsel %vm10202_vm13, %v30252_v38, %v21267_v51  ;;  %v10208_v21 = vsel %vm10202_vm13, %v30254_v52, %v21268_v6  ;;  %v30256_v22 = vunpack.i.l.bf16 %v30249_v48  ;;  %v30257_v38 = vunpack.i.h.bf16 %v30248_v16  ;;  %v21819_v6 = vld [vmem:[%s29197_s5 + $0x5b8] sm:$0xff] }
 0x476   : > { %18611 = vmatpush1.bf16.msra.mxu1 %v18610_v11  ;;  %18484 = vmatprep.subr.msk.bf16.mxu0 %vm22552_vm6, %v18482_v31  ;;  %v30258_v51 = vunpack.i.l.bf16 %v30248_v16  ;;  %v18498_v11 = vpack.c.bf16 %v10208_v21, %v10205_v61  ;;  %v27605_v61 = vpop.permute.xlu1 %21365  ;;  %v30261_v52 = vunpack.i.h.bf16 %v30260_v46  ;;  %v21824_v46 = vld [vmem:[%s29197_s5 + $0x5e0] sm:$0xff] }
 0x477   : > { %v12297_v32 = vsel %vm12295_vm14, %v30256_v22, %v30255_v20  ;;  %18614 = vmatprep.subr.msk.bf16.mxu1 %vm22552_vm6, %v18612_v29  ;;  %17536 = vmatprep.mubr.msk.f32.mxu0 %vm751_vm7, %v21818_v34  ;;  %v21272_v29 = vunpack.i.l.bf16 %v27120_v0  ;;  %v21820_v0 = vld [vmem:[%s29197_s5 + $0x5c0] sm:$0xff]  ;;  %v30262_v20 = vld [vmem:[#allocation36_spill] sm:$0xff]  ;;  %v21822_v34 = vld [vmem:[%s29197_s5 + $0x5d0] sm:$0xff] }
 0x478   : > { %v12300_v49 = vsel %vm12295_vm14, %v30258_v51, %v30257_v38  ;;  %11813 = vmatprep.mubr.f32.mxu1 %v29621_v57  ;;  %17537 = vmatmul.mubr.msk.f32.gmra.mrb[26].mxu0 %vm751_vm7, %v21819_v6  ;;  %v30263_v22 = vunpack.i.h.bf16 %v30262_v20  ;;  %v21293_v38 = vunpack.i.h.bf16 %v27228_v7  ;;  %v21292_v51 = vunpack.i.l.bf16 %v27228_v7  ;;  %v21823_v7 = vld [vmem:[%s29197_s5 + $0x5d8] sm:$0xff] }
 0x479   : > { %18487 = vmatpush3.bf16.msk.msra.mxu0 %vm22552_vm6, %v18482_v31  ;;  %16265 = vmatmul.mubr.msk.f32.gmra.mrb[8].mxu1 %vm751_vm7, %v27567_v40  ;;  %v18628_v10 = vpack.c.bf16 %v12300_v49, %v12297_v32  ;;  %v21821_v31 = vld [vmem:[%s29197_s5 + $0x5c8] sm:$0xff]  ;;  %v10211_v21 = vsel %vm10202_vm13, %v30261_v52, %v21272_v29  ;;  %v27624_v49 = vpop.permute.xlu0 %21370  ;;  %v30266_v29 = vunpack.i.h.bf16 %v30057_v50  ;;  %v30269_v50 = vld [vmem:[#allocation74_spill] sm:$0xff] }
 0x47a   : > { %18617 = vmatpush1.bf16.msk.msra.mxu1 %vm22552_vm6, %v18615_v33  ;;  %18499 = vmatprep.subr.bf16.mxu0 %v18498_v11  ;;  %v10214_v32 = vsel %vm10202_vm13, %v30263_v22, %v21273_v63  ;;  %v27636_v33 = vld [vmem:[%s29197_s5 + $0x708] sm:$0xff]  ;;  %v27642_v63 = vpop.permute.xlu1 %21375  ;;  %v21188_v52 = vunpack.i.h.bf16 %v30269_v50  ;;  %vm12893_vm13 = vcmask 97280  }
 0x47b   : > { %18629 = vmatprep.subr.bf16.mxu1 %v18628_v10  ;;  %17539 = vmatprep.mubr.msk.f32.mxu0 %vm751_vm7, %v21820_v0  ;;  %30264 = vst [vmem:[#allocation92_spill] sm:$0xff] %v27636_v33  ;;  %v18502_v6 = vpack.c.bf16 %v10214_v32, %v10211_v21  ;;  %30265 = vst [vmem:[#allocation27_spill] sm:$0xff] %v27642_v63  ;;  %v10504_v10 = vsel %vm10501_vm15, %v30266_v29, %v21292_v51  ;;  %v30267_v0 = vunpack.i.h.bf16 %v30056_v1  ;;  %v30270_v21 = vld [vmem:[#allocation63_spill] sm:$0xff] }
 0x47c   : > { %11819 = vmatprep.mubr.f32.mxu1 %v29621_v57  ;;  %17540 = vmatmul.mubr.msk.f32.gmra.mrb[28].mxu0 %vm751_vm7, %v21821_v31  ;;  %v21187_v1 = vunpack.i.l.bf16 %v30269_v50  ;;  %v29544_v20 = vunpack.i.h.bf16 %v30270_v21  ;;  %v21202_v32 = vunpack.i.l.bf16 %v30270_v21  ;;  %v21826_v50 = vld [vmem:[%s29197_s5 + $0x5f0] sm:$0xff]  ;;  %v30280_v21 = vld [vmem:[#allocation38_spill] sm:$0xff] }
 0x47d   : > { %16266 = vmatmul.mubr.msk.f32.gmra.mrb[10].mxu1 %vm751_vm7, %v27603_v43  ;;  %17550 = vmatprep.mubr.msk.f32.mxu0 %vm751_vm7, %v21822_v34  ;;  %v10507_v31 = vsel %vm10501_vm15, %v30267_v0, %v21293_v38  ;;  %v27666_v22 = vpop.permute.xlu0 %21380  ;;  %v30272_v38 = vld [vmem:[#allocation79_spill] sm:$0xff]  ;;  %v21313_v0 = vunpack.i.h.bf16 %v27336_v25 }
 0x47e   : > { %11825 = vmatprep.mubr.f32.mxu1 %v29621_v57  ;;  %30271 = vst [vmem:[#allocation37_spill] sm:$0xff] %v27666_v22  ;;  %v21197_v34 = vunpack.i.l.bf16 %v30272_v38  ;;  %v18518_v29 = vpack.c.bf16 %v10507_v31, %v10504_v10  ;;  %v27689_v10 = vld [vmem:[%s29197_s5 + $0x718] sm:$0xff]  ;;  %v27697_v51 = vpop.permute.xlu1 %21385  ;;  %v30276_v63 = vunpack.i.h.bf16 %v30272_v38 }
 0x47f   : > { %30275 = vst [vmem:[#allocation64_spill] sm:$0xff] %v27697_v51 }
 0x480   : > { %17551 = vmatmul.mubr.msk.f32.vlgmr.msra.gmra.mrb[24].mxu0 %vm751_vm7, %v21823_v7  ;;  %v21825_v7 = vld [vmem:[%s29197_s5 + $0x5e8] sm:$0xff]  ;;  %v12303_v22 = vsel %vm12295_vm14, %v21197_v34, %v30276_v63  ;;  %v21318_v63 = vunpack.i.h.bf16 %v27360_v59 }
 0x481   : > { %18501 = vmatpush3.bf16.msra.mxu0 %v18498_v11  ;;  %16267 = vmatmul.mubr.msk.f32.gmra.mrb[12].mxu1 %vm751_vm7, %v27636_v33  ;;  %v27661_v11 = vld [vmem:[%s29197_s5 + $0x710] sm:$0xff]  ;;  %v21317_v33 = vunpack.i.l.bf16 %v27360_v59  ;;  %v27720_v43 = vpop.permute.xlu0 %21390  ;;  %v27736_v59 = vld [vmem:[%s29197_s5 + $0x720] sm:$0xff] }
 0x482   : > { %18504 = vmatprep.subr.msk.bf16.mxu0 %vm22552_vm6, %v18502_v6  ;;  %17553 = vmatprep.mubr.msk.f32.mxu0 %vm751_vm7, %v21824_v46  ;;  %30268 = vst [vmem:[#allocation28_spill] sm:$0xff] %v27661_v11  ;;  %v21312_v46 = vunpack.i.l.bf16 %v27336_v25  ;;  %v30273_v25 = vunpack.i.l.bf16 %v30248_v16 }
 0x483   : > { %11831 = vmatprep.mubr.f32.mxu1 %v29621_v57 }
 0x484   : > { %17554 = vmatmul.mubr.msk.f32.gmra.mrb[26].mxu0 %vm751_vm7, %v21825_v7  ;;  %v12299_v31 = vsel %vm12295_vm14, %v21188_v52, %v30273_v25  ;;  %v21207_v52 = vunpack.i.l.bf16 %v30277_v44  ;;  %v30278_v25 = vld [vmem:[#allocation102_spill] sm:$0xff] }
 0x485   : > { %18507 = vmatpush3.bf16.msk.msra.mxu0 %vm22552_vm6, %v18502_v6  ;;  %16268 = vmatmul.mubr.msk.f32.gmra.mrb[14].mxu1 %vm751_vm7, %v27661_v11  ;;  %v30274_v6 = vunpack.i.l.bf16 %v30249_v48  ;;  %v21208_v11 = vunpack.i.h.bf16 %v30277_v44  ;;  %v21828_v44 = vld [vmem:[%s29197_s5 + $0x600] sm:$0xff] }
 0x486   : > { %18519 = vmatprep.subr.bf16.mxu0 %v18518_v29  ;;  %17556 = vmatprep.mubr.msk.f32.mxu0 %vm751_vm7, %v21826_v50  ;;  %v12306_v50 = vsel %vm12295_vm14, %v21202_v32, %v29544_v20  ;;  %v30281_v20 = vunpack.i.h.bf16 %v30280_v21 }
 0x487   : > { %v12296_v7 = vsel %vm12295_vm14, %v21187_v1, %v30274_v6  ;;  %11837 = vmatprep.mubr.f32.mxu1 %v29621_v57  ;;  %v21827_v1 = vld [vmem:[%s29197_s5 + $0x5f8] sm:$0xff]  ;;  %v30279_v6 = vunpack.i.h.bf16 %v30278_v25  ;;  %v18632_v21 = vpack.c.bf16 %v12306_v50, %v12303_v22  ;;  %v27759_v22 = vld [vmem:[%s29197_s5 + $0x728] sm:$0xff] }
 0x488   : > { %17557 = vmatmul.mubr.msk.f32.gmra.mrb[28].mxu0 %vm751_vm7, %v21827_v1  ;;  %v10513_v38 = vsel %vm10501_vm15, %v30281_v20, %v21313_v0  ;;  %v12305_v1 = vsel %vm12295_vm14, %v21208_v11, %v21202_v32  ;;  %v27744_v0 = vpop.permute.xlu1 %21395  ;;  %v30282_v20 = vunpack.i.h.bf16 %v30085_v60  ;;  %v30283_v32 = vunpack.i.h.bf16 %v30084_v37 }
 0x489   : > { %v10510_v51 = vsel %vm10501_vm15, %v30279_v6, %v21312_v46  ;;  %16269 = vmatmul.mubr.msk.f32.gmra.mrb[16].mxu1 %vm751_vm7, %v27689_v10  ;;  %17567 = vmatprep.mubr.msk.f32.mxu0 %vm751_vm7, %v21828_v44  ;;  %v21829_v6 = vld [vmem:[%s29197_s5 + $0x608] sm:$0xff]  ;;  %v18630_v44 = vpack.c.bf16 %v12299_v31, %v12296_v7  ;;  %v12302_v46 = vsel %vm12295_vm14, %v21207_v52, %v21197_v34  ;;  %v30285_v34 = vunpack.i.l.bf16 %v26905_v42  ;;  %v27771_v31 = vpop.permute.xlu0 %21400  ;;  %v21830_v7 = vld [vmem:[%s29197_s5 + $0x610] sm:$0xff]  ;;  %v21831_v52 = vld [vmem:[%s29197_s5 + $0x618] sm:$0xff] }
 0x48a   : > { %12106 = vmatprep.mubr.f32.mxu1 %v29621_v57  ;;  %v18522_v25 = vpack.c.bf16 %v10513_v38, %v10510_v51  ;;  %v10803_v11 = vsel %vm10800_vm1, %v30282_v20, %v21317_v33  ;;  %v10806_v38 = vsel %vm10800_vm1, %v30283_v32, %v21318_v63  ;;  %v30284_v51 = vunpack.i.h.bf16 %v26905_v42 }
 0x48b   : > { %v30286_v33 = vunpack.i.h.bf16 %v26928_v2  ;;  %v30287_v37 = vunpack.i.l.bf16 %v26928_v2  ;;  %v18635_v50 = vpack.c.bf16 %v12305_v1, %v12302_v46  ;;  %v18538_v63 = vpack.c.bf16 %v10806_v38, %v10803_v11  ;;  %v27795_v1 = vld [vmem:[%s29197_s5 + $0x730] sm:$0xff] }
 0x48c   : > { %17568 = vmatmul.mubr.msk.f32.vlgmr.msra.gmra.mrb[24].mxu0 %vm751_vm7, %v21829_v6  ;;  %v12596_v60 = vsel %vm12594_vm0, %v30285_v34, %v30284_v51  ;;  %v21323_v20 = vunpack.i.h.bf16 %v27387_v24  ;;  %v27797_v6 = vpop.permute.xlu1 %21405  ;;  %v30289_v32 = vunpack.i.h.bf16 %v30103_v55  ;;  %v21343_v51 = vunpack.i.h.bf16 %v27474_v47  ;;  %v27828_v55 = vld [vmem:[%s29197_s5 + $0x738] sm:$0xff] }
 0x48d   : > { %18521 = vmatpush3.bf16.msra.mxu0 %v18518_v29  ;;  %16285 = vmatmul.mubr.msk.f32.vlgmr.msra.gmra.mrb[6].mxu1 %vm751_vm7, %v27736_v59  ;;  %v12599_v29 = vsel %vm12594_vm0, %v30287_v37, %v30286_v33  ;;  %v21342_v34 = vunpack.i.l.bf16 %v27474_v47  ;;  %v21834_v33 = vld [vmem:[%s29197_s5 + $0x630] sm:$0xff]  ;;  %v21835_v47 = vld [vmem:[%s29197_s5 + $0x638] sm:$0xff]  ;;  %vm30336_vm15 = vcmask 1014784  }
 0x48e   : > { %18631 = vmatpush1.bf16.msra.mxu1 %v18630_v44  ;;  %18524 = vmatprep.subr.msk.bf16.mxu0 %vm22552_vm6, %v18522_v25  ;;  %v18648_v46 = vpack.c.bf16 %v12599_v29, %v12596_v60  ;;  %v30288_v44 = vunpack.i.h.bf16 %v30104_v28  ;;  %v10812_v38 = vsel %vm10800_vm1, %v30289_v32, %v21323_v20  ;;  %v27816_v60 = vpop.permute.xlu0 %21410  ;;  %v30290_v29 = vunpack.i.h.bf16 %v30113_v30 }
 0x48f   : > { %18634 = vmatprep.subr.msk.bf16.mxu1 %vm22552_vm6, %v18632_v21  ;;  %17570 = vmatprep.mubr.msk.f32.mxu0 %vm751_vm7, %v21830_v7  ;;  %v21322_v21 = vunpack.i.l.bf16 %v27387_v24  ;;  %v21832_v24 = vld [vmem:[%s29197_s5 + $0x620] sm:$0xff]  ;;  %v21238_v20 = vunpack.i.h.bf16 %v26952_v56  ;;  %v21237_v30 = vunpack.i.l.bf16 %v26952_v56  ;;  %v21362_v56 = vunpack.i.l.bf16 %v27579_v4 }
 0x490   : > { %12112 = vmatprep.mubr.f32.mxu1 %v29621_v57  ;;  %17571 = vmatmul.mubr.msk.f32.gmra.mrb[26].mxu0 %vm751_vm7, %v21831_v52  ;;  %v27834_v37 = vpop.permute.xlu1 %21415  ;;  %v11102_v7 = vsel %vm11099_vm2, %v30290_v29, %v21342_v34  ;;  %v30295_v29 = vld [vmem:[#allocation59_spill] sm:$0xff] }
 0x491   : > { %18527 = vmatpush3.bf16.msk.msra.mxu0 %vm22552_vm6, %v18522_v25  ;;  %16286 = vmatmul.mubr.msk.f32.gmra.mrb[8].mxu1 %vm751_vm7, %v27759_v22  ;;  %v21833_v25 = vld [vmem:[%s29197_s5 + $0x628] sm:$0xff]  ;;  %v10809_v11 = vsel %vm10800_vm1, %v30288_v44, %v21322_v21  ;;  %v29548_v21 = vunpack.i.h.bf16 %v27024_v13  ;;  %v21363_v44 = vunpack.i.h.bf16 %v27579_v4  ;;  %v30293_v4 = vunpack.i.l.bf16 %v26905_v42  ;;  %vm30339_vm1 = vmmov %vm30336_vm15 }
 0x492   : > { %18637 = vmatpush1.bf16.msk.msra.mxu1 %vm22552_vm6, %v18635_v50  ;;  %18539 = vmatprep.subr.bf16.mxu0 %v18538_v63  ;;  %v18542_v28 = vpack.c.bf16 %v10812_v38, %v10809_v11  ;;  %v30291_v50 = vunpack.i.h.bf16 %v30112_v26  ;;  %v27856_v26 = vpop.permute.xlu0 %21420  ;;  %v27875_v11 = vld [vmem:[%s29197_s5 + $0x748] sm:$0xff]  ;;  %vm30366_vm10 = vmmov %vm30339_vm1 }
 0x493   : > { %18649 = vmatprep.subr.bf16.mxu1 %v18648_v46  ;;  %17573 = vmatprep.mubr.msk.f32.mxu0 %vm751_vm7, %v21832_v24  ;;  %v21252_v46 = vunpack.i.l.bf16 %v27024_v13  ;;  %v29549_v24 = vunpack.i.h.bf16 %v27005_v18  ;;  %v12595_v38 = vsel %vm12594_vm0, %v21237_v30, %v30293_v4  ;;  %v21367_v4 = vunpack.i.l.bf16 %v27605_v61  ;;  %vm30374_vm12 = vmmov %vm30339_vm1 }
 0x494   : > { %12118 = vmatprep.mubr.f32.mxu1 %v29621_v57  ;;  %17574 = vmatmul.mubr.msk.f32.gmra.mrb[28].mxu0 %vm751_vm7, %v21833_v25  ;;  %v11105_v52 = vsel %vm11099_vm2, %v30291_v50, %v21343_v51  ;;  %v27883_v51 = vpop.permute.xlu1 %21425  ;;  %vm30375_vm3 = vmmov %vm30339_vm1 }
 0x495   : > { %16287 = vmatmul.mubr.msk.f32.gmra.mrb[10].mxu1 %vm751_vm7, %v27795_v1  ;;  %17584 = vmatprep.mubr.msk.f32.mxu0 %vm751_vm7, %v21834_v33  ;;  %v18558_v25 = vpack.c.bf16 %v11105_v52, %v11102_v7  ;;  %v21258_v33 = vunpack.i.h.bf16 %v27042_v35  ;;  %v30296_v7 = vunpack.i.h.bf16 %v30295_v29  ;;  %v30297_v52 = vld [vmem:[#allocation106_spill] sm:$0xff] }
 0x496   : > { %12124 = vmatprep.mubr.f32.mxu1 %v29621_v57 }
 0x497   : > { %v11108_v50 = vsel %vm11099_vm2, %v30296_v7, %v21362_v56  ;;  %v30299_v56 = vunpack.i.h.bf16 %v25728_v45 }
 0x498   : > { %17585 = vmatmul.mubr.msk.f32.vlgmr.msra.gmra.mrb[24].mxu0 %vm751_vm7, %v21835_v47  ;;  %v30294_v47 = vld [vmem:[#allocation76_spill] sm:$0xff] }
 0x499   : > { %18541 = vmatpush3.bf16.msra.mxu0 %v18538_v63  ;;  %16288 = vmatmul.mubr.msk.f32.gmra.mrb[12].mxu1 %vm751_vm7, %v27828_v55  ;;  %v27851_v63 = vld [vmem:[%s29197_s5 + $0x740] sm:$0xff] }
 0x49a   : > { %18544 = vmatprep.subr.msk.bf16.mxu0 %vm22552_vm6, %v18542_v28  ;;  %17587 = vmatprep.mubr.msk.f32.mxu0 %vm751_vm7, %v26815_v15  ;;  %v21247_v15 = vunpack.i.l.bf16 %v27005_v18 }
 0x49b   : > { %12130 = vmatprep.mubr.f32.mxu1 %v29621_v57 }
 0x49c   : > { %17588 = vmatmul.mubr.msk.f32.gmra.mrb[26].mxu0 %vm751_vm7, %v26844_v54  ;;  %v30292_v54 = vunpack.i.l.bf16 %v26928_v2  ;;  %v12602_v34 = vsel %vm12594_vm0, %v21247_v15, %v29549_v24  ;;  %v27924_v24 = vpop.permute.xlu1 %21435 }
 0x49d   : > { %18547 = vmatpush3.bf16.msk.msra.mxu0 %vm22552_vm6, %v18542_v28  ;;  %16289 = vmatmul.mubr.msk.f32.gmra.mrb[14].mxu1 %vm751_vm7, %v27851_v63  ;;  %v21257_v28 = vunpack.i.l.bf16 %v27042_v35  ;;  %v11401_v35 = vsel %vm11398_vm4, %v30299_v56, %v21367_v4  ;;  %v27971_v4 = vld [vmem:[%s29197_s5 + $0x760] sm:$0xff]  ;;  %v30307_v56 = vld [vmem:[#allocation98_spill] sm:$0xff] }
 0x49e   : > { %18559 = vmatprep.subr.bf16.mxu0 %v18558_v25  ;;  %17590 = vmatprep.mubr.msk.f32.mxu0 %vm751_vm7, %v26869_v62  ;;  %v12598_v32 = vsel %vm12594_vm0, %v21238_v20, %v30292_v54  ;;  %v12605_v62 = vsel %vm12594_vm0, %v21252_v46, %v29548_v21  ;;  %v30298_v20 = vunpack.i.h.bf16 %v30297_v52  ;;  %v21368_v54 = vunpack.i.h.bf16 %v27605_v61  ;;  %v27904_v21 = vpop.permute.xlu0 %21430  ;;  %v27918_v61 = vld [vmem:[%s29197_s5 + $0x750] sm:$0xff] }
 0x49f   : > { %12136 = vmatprep.mubr.f32.mxu1 %v29621_v57  ;;  %v18650_v29 = vpack.c.bf16 %v12598_v32, %v12595_v38  ;;  %v18652_v7 = vpack.c.bf16 %v12605_v62, %v12602_v34  ;;  %v30300_v32 = vunpack.i.h.bf16 %v25722_v23  ;;  %v30302_v23 = vunpack.i.l.bf16 %v27175_v9  ;;  %v30303_v62 = vld [vmem:[#allocation50_spill] sm:$0xff] }
 0x4a0   : > { %17591 = vmatmul.mubr.msk.f32.gmra.mrb[28].mxu0 %vm751_vm7, %v30294_v47  ;;  %v11111_v30 = vsel %vm11099_vm2, %v30298_v20, %v21363_v44  ;;  %v29550_v47 = vunpack.i.h.bf16 %v27148_v19  ;;  %v21277_v44 = vunpack.i.l.bf16 %v27148_v19  ;;  %v12601_v20 = vsel %vm12594_vm0, %v21257_v28, %v21247_v15  ;;  %vm30361_vm2 = vmmov %vm30339_vm1 }
 0x4a1   : > { %16290 = vmatmul.mubr.msk.f32.gmra.mrb[16].mxu1 %vm751_vm7, %v27875_v11  ;;  %17601 = vmatprep.mubr.msk.f32.mxu0 %vm751_vm7, %v26944_v41  ;;  %v12604_v41 = vsel %vm12594_vm0, %v21258_v33, %v21252_v46  ;;  %v18562_v52 = vpack.c.bf16 %v11111_v30, %v11108_v50  ;;  %v11404_v46 = vsel %vm11398_vm4, %v30300_v32, %v21368_v54  ;;  %v30301_v15 = vunpack.i.h.bf16 %v27175_v9  ;;  %v30304_v33 = vld [vmem:[#allocation77_spill] sm:$0xff] }
 0x4a2   : > { %12405 = vmatprep.mubr.f32.mxu1 %v29621_v57  ;;  %v12895_v45 = vsel %vm12893_vm13, %v21277_v44, %v29550_v47  ;;  %v27951_v38 = vpop.permute.xlu0 %21440  ;;  %v18655_v34 = vpack.c.bf16 %v12604_v41, %v12601_v20  ;;  %v18578_v28 = vpack.c.bf16 %v11404_v46, %v11401_v35  ;;  %v21373_v50 = vunpack.i.h.bf16 %v27624_v49  ;;  %v27973_v35 = vpop.permute.xlu1 %21445  ;;  %v30327_v47 = vld [vmem:[#allocation69_spill] sm:$0xff] }
 0x4a3   : > { %v21372_v30 = vunpack.i.l.bf16 %v27624_v49  ;;  %30305 = vst [vmem:[#allocation95_spill] sm:$0xff] %v27973_v35  ;;  %v30306_v49 = vld [vmem:[#allocation78_spill] sm:$0xff]  ;;  %v21393_v46 = vunpack.i.h.bf16 %v27720_v43 }
 0x4a4   : > { %17602 = vmatmul.mubr.msk.f32.vlgmr.msra.gmra.mrb[24].mxu0 %vm751_vm7, %v26967_v53  ;;  %v27939_v53 = vld [vmem:[%s29197_s5 + $0x758] sm:$0xff] }
 0x4a5   : > { %18561 = vmatpush3.bf16.msra.mxu0 %v18558_v25  ;;  %16306 = vmatmul.mubr.msk.f32.vlgmr.msra.gmra.mrb[6].mxu1 %vm751_vm7, %v27918_v61  ;;  %v12898_v25 = vsel %vm12893_vm13, %v30302_v23, %v30301_v15  ;;  %v27998_v23 = vld [vmem:[%s29197_s5 + $0x768] sm:$0xff] }
 0x4a6   : > { %18651 = vmatpush1.bf16.msra.mxu1 %v18650_v29  ;;  %18564 = vmatprep.subr.msk.bf16.mxu0 %vm22552_vm6, %v18562_v52  ;;  %v18668_v54 = vpack.c.bf16 %v12898_v25, %v12895_v45  ;;  %v30308_v29 = vld [vmem:[#allocation53_spill] sm:$0xff]  ;;  %v21392_v45 = vunpack.i.l.bf16 %v27720_v43  ;;  %v27988_v15 = vpop.permute.xlu0 %21450  ;;  %v28002_v43 = vpop.permute.xlu1 %21455 }
 0x4a7   : > { %18654 = vmatprep.subr.msk.bf16.mxu1 %vm22552_vm6, %v18652_v7  ;;  %17604 = vmatprep.mubr.msk.f32.mxu0 %vm751_vm7, %v30303_v62  ;;  %v30309_v7 = vunpack.i.h.bf16 %v30308_v29  ;;  %30312 = vst [vmem:[#allocation94_spill] sm:$0xff] %v27988_v15  ;;  %30313 = vst [vmem:[#allocation24_spill] sm:$0xff] %v28002_v43  ;;  %v30314_v62 = vunpack.i.h.bf16 %v25914_v5  ;;  %v30319_v29 = vld [vmem:[#allocation86_spill] sm:$0xff]  ;;  %v30328_v43 = vunpack.i.h.bf16 %v30327_v47  ;;  %v21417_v15 = vunpack.i.l.bf16 %v27834_v37 }
 0x4a8   : > { %12411 = vmatprep.mubr.f32.mxu1 %v29621_v57  ;;  %17605 = vmatmul.mubr.msk.f32.gmra.mrb[26].mxu0 %vm751_vm7, %v30304_v33 }
 0x4a9   : > { %18567 = vmatpush3.bf16.msk.msra.mxu0 %vm22552_vm6, %v18562_v52  ;;  %16307 = vmatmul.mubr.msk.f32.gmra.mrb[8].mxu1 %vm751_vm7, %v27939_v53  ;;  %v11407_v41 = vsel %vm11398_vm4, %v30309_v7, %v21372_v30  ;;  %v30310_v52 = vld [vmem:[#allocation58_spill] sm:$0xff]  ;;  %v29555_v7 = vunpack.i.h.bf16 %v30319_v29 }
 0x4aa   : > { %18657 = vmatpush1.bf16.msk.msra.mxu1 %vm22552_vm6, %v18655_v34  ;;  %18579 = vmatprep.subr.bf16.mxu0 %v18578_v28  ;;  %v30311_v20 = vunpack.i.h.bf16 %v30310_v52  ;;  %v30315_v34 = vunpack.i.h.bf16 %v25909_v8  ;;  %v28024_v8 = vpop.permute.xlu0 %21460  ;;  %v30320_v52 = vld [vmem:[#allocation85_spill] sm:$0xff] }
 0x4ab   : > { %18669 = vmatprep.subr.bf16.mxu1 %v18668_v54  ;;  %17607 = vmatprep.mubr.msk.f32.mxu0 %vm751_vm7, %v30306_v49  ;;  %v30318_v54 = vld [vmem:[#allocation48_spill] sm:$0xff] }
 0x4ac   : > { %12417 = vmatprep.mubr.f32.mxu1 %v29621_v57  ;;  %17608 = vmatmul.mubr.msk.f32.gmra.mrb[28].mxu0 %vm751_vm7, %v30307_v56  ;;  %v11410_v32 = vsel %vm11398_vm4, %v30311_v20, %v21373_v50  ;;  %v11703_v33 = vsel %vm11697_vm8, %v30315_v34, %v21393_v46  ;;  %v30316_v50 = vld [vmem:[#allocation23_spill] sm:$0xff]  ;;  %v29553_v49 = vunpack.i.h.bf16 %v30318_v54  ;;  %v21302_v56 = vunpack.i.l.bf16 %v30318_v54  ;;  %vm30363_vm4 = vmmov %vm30339_vm1 }
 0x4ad   : > { %16308 = vmatmul.mubr.msk.f32.gmra.mrb[10].mxu1 %vm751_vm7, %v27971_v4  ;;  %17618 = vmatprep.mubr.msk.f32.mxu0 %vm751_vm7, %v27136_v27  ;;  %v18582_v25 = vpack.c.bf16 %v11410_v32, %v11407_v41  ;;  %v11700_v27 = vsel %vm11697_vm8, %v30314_v62, %v21392_v45  ;;  %v21297_v41 = vunpack.i.l.bf16 %v30319_v29  ;;  %v21413_v32 = vunpack.i.h.bf16 %v27816_v60  ;;  %v30321_v45 = vld [vmem:[#allocation87_spill] sm:$0xff]  ;;  %v28043_v62 = vld [vmem:[%s29197_s5 + $0x778] sm:$0xff] }
 0x4ae   : > { %12423 = vmatprep.mubr.f32.mxu1 %v29621_v57  ;;  %v18598_v20 = vpack.c.bf16 %v11703_v33, %v11700_v27  ;;  %v21412_v46 = vunpack.i.l.bf16 %v27816_v60  ;;  %v30322_v27 = vunpack.i.l.bf16 %v27175_v9  ;;  %v12904_v33 = vsel %vm12893_vm13, %v21302_v56, %v29553_v49 }
 0x4af   : > { %v11709_v35 = vsel %vm11697_vm8, %v30328_v43, %v21413_v32  ;;  %v21418_v49 = vunpack.i.h.bf16 %v27834_v37  ;;  %v28086_v37 = vld [vmem:[%s29197_s5 + $0x780] sm:$0xff] }
 0x4b0   : > { %17619 = vmatmul.mubr.msk.f32.vlgmr.msra.gmra.mrb[24].mxu0 %vm751_vm7, %v27163_v17  ;;  %v28019_v17 = vld [vmem:[%s29197_s5 + $0x770] sm:$0xff] }
 0x4b1   : > { %18581 = vmatpush3.bf16.msra.mxu0 %v18578_v28  ;;  %16309 = vmatmul.mubr.msk.f32.gmra.mrb[12].mxu1 %vm751_vm7, %v27998_v23  ;;  %v30317_v28 = vld [vmem:[#allocation82_spill] sm:$0xff] }
 0x4b2   : > { %18584 = vmatprep.subr.msk.bf16.mxu0 %vm22552_vm6, %v18582_v25  ;;  %17621 = vmatprep.mubr.msk.f32.mxu0 %vm751_vm7, %v30316_v50  ;;  %v21288_v30 = vunpack.i.h.bf16 %v30317_v28  ;;  %v21287_v5 = vunpack.i.l.bf16 %v30317_v28  ;;  %v12901_v50 = vsel %vm12893_vm13, %v21297_v41, %v29555_v7  ;;  %v30323_v28 = vld [vmem:[#allocation11_spill] sm:$0xff]  ;;  %v28072_v7 = vpop.permute.xlu0 %21470 }
 0x4b3   : > { %12429 = vmatprep.mubr.f32.mxu1 %v29621_v57 }
 0x4b4   : > { %17622 = vmatmul.mubr.msk.f32.gmra.mrb[26].mxu0 %vm751_vm7, %v30320_v52  ;;  %v12897_v34 = vsel %vm12893_vm13, %v21288_v30, %v30322_v27  ;;  %v12894_v60 = vsel %vm12893_vm13, %v21287_v5, %v21277_v44  ;;  %v21308_v52 = vunpack.i.h.bf16 %v30323_v28  ;;  %v21307_v30 = vunpack.i.l.bf16 %v30323_v28  ;;  %v30325_v44 = vld [vmem:[#allocation70_spill] sm:$0xff]  ;;  %v30330_v28 = vld [vmem:[#allocation5_spill] sm:$0xff] }
 0x4b5   : > { %18587 = vmatpush3.bf16.msk.msra.mxu0 %vm22552_vm6, %v18582_v25  ;;  %16310 = vmatmul.mubr.msk.f32.gmra.mrb[14].mxu1 %vm751_vm7, %v28019_v17  ;;  %v28051_v25 = vpop.permute.xlu1 %21465  ;;  %v30326_v5 = vunpack.i.h.bf16 %v30325_v44  ;;  %v18670_v32 = vpack.c.bf16 %v12897_v34, %v12894_v60  ;;  %v30331_v43 = vunpack.i.h.bf16 %v30330_v28  ;;  %v30332_v34 = vld [vmem:[#allocation4_spill] sm:$0xff] }
 0x4b6   : > { %18599 = vmatprep.subr.bf16.mxu0 %v18598_v20  ;;  %17624 = vmatprep.mubr.msk.f32.mxu0 %vm751_vm7, %v30321_v45  ;;  %v30324_v45 = vld [vmem:[#allocation9_spill] sm:$0xff]  ;;  %v12903_v44 = vsel %vm12893_vm13, %v21308_v52, %v21302_v56  ;;  %v30333_v60 = vunpack.i.h.bf16 %v30332_v34 }
 0x4b7   : > { %12435 = vmatprep.mubr.f32.mxu1 %v29621_v57  ;;  %v11706_v27 = vsel %vm11697_vm8, %v30326_v5, %v21412_v46  ;;  %v12900_v5 = vsel %vm12893_vm13, %v21307_v30, %v21297_v41  ;;  %v11999_v47 = vsel %vm11996_vm5, %v30331_v43, %v21417_v15  ;;  %v30335_v41 = vunpack.i.l.bf16 %v27413_v14  ;;  %v30341_v52 = vld [vmem:[#allocation89_spill] sm:$0xff]  ;;  %vm30365_vm8 = vmmov %vm30339_vm1 }
 0x4b8   : > { %17625 = vmatmul.mubr.msk.f32.gmra.mrb[28].mxu0 %vm751_vm7, %v30324_v45  ;;  %v18672_v45 = vpack.c.bf16 %v12904_v33, %v12901_v50  ;;  %v12002_v56 = vsel %vm11996_vm5, %v30333_v60, %v21418_v49  ;;  %v30337_v15 = vunpack.i.h.bf16 %v27432_v58  ;;  %v30338_v33 = vunpack.i.l.bf16 %v27432_v58  ;;  %v28119_v50 = vpop.permute.xlu0 %21480 }
 0x4b9   : > { %16311 = vmatmul.mubr.msk.f32.gmra.mrb[16].mxu1 %vm751_vm7, %v28043_v62  ;;  %17635 = vmatprep.mubr.msk.f32.mxu0 %vm751_vm7, %v27352_v12  ;;  %v18602_v12 = vpack.c.bf16 %v11709_v35, %v11706_v27  ;;  %v28092_v46 = vpop.permute.xlu1 %21475  ;;  %v30334_v35 = vunpack.i.h.bf16 %v27413_v14  ;;  %30340 = vst [vmem:[#allocation96_spill] sm:$0xff] %v28119_v50  ;;  %v18675_v30 = vpack.c.bf16 %v12903_v44, %v12900_v5  ;;  %v30342_v27 = vld [vmem:[#allocation88_spill] sm:$0xff]  ;;  %v21423_v43 = vunpack.i.h.bf16 %v27856_v26  ;;  %v28139_v44 = vld [vmem:[%s29197_s5 + $0x790] sm:$0xff] }
 0x4ba   : > { %12704 = vmatprep.mubr.f32.mxu1 %v29621_v57  ;;  %30329 = vst [vmem:[#allocation104_spill] sm:$0xff] %v28092_v46  ;;  %v13228_v49 = vsel %vm30339_vm1, %v30338_v33, %v30337_v15  ;;  %v18618_v28 = vpack.c.bf16 %v12002_v56, %v11999_v47  ;;  %v30346_v5 = vld [vmem:[#allocation73_spill] sm:$0xff]  ;;  %v30348_v56 = vld [vmem:[#allocation6_spill] sm:$0xff]  ;;  %v21442_v15 = vunpack.i.l.bf16 %v27951_v38  ;;  %v21467_v46 = vunpack.i.l.bf16 %v28051_v25 }
 0x4bb   : > { %v30347_v34 = vunpack.i.h.bf16 %v30346_v5 }
 0x4bc   : > { %17636 = vmatmul.mubr.msk.f32.vlgmr.msra.gmra.mrb[24].mxu0 %vm751_vm7, %v27375_v36  ;;  %v28107_v36 = vld [vmem:[%s29197_s5 + $0x788] sm:$0xff]  ;;  %v28156_v33 = vpop.permute.xlu0 %21490 }
 0x4bd   : > { %18601 = vmatpush3.bf16.msra.mxu0 %v18598_v20  ;;  %16327 = vmatmul.mubr.msk.f32.vlgmr.msra.gmra.mrb[6].mxu1 %vm751_vm7, %v28086_v37  ;;  %v13225_v20 = vsel %vm30336_vm15, %v30335_v41, %v30334_v35  ;;  %v28141_v47 = vpop.permute.xlu1 %21485  ;;  %v30349_v35 = vunpack.i.h.bf16 %v30348_v56 }
 0x4be   : > { %18671 = vmatpush1.bf16.msra.mxu1 %v18670_v32  ;;  %18604 = vmatprep.subr.msk.bf16.mxu0 %vm22552_vm6, %v18602_v12  ;;  %v21422_v32 = vunpack.i.l.bf16 %v27856_v26  ;;  %30343 = vst [vmem:[#allocation99_spill] sm:$0xff] %v28141_v47  ;;  %v30344_v26 = vld [vmem:[#allocation22_spill] sm:$0xff] }
 0x4bf   : > { %18674 = vmatprep.subr.msk.bf16.mxu1 %vm22552_vm6, %v18672_v45  ;;  %17638 = vmatprep.mubr.msk.f32.mxu0 %vm751_vm7, %v30341_v52  ;;  %v18688_v45 = vpack.c.bf16 %v13228_v49, %v13225_v20  ;;  %v12008_v41 = vsel %vm11996_vm5, %v30349_v35, %v21423_v43  ;;  %v21443_v20 = vunpack.i.h.bf16 %v27951_v38  ;;  %v28166_v49 = vld [vmem:[%s29197_s5 + $0x798] sm:$0xff]  ;;  %v30358_v35 = vld [vmem:[#allocation92_spill] sm:$0xff] }
 0x4c0   : > { %12710 = vmatprep.mubr.f32.mxu1 %v29621_v57  ;;  %17639 = vmatmul.mubr.msk.f32.gmra.mrb[26].mxu0 %vm751_vm7, %v30342_v27  ;;  %v12005_v60 = vsel %vm11996_vm5, %v30347_v34, %v21422_v32  ;;  %v30352_v27 = vunpack.i.h.bf16 %v30248_v16  ;;  %v30353_v32 = vld [vmem:[#allocation93_spill] sm:$0xff]  ;;  %v28192_v16 = vpop.permute.xlu0 %21500  ;;  %v30357_v34 = vld [vmem:[#allocation90_spill] sm:$0xff]  ;;  %vm30390_vm5 = vmmov %vm30380_vm9 }
 0x4c1   : > { %18607 = vmatpush3.bf16.msk.msra.mxu0 %vm22552_vm6, %v18602_v12  ;;  %16328 = vmatmul.mubr.msk.f32.gmra.mrb[8].mxu1 %vm751_vm7, %v28107_v36  ;;  %v30345_v12 = vld [vmem:[#allocation49_spill] sm:$0xff]  ;;  %v18622_v52 = vpack.c.bf16 %v12008_v41, %v12005_v60  ;;  %v28170_v38 = vpop.permute.xlu1 %21495  ;;  %30356 = vst [vmem:[#allocation13_spill] sm:$0xff] %v28192_v16  ;;  %v29562_v60 = vunpack.i.h.bf16 %v30357_v34  ;;  %v21347_v56 = vunpack.i.l.bf16 %v30357_v34 }
 0x4c2   : > { %18677 = vmatpush1.bf16.msk.msra.mxu1 %vm22552_vm6, %v18675_v30  ;;  %18619 = vmatprep.subr.bf16.mxu0 %v18618_v28  ;;  %30350 = vst [vmem:[#allocation14_spill] sm:$0xff] %v28170_v38  ;;  %v30351_v30 = vunpack.i.h.bf16 %v30249_v48  ;;  %v12301_v43 = vsel %vm12295_vm14, %v30352_v27, %v21443_v20  ;;  %v21463_v20 = vunpack.i.h.bf16 %v28024_v8  ;;  %v28211_v27 = vld [vmem:[%s29197_s5 + $0x7a8] sm:$0xff] }
 0x4c3   : > { %18689 = vmatprep.subr.bf16.mxu1 %v18688_v45  ;;  %17641 = vmatprep.mubr.msk.f32.mxu0 %vm751_vm7, %v30344_v26  ;;  %v30355_v26 = vld [vmem:[#allocation91_spill] sm:$0xff] }
 0x4c4   : > { %12716 = vmatprep.mubr.f32.mxu1 %v29621_v57  ;;  %17642 = vmatmul.mubr.msk.f32.gmra.mrb[28].mxu0 %vm751_vm7, %v30345_v12  ;;  %v29560_v12 = vunpack.i.h.bf16 %v30355_v26  ;;  %v21352_v5 = vunpack.i.l.bf16 %v30355_v26 }
 0x4c5   : > { %16329 = vmatmul.mubr.msk.f32.gmra.mrb[10].mxu1 %vm751_vm7, %v28139_v44  ;;  %17652 = vmatprep.mubr.msk.f32.mxu0 %vm751_vm7, %v27544_v39  ;;  %v12298_v39 = vsel %vm12295_vm14, %v30351_v30, %v21442_v15  ;;  %v21462_v15 = vunpack.i.l.bf16 %v28024_v8  ;;  %v30359_v30 = vld [vmem:[#allocation28_spill] sm:$0xff]  ;;  %v30362_v8 = vunpack.i.l.bf16 %v27413_v14 }
 0x4c6   : > { %12722 = vmatprep.mubr.f32.mxu1 %v29621_v57  ;;  %v18638_v41 = vpack.c.bf16 %v12301_v43, %v12298_v39  ;;  %v30360_v39 = vunpack.i.l.bf16 %v27432_v58 }
 0x4c8   : > { %17653 = vmatmul.mubr.msk.f32.vlgmr.msra.gmra.mrb[24].mxu0 %vm751_vm7, %v27567_v40  ;;  %v28187_v40 = vld [vmem:[%s29197_s5 + $0x7a0] sm:$0xff] }
 0x4c9   : > { %18621 = vmatpush3.bf16.msra.mxu0 %v18618_v28  ;;  %16330 = vmatmul.mubr.msk.f32.gmra.mrb[12].mxu1 %vm751_vm7, %v28166_v49  ;;  %v30354_v28 = vld [vmem:[#allocation26_spill] sm:$0xff] }
 0x4ca   : > { %18624 = vmatprep.subr.msk.bf16.mxu0 %vm22552_vm6, %v18622_v52  ;;  %17655 = vmatprep.mubr.msk.f32.mxu0 %vm751_vm7, %v30353_v32  ;;  %v21338_v45 = vunpack.i.h.bf16 %v30354_v28  ;;  %v21337_v48 = vunpack.i.l.bf16 %v30354_v28  ;;  %v28219_v32 = vpop.permute.xlu1 %21505  ;;  %v13234_v28 = vsel %vm30365_vm8, %v21352_v5, %v29560_v12  ;;  %v21468_v12 = vunpack.i.h.bf16 %v28051_v25  ;;  %v28254_v25 = vld [vmem:[%s29197_s5 + $0x7b0] sm:$0xff] }
 0x4cb   : > { %12728 = vmatprep.mubr.f32.mxu1 %v29621_v57  ;;  %30364 = vst [vmem:[#allocation54_spill] sm:$0xff] %v28219_v32  ;;  %v30370_v32 = vld [vmem:[#allocation63_spill] sm:$0xff]  ;;  %vm30402_vm8 = vcmask 998400  }
 0x4cc   : > { %17656 = vmatmul.mubr.msk.f32.gmra.mrb[26].mxu0 %vm751_vm7, %v30358_v35  ;;  %v13227_v43 = vsel %vm30361_vm2, %v21338_v45, %v30360_v39  ;;  %v13231_v35 = vsel %vm30366_vm10, %v21347_v56, %v29562_v60  ;;  %v30371_v16 = vunpack.i.h.bf16 %v30370_v32  ;;  %v28240_v60 = vpop.permute.xlu0 %21510  ;;  %vm30403_vm10 = vmmov %vm30402_vm8 }
 0x4cd   : > { %18627 = vmatpush3.bf16.msk.msra.mxu0 %vm22552_vm6, %v18622_v52  ;;  %16331 = vmatmul.mubr.msk.f32.gmra.mrb[14].mxu1 %vm751_vm7, %v28187_v40  ;;  %v13224_v52 = vsel %vm30363_vm4, %v21337_v48, %v30362_v8  ;;  %v30368_v48 = vld [vmem:[#allocation79_spill] sm:$0xff]  ;;  %vm30401_vm4 = vmmov %vm30361_vm2 }
 0x4ce   : > { %18639 = vmatprep.subr.bf16.mxu0 %v18638_v41  ;;  %17658 = vmatprep.mubr.msk.f32.mxu0 %vm751_vm7, %v30359_v30  ;;  %v30367_v30 = vld [vmem:[#allocation25_spill] sm:$0xff]  ;;  %v30369_v39 = vunpack.i.h.bf16 %v30368_v48  ;;  %v12307_v47 = vsel %vm12295_vm14, %v30371_v16, %v21463_v20  ;;  %v30373_v48 = vld [vmem:[#allocation27_spill] sm:$0xff]  ;;  %v18690_v20 = vpack.c.bf16 %v13227_v43, %v13224_v52  ;;  %v30376_v16 = vunpack.i.h.bf16 %v26905_v42 }
 0x4cf   : > { %12734 = vmatprep.mubr.f32.mxu1 %v29621_v57  ;;  %v21358_v38 = vunpack.i.h.bf16 %v30367_v30  ;;  %v21357_v45 = vunpack.i.l.bf16 %v30367_v30  ;;  %v28260_v30 = vpop.permute.xlu1 %21515  ;;  %v30377_v43 = vunpack.i.h.bf16 %v26928_v2 }
 0x4d0   : > { %17659 = vmatmul.mubr.msk.f32.gmra.mrb[28].mxu0 %vm751_vm7, %v27689_v10  ;;  %v12304_v8 = vsel %vm12295_vm14, %v30369_v39, %v21462_v15  ;;  %v30372_v10 = vld [vmem:[#allocation37_spill] sm:$0xff]  ;;  %v18692_v39 = vpack.c.bf16 %v13234_v28, %v13231_v35  ;;  %v12597_v32 = vsel %vm12594_vm0, %v30376_v16, %v21467_v46  ;;  %v21473_v28 = vunpack.i.h.bf16 %v28072_v7  ;;  %vm30392_vm14 = vmmov %vm30390_vm5 }
 0x4d1   : > { %16332 = vmatmul.mubr.msk.f32.gmra.mrb[16].mxu1 %vm751_vm7, %v28211_v27  ;;  %17669 = vmatprep.mubr.msk.f32.mxu0 %vm751_vm7, %v27736_v59  ;;  %v13233_v50 = vsel %vm30374_vm12, %v21358_v38, %v21352_v5  ;;  %v18642_v59 = vpack.c.bf16 %v12307_v47, %v12304_v8  ;;  %v13230_v15 = vsel %vm30375_vm3, %v21357_v45, %v21347_v56  ;;  %v30378_v47 = vunpack.i.h.bf16 %v30373_v48  ;;  %v28287_v56 = vpop.permute.xlu0 %21520  ;;  %vm30405_vm12 = vmmov %vm30361_vm2 }
 0x4d2   : > { %13003 = vmatprep.mubr.f32.mxu1 %v29621_v57  ;;  %v12600_v38 = vsel %vm12594_vm0, %v30377_v43, %v21468_v12  ;;  %v30379_v5 = vunpack.i.l.bf16 %v30373_v48  ;;  %v30381_v46 = vunpack.i.h.bf16 %v30372_v10  ;;  %v30382_v2 = vunpack.i.l.bf16 %v30372_v10  ;;  %vm30407_vm3 = vmmov %vm30361_vm2 }
 0x4d3   : > { %v18658_v52 = vpack.c.bf16 %v12600_v38, %v12597_v32  ;;  %v21472_v35 = vunpack.i.l.bf16 %v28072_v7  ;;  %v30384_v7 = vunpack.i.h.bf16 %v27005_v18  ;;  %v30385_v8 = vunpack.i.h.bf16 %v27024_v13  ;;  %v28334_v18 = vld [vmem:[%s29197_s5 + $0x7c8] sm:$0xff] }
 0x4d4   : > { %17670 = vmatmul.mubr.msk.f32.vlgmr.msra.gmra.mrb[24].mxu0 %vm751_vm7, %v27759_v22  ;;  %v28275_v22 = vld [vmem:[%s29197_s5 + $0x7b8] sm:$0xff]  ;;  %v13523_v42 = vsel %vm30380_vm9, %v30379_v5, %v30378_v47  ;;  %v13526_v12 = vsel %vm30383_vm11, %v30382_v2, %v30381_v46  ;;  %v21493_v32 = vunpack.i.h.bf16 %v28156_v33  ;;  %v21492_v16 = vunpack.i.l.bf16 %v28156_v33 }
 0x4d5   : > { %18641 = vmatpush3.bf16.msra.mxu0 %v18638_v41  ;;  %16348 = vmatmul.mubr.msk.f32.vlgmr.msra.gmra.mrb[6].mxu1 %vm751_vm7, %v28254_v25  ;;  %v18695_v41 = vpack.c.bf16 %v13233_v50, %v13230_v15  ;;  %v18708_v45 = vpack.c.bf16 %v13526_v12, %v13523_v42  ;;  %v12603_v50 = vsel %vm12594_vm0, %v30384_v7, %v21472_v35  ;;  %v30387_v33 = vunpack.i.h.bf16 %v27175_v9  ;;  %v28379_v12 = vld [vmem:[%s29197_s5 + $0x7d8] sm:$0xff] }
 0x4d6   : > { %18691 = vmatpush1.bf16.msra.mxu1 %v18690_v20  ;;  %18644 = vmatprep.subr.msk.bf16.mxu0 %vm22552_vm6, %v18642_v59  ;;  %v12606_v15 = vsel %vm12594_vm0, %v30385_v8, %v21473_v28  ;;  %v28324_v20 = vpop.permute.xlu0 %21530  ;;  %v21403_v38 = vunpack.i.h.bf16 %v27771_v31  ;;  %v21402_v47 = vunpack.i.l.bf16 %v27771_v31  ;;  %v21398_v5 = vunpack.i.h.bf16 %v27744_v0  ;;  %vm30393_vm0 = vmmov %vm30390_vm5 }
 0x4d7   : > { %18694 = vmatprep.subr.msk.bf16.mxu1 %vm22552_vm6, %v18692_v39  ;;  %17672 = vmatprep.mubr.msk.f32.mxu0 %vm751_vm7, %v27795_v1  ;;  %v28307_v1 = vld [vmem:[%s29197_s5 + $0x7c0] sm:$0xff]  ;;  %v18662_v13 = vpack.c.bf16 %v12606_v15, %v12603_v50  ;;  %v12899_v39 = vsel %vm12893_vm13, %v30387_v33, %v21493_v32  ;;  %v21513_v46 = vunpack.i.h.bf16 %v28240_v60  ;;  %v21512_v2 = vunpack.i.l.bf16 %v28240_v60  ;;  %vm30394_vm15 = vmmov %vm30393_vm0 }
 0x4d8   : > { %13009 = vmatprep.mubr.f32.mxu1 %v29621_v57  ;;  %17673 = vmatmul.mubr.msk.f32.gmra.mrb[26].mxu0 %vm751_vm7, %v27828_v55  ;;  %v28309_v55 = vpop.permute.xlu1 %21525  ;;  %v30391_v60 = vunpack.i.l.bf16 %v30373_v48  ;;  %v21407_v7 = vunpack.i.l.bf16 %v27797_v6  ;;  %v30395_v50 = vunpack.i.h.bf16 %v30319_v29  ;;  %v30396_v15 = vunpack.i.h.bf16 %v30318_v54  ;;  %vm30398_vm1 = vmmov %vm30393_vm0 }
 0x4d9   : > { %18647 = vmatpush3.bf16.msk.msra.mxu0 %vm22552_vm6, %v18642_v59  ;;  %16349 = vmatmul.mubr.msk.f32.gmra.mrb[8].mxu1 %vm751_vm7, %v28275_v22  ;;  %v30388_v59 = vld [vmem:[#allocation64_spill] sm:$0xff]  ;;  %v21432_v29 = vunpack.i.l.bf16 %v27904_v21  ;;  %v21428_v54 = vunpack.i.h.bf16 %v27883_v51  ;;  %vm30409_vm9 = vmmov %vm30393_vm0 }
 0x4da   : > { %18697 = vmatpush1.bf16.msk.msra.mxu1 %vm22552_vm6, %v18695_v41  ;;  %18659 = vmatprep.subr.bf16.mxu0 %v18658_v52  ;;  %v21388_v43 = vunpack.i.h.bf16 %v30388_v59  ;;  %v28360_v9 = vpop.permute.xlu0 %21540  ;;  %v12902_v8 = vsel %vm12893_vm13, %v30395_v50, %v21512_v2  ;;  %v12905_v32 = vsel %vm12893_vm13, %v30396_v15, %v21513_v46  ;;  %v30400_v2 = vunpack.i.h.bf16 %v27432_v58  ;;  %vm30411_vm11 = vmmov %vm30393_vm0 }
 0x4db   : > { %18709 = vmatprep.subr.bf16.mxu1 %v18708_v45  ;;  %17675 = vmatprep.mubr.msk.f32.mxu0 %vm751_vm7, %v27851_v63  ;;  %v21408_v45 = vunpack.i.h.bf16 %v27797_v6  ;;  %v21433_v6 = vunpack.i.h.bf16 %v27904_v21  ;;  %v21542_v50 = vunpack.i.l.bf16 %v28360_v9 }
 0x4dc   : > { %13015 = vmatprep.mubr.f32.mxu1 %v29621_v57  ;;  %17676 = vmatmul.mubr.msk.f32.gmra.mrb[28].mxu0 %vm751_vm7, %v27875_v11  ;;  %v28338_v63 = vpop.permute.xlu1 %21535  ;;  %v30386_v11 = vunpack.i.h.bf16 %v27148_v19  ;;  %v21387_v19 = vunpack.i.l.bf16 %v30388_v59 }
 0x4dd   : > { %16350 = vmatmul.mubr.msk.f32.gmra.mrb[10].mxu1 %vm751_vm7, %v28307_v1  ;;  %17686 = vmatprep.mubr.msk.f32.mxu0 %vm751_vm7, %v27918_v61  ;;  %v13824_v58 = vsel %vm30403_vm10, %v21432_v29, %v21433_v6 }
 0x4de   : > { %13021 = vmatprep.mubr.f32.mxu1 %v29621_v57  ;;  %v12896_v61 = vsel %vm12893_vm13, %v30386_v11, %v21492_v16  ;;  %v21518_v16 = vunpack.i.h.bf16 %v28260_v30  ;;  %v28408_v11 = vpop.permute.xlu0 %21550  ;;  %vm30397_vm13 = vmmov %vm30393_vm0 }
 0x4df   : > { %v18678_v42 = vpack.c.bf16 %v12899_v39, %v12896_v61  ;;  %v13531_v39 = vsel %vm30397_vm13, %v21408_v45, %v21402_v47  ;;  %vm30419_vm13 = vmmov %vm30398_vm1 }
 0x4e0   : > { %17687 = vmatmul.mubr.msk.f32.vlgmr.msra.gmra.mrb[24].mxu0 %vm751_vm7, %v27939_v53  ;;  %v28355_v53 = vld [vmem:[%s29197_s5 + $0x7d0] sm:$0xff]  ;;  %v28387_v28 = vpop.permute.xlu1 %21545 }
 0x4e1   : > { %18661 = vmatpush3.bf16.msra.mxu0 %v18658_v52  ;;  %16351 = vmatmul.mubr.msk.f32.gmra.mrb[12].mxu1 %vm751_vm7, %v28334_v18  ;;  %v13522_v52 = vsel %vm30392_vm14, %v21387_v19, %v30391_v60  ;;  %v30399_v19 = vunpack.i.h.bf16 %v27413_v14  ;;  %v21522_v60 = vunpack.i.l.bf16 %v28287_v56 }
 0x4e2   : > { %18664 = vmatprep.subr.msk.bf16.mxu0 %vm22552_vm6, %v18662_v13  ;;  %17689 = vmatprep.mubr.msk.f32.mxu0 %vm751_vm7, %v27971_v4  ;;  %v21397_v4 = vunpack.i.l.bf16 %v27744_v0 }
 0x4e3   : > { %13027 = vmatprep.mubr.f32.mxu1 %v29621_v57 }
 0x4e4   : > { %17690 = vmatmul.mubr.msk.f32.gmra.mrb[26].mxu0 %vm751_vm7, %v27998_v23  ;;  %v30389_v23 = vunpack.i.l.bf16 %v30372_v10  ;;  %v13529_v35 = vsel %vm30394_vm15, %v21397_v4, %v21398_v5  ;;  %v13528_v59 = vsel %vm30398_vm1, %v21407_v7, %v21397_v4  ;;  %v28455_v4 = vpop.permute.xlu0 %21560  ;;  %v21543_v7 = vunpack.i.h.bf16 %v28360_v9 }
 0x4e5   : > { %18667 = vmatpush3.bf16.msk.msra.mxu0 %vm22552_vm6, %v18662_v13  ;;  %16352 = vmatmul.mubr.msk.f32.gmra.mrb[14].mxu1 %vm751_vm7, %v28355_v53  ;;  %v21517_v13 = vunpack.i.l.bf16 %v28260_v30  ;;  %v28422_v30 = vld [vmem:[%s29197_s5 + $0x7e0] sm:$0xff]  ;;  %v30410_v9 = vunpack.i.h.bf16 %v30372_v10 }
 0x4e6   : > { %18679 = vmatprep.subr.bf16.mxu0 %v18678_v42  ;;  %17692 = vmatprep.mubr.msk.f32.mxu0 %vm751_vm7, %v28019_v17  ;;  %v13525_v41 = vsel %vm30390_vm5, %v21388_v43, %v30389_v23  ;;  %v13532_v17 = vsel %vm30393_vm0, %v21402_v47, %v21403_v38  ;;  %v28428_v43 = vpop.permute.xlu1 %21555  ;;  %v13229_v47 = vsel %vm30401_vm4, %v30400_v2, %v21518_v16  ;;  %v30412_v16 = vld [vmem:[#allocation94_spill] sm:$0xff]  ;;  %vm30414_vm5 = vmmov %vm30402_vm8 }
 0x4e7   : > { %13033 = vmatprep.mubr.f32.mxu1 %v29621_v57  ;;  %v18710_v61 = vpack.c.bf16 %v13525_v41, %v13522_v52  ;;  %v18712_v33 = vpack.c.bf16 %v13532_v17, %v13529_v35  ;;  %v13226_v46 = vsel %vm30361_vm2, %v30399_v19, %v21517_v13  ;;  %v21523_v41 = vunpack.i.h.bf16 %v28287_v56  ;;  %v16366_v19 = vld [vmem:[%s29197_s5 + $0x808] sm:$0xff]  ;;  %vm30415_vm14 = vmmov %vm30414_vm5 }
 0x4e8   : > { %17693 = vmatmul.mubr.msk.f32.gmra.mrb[28].mxu0 %vm751_vm7, %v28043_v62  ;;  %v21427_v62 = vunpack.i.l.bf16 %v27883_v51  ;;  %v18698_v23 = vpack.c.bf16 %v13229_v47, %v13226_v46  ;;  %v30404_v56 = vunpack.i.h.bf16 %v30357_v34  ;;  %v30406_v35 = vunpack.i.h.bf16 %v30355_v26  ;;  %vm30416_vm0 = vmmov %vm30414_vm5 }
 0x4e9   : > { %16353 = vmatmul.mubr.msk.f32.gmra.mrb[16].mxu1 %vm751_vm7, %v28379_v12  ;;  %17703 = vmatprep.mubr.msk.f32.mxu0 %vm751_vm7, %v28086_v37  ;;  %v18682_v37 = vpack.c.bf16 %v12905_v32, %v12902_v8  ;;  %v28492_v8 = vpop.permute.xlu0 %21570  ;;  %v13527_v15 = vsel %vm30411_vm11, %v30410_v9, %v21543_v7  ;;  %v21438_v32 = vunpack.i.h.bf16 %v27924_v24  ;;  %v21453_v13 = vunpack.i.h.bf16 %v30412_v16  ;;  %vm30417_vm15 = vmmov %vm30416_vm0 }
 0x4ea   : > { %13333 = vmatprep.mubr.f32.mxu1 %v29621_v57  ;;  %v13821_v14 = vsel %vm30402_vm8, %v21427_v62, %v21428_v54  ;;  %v13232_v17 = vsel %vm30405_vm12, %v30404_v56, %v21522_v60  ;;  %v13235_v45 = vsel %vm30407_vm3, %v30406_v35, %v21523_v41  ;;  %vm14118_vm2 = vcmask 990208   ;;  %vm30422_vm4 = vmmov %vm30416_vm0 }
 0x4eb   : > { %v18728_v52 = vpack.c.bf16 %v13824_v58, %v13821_v14  ;;  %v18702_v26 = vpack.c.bf16 %v13235_v45, %v13232_v17  ;;  %v30418_v14 = vld [vmem:[#allocation24_spill] sm:$0xff]  ;;  %vm30423_vm8 = vmmov %vm30416_vm0  ;;  %vm14417_vm11 = vcmask 982016  }
 0x4ec   : > { %17704 = vmatmul.mubr.msk.f32.vlgmr.msra.gmra.mrb[24].mxu0 %vm751_vm7, %v28107_v36  ;;  %v28443_v36 = vld [vmem:[%s29197_s5 + $0x7e8] sm:$0xff]  ;;  %v21458_v58 = vunpack.i.h.bf16 %v30418_v14  ;;  %vm30424_vm10 = vmmov %vm30416_vm0 }
 0x4ed   : > { %18681 = vmatpush3.bf16.msra.mxu0 %v18678_v42  ;;  %16369 = vmatmul.mubr.msk.f32.vlgmr.msra.gmra.mrb[6].mxu1 %vm751_vm7, %v28422_v30  ;;  %v18715_v42 = vpack.c.bf16 %v13531_v39, %v13528_v59  ;;  %v28528_v10 = vpop.permute.xlu0 %21580  ;;  %v21563_v59 = vunpack.i.h.bf16 %v28455_v4  ;;  %vm30425_vm12 = vmmov %vm30416_vm0 }
 0x4ee   : > { %18711 = vmatpush1.bf16.msra.mxu1 %v18710_v61  ;;  %18684 = vmatprep.subr.msk.bf16.mxu0 %vm22552_vm6, %v18682_v37  ;;  %v21452_v61 = vunpack.i.l.bf16 %v30412_v16  ;;  %vm30426_vm3 = vmmov %vm30416_vm0 }
 0x4ef   : > { %18714 = vmatprep.subr.msk.bf16.mxu1 %vm22552_vm6, %v18712_v33  ;;  %17706 = vmatprep.mubr.msk.f32.mxu0 %vm751_vm7, %v28139_v44  ;;  %v28475_v44 = vld [vmem:[%s29197_s5 + $0x7f0] sm:$0xff]  ;;  %v30413_v33 = vld [vmem:[#allocation95_spill] sm:$0xff] }
 0x4f0   : > { %13339 = vmatprep.mubr.f32.mxu1 %v29621_v57  ;;  %17707 = vmatmul.mubr.msk.f32.gmra.mrb[26].mxu0 %vm751_vm7, %v28166_v49  ;;  %v28477_v49 = vpop.permute.xlu1 %21565  ;;  %v21448_v39 = vunpack.i.h.bf16 %v30413_v33  ;;  %v13829_v17 = vsel %vm30422_vm4, %v21458_v58, %v21452_v61 }
 0x4f1   : > { %18687 = vmatpush3.bf16.msk.msra.mxu0 %vm22552_vm6, %v18682_v37  ;;  %16370 = vmatmul.mubr.msk.f32.gmra.mrb[8].mxu1 %vm751_vm7, %v28443_v36  ;;  %v28574_v41 = vpop.permute.xlu0 %21590 }
 0x4f2   : > { %18717 = vmatpush1.bf16.msk.msra.mxu1 %vm22552_vm6, %v18715_v42  ;;  %18699 = vmatprep.subr.bf16.mxu0 %v18698_v23  ;;  %v21568_v42 = vunpack.i.h.bf16 %v28477_v49 }
 0x4f3   : > { %18729 = vmatprep.subr.bf16.mxu1 %v18728_v52  ;;  %17709 = vmatprep.mubr.msk.f32.mxu0 %vm751_vm7, %v28187_v40  ;;  %v28502_v40 = vld [vmem:[%s29197_s5 + $0x7f8] sm:$0xff] }
 0x4f4   : > { %13345 = vmatprep.mubr.f32.mxu1 %v29621_v57  ;;  %17710 = vmatmul.mubr.msk.f32.gmra.mrb[28].mxu0 %vm751_vm7, %v28211_v27  ;;  %v28506_v34 = vpop.permute.xlu1 %21575  ;;  %v30408_v27 = vunpack.i.h.bf16 %v30373_v48  ;;  %v21437_v48 = vunpack.i.l.bf16 %v27924_v24  ;;  %v21562_v24 = vunpack.i.l.bf16 %v28455_v4  ;;  %v13533_v4 = vsel %vm30398_vm1, %v21403_v38, %v21563_v59  ;;  %v16382_v38 = vld [vmem:[%s29197_s5 + $0x810] sm:$0xff] }
 0x4f5   : > { %16371 = vmatmul.mubr.msk.f32.gmra.mrb[10].mxu1 %vm751_vm7, %v28475_v44  ;;  %17720 = vmatprep.mubr.msk.f32.mxu0 %vm751_vm7, %v28254_v25 }
 0x4f6   : > { %13351 = vmatprep.mubr.f32.mxu1 %v29621_v57  ;;  %v13524_v25 = vsel %vm30409_vm9, %v30408_v27, %v21542_v50  ;;  %v13820_v46 = vsel %vm30415_vm14, %v21437_v48, %v21427_v62  ;;  %v13530_v62 = vsel %vm30419_vm13, %v21398_v5, %v21562_v24  ;;  %v30421_v5 = vld [vmem:[#allocation104_spill] sm:$0xff]  ;;  %v13825_v50 = vsel %vm30425_vm12, %v21433_v6, %v21568_v42  ;;  %vm30427_vm9 = vmmov %vm30416_vm0  ;;  %v16387_v42 = vld [vmem:[%s29197_s5 + $0x838] sm:$0xff] }
 0x4f7   : > { %v18718_v37 = vpack.c.bf16 %v13527_v15, %v13524_v25  ;;  %v21478_v52 = vunpack.i.h.bf16 %v30421_v5  ;;  %v21477_v31 = vunpack.i.l.bf16 %v30421_v5  ;;  %v21573_v27 = vunpack.i.h.bf16 %v28492_v8 }
 0x4f8   : > { %17721 = vmatmul.mubr.msk.f32.vlgmr.msra.gmra.mrb[24].mxu0 %vm751_vm7, %v28275_v22  ;;  %v28523_v22 = vld [vmem:[%s29197_s5 + $0x800] sm:$0xff]  ;;  %v28553_v2 = vpop.permute.xlu1 %21585  ;;  %v21572_v25 = vunpack.i.l.bf16 %v28492_v8  ;;  %v21592_v48 = vunpack.i.l.bf16 %v28574_v41  ;;  %vm15015_vm14 = vcmask 965632  }
 0x4f9   : > { %16372 = vmatmul.mubr.msk.f32.gmra.mrb[12].mxu1 %vm751_vm7, %v28502_v40  ;;  %18701 = vmatpush3.bf16.msra.mxu0 %v18698_v23  ;;  %v21567_v23 = vunpack.i.l.bf16 %v28477_v49  ;;  %v13831_v15 = vsel %vm30427_vm9, %v21453_v13, %v21573_v27 }
 0x4fa   : > { %18704 = vmatprep.subr.msk.bf16.mxu0 %vm22552_vm6, %v18702_v26  ;;  %17723 = vmatprep.mubr.msk.f32.mxu0 %vm751_vm7, %v28307_v1  ;;  %v21447_v1 = vunpack.i.l.bf16 %v30413_v33  ;;  %v13828_v8 = vsel %vm30426_vm3, %v21448_v39, %v21572_v25 }
 0x4fb   : > { %13357 = vmatprep.mubr.f32.mxu1 %v29621_v57  ;;  %v13822_v7 = vsel %vm30424_vm10, %v21428_v54, %v21567_v23  ;;  %v28611_v54 = vpop.permute.xlu0 %21600  ;;  %v18742_v33 = vpack.c.bf16 %v13831_v15, %v13828_v8  ;;  %v16403_v23 = vld [vmem:[%s29197_s5 + $0x840] sm:$0xff]  ;;  %v16405_v8 = vld [vmem:[%s29197_s5 + $0x850] sm:$0xff] }
 0x4fc   : > { %17724 = vmatmul.mubr.msk.f32.gmra.mrb[26].mxu0 %vm751_vm7, %v28334_v18  ;;  %v13823_v18 = vsel %vm30414_vm5, %v21438_v32, %v21432_v29  ;;  %v13827_v47 = vsel %vm30417_vm15, %v21447_v1, %v21448_v39  ;;  %v21457_v29 = vunpack.i.l.bf16 %v30418_v14  ;;  %v28591_v45 = vpop.permute.xlu1 %21595  ;;  %v18738_v6 = vpack.c.bf16 %v13825_v50, %v13822_v7  ;;  %v16404_v7 = vld [vmem:[%s29197_s5 + $0x848] sm:$0xff] }
 0x4fd   : > { %16373 = vmatmul.mubr.msk.f32.gmra.mrb[14].mxu1 %vm751_vm7, %v28523_v22  ;;  %18707 = vmatpush3.bf16.msk.msra.mxu0 %vm22552_vm6, %v18702_v26  ;;  %v18730_v49 = vpack.c.bf16 %v13823_v18, %v13820_v46  ;;  %v14120_v26 = vsel %vm14118_vm2, %v21477_v31, %v21478_v52  ;;  %v21593_v32 = vunpack.i.h.bf16 %v28574_v41  ;;  %v21528_v50 = vunpack.i.h.bf16 %v28309_v55 }
 0x4fe   : > { %18719 = vmatprep.subr.bf16.mxu0 %v18718_v37  ;;  %17726 = vmatprep.mubr.msk.f32.mxu0 %vm751_vm7, %v28355_v53  ;;  %v13830_v53 = vsel %vm30416_vm0, %v21452_v61, %v21453_v13  ;;  %v13826_v35 = vsel %vm30423_vm8, %v21457_v29, %v21447_v1  ;;  %v14121_v13 = vsel %vm14118_vm2, %v21478_v52, %v21592_v48  ;;  %v16386_v1 = vld [vmem:[%s29197_s5 + $0x830] sm:$0xff]  ;;  %vm14716_vm5 = vcmask 973824  }
 0x4ff   : > { %13363 = vmatprep.mubr.f32.mxu1 %v29621_v57  ;;  %v18732_v56 = vpack.c.bf16 %v13830_v53, %v13827_v47  ;;  %v18735_v21 = vpack.c.bf16 %v13829_v17, %v13826_v35  ;;  %v21611_v61 = vpop.permute.xlu0 %21610  ;;  %v30430_v47 = vld [vmem:[#allocation14_spill] sm:$0xff] }
 0x500   : > { %17727 = vmatmul.mubr.msk.f32.gmra.mrb[28].mxu0 %vm751_vm7, %v28379_v12  ;;  %v30420_v12 = vld [vmem:[#allocation96_spill] sm:$0xff]  ;;  %v21498_v14 = vunpack.i.h.bf16 %v30430_v47  ;;  %v21497_v58 = vunpack.i.l.bf16 %v30430_v47 }
 0x501   : > { %16374 = vmatmul.mubr.msk.f32.gmra.mrb[16].mxu1 %vm751_vm7, %v16366_v19  ;;  %17737 = vmatprep.mubr.msk.f32.mxu0 %vm751_vm7, %v28422_v30  ;;  %v21483_v60 = vunpack.i.h.bf16 %v30420_v12  ;;  %v21482_v0 = vunpack.i.l.bf16 %v30420_v12  ;;  %v18722_v30 = vpack.c.bf16 %v13533_v4, %v13530_v62  ;;  %v21613_v62 = vunpack.i.h.bf16 %v21611_v61 }
 0x502   : > { %13631 = vmatprep.mubr.f32.mxu1 %v29621_v57  ;;  %v21612_v4 = vunpack.i.l.bf16 %v21611_v61  ;;  %v21533_v12 = vunpack.i.h.bf16 %v28324_v20 }
 0x503   : > { %v14123_v51 = vsel %vm14118_vm2, %v21482_v0, %v21483_v60  ;;  %v14124_v39 = vsel %vm14118_vm2, %v21483_v60, %v21593_v32  ;;  %v28665_v46 = vpop.permute.xlu0 %21620  ;;  %v16406_v32 = vld [vmem:[%s29197_s5 + $0x858] sm:$0xff] }
 0x504   : > { %17738 = vmatmul.mubr.msk.f32.vlgmr.msra.gmra.mrb[24].mxu0 %vm751_vm7, %v28443_v36  ;;  %v16383_v36 = vld [vmem:[%s29197_s5 + $0x818] sm:$0xff]  ;;  %v18748_v9 = vpack.c.bf16 %v14123_v51, %v14120_v26  ;;  %v18758_v29 = vpack.c.bf16 %v14124_v39, %v14121_v13  ;;  %v14127_v5 = vsel %vm14118_vm2, %v21498_v14, %v21612_v4 }
 0x505   : > { %16390 = vmatmul.mubr.msk.f32.vlgmr.msra.gmra.mrb[6].mxu1 %vm751_vm7, %v16382_v38  ;;  %18721 = vmatpush3.bf16.msra.mxu0 %v18718_v37  ;;  %v30428_v37 = vld [vmem:[#allocation99_spill] sm:$0xff]  ;;  %v28775_v4 = vld [vmem:[%s29197_s5 + $0x878] sm:$0xff] }
 0x506   : > { %18731 = vmatpush1.bf16.msra.mxu1 %v18730_v49  ;;  %18724 = vmatprep.subr.msk.bf16.mxu0 %vm22552_vm6, %v18722_v30  ;;  %v21488_v59 = vunpack.i.h.bf16 %v30428_v37  ;;  %v21487_v24 = vunpack.i.l.bf16 %v30428_v37  ;;  %v14126_v49 = vsel %vm14118_vm2, %v21497_v58, %v21498_v14  ;;  %v21623_v37 = vunpack.i.h.bf16 %v28665_v46 }
 0x507   : > { %18734 = vmatprep.subr.msk.bf16.mxu1 %vm22552_vm6, %v18732_v56  ;;  %17740 = vmatprep.mubr.msk.f32.mxu0 %vm751_vm7, %v28475_v44  ;;  %v16384_v44 = vld [vmem:[%s29197_s5 + $0x820] sm:$0xff]  ;;  %v30431_v56 = vld [vmem:[#allocation54_spill] sm:$0xff]  ;;  %v28700_v35 = vpop.permute.xlu0 %21630 }
 0x508   : > { %13637 = vmatprep.mubr.f32.mxu1 %v29621_v57  ;;  %17741 = vmatmul.mubr.msk.f32.gmra.mrb[26].mxu0 %vm751_vm7, %v28502_v40  ;;  %v28630_v40 = vpop.permute.xlu1 %21605  ;;  %v14122_v41 = vsel %vm14118_vm2, %v21488_v59, %v21482_v0  ;;  %v14119_v60 = vsel %vm14118_vm2, %v21487_v24, %v21477_v31  ;;  %v21508_v17 = vunpack.i.h.bf16 %v30431_v56  ;;  %v21532_v0 = vunpack.i.l.bf16 %v28324_v20  ;;  %v16408_v24 = vld [vmem:[%s29197_s5 + $0x868] sm:$0xff] }
 0x509   : > { %16391 = vmatmul.mubr.msk.f32.gmra.mrb[8].mxu1 %vm751_vm7, %v16383_v36  ;;  %18727 = vmatpush3.bf16.msk.msra.mxu0 %vm22552_vm6, %v18722_v30  ;;  %v21507_v30 = vunpack.i.l.bf16 %v30431_v56  ;;  %v21622_v59 = vunpack.i.l.bf16 %v28665_v46  ;;  %v21553_v46 = vunpack.i.h.bf16 %v28408_v11  ;;  %v21558_v20 = vunpack.i.h.bf16 %v28428_v43 }
 0x50a   : > { %18737 = vmatpush1.bf16.msk.msra.mxu1 %vm22552_vm6, %v18735_v21  ;;  %18739 = vmatprep.subr.bf16.mxu0 %v18738_v6  ;;  %v18750_v21 = vpack.c.bf16 %v14122_v41, %v14119_v60  ;;  %v14422_v15 = vsel %vm14417_vm11, %v21532_v0, %v21533_v12  ;;  %v28782_v41 = vld [vmem:[%s29197_s5 + $0x880] sm:$0xff] }
 0x50b   : > { %18749 = vmatprep.subr.bf16.mxu1 %v18748_v9  ;;  %17743 = vmatprep.mubr.msk.f32.mxu0 %vm751_vm7, %v28523_v22  ;;  %v16385_v22 = vld [vmem:[%s29197_s5 + $0x828] sm:$0xff]  ;;  %v14125_v9 = vsel %vm14118_vm2, %v21507_v30, %v21497_v58  ;;  %v14429_v58 = vsel %vm14417_vm11, %v21553_v46, %v21623_v37  ;;  %v21538_v30 = vunpack.i.h.bf16 %v28338_v63 }
 0x50c   : > { %13643 = vmatprep.mubr.f32.mxu1 %v29621_v57  ;;  %17744 = vmatmul.mubr.msk.f32.gmra.mrb[28].mxu0 %vm751_vm7, %v16366_v19  ;;  %v28651_v16 = vpop.permute.xlu1 %21615  ;;  %v30429_v19 = vld [vmem:[#allocation13_spill] sm:$0xff] }
 0x50d   : > { %16392 = vmatmul.mubr.msk.f32.gmra.mrb[10].mxu1 %vm751_vm7, %v16384_v44  ;;  %17754 = vmatprep.mubr.msk.f32.mxu0 %vm751_vm7, %v16382_v38  ;;  %v21503_v18 = vunpack.i.h.bf16 %v30429_v19  ;;  %v21502_v53 = vunpack.i.l.bf16 %v30429_v19  ;;  %v21618_v26 = vunpack.i.h.bf16 %v28651_v16  ;;  %v21617_v51 = vunpack.i.l.bf16 %v28651_v16 }
 0x50e   : > { %13649 = vmatprep.mubr.f32.mxu1 %v29621_v57 }
 0x50f   : > { %v14129_v38 = vsel %vm14118_vm2, %v21502_v53, %v21503_v18  ;;  %v14130_v31 = vsel %vm14118_vm2, %v21503_v18, %v21613_v62  ;;  %v14128_v25 = vsel %vm14118_vm2, %v21508_v17, %v21502_v53  ;;  %v14420_v61 = vsel %vm14417_vm11, %v21528_v50, %v21617_v51  ;;  %v28757_v18 = vld [vmem:[%s29197_s5 + $0x870] sm:$0xff] }
 0x510   : > { %17755 = vmatmul.mubr.msk.f32.vlgmr.msra.gmra.mrb[24].mxu0 %vm751_vm7, %v16383_v36  ;;  %v28688_v52 = vpop.permute.xlu1 %21625  ;;  %v21527_v36 = vunpack.i.l.bf16 %v28309_v55  ;;  %v18762_v27 = vpack.c.bf16 %v14130_v31, %v14127_v5  ;;  %v18755_v16 = vpack.c.bf16 %v14128_v25, %v14125_v9  ;;  %v21548_v53 = vunpack.i.h.bf16 %v28387_v28 }
 0x511   : > { %16393 = vmatmul.mubr.msk.f32.gmra.mrb[12].mxu1 %vm751_vm7, %v16385_v22  ;;  %18741 = vmatpush3.bf16.msra.mxu0 %v18738_v6  ;;  %v18752_v6 = vpack.c.bf16 %v14129_v38, %v14126_v49  ;;  %v28793_v49 = vld [vmem:[%s29197_s5 + $0x888] sm:$0xff]  ;;  %v21552_v31 = vunpack.i.l.bf16 %v28408_v11  ;;  %v28823_v11 = vld [vmem:[%s29197_s5 + $0x898] sm:$0xff]  ;;  %v21598_v55 = vunpack.i.h.bf16 %v28591_v45  ;;  %v21557_v9 = vunpack.i.l.bf16 %v28428_v43 }
 0x512   : > { %18744 = vmatprep.subr.msk.bf16.mxu0 %vm22552_vm6, %v18742_v33  ;;  %13655 = vmatprep.mubr.f32.mxu1 %v29621_v57  ;;  %v14419_v48 = vsel %vm14417_vm11, %v21527_v36, %v21528_v50  ;;  %v14426_v14 = vsel %vm14417_vm11, %v21548_v53, %v21622_v59  ;;  %v21547_v50 = vunpack.i.l.bf16 %v28387_v28  ;;  %v14421_v28 = vsel %vm14417_vm11, %v21538_v30, %v21532_v0  ;;  %v28861_v43 = vld [vmem:[%s29197_s5 + $0x8a8] sm:$0xff]  ;;  %v28925_v30 = vld [vmem:[%s29197_s5 + $0x8d0] sm:$0xff] }
 0x513   : > { %17757 = vmatprep.mubr.msk.f32.mxu0 %vm751_vm7, %v16384_v44  ;;  %v18768_v13 = vpack.c.bf16 %v14422_v15, %v14419_v48  ;;  %v18782_v60 = vpack.c.bf16 %v14429_v58, %v14426_v14  ;;  %v14428_v25 = vsel %vm14417_vm11, %v21552_v31, %v21553_v46  ;;  %v21603_v0 = vunpack.i.h.bf16 %v28611_v54 }
 0x514   : > { %17758 = vmatmul.mubr.msk.f32.gmra.mrb[26].mxu0 %vm751_vm7, %v16385_v22  ;;  %v28715_v44 = vpop.permute.xlu1 %21635  ;;  %v14423_v22 = vsel %vm14417_vm11, %v21533_v12, %v21618_v26  ;;  %v21537_v12 = vunpack.i.l.bf16 %v28338_v63  ;;  %v21577_v15 = vunpack.i.l.bf16 %v28506_v34  ;;  %v14424_v37 = vsel %vm14417_vm11, %v21557_v9, %v21547_v50 }
 0x515   : > { %16394 = vmatmul.mubr.msk.f32.gmra.mrb[14].mxu1 %vm751_vm7, %v16386_v1  ;;  %18747 = vmatpush3.bf16.msk.msra.mxu0 %vm22552_vm6, %v18742_v33  ;;  %v21641_v33 = vpop.permute.xlu0 %21640  ;;  %v18778_v39 = vpack.c.bf16 %v14423_v22, %v14420_v61  ;;  %v21608_v9 = vunpack.i.h.bf16 %v28630_v40 }
 0x516   : > { %18759 = vmatprep.subr.bf16.mxu0 %v18758_v29  ;;  %13661 = vmatprep.mubr.f32.mxu1 %v29621_v57  ;;  %v21642_v62 = vunpack.i.l.bf16 %v21641_v33 }
 0x517   : > { %17760 = vmatprep.mubr.msk.f32.mxu0 %vm751_vm7, %v16386_v1  ;;  %v16407_v1 = vld [vmem:[%s29197_s5 + $0x860] sm:$0xff] }
 0x518   : > { %17761 = vmatmul.mubr.msk.f32.gmra.mrb[28].mxu0 %vm751_vm7, %v16387_v42  ;;  %v28752_v19 = vpop.permute.xlu1 %21645 }
 0x519   : > { %16395 = vmatmul.mubr.msk.f32.gmra.mrb[16].mxu1 %vm751_vm7, %v16387_v42  ;;  %17771 = vmatprep.mubr.msk.f32.mxu0 %vm751_vm7, %v16403_v23  ;;  %v28763_v47 = vpop.permute.xlu0 %21650  ;;  %v21583_v42 = vunpack.i.h.bf16 %v28528_v10 }
 0x51a   : > { %13929 = vmatprep.mubr.f32.mxu1 %v29621_v57 }
 0x51c   : > { %17772 = vmatmul.mubr.msk.f32.vlgmr.msra.gmra.mrb[24].mxu0 %vm751_vm7, %v16404_v7  ;;  %v28784_v38 = vpop.permute.xlu1 %21655 }
 0x51d   : > { %16411 = vmatmul.mubr.msk.f32.vlgmr.msra.gmra.mrb[6].mxu1 %vm751_vm7, %v16403_v23  ;;  %18761 = vmatpush3.bf16.msra.mxu0 %v18758_v29  ;;  %v21643_v29 = vunpack.i.h.bf16 %v21641_v33  ;;  %v21578_v23 = vunpack.i.h.bf16 %v28506_v34  ;;  %v21661_v5 = vpop.permute.xlu0 %21660 }
 0x51e   : > { %18751 = vmatpush1.bf16.msra.mxu1 %v18750_v21  ;;  %18764 = vmatprep.subr.msk.bf16.mxu0 %vm22552_vm6, %v18762_v27  ;;  %v21663_v26 = vunpack.i.h.bf16 %v21661_v5  ;;  %v21662_v51 = vunpack.i.l.bf16 %v21661_v5  ;;  %v14418_v21 = vsel %vm14417_vm11, %v21537_v12, %v21527_v36  ;;  %v14425_v36 = vsel %vm14417_vm11, %v21547_v50, %v21548_v53 }
 0x51f   : > { %18754 = vmatprep.subr.msk.bf16.mxu1 %vm22552_vm6, %v18752_v6  ;;  %13935 = vmatprep.mubr.f32.mxu1 %v29621_v57  ;;  %v14719_v56 = vsel %vm14716_vm5, %v21578_v23, %v21642_v62  ;;  %v14722_v17 = vsel %vm14716_vm5, %v21583_v42, %v21643_v29  ;;  %v18770_v33 = vpack.c.bf16 %v14421_v28, %v14418_v21  ;;  %v21653_v12 = vunpack.i.h.bf16 %v28763_v47 }
 0x520   : > { %17774 = vmatprep.mubr.msk.f32.mxu0 %vm751_vm7, %v16405_v8  ;;  %v18798_v63 = vpack.c.bf16 %v14722_v17, %v14719_v56  ;;  %v21666_v6 = vpop.permute.xlu1 %21665  ;;  %v14728_v48 = vsel %vm14716_vm5, %v21603_v0, %v21663_v26  ;;  %v14718_v53 = vsel %vm14716_vm5, %v21577_v15, %v21578_v23  ;;  %v21648_v5 = vunpack.i.h.bf16 %v28752_v19 }
 0x521   : > { %16412 = vmatmul.mubr.msk.f32.gmra.mrb[8].mxu1 %vm751_vm7, %v16404_v7  ;;  %17775 = vmatmul.mubr.msk.f32.gmra.mrb[26].mxu0 %vm751_vm7, %v16406_v32  ;;  %v28811_v7 = vld [vmem:[%s29197_s5 + $0x890] sm:$0xff]  ;;  %v21668_v61 = vunpack.i.h.bf16 %v21666_v6  ;;  %v21667_v22 = vunpack.i.l.bf16 %v21666_v6  ;;  %v21671_v29 = vpop.permute.xlu0 %21670  ;;  %v21588_v28 = vunpack.i.h.bf16 %v28553_v2  ;;  %v21587_v21 = vunpack.i.l.bf16 %v28553_v2  ;;  %v28995_v2 = vld [vmem:[%s29197_s5 + $0x900] sm:$0xff] }
 0x522   : > { %18757 = vmatpush1.bf16.msk.msra.mxu1 %vm22552_vm6, %v18755_v16  ;;  %18767 = vmatpush3.bf16.msk.msra.mxu0 %vm22552_vm6, %v18762_v27  ;;  %v28836_v27 = vld [vmem:[%s29197_s5 + $0x8a0] sm:$0xff]  ;;  %v18772_v16 = vpack.c.bf16 %v14428_v25, %v14425_v36  ;;  %v21673_v56 = vunpack.i.h.bf16 %v21671_v29  ;;  %v21672_v17 = vunpack.i.l.bf16 %v21671_v29  ;;  %v21602_v6 = vunpack.i.l.bf16 %v28611_v54 }
 0x523   : > { %18769 = vmatprep.subr.bf16.mxu1 %v18768_v13  ;;  %18779 = vmatprep.subr.bf16.mxu0 %v18778_v39  ;;  %v14427_v13 = vsel %vm14417_vm11, %v21558_v20, %v21552_v31  ;;  %v21597_v25 = vunpack.i.l.bf16 %v28591_v45  ;;  %v28988_v20 = vld [vmem:[%s29197_s5 + $0x8f8] sm:$0xff]  ;;  %v14717_v36 = vsel %vm14716_vm5, %v21587_v21, %v21577_v15  ;;  %v21627_v15 = vunpack.i.l.bf16 %v28688_v52  ;;  %v29028_v45 = vld [vmem:[%s29197_s5 + $0x910] sm:$0xff] }
 0x524   : > { %13941 = vmatprep.mubr.f32.mxu1 %v29621_v57  ;;  %17777 = vmatprep.mubr.msk.f32.mxu0 %vm751_vm7, %v16407_v1  ;;  %v18775_v62 = vpack.c.bf16 %v14427_v13, %v14424_v37  ;;  %v15024_v31 = vsel %vm15015_vm14, %v21648_v5, %v21672_v17  ;;  %v15027_v50 = vsel %vm15015_vm14, %v21653_v12, %v21673_v56  ;;  %v21652_v13 = vunpack.i.l.bf16 %v28763_v47  ;;  %v15284_v47 = vpop.permute.xlu1 %15283 }
 0x525   : > { %16413 = vmatmul.mubr.msk.f32.gmra.mrb[10].mxu1 %vm751_vm7, %v16405_v8  ;;  %17778 = vmatmul.mubr.msk.f32.gmra.mrb[28].mxu0 %vm751_vm7, %v16408_v24  ;;  %v21582_v8 = vunpack.i.l.bf16 %v28528_v10  ;;  %v18822_v26 = vpack.c.bf16 %v15027_v50, %v15024_v31  ;;  %v14727_v10 = vsel %vm14716_vm5, %v21602_v6, %v21603_v0  ;;  %v14724_v34 = vsel %vm14716_vm5, %v21597_v25, %v21598_v55  ;;  %v29128_v3 = vpop.permute.xlu0 %15288 }
 0x526   : > { %13947 = vmatprep.mubr.f32.mxu1 %v29621_v57  ;;  %17788 = vmatprep.mubr.msk.f32.mxu0 %vm751_vm7, %v28757_v18  ;;  %v14726_v0 = vsel %vm14716_vm5, %v21608_v9, %v21602_v6 }
 0x527   : > { %v14721_v46 = vsel %vm14716_vm5, %v21582_v8, %v21583_v42 }
 0x528   : > { %v18788_v42 = vpack.c.bf16 %v14721_v46, %v14718_v53 }
 0x529   : > { %16414 = vmatmul.mubr.msk.f32.gmra.mrb[12].mxu1 %vm751_vm7, %v16406_v32  ;;  %17789 = vmatmul.mubr.msk.f32.vlgmr.msra.gmra.mrb[24].mxu0 %vm751_vm7, %v28775_v4  ;;  %v14725_v32 = vsel %vm14716_vm5, %v21598_v55, %v21662_v51  ;;  %v28963_v51 = vld [vmem:[%s29197_s5 + $0x8e8] sm:$0xff] }
 0x52a   : > { %18781 = vmatpush3.bf16.msra.mxu0 %v18778_v39  ;;  %13953 = vmatprep.mubr.f32.mxu1 %v29621_v57  ;;  %v21633_v39 = vunpack.i.h.bf16 %v28700_v35  ;;  %v18802_v59 = vpack.c.bf16 %v14728_v48, %v14725_v32  ;;  %v21607_v32 = vunpack.i.l.bf16 %v28630_v40  ;;  %v29023_v40 = vld [vmem:[%s29197_s5 + $0x908] sm:$0xff]  ;;  %v16490_v48 = vld [vmem:[%s29197_s5 + $0x918] sm:$0xff] }
 0x52b   : > { %18784 = vmatprep.subr.msk.bf16.mxu0 %vm22552_vm6, %v18782_v60  ;;  %17791 = vmatprep.mubr.msk.f32.mxu0 %vm751_vm7, %v28782_v41 }
 0x52c   : > { %v15021_v58 = vsel %vm15015_vm14, %v21633_v39, %v21668_v61  ;;  %v14723_v55 = vsel %vm14716_vm5, %v21607_v32, %v21597_v25  ;;  %v30432_v32 = vld [vmem:[#allocation16_spill] sm:$0xff] }
 0x52d   : > { %16415 = vmatmul.mubr.msk.f32.gmra.mrb[14].mxu1 %vm751_vm7, %v16407_v1  ;;  %17792 = vmatmul.mubr.msk.f32.gmra.mrb[26].mxu0 %vm751_vm7, %v28793_v49  ;;  %v21628_v1 = vunpack.i.h.bf16 %v28688_v52 }
 0x52e   : > { %18787 = vmatpush3.bf16.msk.msra.mxu0 %vm22552_vm6, %v18782_v60  ;;  %13959 = vmatprep.mubr.f32.mxu1 %v29621_v57  ;;  %v28911_v60 = vld [vmem:[%s29197_s5 + $0x8c0] sm:$0xff] }
 0x52f   : > { %18799 = vmatprep.subr.bf16.mxu0 %v18798_v63  ;;  %17794 = vmatprep.mubr.msk.f32.mxu0 %vm751_vm7, %v28811_v7  ;;  %v15018_v14 = vsel %vm15015_vm14, %v21628_v1, %v21667_v22  ;;  %v15017_v61 = vsel %vm15015_vm14, %v21627_v15, %v21628_v1 }
 0x530   : > { %v18818_v23 = vpack.c.bf16 %v15021_v58, %v15018_v14 }
 0x531   : > { %16416 = vmatmul.mubr.msk.f32.gmra.mrb[16].mxu1 %vm751_vm7, %v16408_v24  ;;  %17795 = vmatmul.mubr.msk.f32.gmra.mrb[28].mxu0 %vm751_vm7, %v28823_v11  ;;  %v28874_v24 = vld [vmem:[%s29197_s5 + $0x8b0] sm:$0xff] }
 0x532   : > { %14228 = vmatprep.mubr.f32.mxu1 %v29621_v57  ;;  %17805 = vmatprep.mubr.msk.f32.mxu0 %vm751_vm7, %v28836_v27 }
 0x535   : > { %16432 = vmatmul.mubr.msk.f32.vlgmr.msra.gmra.mrb[6].mxu1 %vm751_vm7, %v28757_v18  ;;  %17806 = vmatmul.mubr.msk.f32.vlgmr.msra.gmra.mrb[24].mxu0 %vm751_vm7, %v28861_v43  ;;  %v28884_v18 = vld [vmem:[%s29197_s5 + $0x8b8] sm:$0xff] }
 0x536   : > { %18771 = vmatpush1.bf16.msra.mxu1 %v18770_v33  ;;  %18801 = vmatpush3.bf16.msra.mxu0 %v18798_v63  ;;  %v28953_v63 = vld [vmem:[%s29197_s5 + $0x8e0] sm:$0xff] }
 0x537   : > { %18774 = vmatprep.subr.msk.bf16.mxu1 %vm22552_vm6, %v18772_v16  ;;  %18804 = vmatprep.subr.msk.bf16.mxu0 %vm22552_vm6, %v18802_v59  ;;  %v16491_v33 = vld [vmem:[%s29197_s5 + $0x920] sm:$0xff]  ;;  %v21637_v16 = vunpack.i.l.bf16 %v28715_v44 }
 0x538   : > { %14234 = vmatprep.mubr.f32.mxu1 %v29621_v57  ;;  %17808 = vmatprep.mubr.msk.f32.mxu0 %vm751_vm7, %v28874_v24 }
 0x539   : > { %16433 = vmatmul.mubr.msk.f32.gmra.mrb[8].mxu1 %vm751_vm7, %v28775_v4  ;;  %17809 = vmatmul.mubr.msk.f32.gmra.mrb[26].mxu0 %vm751_vm7, %v28884_v18  ;;  %v28920_v4 = vld [vmem:[%s29197_s5 + $0x8c8] sm:$0xff]  ;;  %v15016_v37 = vsel %vm15015_vm14, %v21637_v16, %v21627_v15 }
 0x53a   : > { %18777 = vmatpush1.bf16.msk.msra.mxu1 %vm22552_vm6, %v18775_v62  ;;  %18807 = vmatpush3.bf16.msk.msra.mxu0 %vm22552_vm6, %v18802_v59  ;;  %v21658_v59 = vunpack.i.h.bf16 %v28784_v38 }
 0x53b   : > { %18789 = vmatprep.subr.bf16.mxu1 %v18788_v42  ;;  %18819 = vmatprep.subr.bf16.mxu0 %v18818_v23  ;;  %v29132_v42 = vpop.permute.xlu0 %15298 }
 0x53c   : > { %14240 = vmatprep.mubr.f32.mxu1 %v29621_v57  ;;  %17811 = vmatprep.mubr.msk.f32.mxu0 %vm751_vm7, %v28911_v60  ;;  %v15025_v14 = vsel %vm15015_vm14, %v21658_v59, %v21652_v13 }
 0x53d   : > { %16434 = vmatmul.mubr.msk.f32.gmra.mrb[10].mxu1 %vm751_vm7, %v28782_v41  ;;  %17812 = vmatmul.mubr.msk.f32.gmra.mrb[28].mxu0 %vm751_vm7, %v28920_v4  ;;  %v28948_v41 = vld [vmem:[%s29197_s5 + $0x8d8] sm:$0xff] }
 0x53e   : > { %14246 = vmatprep.mubr.f32.mxu1 %v29621_v57  ;;  %17822 = vmatprep.mubr.msk.f32.mxu0 %vm751_vm7, %v28925_v30 }
 0x541   : > { %16435 = vmatmul.mubr.msk.f32.gmra.mrb[12].mxu1 %vm751_vm7, %v28793_v49  ;;  %17823 = vmatmul.mubr.msk.f32.vlgmr.msra.gmra.mrb[24].mxu0 %vm751_vm7, %v28948_v41  ;;  %v28972_v49 = vld [vmem:[%s29197_s5 + $0x8f0] sm:$0xff] }
 0x542   : > { %18821 = vmatpush3.bf16.msra.mxu0 %v18818_v23  ;;  %14252 = vmatprep.mubr.f32.mxu1 %v29621_v57 }
 0x543   : > { %18824 = vmatprep.subr.msk.bf16.mxu0 %vm22552_vm6, %v18822_v26  ;;  %17825 = vmatprep.mubr.msk.f32.mxu0 %vm751_vm7, %v28953_v63 }
 0x545   : > { %16436 = vmatmul.mubr.msk.f32.gmra.mrb[14].mxu1 %vm751_vm7, %v28811_v7  ;;  %17826 = vmatmul.mubr.msk.f32.gmra.mrb[26].mxu0 %vm751_vm7, %v28963_v51  ;;  %v14720_v7 = vsel %vm14716_vm5, %v21588_v28, %v21582_v8  ;;  %v21632_v8 = vunpack.i.l.bf16 %v28700_v35  ;;  %v16492_v35 = vld [vmem:[%s29197_s5 + $0x928] sm:$0xff] }
 0x546   : > { %18827 = vmatpush3.bf16.msk.msra.mxu0 %vm22552_vm6, %v18822_v26  ;;  %14258 = vmatprep.mubr.f32.mxu1 %v29621_v57  ;;  %v18790_v54 = vpack.c.bf16 %v14720_v7, %v14717_v36 }
 0x547   : > { %17828 = vmatprep.mubr.msk.f32.mxu0 %vm751_vm7, %v28972_v49  ;;  %v15020_v22 = vsel %vm15015_vm14, %v21632_v8, %v21633_v39  ;;  %v21647_v39 = vunpack.i.l.bf16 %v28752_v19 }
 0x548   : > { %v18808_v52 = vpack.c.bf16 %v15020_v22, %v15017_v61  ;;  %v30435_v22 = vld [vmem:[#allocation80_spill] sm:$0xff] }
 0x549   : > { %16437 = vmatmul.mubr.msk.f32.gmra.mrb[16].mxu1 %vm751_vm7, %v28823_v11  ;;  %17829 = vmatmul.mubr.msk.f32.gmra.mrb[28].mxu0 %vm751_vm7, %v28988_v20  ;;  %v18792_v11 = vpack.c.bf16 %v14727_v10, %v14724_v34  ;;  %v15023_v46 = vsel %vm15015_vm14, %v21647_v39, %v21648_v5 }
 0x54a   : > { %14527 = vmatprep.mubr.f32.mxu1 %v29621_v57  ;;  %17839 = vmatprep.mubr.msk.f32.mxu0 %vm751_vm7, %v28995_v2 }
 0x54d   : > { %16453 = vmatmul.mubr.msk.f32.vlgmr.msra.gmra.mrb[6].mxu1 %vm751_vm7, %v28836_v27  ;;  %17840 = vmatmul.mubr.msk.f32.vlgmr.msra.gmra.mrb[24].mxu0 %vm751_vm7, %v29023_v40  ;;  %v18795_v27 = vpack.c.bf16 %v14726_v0, %v14723_v55  ;;  %v30434_v0 = vld [vmem:[#allocation81_spill] sm:$0xff] }
 0x54e   : > { %18791 = vmatpush1.bf16.msra.mxu1 %v18790_v54  ;;  %14533 = vmatprep.mubr.f32.mxu1 %v29621_v57 }
 0x54f   : > { %18794 = vmatprep.subr.msk.bf16.mxu1 %vm22552_vm6, %v18792_v11  ;;  %17842 = vmatprep.mubr.msk.f32.mxu0 %vm751_vm7, %v29028_v45 }
 0x551   : > { %16454 = vmatmul.mubr.msk.f32.gmra.mrb[8].mxu1 %vm751_vm7, %v28861_v43  ;;  %17843 = vmatmul.mubr.msk.f32.gmra.mrb[26].mxu0 %vm751_vm7, %v16490_v48  ;;  %v21638_v43 = vunpack.i.h.bf16 %v28715_v44  ;;  %v15026_v44 = vsel %vm15015_vm14, %v21652_v13, %v21653_v12 }
 0x552   : > { %18797 = vmatpush1.bf16.msk.msra.mxu1 %vm22552_vm6, %v18795_v27  ;;  %14539 = vmatprep.mubr.f32.mxu1 %v29621_v57  ;;  %v18812_v53 = vpack.c.bf16 %v15026_v44, %v15023_v46 }
 0x553   : > { %18809 = vmatprep.subr.bf16.mxu1 %v18808_v52  ;;  %17845 = vmatprep.mubr.msk.f32.mxu0 %vm751_vm7, %v16491_v33  ;;  %v15019_v1 = vsel %vm15015_vm14, %v21638_v43, %v21632_v8  ;;  %v30433_v8 = vld [vmem:[#allocation47_spill] sm:$0xff] }
 0x555   : > { %16455 = vmatmul.mubr.msk.f32.gmra.mrb[10].mxu1 %vm751_vm7, %v28874_v24  ;;  %17846 = vmatmul.mubr.msk.f32.gmra.mrb[28].mxu0 %vm751_vm7, %v16492_v35  ;;  %v21657_v24 = vunpack.i.l.bf16 %v28784_v38 }
 0x556   : > { %14545 = vmatprep.mubr.f32.mxu1 %v29621_v57 }
 0x557   : > { %v15022_v58 = vsel %vm15015_vm14, %v21657_v24, %v21647_v39  ;;  %v30436_v39 = vld [vmem:[#allocation83_spill] sm:$0xff]  ;;  %v30437_v24 = vld [vmem:[#allocation65_spill] sm:$0xff] }
 0x558   : > { %v18815_v19 = vpack.c.bf16 %v15025_v14, %v15022_v58 }
 0x559   : > { %16456 = vmatmul.mubr.msk.f32.gmra.mrb[12].mxu1 %vm751_vm7, %v28884_v18  ;;  %v18810_v18 = vpack.c.bf16 %v15019_v1, %v15016_v37 }
 0x55a   : > { %14551 = vmatprep.mubr.f32.mxu1 %v29621_v57 }
 0x55d   : > { %16457 = vmatmul.mubr.msk.f32.gmra.mrb[14].mxu1 %vm751_vm7, %v28911_v60 }
 0x55e   : > { %14557 = vmatprep.mubr.f32.mxu1 %v29621_v57 }
 0x561   : > { %16458 = vmatmul.mubr.msk.f32.gmra.mrb[16].mxu1 %vm751_vm7, %v28920_v4 }
 0x562   : > { %14826 = vmatprep.mubr.f32.mxu1 %v29621_v57 }
 0x565   : > { %16474 = vmatmul.mubr.msk.f32.vlgmr.msra.gmra.mrb[6].mxu1 %vm751_vm7, %v28925_v30 }
 0x566   : > { %18811 = vmatpush1.bf16.msra.mxu1 %v18810_v18  ;;  %14832 = vmatprep.mubr.f32.mxu1 %v29621_v57 }
 0x567   : > { %18814 = vmatprep.subr.msk.bf16.mxu1 %vm22552_vm6, %v18812_v53 }
 0x569   : > { %16475 = vmatmul.mubr.msk.f32.gmra.mrb[8].mxu1 %vm751_vm7, %v28948_v41  ;;  %v29145_v41 = vpop.permute.xlu0 %15308 }
 0x56a   : > { %18817 = vmatpush1.bf16.msk.msra.mxu1 %vm22552_vm6, %v18815_v19  ;;  %14838 = vmatprep.mubr.f32.mxu1 %v29621_v57 }
 0x56d   : > { %16476 = vmatmul.mubr.msk.f32.gmra.mrb[10].mxu1 %vm751_vm7, %v28953_v63 }
 0x56e   : > { %14844 = vmatprep.mubr.f32.mxu1 %v29621_v57 }
 0x571   : > { %16477 = vmatmul.mubr.msk.f32.gmra.mrb[12].mxu1 %vm751_vm7, %v28963_v51 }
 0x572   : > { %14850 = vmatprep.mubr.f32.mxu1 %v29621_v57 }
 0x575   : > { %16478 = vmatmul.mubr.msk.f32.gmra.mrb[14].mxu1 %vm751_vm7, %v28972_v49 }
 0x576   : > { %14856 = vmatprep.mubr.f32.mxu1 %v29621_v57 }
 0x579   : > { %16479 = vmatmul.mubr.msk.f32.gmra.mrb[16].mxu1 %vm751_vm7, %v28988_v20 }
 0x57a   : > { %15125 = vmatprep.mubr.f32.mxu1 %v29621_v57 }
 0x57d   : > { %16495 = vmatmul.mubr.msk.f32.vlgmr.msra.gmra.mrb[6].mxu1 %vm751_vm7, %v28995_v2 }
 0x57e   : > { %15131 = vmatprep.mubr.f32.mxu1 %v29621_v57 }
 0x581   : > { %16496 = vmatmul.mubr.msk.f32.gmra.mrb[8].mxu1 %vm751_vm7, %v29023_v40 }
 0x582   : > { %15137 = vmatprep.mubr.f32.mxu1 %v29621_v57 }
 0x585   : > { %16497 = vmatmul.mubr.msk.f32.gmra.mrb[10].mxu1 %vm751_vm7, %v29028_v45 }
 0x586   : > { %15143 = vmatprep.mubr.f32.mxu1 %v29621_v57 }
 0x589   : > { %16498 = vmatmul.mubr.msk.f32.gmra.mrb[12].mxu1 %vm751_vm7, %v16490_v48 }
 0x58a   : > { %15149 = vmatprep.mubr.f32.mxu1 %v29621_v57 }
 0x58d   : > { %16499 = vmatmul.mubr.msk.f32.gmra.mrb[14].mxu1 %vm751_vm7, %v16491_v33 }
 0x58e   : > { %15155 = vmatprep.mubr.f32.mxu1 %v29621_v57  ;;  %v29139_v57 = vpop.permute.xlu1 %15293 }
 0x591   : > { %16500 = vmatmul.mubr.msk.f32.gmra.mrb[16].mxu1 %vm751_vm7, %v16492_v35 }
 0x592   : > { %v29147_v51 = vpop.permute.xlu1 %15303 }
 0x620   : > { %v17841_v38 = vpop.f32.mrb[24].mxu0 }
 0x621   : > { %v15316_v29 = vadd.f32 %v17841_v38, %v29128_v3  ;;  %v15228_v62 = vpop.f32.mrb[25].mxu0 }
 0x622   : > { %v15313_v23 = vadd.f32 %v15284_v47, %v15228_v62  ;;  %v30439_v62 = vld [vmem:[#allocation51_spill] sm:$0xff] }
 0x623   : > { %vm15334_vm6 = vcmp.ge.f32.partialorder %v15316_v29, 0.0  ;;  %v15352_v60 = vmul.f32 0.01, %v15316_v29 }
 0x624   : > { %vm15331_vm7 = vcmp.ge.f32.partialorder %v15313_v23, 0.0  ;;  %v15349_v56 = vmul.f32 0.01, %v15313_v23  ;;  %v17844_v17 = vpop.f32.mrb[26].mxu0 }
 0x625   : > { %v15370_v4 = vsel %vm15334_vm6, %v15316_v29, %v15352_v60  ;;  %v15322_v30 = vadd.f32 %v17844_v17, %v29132_v42  ;;  %v15238_v12 = vpop.f32.mrb[27].mxu0 }
 0x626   : > { %15388 = vst [vmem:[%s29137_s11 + $0x28] sm:$0xff] %v15370_v4  ;;  %v15367_v5 = vsel %vm15331_vm7, %v15313_v23, %v15349_v56  ;;  %v15319_v31 = vadd.f32 %v29139_v57, %v15238_v12  ;;  %v30440_v12 = vld [vmem:[#allocation40_spill] sm:$0xff] }
 0x627   : > { %15385 = vst [vmem:[%s29137_s11 + $0x10] sm:$0xff] %v15367_v5  ;;  %vm15340_vm0 = vcmp.ge.f32.partialorder %v15322_v30, 0.0  ;;  %v15358_v50 = vmul.f32 0.01, %v15322_v30 }
 0x628   : > { %vm15337_vm15 = vcmp.ge.f32.partialorder %v15319_v31, 0.0  ;;  %v15355_v63 = vmul.f32 0.01, %v15319_v31  ;;  %v17847_v26 = vpop.f32.mrb[28].mxu0 }
 0x629   : > { %v15376_v49 = vsel %vm15340_vm0, %v15322_v30, %v15358_v50  ;;  %v15328_v28 = vadd.f32 %v17847_v26, %v29145_v41  ;;  %v15248_v21 = vpop.f32.mrb[29].mxu0 }
 0x62a   : > { %15394 = vst [vmem:[%s29137_s11 + $0x58] sm:$0xff] %v15376_v49  ;;  %v15373_v6 = vsel %vm15337_vm15, %v15319_v31, %v15355_v63  ;;  %v15325_v25 = vadd.f32 %v29147_v51, %v15248_v21  ;;  %v30441_v63 = vld [vmem:[#allocation10_spill] sm:$0xff] }
 0x62b   : > { %15391 = vst [vmem:[%s29137_s11 + $0x40] sm:$0xff] %v15373_v6  ;;  %vm15346_vm13 = vcmp.ge.f32.partialorder %v15328_v28, 0.0  ;;  %v15364_v20 = vmul.f32 0.01, %v15328_v28 }
 0x62c   : > { %vm15343_vm1 = vcmp.ge.f32.partialorder %v15325_v25, 0.0  ;;  %v15361_v2 = vmul.f32 0.01, %v15325_v25 }
 0x62d   : > { %v15382_v7 = vsel %vm15346_vm13, %v15328_v28, %v15364_v20  ;;  %v30442_v20 = vld [vmem:[#allocation12_spill] sm:$0xff] }
 0x62e   : > { %15400 = vst [vmem:[%s29137_s11 + $0x88] sm:$0xff] %v15382_v7  ;;  %v15379_v36 = vsel %vm15343_vm1, %v15325_v25, %v15361_v2 }
 0x62f   : > { %15397 = vst [vmem:[%s29137_s11 + $0x70] sm:$0xff] %v15379_v36 }
 0x650   : > { %v15127_v9 = vpop.f32.mrb[6].mxu1 }
 0x651   : > { %v18828_v10 = vadd.f32 %v15127_v9, %v30432_v32  ;;  %v15129_v34 = vpop.f32.mrb[7].mxu1  ;;  %v30443_v9 = vld [vmem:[#allocation21_spill] sm:$0xff] }
 0x652   : > { %v18829_v15 = vadd.f32 %v15129_v34, %v30433_v8 }
 0x653   : > { %v15311_v40 = vadd.f32 %v18828_v10, %v15284_v47 }
 0x654   : > { %v15312_v54 = vadd.f32 %v18829_v15, %v15284_v47  ;;  %v15133_v45 = vpop.f32.mrb[8].mxu1 }
 0x655   : > { %vm15329_vm2 = vcmp.ge.f32.partialorder %v15311_v40, 0.0  ;;  %v15347_v11 = vmul.f32 0.01, %v15311_v40  ;;  %v18830_v55 = vadd.f32 %v15133_v45, %v30434_v0  ;;  %v15135_v48 = vpop.f32.mrb[9].mxu1 }
 0x656   : > { %vm15330_vm4 = vcmp.ge.f32.partialorder %v15312_v54, 0.0  ;;  %v15348_v61 = vmul.f32 0.01, %v15312_v54  ;;  %v18831_v27 = vadd.f32 %v15135_v48, %v30435_v22 }
 0x657   : > { %v15365_v33 = vsel %vm15329_vm2, %v15311_v40, %v15347_v11  ;;  %v15314_v52 = vadd.f32 %v18830_v55, %v29128_v3 }
 0x658   : > { %15383 = vst [vmem:[%s29137_s11] sm:$0xff] %v15365_v33  ;;  %v15366_v35 = vsel %vm15330_vm4, %v15312_v54, %v15348_v61  ;;  %v15315_v43 = vadd.f32 %v18831_v27, %v29128_v3  ;;  %v15139_v16 = vpop.f32.mrb[10].mxu1  ;;  %v30438_v3 = vld [vmem:[#allocation84_spill] sm:$0xff] }
 0x659   : > { %15384 = vst [vmem:[%s29137_s11 + $0x8] sm:$0xff] %v15366_v35  ;;  %vm15332_vm8 = vcmp.ge.f32.partialorder %v15314_v52, 0.0  ;;  %v15350_v13 = vmul.f32 0.01, %v15314_v52  ;;  %v18832_v1 = vadd.f32 %v15139_v16, %v30436_v39  ;;  %v15141_v37 = vpop.f32.mrb[11].mxu1 }
 0x65a   : > { %vm15333_vm10 = vcmp.ge.f32.partialorder %v15315_v43, 0.0  ;;  %v15351_v59 = vmul.f32 0.01, %v15315_v43  ;;  %v18833_v44 = vadd.f32 %v15141_v37, %v30437_v24 }
 0x65b   : > { %v15368_v46 = vsel %vm15332_vm8, %v15314_v52, %v15350_v13  ;;  %v15317_v18 = vadd.f32 %v18832_v1, %v29139_v57 }
 0x65c   : > { %15386 = vst [vmem:[%s29137_s11 + $0x18] sm:$0xff] %v15368_v46  ;;  %v15369_v53 = vsel %vm15333_vm10, %v15315_v43, %v15351_v59  ;;  %v15318_v14 = vadd.f32 %v18833_v44, %v29139_v57  ;;  %v15145_v58 = vpop.f32.mrb[12].mxu1 }
 0x65d   : > { %15387 = vst [vmem:[%s29137_s11 + $0x20] sm:$0xff] %v15369_v53  ;;  %vm15335_vm12 = vcmp.ge.f32.partialorder %v15317_v18, 0.0  ;;  %v15353_v19 = vmul.f32 0.01, %v15317_v18  ;;  %v18834_v47 = vadd.f32 %v15145_v58, %v30438_v3  ;;  %v15147_v38 = vpop.f32.mrb[13].mxu1 }
 0x65e   : > { %vm15336_vm3 = vcmp.ge.f32.partialorder %v15318_v14, 0.0  ;;  %v15354_v29 = vmul.f32 0.01, %v15318_v14  ;;  %v18835_v23 = vadd.f32 %v15147_v38, %v30439_v62 }
 0x65f   : > { %v15371_v60 = vsel %vm15335_vm12, %v15317_v18, %v15353_v19  ;;  %v15320_v56 = vadd.f32 %v18834_v47, %v29132_v42 }
 0x660   : > { %15389 = vst [vmem:[%s29137_s11 + $0x30] sm:$0xff] %v15371_v60  ;;  %v15372_v17 = vsel %vm15336_vm3, %v15318_v14, %v15354_v29  ;;  %v15321_v57 = vadd.f32 %v18835_v23, %v29132_v42  ;;  %v15151_v4 = vpop.f32.mrb[14].mxu1 }
 0x661   : > { %15390 = vst [vmem:[%s29137_s11 + $0x38] sm:$0xff] %v15372_v17  ;;  %vm15338_vm9 = vcmp.ge.f32.partialorder %v15320_v56, 0.0  ;;  %v15356_v30 = vmul.f32 0.01, %v15320_v56  ;;  %v18836_v5 = vadd.f32 %v15151_v4, %v30440_v12  ;;  %v15153_v31 = vpop.f32.mrb[15].mxu1 }
 0x662   : > { %vm15339_vm11 = vcmp.ge.f32.partialorder %v15321_v57, 0.0  ;;  %v15357_v50 = vmul.f32 0.01, %v15321_v57  ;;  %v18837_v26 = vadd.f32 %v15153_v31, %v30441_v63 }
 0x663   : > { %v15374_v49 = vsel %vm15338_vm9, %v15320_v56, %v15356_v30  ;;  %v15323_v28 = vadd.f32 %v18836_v5, %v29147_v51 }
 0x664   : > { %15392 = vst [vmem:[%s29137_s11 + $0x48] sm:$0xff] %v15374_v49  ;;  %v15375_v21 = vsel %vm15339_vm11, %v15321_v57, %v15357_v50  ;;  %v15324_v42 = vadd.f32 %v18837_v26, %v29147_v51  ;;  %v15157_v6 = vpop.f32.mrb[16].mxu1 }
 0x665   : > { %15393 = vst [vmem:[%s29137_s11 + $0x50] sm:$0xff] %v15375_v21  ;;  %vm15341_vm5 = vcmp.ge.f32.partialorder %v15323_v28, 0.0  ;;  %v15359_v25 = vmul.f32 0.01, %v15323_v28  ;;  %v18838_v2 = vadd.f32 %v15157_v6, %v30442_v20  ;;  %v15159_v7 = vpop.f32.mrb[17].mxu1 }
 0x666   : > { %vm15342_vm14 = vcmp.ge.f32.partialorder %v15324_v42, 0.0  ;;  %v15360_v36 = vmul.f32 0.01, %v15324_v42  ;;  %v18839_v32 = vadd.f32 %v15159_v7, %v30443_v9 }
 0x667   : > { %v15377_v10 = vsel %vm15341_vm5, %v15323_v28, %v15359_v25  ;;  %v15326_v34 = vadd.f32 %v18838_v2, %v29145_v41 }
 0x668   : > { %15395 = vst [vmem:[%s29137_s11 + $0x60] sm:$0xff] %v15377_v10  ;;  %v15378_v8 = vsel %vm15342_vm14, %v15324_v42, %v15360_v36  ;;  %v15327_v51 = vadd.f32 %v18839_v32, %v29145_v41 }
 0x669   : > { %15396 = vst [vmem:[%s29137_s11 + $0x68] sm:$0xff] %v15378_v8  ;;  %vm15344_vm6 = vcmp.ge.f32.partialorder %v15326_v34, 0.0  ;;  %v15362_v15 = vmul.f32 0.01, %v15326_v34 }
 0x66a   : > { %vm15345_vm7 = vcmp.ge.f32.partialorder %v15327_v51, 0.0  ;;  %v15363_v40 = vmul.f32 0.01, %v15327_v51 }
 0x66b   : > { %v15380_v54 = vsel %vm15344_vm6, %v15326_v34, %v15362_v15 }
 0x66c   : > { %15398 = vst [vmem:[%s29137_s11 + $0x78] sm:$0xff] %v15380_v54  ;;  %v15381_v45 = vsel %vm15345_vm7, %v15327_v51, %v15363_v40 }
 0x66d   : > { %15399 = vst [vmem:[%s29137_s11 + $0x80] sm:$0xff] %v15381_v45 }
 0x66e PF: > { %s17_s24 = sadd.s32 1, %s21842_s24  }
 0x66f   : > { %p14_p4 = scmp.ge.s32.totalorder %s17_s24, 4  }
 0x671   :  { %16 = sbr.rel (!%p14_p4) target bundleno = 1 (0x1), region = 129 }

</bundles_post_ra>
